<compile_context>
chip_gen: v6e
topology: v6e:2x2x1
jax: 0.10.0
libtpu: 0.0.40
codegen_flags: <defaults>
</compile_context>

<pallas_src>
from functools import partial

import jax
import jax.numpy as jnp
from jax.experimental import pallas as pl
from jax.experimental.pallas import tpu as pltpu


KH = KW = 3      # conv3x3
KPAD = 128       # per-tap K (input-channel slot) = one full lane tile
NPAD = 128       # conv output N padded to one full lane tile (zero columns)


# ---------------------------------------------------------------------------
# Fused kernel factory: gate + 3 residual blocks = 7 conv/BN layers, one call.
# ---------------------------------------------------------------------------
def _make_fused_kernel(BS, H, W, cin, n_blocks):
    M = BS * H * W                      # batch folded into matmul M (=128 here)

    def conv(buf, w_ref, s_ref, layer, residual=None):
        # 3x3 conv as nine accumulating per-tap MXU matmuls (no im2col slab).
        acc = jnp.zeros((M, NPAD), jnp.float32)
        for dy in range(KH):
            for dx in range(KW):
                # TODO(synk): for dx>0 this slice+reshape may still cost a
                # sublane relayout; if the Mosaic dump shows copies, move to a
                # flat-padded (BS, (H+2)*(W+2), C) activation layout.
                tap = buf[:, dy:dy + H, dx:dx + W, :].reshape(M, KPAD)
                w_tap = w_ref[layer, dy * KW + dx, :, :]        # (KPAD, NPAD)
                acc = acc + jnp.dot(tap.astype(w_tap.dtype), w_tap,
                                    preferred_element_type=jnp.float32)
        y = acc + s_ref[layer:layer + 1, :]                     # folded-BN shift
        if residual is not None:
            y = y + residual
        return jnp.maximum(y, 0.0)                              # (M, NPAD) f32

    def store_interior(buf, y):
        # Full 128-lane (unmasked) stores; the 1-px halo is never touched, and
        # lanes [cout:128] of y are exactly zero (zero weight/shift columns).
        buf[:, 1:1 + H, 1:1 + W, :] = y.reshape(BS, H, W, NPAD)

    def kernel(x_ref, w_ref, s_ref, out_ref, buf):
        # Zero the padded buffer ONCE per call (single grid step): only the halo
        # ring and the unused channel lanes need to stay zero; interiors are
        # always overwritten with full-lane stores.
        buf[...] = jnp.zeros_like(buf)

        # Gate input -> interior, channels [0, cin).  (Single tiny masked store.)
        buf[:, 1:1 + H, 1:1 + W, :cin] = x_ref[...]

        # Gate: conv3x3 + BN + ReLU.
        y = conv(buf, w_ref, s_ref, 0)
        store_interior(buf, y)

        # ResNetBasicBlocks (deepths=[3]); the residual stays live in registers.
        for i in range(n_blocks):
            res = y
            h = conv(buf, w_ref, s_ref, 1 + 2 * i)
            store_interior(buf, h)
            y = conv(buf, w_ref, s_ref, 2 + 2 * i, residual=res)
            if i + 1 < n_blocks:
                store_interior(buf, y)

        out_ref[...] = y     # lane-dense (M, 128) writeback; wrapper slices :C

    return kernel


def _fused_resnet_call(x_nhwc, w_packed, shifts, *, H, W, cin, n_blocks):
    BS = x_nhwc.shape[0]
    M = BS * H * W
    n_layers = 1 + 2 * n_blocks
    kernel = _make_fused_kernel(BS, H, W, cin, n_blocks)
    return pl.pallas_call(
        kernel,
        out_shape=jax.ShapeDtypeStruct((M, NPAD), jnp.float32),
        grid=(1,),
        in_specs=[
            pl.BlockSpec((BS, H, W, cin), lambda i: (0, 0, 0, 0)),
            pl.BlockSpec((n_layers, KH * KW, KPAD, NPAD),
                         lambda i: (0, 0, 0, 0)),
            pl.BlockSpec((n_layers, NPAD), lambda i: (0, 0)),
        ],
        out_specs=pl.BlockSpec((M, NPAD), lambda i: (0, 0)),
        scratch_shapes=[
            pltpu.VMEM((BS, H + 2, W + 2, KPAD), jnp.float32),  # padded act buf
        ],
        compiler_params=pltpu.CompilerParams(
            dimension_semantics=("arbitrary",),
            # Working set is ~2-9 MB; explicit budget so scaled-up configs fail
            # loudly instead of silently OOM-ing v7x's 64 MiB VMEM.
            vmem_limit_bytes=32 * 1024 * 1024,
        ),
    )(x_nhwc, w_packed, shifts)


# ---------------------------------------------------------------------------
# Host-side parameter packing (run ONCE at setup, outside jit):
# fold BN scale into conv weights, pad K (in-ch) and N (out-ch) to full
# 128-lane tiles, stack all 7 layers, cast to the matmul operand dtype.
# ---------------------------------------------------------------------------
def pack_params(params, matmul_dtype=jnp.bfloat16):
    layers = [params["gate"]] + [l for blk in params["blocks"] for l in blk]
    w_list, s_list = [], []
    for layer in layers:
        w = layer["w"] * layer["scale"].reshape(1, 1, 1, -1)   # (3,3,cin,cout)
        kh, kw, cin, cout = w.shape
        wp = jnp.zeros((kh * kw, KPAD, NPAD), jnp.float32)
        wp = wp.at[:, :cin, :cout].set(w.reshape(kh * kw, cin, cout))
        w_list.append(wp)
        s_list.append(jnp.zeros((NPAD,), jnp.float32).at[:cout].set(layer["shift"]))
    w_packed = jnp.stack(w_list).astype(matmul_dtype)          # (L, 9, 128, 128)
    shifts = jnp.stack(s_list)                                  # (L, 128) f32
    return w_packed, shifts


# ---------------------------------------------------------------------------
# Full ConvResNet forward (mirrors the PyTorch module's control flow).
# ---------------------------------------------------------------------------
def conv_resnet_forward(x, w_packed, shifts, *, in_channels, filter_size,
                        output_shape):
    BS = x.shape[0]
    H, W = output_shape
    n_blocks = (w_packed.shape[0] - 1) // 2
    # torch.reshape(x, (BS, in_channels) + output_shape) -> NCHW -> NHWC
    x = x.reshape((BS, in_channels) + tuple(output_shape))
    x_nhwc = jnp.transpose(x, (0, 2, 3, 1)).astype(jnp.float32)

    out2d = _fused_resnet_call(x_nhwc, w_packed, shifts, H=H, W=W,
                               cin=in_channels, n_blocks=n_blocks)  # (BS*H*W,128)
    out = out2d[:, :filter_size].reshape(BS, H, W, filter_size)
    out = jnp.transpose(out, (0, 3, 1, 2))                          # NHWC -> NCHW
    return out.reshape((BS, filter_size) + tuple(output_shape))


# ---------------------------------------------------------------------------
# Pure-JAX reference (same folded-BN semantics; matmul_dtype selects whether
# the conv operands are f32 or bf16-rounded to match the kernel's MXU path).
# ---------------------------------------------------------------------------
def _conv_bn_ref(x, w, scale, shift, residual=None, relu=True,
                 matmul_dtype=jnp.float32):
    wf = (w * scale.reshape(1, 1, 1, -1)).astype(matmul_dtype)
    y = jax.lax.conv_general_dilated(
        x.astype(matmul_dtype), wf, window_strides=(1, 1), padding="SAME",
        dimension_numbers=("NHWC", "HWIO", "NHWC"),
        precision=jax.lax.Precision.HIGHEST,
        preferred_element_type=jnp.float32)
    y = y + shift.reshape(1, 1, 1, -1)
    if residual is not None:
        y = y + residual
    if relu:
        y = jnp.maximum(y, 0.0)
    return y


def conv_resnet_forward_ref(x, params, in_channels, filter_size, output_shape,
                            matmul_dtype=jnp.float32):
    BS = x.shape[0]
    x = x.reshape((BS, in_channels) + tuple(output_shape))
    x = jnp.transpose(x, (0, 2, 3, 1)).astype(jnp.float32)
    g = params["gate"]
    x = _conv_bn_ref(x, g["w"], g["scale"], g["shift"], relu=True,
                     matmul_dtype=matmul_dtype)
    for blk in params["blocks"]:
        res = x
        h = _conv_bn_ref(x, blk[0]["w"], blk[0]["scale"], blk[0]["shift"],
                         relu=True, matmul_dtype=matmul_dtype)
        x = _conv_bn_ref(h, blk[1]["w"], blk[1]["scale"], blk[1]["shift"],
                         residual=res, relu=True, matmul_dtype=matmul_dtype)
    x = jnp.transpose(x, (0, 3, 1, 2))
    return x.reshape((BS, filter_size) + tuple(output_shape))


# ---------------------------------------------------------------------------
# Deterministic parameter init (shapes from the module's __init__).
# ---------------------------------------------------------------------------
def init_params(key, in_channels, C, n_blocks=3, eps=1e-5):
    def conv_bn_params(k, cin, cout):
        kw_, kg, kb, km, kv = jax.random.split(k, 5)
        w = jax.random.normal(kw_, (3, 3, cin, cout), jnp.float32) * 0.1
        gamma = 1.0 + 0.1 * jax.random.normal(kg, (cout,), jnp.float32)
        beta = 0.1 * jax.random.normal(kb, (cout,), jnp.float32)
        mean = 0.1 * jax.random.normal(km, (cout,), jnp.float32)
        var = 1.0 + 0.1 * jax.random.uniform(kv, (cout,), jnp.float32)
        scale = gamma * jax.lax.rsqrt(var + eps)   # fold running stats
        shift = beta - mean * scale
        return {"w": w, "scale": scale, "shift": shift}

    keys = jax.random.split(key, 1 + 2 * n_blocks)
    params = {"gate": conv_bn_params(keys[0], in_channels, C), "blocks": []}
    for i in range(n_blocks):
        params["blocks"].append(
            [conv_bn_params(keys[1 + 2 * i], C, C),
             conv_bn_params(keys[2 + 2 * i], C, C)]
        )
    return params


if __name__ == "__main__":
    BS, Cin, C = 2, 4, 32          # batch, in_channels, filter_size
    H = W = 8                      # output_shape = (8, 8)

    key = jax.random.PRNGKey(0)
    kx, kp = jax.random.split(key)
    x = jax.random.normal(kx, (BS, Cin, H, W), jnp.float32)
    params = init_params(kp, Cin, C)

    fwd = jax.jit(partial(conv_resnet_forward, in_channels=Cin,
                          filter_size=C, output_shape=(H, W)))

    # Production path: bf16 MXU operands, f32 accumulation; weights packed once.
    w_bf16, shifts = pack_params(params, jnp.bfloat16)
    out_bf16 = jax.block_until_ready(fwd(x, w_bf16, shifts))
    assert out_bf16.shape == (BS, C, H, W), out_bf16.shape

    # Strict correctness check on the all-f32 matmul path.
    w_f32, _ = pack_params(params, jnp.float32)
    out_f32 = jax.block_until_ready(fwd(x, w_f32, shifts))
    ref_f32 = conv_resnet_forward_ref(x, params, Cin, C, (H, W),
                                      matmul_dtype=jnp.float32)
    err_f32 = float(jnp.max(jnp.abs(out_f32 - ref_f32)))
    assert jnp.allclose(out_f32, ref_f32, atol=1e-3, rtol=1e-3), \
        f"f32 path max abs err {err_f32}"

    # bf16 path checked against a precision-matched reference (bf16 conv
    # operands, f32 accumulation): only accumulation order differs.
    ref_bf16 = conv_resnet_forward_ref(x, params, Cin, C, (H, W),
                                       matmul_dtype=jnp.bfloat16)
    err_bf16 = float(jnp.max(jnp.abs(out_bf16 - ref_bf16)))
    assert jnp.allclose(out_bf16, ref_bf16, atol=5e-2, rtol=5e-2), \
        f"bf16 path max abs err {err_bf16}"

    print("KERNEL_OK")
</pallas_src>

<mosaic_0001>
module attributes {stable_mosaic.version = 11 : i64} {
  func.func @kernel(%arg0: i32, %arg1: memref<2x8x8x4xf32, #tpu.memory_space<vmem>>, %arg2: memref<7x9x128x128xbf16, #tpu.memory_space<vmem>>, %arg3: memref<7x128xf32, #tpu.memory_space<vmem>>, %arg4: memref<128x128xf32, #tpu.memory_space<vmem>>, %arg5: memref<2x10x10x128xf32, #tpu.memory_space<vmem>>) attributes {dimension_semantics = [#tpu.dimension_semantics<arbitrary>], iteration_bounds = array<i64: 1>, scalar_prefetch = 0 : i64, scratch_operands = 1 : i64, tpu.core_type = #tpu.core_type<tc>, window_params = [{pipeline_mode = #tpu.pipeline_mode<synchronous>, transform_indices = @transform_0, window_bounds = array<i64: 2, 8, 8, 4>}, {pipeline_mode = #tpu.pipeline_mode<synchronous>, transform_indices = @transform_1, window_bounds = array<i64: 7, 9, 128, 128>}, {pipeline_mode = #tpu.pipeline_mode<synchronous>, transform_indices = @transform_2, window_bounds = array<i64: 7, 128>}, {pipeline_mode = #tpu.pipeline_mode<synchronous>, transform_indices = @transform_3, window_bounds = array<i64: 128, 128>}]} {
    %cst = arith.constant 0.000000e+00 : f32
    %0 = vector.broadcast %cst : f32 to vector<2x10x10x128xf32>
    %c0 = arith.constant 0 : index
    %c0_0 = arith.constant 0 : index
    %c0_1 = arith.constant 0 : index
    %c0_2 = arith.constant 0 : index
    %1 = vector.load %arg5[%c0, %c0_0, %c0_1, %c0_2] : memref<2x10x10x128xf32, #tpu.memory_space<vmem>>, vector<2x10x10x128xf32>
    tpu.vector_store %arg5[%c0, %c0_0, %c0_1, %c0_2], %0 {strides = array<i32>} : memref<2x10x10x128xf32, #tpu.memory_space<vmem>>, vector<2x10x10x128xf32>,
    %c0_3 = arith.constant 0 : index
    %c0_4 = arith.constant 0 : index
    %c0_5 = arith.constant 0 : index
    %c0_6 = arith.constant 0 : index
    %2 = vector.load %arg1[%c0_3, %c0_4, %c0_5, %c0_6] : memref<2x8x8x4xf32, #tpu.memory_space<vmem>>, vector<2x8x8x4xf32>
    %c0_7 = arith.constant 0 : index
    %c1 = arith.constant 1 : index
    %c1_8 = arith.constant 1 : index
    %c0_9 = arith.constant 0 : index
    %3 = vector.load %arg5[%c0_7, %c1, %c1_8, %c0_9] : memref<2x10x10x128xf32, #tpu.memory_space<vmem>>, vector<2x8x8x4xf32>
    tpu.vector_store %arg5[%c0_7, %c1, %c1_8, %c0_9], %2 {strides = array<i32>} : memref<2x10x10x128xf32, #tpu.memory_space<vmem>>, vector<2x8x8x4xf32>,
    %cst_10 = arith.constant 0.000000e+00 : f32
    %4 = vector.broadcast %cst_10 : f32 to vector<128x128xf32>
    %c0_11 = arith.constant 0 : index
    %c0_12 = arith.constant 0 : index
    %c0_13 = arith.constant 0 : index
    %c0_14 = arith.constant 0 : index
    %5 = vector.load %arg5[%c0_11, %c0_12, %c0_13, %c0_14] : memref<2x10x10x128xf32, #tpu.memory_space<vmem>>, vector<2x8x8x128xf32>
    %6 = vector.shape_cast %5 : vector<2x8x8x128xf32> to vector<128x128xf32>
    %c0_15 = arith.constant 0 : index
    %c0_16 = arith.constant 0 : index
    %c0_17 = arith.constant 0 : index
    %c0_18 = arith.constant 0 : index
    %7 = vector.load %arg2[%c0_15, %c0_16, %c0_17, %c0_18] : memref<7x9x128x128xbf16, #tpu.memory_space<vmem>>, vector<1x1x128x128xbf16>
    %8 = vector.shape_cast %7 : vector<1x1x128x128xbf16> to vector<128x128xbf16>
    %9 = arith.truncf %6 : vector<128x128xf32> to vector<128x128xbf16>
    %cst_19 = arith.constant dense<0.000000e+00> : vector<128x128xf32>
    %10 = tpu.matmul %9, %8, %cst_19 {dimension_numbers = #tpu.dot_dimension_numbers<[1], [0], [0], [1], [0, 0, 1, 1], [], []>} : vector<128x128xbf16>, vector<128x128xbf16>, vector<128x128xf32> -> vector<128x128xf32>
    %11 = arith.addf %4, %10 : vector<128x128xf32>
    %c0_20 = arith.constant 0 : index
    %c0_21 = arith.constant 0 : index
    %c1_22 = arith.constant 1 : index
    %c0_23 = arith.constant 0 : index
    %12 = vector.load %arg5[%c0_20, %c0_21, %c1_22, %c0_23] : memref<2x10x10x128xf32, #tpu.memory_space<vmem>>, vector<2x8x8x128xf32>
    %13 = vector.shape_cast %12 : vector<2x8x8x128xf32> to vector<128x128xf32>
    %c0_24 = arith.constant 0 : index
    %c1_25 = arith.constant 1 : index
    %c0_26 = arith.constant 0 : index
    %c0_27 = arith.constant 0 : index
    %14 = vector.load %arg2[%c0_24, %c1_25, %c0_26, %c0_27] : memref<7x9x128x128xbf16, #tpu.memory_space<vmem>>, vector<1x1x128x128xbf16>
    %15 = vector.shape_cast %14 : vector<1x1x128x128xbf16> to vector<128x128xbf16>
    %16 = arith.truncf %13 : vector<128x128xf32> to vector<128x128xbf16>
    %cst_28 = arith.constant dense<0.000000e+00> : vector<128x128xf32>
    %17 = tpu.matmul %16, %15, %cst_28 {dimension_numbers = #tpu.dot_dimension_numbers<[1], [0], [0], [1], [0, 0, 1, 1], [], []>} : vector<128x128xbf16>, vector<128x128xbf16>, vector<128x128xf32> -> vector<128x128xf32>
    %18 = arith.addf %11, %17 : vector<128x128xf32>
    %c0_29 = arith.constant 0 : index
    %c0_30 = arith.constant 0 : index
    %c2 = arith.constant 2 : index
    %c0_31 = arith.constant 0 : index
    %19 = vector.load %arg5[%c0_29, %c0_30, %c2, %c0_31] : memref<2x10x10x128xf32, #tpu.memory_space<vmem>>, vector<2x8x8x128xf32>
    %20 = vector.shape_cast %19 : vector<2x8x8x128xf32> to vector<128x128xf32>
    %c0_32 = arith.constant 0 : index
    %c2_33 = arith.constant 2 : index
    %c0_34 = arith.constant 0 : index
    %c0_35 = arith.constant 0 : index
    %21 = vector.load %arg2[%c0_32, %c2_33, %c0_34, %c0_35] : memref<7x9x128x128xbf16, #tpu.memory_space<vmem>>, vector<1x1x128x128xbf16>
    %22 = vector.shape_cast %21 : vector<1x1x128x128xbf16> to vector<128x128xbf16>
    %23 = arith.truncf %20 : vector<128x128xf32> to vector<128x128xbf16>
    %cst_36 = arith.constant dense<0.000000e+00> : vector<128x128xf32>
    %24 = tpu.matmul %23, %22, %cst_36 {dimension_numbers = #tpu.dot_dimension_numbers<[1], [0], [0], [1], [0, 0, 1, 1], [], []>} : vector<128x128xbf16>, vector<128x128xbf16>, vector<128x128xf32> -> vector<128x128xf32>
    %25 = arith.addf %18, %24 : vector<128x128xf32>
    %c0_37 = arith.constant 0 : index
    %c1_38 = arith.constant 1 : index
    %c0_39 = arith.constant 0 : index
    %c0_40 = arith.constant 0 : index
    %26 = vector.load %arg5[%c0_37, %c1_38, %c0_39, %c0_40] : memref<2x10x10x128xf32, #tpu.memory_space<vmem>>, vector<2x8x8x128xf32>
    %27 = vector.shape_cast %26 : vector<2x8x8x128xf32> to vector<128x128xf32>
    %c0_41 = arith.constant 0 : index
    %c3 = arith.constant 3 : index
    %c0_42 = arith.constant 0 : index
    %c0_43 = arith.constant 0 : index
    %28 = vector.load %arg2[%c0_41, %c3, %c0_42, %c0_43] : memref<7x9x128x128xbf16, #tpu.memory_space<vmem>>, vector<1x1x128x128xbf16>
    %29 = vector.shape_cast %28 : vector<1x1x128x128xbf16> to vector<128x128xbf16>
    %30 = arith.truncf %27 : vector<128x128xf32> to vector<128x128xbf16>
    %cst_44 = arith.constant dense<0.000000e+00> : vector<128x128xf32>
    %31 = tpu.matmul %30, %29, %cst_44 {dimension_numbers = #tpu.dot_dimension_numbers<[1], [0], [0], [1], [0, 0, 1, 1], [], []>} : vector<128x128xbf16>, vector<128x128xbf16>, vector<128x128xf32> -> vector<128x128xf32>
    %32 = arith.addf %25, %31 : vector<128x128xf32>
    %c0_45 = arith.constant 0 : index
    %c1_46 = arith.constant 1 : index
    %c1_47 = arith.constant 1 : index
    %c0_48 = arith.constant 0 : index
    %33 = vector.load %arg5[%c0_45, %c1_46, %c1_47, %c0_48] : memref<2x10x10x128xf32, #tpu.memory_space<vmem>>, vector<2x8x8x128xf32>
    %34 = vector.shape_cast %33 : vector<2x8x8x128xf32> to vector<128x128xf32>
    %c0_49 = arith.constant 0 : index
    %c4 = arith.constant 4 : index
    %c0_50 = arith.constant 0 : index
    %c0_51 = arith.constant 0 : index
    %35 = vector.load %arg2[%c0_49, %c4, %c0_50, %c0_51] : memref<7x9x128x128xbf16, #tpu.memory_space<vmem>>, vector<1x1x128x128xbf16>
    %36 = vector.shape_cast %35 : vector<1x1x128x128xbf16> to vector<128x128xbf16>
    %37 = arith.truncf %34 : vector<128x128xf32> to vector<128x128xbf16>
    %cst_52 = arith.constant dense<0.000000e+00> : vector<128x128xf32>
    %38 = tpu.matmul %37, %36, %cst_52 {dimension_numbers = #tpu.dot_dimension_numbers<[1], [0], [0], [1], [0, 0, 1, 1], [], []>} : vector<128x128xbf16>, vector<128x128xbf16>, vector<128x128xf32> -> vector<128x128xf32>
    %39 = arith.addf %32, %38 : vector<128x128xf32>
    %c0_53 = arith.constant 0 : index
    %c1_54 = arith.constant 1 : index
    %c2_55 = arith.constant 2 : index
    %c0_56 = arith.constant 0 : index
    %40 = vector.load %arg5[%c0_53, %c1_54, %c2_55, %c0_56] : memref<2x10x10x128xf32, #tpu.memory_space<vmem>>, vector<2x8x8x128xf32>
    %41 = vector.shape_cast %40 : vector<2x8x8x128xf32> to vector<128x128xf32>
    %c0_57 = arith.constant 0 : index
    %c5 = arith.constant 5 : index
    %c0_58 = arith.constant 0 : index
    %c0_59 = arith.constant 0 : index
    %42 = vector.load %arg2[%c0_57, %c5, %c0_58, %c0_59] : memref<7x9x128x128xbf16, #tpu.memory_space<vmem>>, vector<1x1x128x128xbf16>
    %43 = vector.shape_cast %42 : vector<1x1x128x128xbf16> to vector<128x128xbf16>
    %44 = arith.truncf %41 : vector<128x128xf32> to vector<128x128xbf16>
    %cst_60 = arith.constant dense<0.000000e+00> : vector<128x128xf32>
    %45 = tpu.matmul %44, %43, %cst_60 {dimension_numbers = #tpu.dot_dimension_numbers<[1], [0], [0], [1], [0, 0, 1, 1], [], []>} : vector<128x128xbf16>, vector<128x128xbf16>, vector<128x128xf32> -> vector<128x128xf32>
    %46 = arith.addf %39, %45 : vector<128x128xf32>
    %c0_61 = arith.constant 0 : index
    %c2_62 = arith.constant 2 : index
    %c0_63 = arith.constant 0 : index
    %c0_64 = arith.constant 0 : index
    %47 = vector.load %arg5[%c0_61, %c2_62, %c0_63, %c0_64] : memref<2x10x10x128xf32, #tpu.memory_space<vmem>>, vector<2x8x8x128xf32>
    %48 = vector.shape_cast %47 : vector<2x8x8x128xf32> to vector<128x128xf32>
    %c0_65 = arith.constant 0 : index
    %c6 = arith.constant 6 : index
    %c0_66 = arith.constant 0 : index
    %c0_67 = arith.constant 0 : index
    %49 = vector.load %arg2[%c0_65, %c6, %c0_66, %c0_67] : memref<7x9x128x128xbf16, #tpu.memory_space<vmem>>, vector<1x1x128x128xbf16>
    %50 = vector.shape_cast %49 : vector<1x1x128x128xbf16> to vector<128x128xbf16>
    %51 = arith.truncf %48 : vector<128x128xf32> to vector<128x128xbf16>
    %cst_68 = arith.constant dense<0.000000e+00> : vector<128x128xf32>
    %52 = tpu.matmul %51, %50, %cst_68 {dimension_numbers = #tpu.dot_dimension_numbers<[1], [0], [0], [1], [0, 0, 1, 1], [], []>} : vector<128x128xbf16>, vector<128x128xbf16>, vector<128x128xf32> -> vector<128x128xf32>
    %53 = arith.addf %46, %52 : vector<128x128xf32>
    %c0_69 = arith.constant 0 : index
    %c2_70 = arith.constant 2 : index
    %c1_71 = arith.constant 1 : index
    %c0_72 = arith.constant 0 : index
    %54 = vector.load %arg5[%c0_69, %c2_70, %c1_71, %c0_72] : memref<2x10x10x128xf32, #tpu.memory_space<vmem>>, vector<2x8x8x128xf32>
    %55 = vector.shape_cast %54 : vector<2x8x8x128xf32> to vector<128x128xf32>
    %c0_73 = arith.constant 0 : index
    %c7 = arith.constant 7 : index
    %c0_74 = arith.constant 0 : index
    %c0_75 = arith.constant 0 : index
    %56 = vector.load %arg2[%c0_73, %c7, %c0_74, %c0_75] : memref<7x9x128x128xbf16, #tpu.memory_space<vmem>>, vector<1x1x128x128xbf16>
    %57 = vector.shape_cast %56 : vector<1x1x128x128xbf16> to vector<128x128xbf16>
    %58 = arith.truncf %55 : vector<128x128xf32> to vector<128x128xbf16>
    %cst_76 = arith.constant dense<0.000000e+00> : vector<128x128xf32>
    %59 = tpu.matmul %58, %57, %cst_76 {dimension_numbers = #tpu.dot_dimension_numbers<[1], [0], [0], [1], [0, 0, 1, 1], [], []>} : vector<128x128xbf16>, vector<128x128xbf16>, vector<128x128xf32> -> vector<128x128xf32>
    %60 = arith.addf %53, %59 : vector<128x128xf32>
    %c0_77 = arith.constant 0 : index
    %c2_78 = arith.constant 2 : index
    %c2_79 = arith.constant 2 : index
    %c0_80 = arith.constant 0 : index
    %61 = vector.load %arg5[%c0_77, %c2_78, %c2_79, %c0_80] : memref<2x10x10x128xf32, #tpu.memory_space<vmem>>, vector<2x8x8x128xf32>
    %62 = vector.shape_cast %61 : vector<2x8x8x128xf32> to vector<128x128xf32>
    %c0_81 = arith.constant 0 : index
    %c8 = arith.constant 8 : index
    %c0_82 = arith.constant 0 : index
    %c0_83 = arith.constant 0 : index
    %63 = vector.load %arg2[%c0_81, %c8, %c0_82, %c0_83] : memref<7x9x128x128xbf16, #tpu.memory_space<vmem>>, vector<1x1x128x128xbf16>
    %64 = vector.shape_cast %63 : vector<1x1x128x128xbf16> to vector<128x128xbf16>
    %65 = arith.truncf %62 : vector<128x128xf32> to vector<128x128xbf16>
    %cst_84 = arith.constant dense<0.000000e+00> : vector<128x128xf32>
    %66 = tpu.matmul %65, %64, %cst_84 {dimension_numbers = #tpu.dot_dimension_numbers<[1], [0], [0], [1], [0, 0, 1, 1], [], []>} : vector<128x128xbf16>, vector<128x128xbf16>, vector<128x128xf32> -> vector<128x128xf32>
    %67 = arith.addf %60, %66 : vector<128x128xf32>
    %c0_85 = arith.constant 0 : index
    %c0_86 = arith.constant 0 : index
    %68 = vector.load %arg3[%c0_85, %c0_86] : memref<7x128xf32, #tpu.memory_space<vmem>>, vector<1x128xf32>
    %69 = vector.broadcast %68 : vector<1x128xf32> to vector<128x128xf32>
    %70 = arith.addf %67, %69 : vector<128x128xf32>
    %cst_87 = arith.constant 0.000000e+00 : f32
    %71 = vector.broadcast %cst_87 : f32 to vector<128x128xf32>
    %72 = arith.maximumf %70, %71 : vector<128x128xf32>
    %73 = vector.shape_cast %72 : vector<128x128xf32> to vector<2x8x8x128xf32>
    %c0_88 = arith.constant 0 : index
    %c1_89 = arith.constant 1 : index
    %c1_90 = arith.constant 1 : index
    %c0_91 = arith.constant 0 : index
    %74 = vector.load %arg5[%c0_88, %c1_89, %c1_90, %c0_91] : memref<2x10x10x128xf32, #tpu.memory_space<vmem>>, vector<2x8x8x128xf32>
    tpu.vector_store %arg5[%c0_88, %c1_89, %c1_90, %c0_91], %73 {strides = array<i32>} : memref<2x10x10x128xf32, #tpu.memory_space<vmem>>, vector<2x8x8x128xf32>,
    %cst_92 = arith.constant 0.000000e+00 : f32
    %75 = vector.broadcast %cst_92 : f32 to vector<128x128xf32>
    %c0_93 = arith.constant 0 : index
    %c0_94 = arith.constant 0 : index
    %c0_95 = arith.constant 0 : index
    %c0_96 = arith.constant 0 : index
    %76 = vector.load %arg5[%c0_93, %c0_94, %c0_95, %c0_96] : memref<2x10x10x128xf32, #tpu.memory_space<vmem>>, vector<2x8x8x128xf32>
    %77 = vector.shape_cast %76 : vector<2x8x8x128xf32> to vector<128x128xf32>
    %c1_97 = arith.constant 1 : index
    %c0_98 = arith.constant 0 : index
    %c0_99 = arith.constant 0 : index
    %c0_100 = arith.constant 0 : index
    %78 = vector.load %arg2[%c1_97, %c0_98, %c0_99, %c0_100] : memref<7x9x128x128xbf16, #tpu.memory_space<vmem>>, vector<1x1x128x128xbf16>
    %79 = vector.shape_cast %78 : vector<1x1x128x128xbf16> to vector<128x128xbf16>
    %80 = arith.truncf %77 : vector<128x128xf32> to vector<128x128xbf16>
    %cst_101 = arith.constant dense<0.000000e+00> : vector<128x128xf32>
    %81 = tpu.matmul %80, %79, %cst_101 {dimension_numbers = #tpu.dot_dimension_numbers<[1], [0], [0], [1], [0, 0, 1, 1], [], []>} : vector<128x128xbf16>, vector<128x128xbf16>, vector<128x128xf32> -> vector<128x128xf32>
    %82 = arith.addf %75, %81 : vector<128x128xf32>
    %c0_102 = arith.constant 0 : index
    %c0_103 = arith.constant 0 : index
    %c1_104 = arith.constant 1 : index
    %c0_105 = arith.constant 0 : index
    %83 = vector.load %arg5[%c0_102, %c0_103, %c1_104, %c0_105] : memref<2x10x10x128xf32, #tpu.memory_space<vmem>>, vector<2x8x8x128xf32>
    %84 = vector.shape_cast %83 : vector<2x8x8x128xf32> to vector<128x128xf32>
    %c1_106 = arith.constant 1 : index
    %c1_107 = arith.constant 1 : index
    %c0_108 = arith.constant 0 : index
    %c0_109 = arith.constant 0 : index
    %85 = vector.load %arg2[%c1_106, %c1_107, %c0_108, %c0_109] : memref<7x9x128x128xbf16, #tpu.memory_space<vmem>>, vector<1x1x128x128xbf16>
    %86 = vector.shape_cast %85 : vector<1x1x128x128xbf16> to vector<128x128xbf16>
    %87 = arith.truncf %84 : vector<128x128xf32> to vector<128x128xbf16>
    %cst_110 = arith.constant dense<0.000000e+00> : vector<128x128xf32>
    %88 = tpu.matmul %87, %86, %cst_110 {dimension_numbers = #tpu.dot_dimension_numbers<[1], [0], [0], [1], [0, 0, 1, 1], [], []>} : vector<128x128xbf16>, vector<128x128xbf16>, vector<128x128xf32> -> vector<128x128xf32>
    %89 = arith.addf %82, %88 : vector<128x128xf32>
    %c0_111 = arith.constant 0 : index
    %c0_112 = arith.constant 0 : index
    %c2_113 = arith.constant 2 : index
    %c0_114 = arith.constant 0 : index
    %90 = vector.load %arg5[%c0_111, %c0_112, %c2_113, %c0_114] : memref<2x10x10x128xf32, #tpu.memory_space<vmem>>, vector<2x8x8x128xf32>
    %91 = vector.shape_cast %90 : vector<2x8x8x128xf32> to vector<128x128xf32>
    %c1_115 = arith.constant 1 : index
    %c2_116 = arith.constant 2 : index
    %c0_117 = arith.constant 0 : index
    %c0_118 = arith.constant 0 : index
    %92 = vector.load %arg2[%c1_115, %c2_116, %c0_117, %c0_118] : memref<7x9x128x128xbf16, #tpu.memory_space<vmem>>, vector<1x1x128x128xbf16>
    %93 = vector.shape_cast %92 : vector<1x1x128x128xbf16> to vector<128x128xbf16>
    %94 = arith.truncf %91 : vector<128x128xf32> to vector<128x128xbf16>
    %cst_119 = arith.constant dense<0.000000e+00> : vector<128x128xf32>
    %95 = tpu.matmul %94, %93, %cst_119 {dimension_numbers = #tpu.dot_dimension_numbers<[1], [0], [0], [1], [0, 0, 1, 1], [], []>} : vector<128x128xbf16>, vector<128x128xbf16>, vector<128x128xf32> -> vector<128x128xf32>
    %96 = arith.addf %89, %95 : vector<128x128xf32>
    %c0_120 = arith.constant 0 : index
    %c1_121 = arith.constant 1 : index
    %c0_122 = arith.constant 0 : index
    %c0_123 = arith.constant 0 : index
    %97 = vector.load %arg5[%c0_120, %c1_121, %c0_122, %c0_123] : memref<2x10x10x128xf32, #tpu.memory_space<vmem>>, vector<2x8x8x128xf32>
    %98 = vector.shape_cast %97 : vector<2x8x8x128xf32> to vector<128x128xf32>
    %c1_124 = arith.constant 1 : index
    %c3_125 = arith.constant 3 : index
    %c0_126 = arith.constant 0 : index
    %c0_127 = arith.constant 0 : index
    %99 = vector.load %arg2[%c1_124, %c3_125, %c0_126, %c0_127] : memref<7x9x128x128xbf16, #tpu.memory_space<vmem>>, vector<1x1x128x128xbf16>
    %100 = vector.shape_cast %99 : vector<1x1x128x128xbf16> to vector<128x128xbf16>
    %101 = arith.truncf %98 : vector<128x128xf32> to vector<128x128xbf16>
    %cst_128 = arith.constant dense<0.000000e+00> : vector<128x128xf32>
    %102 = tpu.matmul %101, %100, %cst_128 {dimension_numbers = #tpu.dot_dimension_numbers<[1], [0], [0], [1], [0, 0, 1, 1], [], []>} : vector<128x128xbf16>, vector<128x128xbf16>, vector<128x128xf32> -> vector<128x128xf32>
    %103 = arith.addf %96, %102 : vector<128x128xf32>
    %c0_129 = arith.constant 0 : index
    %c1_130 = arith.constant 1 : index
    %c1_131 = arith.constant 1 : index
    %c0_132 = arith.constant 0 : index
    %104 = vector.load %arg5[%c0_129, %c1_130, %c1_131, %c0_132] : memref<2x10x10x128xf32, #tpu.memory_space<vmem>>, vector<2x8x8x128xf32>
    %105 = vector.shape_cast %104 : vector<2x8x8x128xf32> to vector<128x128xf32>
    %c1_133 = arith.constant 1 : index
    %c4_134 = arith.constant 4 : index
    %c0_135 = arith.constant 0 : index
    %c0_136 = arith.constant 0 : index
    %106 = vector.load %arg2[%c1_133, %c4_134, %c0_135, %c0_136] : memref<7x9x128x128xbf16, #tpu.memory_space<vmem>>, vector<1x1x128x128xbf16>
    %107 = vector.shape_cast %106 : vector<1x1x128x128xbf16> to vector<128x128xbf16>
    %108 = arith.truncf %105 : vector<128x128xf32> to vector<128x128xbf16>
    %cst_137 = arith.constant dense<0.000000e+00> : vector<128x128xf32>
    %109 = tpu.matmul %108, %107, %cst_137 {dimension_numbers = #tpu.dot_dimension_numbers<[1], [0], [0], [1], [0, 0, 1, 1], [], []>} : vector<128x128xbf16>, vector<128x128xbf16>, vector<128x128xf32> -> vector<128x128xf32>
    %110 = arith.addf %103, %109 : vector<128x128xf32>
    %c0_138 = arith.constant 0 : index
    %c1_139 = arith.constant 1 : index
    %c2_140 = arith.constant 2 : index
    %c0_141 = arith.constant 0 : index
    %111 = vector.load %arg5[%c0_138, %c1_139, %c2_140, %c0_141] : memref<2x10x10x128xf32, #tpu.memory_space<vmem>>, vector<2x8x8x128xf32>
    %112 = vector.shape_cast %111 : vector<2x8x8x128xf32> to vector<128x128xf32>
    %c1_142 = arith.constant 1 : index
    %c5_143 = arith.constant 5 : index
    %c0_144 = arith.constant 0 : index
    %c0_145 = arith.constant 0 : index
    %113 = vector.load %arg2[%c1_142, %c5_143, %c0_144, %c0_145] : memref<7x9x128x128xbf16, #tpu.memory_space<vmem>>, vector<1x1x128x128xbf16>
    %114 = vector.shape_cast %113 : vector<1x1x128x128xbf16> to vector<128x128xbf16>
    %115 = arith.truncf %112 : vector<128x128xf32> to vector<128x128xbf16>
    %cst_146 = arith.constant dense<0.000000e+00> : vector<128x128xf32>
    %116 = tpu.matmul %115, %114, %cst_146 {dimension_numbers = #tpu.dot_dimension_numbers<[1], [0], [0], [1], [0, 0, 1, 1], [], []>} : vector<128x128xbf16>, vector<128x128xbf16>, vector<128x128xf32> -> vector<128x128xf32>
    %117 = arith.addf %110, %116 : vector<128x128xf32>
    %c0_147 = arith.constant 0 : index
    %c2_148 = arith.constant 2 : index
    %c0_149 = arith.constant 0 : index
    %c0_150 = arith.constant 0 : index
    %118 = vector.load %arg5[%c0_147, %c2_148, %c0_149, %c0_150] : memref<2x10x10x128xf32, #tpu.memory_space<vmem>>, vector<2x8x8x128xf32>
    %119 = vector.shape_cast %118 : vector<2x8x8x128xf32> to vector<128x128xf32>
    %c1_151 = arith.constant 1 : index
    %c6_152 = arith.constant 6 : index
    %c0_153 = arith.constant 0 : index
    %c0_154 = arith.constant 0 : index
    %120 = vector.load %arg2[%c1_151, %c6_152, %c0_153, %c0_154] : memref<7x9x128x128xbf16, #tpu.memory_space<vmem>>, vector<1x1x128x128xbf16>
    %121 = vector.shape_cast %120 : vector<1x1x128x128xbf16> to vector<128x128xbf16>
    %122 = arith.truncf %119 : vector<128x128xf32> to vector<128x128xbf16>
    %cst_155 = arith.constant dense<0.000000e+00> : vector<128x128xf32>
    %123 = tpu.matmul %122, %121, %cst_155 {dimension_numbers = #tpu.dot_dimension_numbers<[1], [0], [0], [1], [0, 0, 1, 1], [], []>} : vector<128x128xbf16>, vector<128x128xbf16>, vector<128x128xf32> -> vector<128x128xf32>
    %124 = arith.addf %117, %123 : vector<128x128xf32>
    %c0_156 = arith.constant 0 : index
    %c2_157 = arith.constant 2 : index
    %c1_158 = arith.constant 1 : index
    %c0_159 = arith.constant 0 : index
    %125 = vector.load %arg5[%c0_156, %c2_157, %c1_158, %c0_159] : memref<2x10x10x128xf32, #tpu.memory_space<vmem>>, vector<2x8x8x128xf32>
    %126 = vector.shape_cast %125 : vector<2x8x8x128xf32> to vector<128x128xf32>
    %c1_160 = arith.constant 1 : index
    %c7_161 = arith.constant 7 : index
    %c0_162 = arith.constant 0 : index
    %c0_163 = arith.constant 0 : index
    %127 = vector.load %arg2[%c1_160, %c7_161, %c0_162, %c0_163] : memref<7x9x128x128xbf16, #tpu.memory_space<vmem>>, vector<1x1x128x128xbf16>
    %128 = vector.shape_cast %127 : vector<1x1x128x128xbf16> to vector<128x128xbf16>
    %129 = arith.truncf %126 : vector<128x128xf32> to vector<128x128xbf16>
    %cst_164 = arith.constant dense<0.000000e+00> : vector<128x128xf32>
    %130 = tpu.matmul %129, %128, %cst_164 {dimension_numbers = #tpu.dot_dimension_numbers<[1], [0], [0], [1], [0, 0, 1, 1], [], []>} : vector<128x128xbf16>, vector<128x128xbf16>, vector<128x128xf32> -> vector<128x128xf32>
    %131 = arith.addf %124, %130 : vector<128x128xf32>
    %c0_165 = arith.constant 0 : index
    %c2_166 = arith.constant 2 : index
    %c2_167 = arith.constant 2 : index
    %c0_168 = arith.constant 0 : index
    %132 = vector.load %arg5[%c0_165, %c2_166, %c2_167, %c0_168] : memref<2x10x10x128xf32, #tpu.memory_space<vmem>>, vector<2x8x8x128xf32>
    %133 = vector.shape_cast %132 : vector<2x8x8x128xf32> to vector<128x128xf32>
    %c1_169 = arith.constant 1 : index
    %c8_170 = arith.constant 8 : index
    %c0_171 = arith.constant 0 : index
    %c0_172 = arith.constant 0 : index
    %134 = vector.load %arg2[%c1_169, %c8_170, %c0_171, %c0_172] : memref<7x9x128x128xbf16, #tpu.memory_space<vmem>>, vector<1x1x128x128xbf16>
    %135 = vector.shape_cast %134 : vector<1x1x128x128xbf16> to vector<128x128xbf16>
    %136 = arith.truncf %133 : vector<128x128xf32> to vector<128x128xbf16>
    %cst_173 = arith.constant dense<0.000000e+00> : vector<128x128xf32>
    %137 = tpu.matmul %136, %135, %cst_173 {dimension_numbers = #tpu.dot_dimension_numbers<[1], [0], [0], [1], [0, 0, 1, 1], [], []>} : vector<128x128xbf16>, vector<128x128xbf16>, vector<128x128xf32> -> vector<128x128xf32>
    %138 = arith.addf %131, %137 : vector<128x128xf32>
    %c1_174 = arith.constant 1 : index
    %c0_175 = arith.constant 0 : index
    %139 = vector.load %arg3[%c1_174, %c0_175] : memref<7x128xf32, #tpu.memory_space<vmem>>, vector<1x128xf32>
    %140 = vector.broadcast %139 : vector<1x128xf32> to vector<128x128xf32>
    %141 = arith.addf %138, %140 : vector<128x128xf32>
    %cst_176 = arith.constant 0.000000e+00 : f32
    %142 = vector.broadcast %cst_176 : f32 to vector<128x128xf32>
    %143 = arith.maximumf %141, %142 : vector<128x128xf32>
    %144 = vector.shape_cast %143 : vector<128x128xf32> to vector<2x8x8x128xf32>
    %c0_177 = arith.constant 0 : index
    %c1_178 = arith.constant 1 : index
    %c1_179 = arith.constant 1 : index
    %c0_180 = arith.constant 0 : index
    %145 = vector.load %arg5[%c0_177, %c1_178, %c1_179, %c0_180] : memref<2x10x10x128xf32, #tpu.memory_space<vmem>>, vector<2x8x8x128xf32>
    tpu.vector_store %arg5[%c0_177, %c1_178, %c1_179, %c0_180], %144 {strides = array<i32>} : memref<2x10x10x128xf32, #tpu.memory_space<vmem>>, vector<2x8x8x128xf32>,
    %cst_181 = arith.constant 0.000000e+00 : f32
    %146 = vector.broadcast %cst_181 : f32 to vector<128x128xf32>
    %c0_182 = arith.constant 0 : index
    %c0_183 = arith.constant 0 : index
    %c0_184 = arith.constant 0 : index
    %c0_185 = arith.constant 0 : index
    %147 = vector.load %arg5[%c0_182, %c0_183, %c0_184, %c0_185] : memref<2x10x10x128xf32, #tpu.memory_space<vmem>>, vector<2x8x8x128xf32>
    %148 = vector.shape_cast %147 : vector<2x8x8x128xf32> to vector<128x128xf32>
    %c2_186 = arith.constant 2 : index
    %c0_187 = arith.constant 0 : index
    %c0_188 = arith.constant 0 : index
    %c0_189 = arith.constant 0 : index
    %149 = vector.load %arg2[%c2_186, %c0_187, %c0_188, %c0_189] : memref<7x9x128x128xbf16, #tpu.memory_space<vmem>>, vector<1x1x128x128xbf16>
    %150 = vector.shape_cast %149 : vector<1x1x128x128xbf16> to vector<128x128xbf16>
    %151 = arith.truncf %148 : vector<128x128xf32> to vector<128x128xbf16>
    %cst_190 = arith.constant dense<0.000000e+00> : vector<128x128xf32>
    %152 = tpu.matmul %151, %150, %cst_190 {dimension_numbers = #tpu.dot_dimension_numbers<[1], [0], [0], [1], [0, 0, 1, 1], [], []>} : vector<128x128xbf16>, vector<128x128xbf16>, vector<128x128xf32> -> vector<128x128xf32>
    %153 = arith.addf %146, %152 : vector<128x128xf32>
    %c0_191 = arith.constant 0 : index
    %c0_192 = arith.constant 0 : index
    %c1_193 = arith.constant 1 : index
    %c0_194 = arith.constant 0 : index
    %154 = vector.load %arg5[%c0_191, %c0_192, %c1_193, %c0_194] : memref<2x10x10x128xf32, #tpu.memory_space<vmem>>, vector<2x8x8x128xf32>
    %155 = vector.shape_cast %154 : vector<2x8x8x128xf32> to vector<128x128xf32>
    %c2_195 = arith.constant 2 : index
    %c1_196 = arith.constant 1 : index
    %c0_197 = arith.constant 0 : index
    %c0_198 = arith.constant 0 : index
    %156 = vector.load %arg2[%c2_195, %c1_196, %c0_197, %c0_198] : memref<7x9x128x128xbf16, #tpu.memory_space<vmem>>, vector<1x1x128x128xbf16>
    %157 = vector.shape_cast %156 : vector<1x1x128x128xbf16> to vector<128x128xbf16>
    %158 = arith.truncf %155 : vector<128x128xf32> to vector<128x128xbf16>
    %cst_199 = arith.constant dense<0.000000e+00> : vector<128x128xf32>
    %159 = tpu.matmul %158, %157, %cst_199 {dimension_numbers = #tpu.dot_dimension_numbers<[1], [0], [0], [1], [0, 0, 1, 1], [], []>} : vector<128x128xbf16>, vector<128x128xbf16>, vector<128x128xf32> -> vector<128x128xf32>
    %160 = arith.addf %153, %159 : vector<128x128xf32>
    %c0_200 = arith.constant 0 : index
    %c0_201 = arith.constant 0 : index
    %c2_202 = arith.constant 2 : index
    %c0_203 = arith.constant 0 : index
    %161 = vector.load %arg5[%c0_200, %c0_201, %c2_202, %c0_203] : memref<2x10x10x128xf32, #tpu.memory_space<vmem>>, vector<2x8x8x128xf32>
    %162 = vector.shape_cast %161 : vector<2x8x8x128xf32> to vector<128x128xf32>
    %c2_204 = arith.constant 2 : index
    %c2_205 = arith.constant 2 : index
    %c0_206 = arith.constant 0 : index
    %c0_207 = arith.constant 0 : index
    %163 = vector.load %arg2[%c2_204, %c2_205, %c0_206, %c0_207] : memref<7x9x128x128xbf16, #tpu.memory_space<vmem>>, vector<1x1x128x128xbf16>
    %164 = vector.shape_cast %163 : vector<1x1x128x128xbf16> to vector<128x128xbf16>
    %165 = arith.truncf %162 : vector<128x128xf32> to vector<128x128xbf16>
    %cst_208 = arith.constant dense<0.000000e+00> : vector<128x128xf32>
    %166 = tpu.matmul %165, %164, %cst_208 {dimension_numbers = #tpu.dot_dimension_numbers<[1], [0], [0], [1], [0, 0, 1, 1], [], []>} : vector<128x128xbf16>, vector<128x128xbf16>, vector<128x128xf32> -> vector<128x128xf32>
    %167 = arith.addf %160, %166 : vector<128x128xf32>
    %c0_209 = arith.constant 0 : index
    %c1_210 = arith.constant 1 : index
    %c0_211 = arith.constant 0 : index
    %c0_212 = arith.constant 0 : index
    %168 = vector.load %arg5[%c0_209, %c1_210, %c0_211, %c0_212] : memref<2x10x10x128xf32, #tpu.memory_space<vmem>>, vector<2x8x8x128xf32>
    %169 = vector.shape_cast %168 : vector<2x8x8x128xf32> to vector<128x128xf32>
    %c2_213 = arith.constant 2 : index
    %c3_214 = arith.constant 3 : index
    %c0_215 = arith.constant 0 : index
    %c0_216 = arith.constant 0 : index
    %170 = vector.load %arg2[%c2_213, %c3_214, %c0_215, %c0_216] : memref<7x9x128x128xbf16, #tpu.memory_space<vmem>>, vector<1x1x128x128xbf16>
    %171 = vector.shape_cast %170 : vector<1x1x128x128xbf16> to vector<128x128xbf16>
    %172 = arith.truncf %169 : vector<128x128xf32> to vector<128x128xbf16>
    %cst_217 = arith.constant dense<0.000000e+00> : vector<128x128xf32>
    %173 = tpu.matmul %172, %171, %cst_217 {dimension_numbers = #tpu.dot_dimension_numbers<[1], [0], [0], [1], [0, 0, 1, 1], [], []>} : vector<128x128xbf16>, vector<128x128xbf16>, vector<128x128xf32> -> vector<128x128xf32>
    %174 = arith.addf %167, %173 : vector<128x128xf32>
    %c0_218 = arith.constant 0 : index
    %c1_219 = arith.constant 1 : index
    %c1_220 = arith.constant 1 : index
    %c0_221 = arith.constant 0 : index
    %175 = vector.load %arg5[%c0_218, %c1_219, %c1_220, %c0_221] : memref<2x10x10x128xf32, #tpu.memory_space<vmem>>, vector<2x8x8x128xf32>
    %176 = vector.shape_cast %175 : vector<2x8x8x128xf32> to vector<128x128xf32>
    %c2_222 = arith.constant 2 : index
    %c4_223 = arith.constant 4 : index
    %c0_224 = arith.constant 0 : index
    %c0_225 = arith.constant 0 : index
    %177 = vector.load %arg2[%c2_222, %c4_223, %c0_224, %c0_225] : memref<7x9x128x128xbf16, #tpu.memory_space<vmem>>, vector<1x1x128x128xbf16>
    %178 = vector.shape_cast %177 : vector<1x1x128x128xbf16> to vector<128x128xbf16>
    %179 = arith.truncf %176 : vector<128x128xf32> to vector<128x128xbf16>
    %cst_226 = arith.constant dense<0.000000e+00> : vector<128x128xf32>
    %180 = tpu.matmul %179, %178, %cst_226 {dimension_numbers = #tpu.dot_dimension_numbers<[1], [0], [0], [1], [0, 0, 1, 1], [], []>} : vector<128x128xbf16>, vector<128x128xbf16>, vector<128x128xf32> -> vector<128x128xf32>
    %181 = arith.addf %174, %180 : vector<128x128xf32>
    %c0_227 = arith.constant 0 : index
    %c1_228 = arith.constant 1 : index
    %c2_229 = arith.constant 2 : index
    %c0_230 = arith.constant 0 : index
    %182 = vector.load %arg5[%c0_227, %c1_228, %c2_229, %c0_230] : memref<2x10x10x128xf32, #tpu.memory_space<vmem>>, vector<2x8x8x128xf32>
    %183 = vector.shape_cast %182 : vector<2x8x8x128xf32> to vector<128x128xf32>
    %c2_231 = arith.constant 2 : index
    %c5_232 = arith.constant 5 : index
    %c0_233 = arith.constant 0 : index
    %c0_234 = arith.constant 0 : index
    %184 = vector.load %arg2[%c2_231, %c5_232, %c0_233, %c0_234] : memref<7x9x128x128xbf16, #tpu.memory_space<vmem>>, vector<1x1x128x128xbf16>
    %185 = vector.shape_cast %184 : vector<1x1x128x128xbf16> to vector<128x128xbf16>
    %186 = arith.truncf %183 : vector<128x128xf32> to vector<128x128xbf16>
    %cst_235 = arith.constant dense<0.000000e+00> : vector<128x128xf32>
    %187 = tpu.matmul %186, %185, %cst_235 {dimension_numbers = #tpu.dot_dimension_numbers<[1], [0], [0], [1], [0, 0, 1, 1], [], []>} : vector<128x128xbf16>, vector<128x128xbf16>, vector<128x128xf32> -> vector<128x128xf32>
    %188 = arith.addf %181, %187 : vector<128x128xf32>
    %c0_236 = arith.constant 0 : index
    %c2_237 = arith.constant 2 : index
    %c0_238 = arith.constant 0 : index
    %c0_239 = arith.constant 0 : index
    %189 = vector.load %arg5[%c0_236, %c2_237, %c0_238, %c0_239] : memref<2x10x10x128xf32, #tpu.memory_space<vmem>>, vector<2x8x8x128xf32>
    %190 = vector.shape_cast %189 : vector<2x8x8x128xf32> to vector<128x128xf32>
    %c2_240 = arith.constant 2 : index
    %c6_241 = arith.constant 6 : index
    %c0_242 = arith.constant 0 : index
    %c0_243 = arith.constant 0 : index
    %191 = vector.load %arg2[%c2_240, %c6_241, %c0_242, %c0_243] : memref<7x9x128x128xbf16, #tpu.memory_space<vmem>>, vector<1x1x128x128xbf16>
    %192 = vector.shape_cast %191 : vector<1x1x128x128xbf16> to vector<128x128xbf16>
    %193 = arith.truncf %190 : vector<128x128xf32> to vector<128x128xbf16>
    %cst_244 = arith.constant dense<0.000000e+00> : vector<128x128xf32>
    %194 = tpu.matmul %193, %192, %cst_244 {dimension_numbers = #tpu.dot_dimension_numbers<[1], [0], [0], [1], [0, 0, 1, 1], [], []>} : vector<128x128xbf16>, vector<128x128xbf16>, vector<128x128xf32> -> vector<128x128xf32>
    %195 = arith.addf %188, %194 : vector<128x128xf32>
    %c0_245 = arith.constant 0 : index
    %c2_246 = arith.constant 2 : index
    %c1_247 = arith.constant 1 : index
    %c0_248 = arith.constant 0 : index
    %196 = vector.load %arg5[%c0_245, %c2_246, %c1_247, %c0_248] : memref<2x10x10x128xf32, #tpu.memory_space<vmem>>, vector<2x8x8x128xf32>
    %197 = vector.shape_cast %196 : vector<2x8x8x128xf32> to vector<128x128xf32>
    %c2_249 = arith.constant 2 : index
    %c7_250 = arith.constant 7 : index
    %c0_251 = arith.constant 0 : index
    %c0_252 = arith.constant 0 : index
    %198 = vector.load %arg2[%c2_249, %c7_250, %c0_251, %c0_252] : memref<7x9x128x128xbf16, #tpu.memory_space<vmem>>, vector<1x1x128x128xbf16>
    %199 = vector.shape_cast %198 : vector<1x1x128x128xbf16> to vector<128x128xbf16>
    %200 = arith.truncf %197 : vector<128x128xf32> to vector<128x128xbf16>
    %cst_253 = arith.constant dense<0.000000e+00> : vector<128x128xf32>
    %201 = tpu.matmul %200, %199, %cst_253 {dimension_numbers = #tpu.dot_dimension_numbers<[1], [0], [0], [1], [0, 0, 1, 1], [], []>} : vector<128x128xbf16>, vector<128x128xbf16>, vector<128x128xf32> -> vector<128x128xf32>
    %202 = arith.addf %195, %201 : vector<128x128xf32>
    %c0_254 = arith.constant 0 : index
    %c2_255 = arith.constant 2 : index
    %c2_256 = arith.constant 2 : index
    %c0_257 = arith.constant 0 : index
    %203 = vector.load %arg5[%c0_254, %c2_255, %c2_256, %c0_257] : memref<2x10x10x128xf32, #tpu.memory_space<vmem>>, vector<2x8x8x128xf32>
    %204 = vector.shape_cast %203 : vector<2x8x8x128xf32> to vector<128x128xf32>
    %c2_258 = arith.constant 2 : index
    %c8_259 = arith.constant 8 : index
    %c0_260 = arith.constant 0 : index
    %c0_261 = arith.constant 0 : index
    %205 = vector.load %arg2[%c2_258, %c8_259, %c0_260, %c0_261] : memref<7x9x128x128xbf16, #tpu.memory_space<vmem>>, vector<1x1x128x128xbf16>
    %206 = vector.shape_cast %205 : vector<1x1x128x128xbf16> to vector<128x128xbf16>
    %207 = arith.truncf %204 : vector<128x128xf32> to vector<128x128xbf16>
    %cst_262 = arith.constant dense<0.000000e+00> : vector<128x128xf32>
    %208 = tpu.matmul %207, %206, %cst_262 {dimension_numbers = #tpu.dot_dimension_numbers<[1], [0], [0], [1], [0, 0, 1, 1], [], []>} : vector<128x128xbf16>, vector<128x128xbf16>, vector<128x128xf32> -> vector<128x128xf32>
    %209 = arith.addf %202, %208 : vector<128x128xf32>
    %c2_263 = arith.constant 2 : index
    %c0_264 = arith.constant 0 : index
    %210 = vector.load %arg3[%c2_263, %c0_264] : memref<7x128xf32, #tpu.memory_space<vmem>>, vector<1x128xf32>
    %211 = vector.broadcast %210 : vector<1x128xf32> to vector<128x128xf32>
    %212 = arith.addf %209, %211 : vector<128x128xf32>
    %213 = arith.addf %212, %72 : vector<128x128xf32>
    %cst_265 = arith.constant 0.000000e+00 : f32
    %214 = vector.broadcast %cst_265 : f32 to vector<128x128xf32>
    %215 = arith.maximumf %213, %214 : vector<128x128xf32>
    %216 = vector.shape_cast %215 : vector<128x128xf32> to vector<2x8x8x128xf32>
    %c0_266 = arith.constant 0 : index
    %c1_267 = arith.constant 1 : index
    %c1_268 = arith.constant 1 : index
    %c0_269 = arith.constant 0 : index
    %217 = vector.load %arg5[%c0_266, %c1_267, %c1_268, %c0_269] : memref<2x10x10x128xf32, #tpu.memory_space<vmem>>, vector<2x8x8x128xf32>
    tpu.vector_store %arg5[%c0_266, %c1_267, %c1_268, %c0_269], %216 {strides = array<i32>} : memref<2x10x10x128xf32, #tpu.memory_space<vmem>>, vector<2x8x8x128xf32>,
    %cst_270 = arith.constant 0.000000e+00 : f32
    %218 = vector.broadcast %cst_270 : f32 to vector<128x128xf32>
    %c0_271 = arith.constant 0 : index
    %c0_272 = arith.constant 0 : index
    %c0_273 = arith.constant 0 : index
    %c0_274 = arith.constant 0 : index
    %219 = vector.load %arg5[%c0_271, %c0_272, %c0_273, %c0_274] : memref<2x10x10x128xf32, #tpu.memory_space<vmem>>, vector<2x8x8x128xf32>
    %220 = vector.shape_cast %219 : vector<2x8x8x128xf32> to vector<128x128xf32>
    %c3_275 = arith.constant 3 : index
    %c0_276 = arith.constant 0 : index
    %c0_277 = arith.constant 0 : index
    %c0_278 = arith.constant 0 : index
    %221 = vector.load %arg2[%c3_275, %c0_276, %c0_277, %c0_278] : memref<7x9x128x128xbf16, #tpu.memory_space<vmem>>, vector<1x1x128x128xbf16>
    %222 = vector.shape_cast %221 : vector<1x1x128x128xbf16> to vector<128x128xbf16>
    %223 = arith.truncf %220 : vector<128x128xf32> to vector<128x128xbf16>
    %cst_279 = arith.constant dense<0.000000e+00> : vector<128x128xf32>
    %224 = tpu.matmul %223, %222, %cst_279 {dimension_numbers = #tpu.dot_dimension_numbers<[1], [0], [0], [1], [0, 0, 1, 1], [], []>} : vector<128x128xbf16>, vector<128x128xbf16>, vector<128x128xf32> -> vector<128x128xf32>
    %225 = arith.addf %218, %224 : vector<128x128xf32>
    %c0_280 = arith.constant 0 : index
    %c0_281 = arith.constant 0 : index
    %c1_282 = arith.constant 1 : index
    %c0_283 = arith.constant 0 : index
    %226 = vector.load %arg5[%c0_280, %c0_281, %c1_282, %c0_283] : memref<2x10x10x128xf32, #tpu.memory_space<vmem>>, vector<2x8x8x128xf32>
    %227 = vector.shape_cast %226 : vector<2x8x8x128xf32> to vector<128x128xf32>
    %c3_284 = arith.constant 3 : index
    %c1_285 = arith.constant 1 : index
    %c0_286 = arith.constant 0 : index
    %c0_287 = arith.constant 0 : index
    %228 = vector.load %arg2[%c3_284, %c1_285, %c0_286, %c0_287] : memref<7x9x128x128xbf16, #tpu.memory_space<vmem>>, vector<1x1x128x128xbf16>
    %229 = vector.shape_cast %228 : vector<1x1x128x128xbf16> to vector<128x128xbf16>
    %230 = arith.truncf %227 : vector<128x128xf32> to vector<128x128xbf16>
    %cst_288 = arith.constant dense<0.000000e+00> : vector<128x128xf32>
    %231 = tpu.matmul %230, %229, %cst_288 {dimension_numbers = #tpu.dot_dimension_numbers<[1], [0], [0], [1], [0, 0, 1, 1], [], []>} : vector<128x128xbf16>, vector<128x128xbf16>, vector<128x128xf32> -> vector<128x128xf32>
    %232 = arith.addf %225, %231 : vector<128x128xf32>
    %c0_289 = arith.constant 0 : index
    %c0_290 = arith.constant 0 : index
    %c2_291 = arith.constant 2 : index
    %c0_292 = arith.constant 0 : index
    %233 = vector.load %arg5[%c0_289, %c0_290, %c2_291, %c0_292] : memref<2x10x10x128xf32, #tpu.memory_space<vmem>>, vector<2x8x8x128xf32>
    %234 = vector.shape_cast %233 : vector<2x8x8x128xf32> to vector<128x128xf32>
    %c3_293 = arith.constant 3 : index
    %c2_294 = arith.constant 2 : index
    %c0_295 = arith.constant 0 : index
    %c0_296 = arith.constant 0 : index
    %235 = vector.load %arg2[%c3_293, %c2_294, %c0_295, %c0_296] : memref<7x9x128x128xbf16, #tpu.memory_space<vmem>>, vector<1x1x128x128xbf16>
    %236 = vector.shape_cast %235 : vector<1x1x128x128xbf16> to vector<128x128xbf16>
    %237 = arith.truncf %234 : vector<128x128xf32> to vector<128x128xbf16>
    %cst_297 = arith.constant dense<0.000000e+00> : vector<128x128xf32>
    %238 = tpu.matmul %237, %236, %cst_297 {dimension_numbers = #tpu.dot_dimension_numbers<[1], [0], [0], [1], [0, 0, 1, 1], [], []>} : vector<128x128xbf16>, vector<128x128xbf16>, vector<128x128xf32> -> vector<128x128xf32>
    %239 = arith.addf %232, %238 : vector<128x128xf32>
    %c0_298 = arith.constant 0 : index
    %c1_299 = arith.constant 1 : index
    %c0_300 = arith.constant 0 : index
    %c0_301 = arith.constant 0 : index
    %240 = vector.load %arg5[%c0_298, %c1_299, %c0_300, %c0_301] : memref<2x10x10x128xf32, #tpu.memory_space<vmem>>, vector<2x8x8x128xf32>
    %241 = vector.shape_cast %240 : vector<2x8x8x128xf32> to vector<128x128xf32>
    %c3_302 = arith.constant 3 : index
    %c3_303 = arith.constant 3 : index
    %c0_304 = arith.constant 0 : index
    %c0_305 = arith.constant 0 : index
    %242 = vector.load %arg2[%c3_302, %c3_303, %c0_304, %c0_305] : memref<7x9x128x128xbf16, #tpu.memory_space<vmem>>, vector<1x1x128x128xbf16>
    %243 = vector.shape_cast %242 : vector<1x1x128x128xbf16> to vector<128x128xbf16>
    %244 = arith.truncf %241 : vector<128x128xf32> to vector<128x128xbf16>
    %cst_306 = arith.constant dense<0.000000e+00> : vector<128x128xf32>
    %245 = tpu.matmul %244, %243, %cst_306 {dimension_numbers = #tpu.dot_dimension_numbers<[1], [0], [0], [1], [0, 0, 1, 1], [], []>} : vector<128x128xbf16>, vector<128x128xbf16>, vector<128x128xf32> -> vector<128x128xf32>
    %246 = arith.addf %239, %245 : vector<128x128xf32>
    %c0_307 = arith.constant 0 : index
    %c1_308 = arith.constant 1 : index
    %c1_309 = arith.constant 1 : index
    %c0_310 = arith.constant 0 : index
    %247 = vector.load %arg5[%c0_307, %c1_308, %c1_309, %c0_310] : memref<2x10x10x128xf32, #tpu.memory_space<vmem>>, vector<2x8x8x128xf32>
    %248 = vector.shape_cast %247 : vector<2x8x8x128xf32> to vector<128x128xf32>
    %c3_311 = arith.constant 3 : index
    %c4_312 = arith.constant 4 : index
    %c0_313 = arith.constant 0 : index
    %c0_314 = arith.constant 0 : index
    %249 = vector.load %arg2[%c3_311, %c4_312, %c0_313, %c0_314] : memref<7x9x128x128xbf16, #tpu.memory_space<vmem>>, vector<1x1x128x128xbf16>
    %250 = vector.shape_cast %249 : vector<1x1x128x128xbf16> to vector<128x128xbf16>
    %251 = arith.truncf %248 : vector<128x128xf32> to vector<128x128xbf16>
    %cst_315 = arith.constant dense<0.000000e+00> : vector<128x128xf32>
    %252 = tpu.matmul %251, %250, %cst_315 {dimension_numbers = #tpu.dot_dimension_numbers<[1], [0], [0], [1], [0, 0, 1, 1], [], []>} : vector<128x128xbf16>, vector<128x128xbf16>, vector<128x128xf32> -> vector<128x128xf32>
    %253 = arith.addf %246, %252 : vector<128x128xf32>
    %c0_316 = arith.constant 0 : index
    %c1_317 = arith.constant 1 : index
    %c2_318 = arith.constant 2 : index
    %c0_319 = arith.constant 0 : index
    %254 = vector.load %arg5[%c0_316, %c1_317, %c2_318, %c0_319] : memref<2x10x10x128xf32, #tpu.memory_space<vmem>>, vector<2x8x8x128xf32>
    %255 = vector.shape_cast %254 : vector<2x8x8x128xf32> to vector<128x128xf32>
    %c3_320 = arith.constant 3 : index
    %c5_321 = arith.constant 5 : index
    %c0_322 = arith.constant 0 : index
    %c0_323 = arith.constant 0 : index
    %256 = vector.load %arg2[%c3_320, %c5_321, %c0_322, %c0_323] : memref<7x9x128x128xbf16, #tpu.memory_space<vmem>>, vector<1x1x128x128xbf16>
    %257 = vector.shape_cast %256 : vector<1x1x128x128xbf16> to vector<128x128xbf16>
    %258 = arith.truncf %255 : vector<128x128xf32> to vector<128x128xbf16>
    %cst_324 = arith.constant dense<0.000000e+00> : vector<128x128xf32>
    %259 = tpu.matmul %258, %257, %cst_324 {dimension_numbers = #tpu.dot_dimension_numbers<[1], [0], [0], [1], [0, 0, 1, 1], [], []>} : vector<128x128xbf16>, vector<128x128xbf16>, vector<128x128xf32> -> vector<128x128xf32>
    %260 = arith.addf %253, %259 : vector<128x128xf32>
    %c0_325 = arith.constant 0 : index
    %c2_326 = arith.constant 2 : index
    %c0_327 = arith.constant 0 : index
    %c0_328 = arith.constant 0 : index
    %261 = vector.load %arg5[%c0_325, %c2_326, %c0_327, %c0_328] : memref<2x10x10x128xf32, #tpu.memory_space<vmem>>, vector<2x8x8x128xf32>
    %262 = vector.shape_cast %261 : vector<2x8x8x128xf32> to vector<128x128xf32>
    %c3_329 = arith.constant 3 : index
    %c6_330 = arith.constant 6 : index
    %c0_331 = arith.constant 0 : index
    %c0_332 = arith.constant 0 : index
    %263 = vector.load %arg2[%c3_329, %c6_330, %c0_331, %c0_332] : memref<7x9x128x128xbf16, #tpu.memory_space<vmem>>, vector<1x1x128x128xbf16>
    %264 = vector.shape_cast %263 : vector<1x1x128x128xbf16> to vector<128x128xbf16>
    %265 = arith.truncf %262 : vector<128x128xf32> to vector<128x128xbf16>
    %cst_333 = arith.constant dense<0.000000e+00> : vector<128x128xf32>
    %266 = tpu.matmul %265, %264, %cst_333 {dimension_numbers = #tpu.dot_dimension_numbers<[1], [0], [0], [1], [0, 0, 1, 1], [], []>} : vector<128x128xbf16>, vector<128x128xbf16>, vector<128x128xf32> -> vector<128x128xf32>
    %267 = arith.addf %260, %266 : vector<128x128xf32>
    %c0_334 = arith.constant 0 : index
    %c2_335 = arith.constant 2 : index
    %c1_336 = arith.constant 1 : index
    %c0_337 = arith.constant 0 : index
    %268 = vector.load %arg5[%c0_334, %c2_335, %c1_336, %c0_337] : memref<2x10x10x128xf32, #tpu.memory_space<vmem>>, vector<2x8x8x128xf32>
    %269 = vector.shape_cast %268 : vector<2x8x8x128xf32> to vector<128x128xf32>
    %c3_338 = arith.constant 3 : index
    %c7_339 = arith.constant 7 : index
    %c0_340 = arith.constant 0 : index
    %c0_341 = arith.constant 0 : index
    %270 = vector.load %arg2[%c3_338, %c7_339, %c0_340, %c0_341] : memref<7x9x128x128xbf16, #tpu.memory_space<vmem>>, vector<1x1x128x128xbf16>
    %271 = vector.shape_cast %270 : vector<1x1x128x128xbf16> to vector<128x128xbf16>
    %272 = arith.truncf %269 : vector<128x128xf32> to vector<128x128xbf16>
    %cst_342 = arith.constant dense<0.000000e+00> : vector<128x128xf32>
    %273 = tpu.matmul %272, %271, %cst_342 {dimension_numbers = #tpu.dot_dimension_numbers<[1], [0], [0], [1], [0, 0, 1, 1], [], []>} : vector<128x128xbf16>, vector<128x128xbf16>, vector<128x128xf32> -> vector<128x128xf32>
    %274 = arith.addf %267, %273 : vector<128x128xf32>
    %c0_343 = arith.constant 0 : index
    %c2_344 = arith.constant 2 : index
    %c2_345 = arith.constant 2 : index
    %c0_346 = arith.constant 0 : index
    %275 = vector.load %arg5[%c0_343, %c2_344, %c2_345, %c0_346] : memref<2x10x10x128xf32, #tpu.memory_space<vmem>>, vector<2x8x8x128xf32>
    %276 = vector.shape_cast %275 : vector<2x8x8x128xf32> to vector<128x128xf32>
    %c3_347 = arith.constant 3 : index
    %c8_348 = arith.constant 8 : index
    %c0_349 = arith.constant 0 : index
    %c0_350 = arith.constant 0 : index
    %277 = vector.load %arg2[%c3_347, %c8_348, %c0_349, %c0_350] : memref<7x9x128x128xbf16, #tpu.memory_space<vmem>>, vector<1x1x128x128xbf16>
    %278 = vector.shape_cast %277 : vector<1x1x128x128xbf16> to vector<128x128xbf16>
    %279 = arith.truncf %276 : vector<128x128xf32> to vector<128x128xbf16>
    %cst_351 = arith.constant dense<0.000000e+00> : vector<128x128xf32>
    %280 = tpu.matmul %279, %278, %cst_351 {dimension_numbers = #tpu.dot_dimension_numbers<[1], [0], [0], [1], [0, 0, 1, 1], [], []>} : vector<128x128xbf16>, vector<128x128xbf16>, vector<128x128xf32> -> vector<128x128xf32>
    %281 = arith.addf %274, %280 : vector<128x128xf32>
    %c3_352 = arith.constant 3 : index
    %c0_353 = arith.constant 0 : index
    %282 = vector.load %arg3[%c3_352, %c0_353] : memref<7x128xf32, #tpu.memory_space<vmem>>, vector<1x128xf32>
    %283 = vector.broadcast %282 : vector<1x128xf32> to vector<128x128xf32>
    %284 = arith.addf %281, %283 : vector<128x128xf32>
    %cst_354 = arith.constant 0.000000e+00 : f32
    %285 = vector.broadcast %cst_354 : f32 to vector<128x128xf32>
    %286 = arith.maximumf %284, %285 : vector<128x128xf32>
    %287 = vector.shape_cast %286 : vector<128x128xf32> to vector<2x8x8x128xf32>
    %c0_355 = arith.constant 0 : index
    %c1_356 = arith.constant 1 : index
    %c1_357 = arith.constant 1 : index
    %c0_358 = arith.constant 0 : index
    %288 = vector.load %arg5[%c0_355, %c1_356, %c1_357, %c0_358] : memref<2x10x10x128xf32, #tpu.memory_space<vmem>>, vector<2x8x8x128xf32>
    tpu.vector_store %arg5[%c0_355, %c1_356, %c1_357, %c0_358], %287 {strides = array<i32>} : memref<2x10x10x128xf32, #tpu.memory_space<vmem>>, vector<2x8x8x128xf32>,
    %cst_359 = arith.constant 0.000000e+00 : f32
    %289 = vector.broadcast %cst_359 : f32 to vector<128x128xf32>
    %c0_360 = arith.constant 0 : index
    %c0_361 = arith.constant 0 : index
    %c0_362 = arith.constant 0 : index
    %c0_363 = arith.constant 0 : index
    %290 = vector.load %arg5[%c0_360, %c0_361, %c0_362, %c0_363] : memref<2x10x10x128xf32, #tpu.memory_space<vmem>>, vector<2x8x8x128xf32>
    %291 = vector.shape_cast %290 : vector<2x8x8x128xf32> to vector<128x128xf32>
    %c4_364 = arith.constant 4 : index
    %c0_365 = arith.constant 0 : index
    %c0_366 = arith.constant 0 : index
    %c0_367 = arith.constant 0 : index
    %292 = vector.load %arg2[%c4_364, %c0_365, %c0_366, %c0_367] : memref<7x9x128x128xbf16, #tpu.memory_space<vmem>>, vector<1x1x128x128xbf16>
    %293 = vector.shape_cast %292 : vector<1x1x128x128xbf16> to vector<128x128xbf16>
    %294 = arith.truncf %291 : vector<128x128xf32> to vector<128x128xbf16>
    %cst_368 = arith.constant dense<0.000000e+00> : vector<128x128xf32>
    %295 = tpu.matmul %294, %293, %cst_368 {dimension_numbers = #tpu.dot_dimension_numbers<[1], [0], [0], [1], [0, 0, 1, 1], [], []>} : vector<128x128xbf16>, vector<128x128xbf16>, vector<128x128xf32> -> vector<128x128xf32>
    %296 = arith.addf %289, %295 : vector<128x128xf32>
    %c0_369 = arith.constant 0 : index
    %c0_370 = arith.constant 0 : index
    %c1_371 = arith.constant 1 : index
    %c0_372 = arith.constant 0 : index
    %297 = vector.load %arg5[%c0_369, %c0_370, %c1_371, %c0_372] : memref<2x10x10x128xf32, #tpu.memory_space<vmem>>, vector<2x8x8x128xf32>
    %298 = vector.shape_cast %297 : vector<2x8x8x128xf32> to vector<128x128xf32>
    %c4_373 = arith.constant 4 : index
    %c1_374 = arith.constant 1 : index
    %c0_375 = arith.constant 0 : index
    %c0_376 = arith.constant 0 : index
    %299 = vector.load %arg2[%c4_373, %c1_374, %c0_375, %c0_376] : memref<7x9x128x128xbf16, #tpu.memory_space<vmem>>, vector<1x1x128x128xbf16>
    %300 = vector.shape_cast %299 : vector<1x1x128x128xbf16> to vector<128x128xbf16>
    %301 = arith.truncf %298 : vector<128x128xf32> to vector<128x128xbf16>
    %cst_377 = arith.constant dense<0.000000e+00> : vector<128x128xf32>
    %302 = tpu.matmul %301, %300, %cst_377 {dimension_numbers = #tpu.dot_dimension_numbers<[1], [0], [0], [1], [0, 0, 1, 1], [], []>} : vector<128x128xbf16>, vector<128x128xbf16>, vector<128x128xf32> -> vector<128x128xf32>
    %303 = arith.addf %296, %302 : vector<128x128xf32>
    %c0_378 = arith.constant 0 : index
    %c0_379 = arith.constant 0 : index
    %c2_380 = arith.constant 2 : index
    %c0_381 = arith.constant 0 : index
    %304 = vector.load %arg5[%c0_378, %c0_379, %c2_380, %c0_381] : memref<2x10x10x128xf32, #tpu.memory_space<vmem>>, vector<2x8x8x128xf32>
    %305 = vector.shape_cast %304 : vector<2x8x8x128xf32> to vector<128x128xf32>
    %c4_382 = arith.constant 4 : index
    %c2_383 = arith.constant 2 : index
    %c0_384 = arith.constant 0 : index
    %c0_385 = arith.constant 0 : index
    %306 = vector.load %arg2[%c4_382, %c2_383, %c0_384, %c0_385] : memref<7x9x128x128xbf16, #tpu.memory_space<vmem>>, vector<1x1x128x128xbf16>
    %307 = vector.shape_cast %306 : vector<1x1x128x128xbf16> to vector<128x128xbf16>
    %308 = arith.truncf %305 : vector<128x128xf32> to vector<128x128xbf16>
    %cst_386 = arith.constant dense<0.000000e+00> : vector<128x128xf32>
    %309 = tpu.matmul %308, %307, %cst_386 {dimension_numbers = #tpu.dot_dimension_numbers<[1], [0], [0], [1], [0, 0, 1, 1], [], []>} : vector<128x128xbf16>, vector<128x128xbf16>, vector<128x128xf32> -> vector<128x128xf32>
    %310 = arith.addf %303, %309 : vector<128x128xf32>
    %c0_387 = arith.constant 0 : index
    %c1_388 = arith.constant 1 : index
    %c0_389 = arith.constant 0 : index
    %c0_390 = arith.constant 0 : index
    %311 = vector.load %arg5[%c0_387, %c1_388, %c0_389, %c0_390] : memref<2x10x10x128xf32, #tpu.memory_space<vmem>>, vector<2x8x8x128xf32>
    %312 = vector.shape_cast %311 : vector<2x8x8x128xf32> to vector<128x128xf32>
    %c4_391 = arith.constant 4 : index
    %c3_392 = arith.constant 3 : index
    %c0_393 = arith.constant 0 : index
    %c0_394 = arith.constant 0 : index
    %313 = vector.load %arg2[%c4_391, %c3_392, %c0_393, %c0_394] : memref<7x9x128x128xbf16, #tpu.memory_space<vmem>>, vector<1x1x128x128xbf16>
    %314 = vector.shape_cast %313 : vector<1x1x128x128xbf16> to vector<128x128xbf16>
    %315 = arith.truncf %312 : vector<128x128xf32> to vector<128x128xbf16>
    %cst_395 = arith.constant dense<0.000000e+00> : vector<128x128xf32>
    %316 = tpu.matmul %315, %314, %cst_395 {dimension_numbers = #tpu.dot_dimension_numbers<[1], [0], [0], [1], [0, 0, 1, 1], [], []>} : vector<128x128xbf16>, vector<128x128xbf16>, vector<128x128xf32> -> vector<128x128xf32>
    %317 = arith.addf %310, %316 : vector<128x128xf32>
    %c0_396 = arith.constant 0 : index
    %c1_397 = arith.constant 1 : index
    %c1_398 = arith.constant 1 : index
    %c0_399 = arith.constant 0 : index
    %318 = vector.load %arg5[%c0_396, %c1_397, %c1_398, %c0_399] : memref<2x10x10x128xf32, #tpu.memory_space<vmem>>, vector<2x8x8x128xf32>
    %319 = vector.shape_cast %318 : vector<2x8x8x128xf32> to vector<128x128xf32>
    %c4_400 = arith.constant 4 : index
    %c4_401 = arith.constant 4 : index
    %c0_402 = arith.constant 0 : index
    %c0_403 = arith.constant 0 : index
    %320 = vector.load %arg2[%c4_400, %c4_401, %c0_402, %c0_403] : memref<7x9x128x128xbf16, #tpu.memory_space<vmem>>, vector<1x1x128x128xbf16>
    %321 = vector.shape_cast %320 : vector<1x1x128x128xbf16> to vector<128x128xbf16>
    %322 = arith.truncf %319 : vector<128x128xf32> to vector<128x128xbf16>
    %cst_404 = arith.constant dense<0.000000e+00> : vector<128x128xf32>
    %323 = tpu.matmul %322, %321, %cst_404 {dimension_numbers = #tpu.dot_dimension_numbers<[1], [0], [0], [1], [0, 0, 1, 1], [], []>} : vector<128x128xbf16>, vector<128x128xbf16>, vector<128x128xf32> -> vector<128x128xf32>
    %324 = arith.addf %317, %323 : vector<128x128xf32>
    %c0_405 = arith.constant 0 : index
    %c1_406 = arith.constant 1 : index
    %c2_407 = arith.constant 2 : index
    %c0_408 = arith.constant 0 : index
    %325 = vector.load %arg5[%c0_405, %c1_406, %c2_407, %c0_408] : memref<2x10x10x128xf32, #tpu.memory_space<vmem>>, vector<2x8x8x128xf32>
    %326 = vector.shape_cast %325 : vector<2x8x8x128xf32> to vector<128x128xf32>
    %c4_409 = arith.constant 4 : index
    %c5_410 = arith.constant 5 : index
    %c0_411 = arith.constant 0 : index
    %c0_412 = arith.constant 0 : index
    %327 = vector.load %arg2[%c4_409, %c5_410, %c0_411, %c0_412] : memref<7x9x128x128xbf16, #tpu.memory_space<vmem>>, vector<1x1x128x128xbf16>
    %328 = vector.shape_cast %327 : vector<1x1x128x128xbf16> to vector<128x128xbf16>
    %329 = arith.truncf %326 : vector<128x128xf32> to vector<128x128xbf16>
    %cst_413 = arith.constant dense<0.000000e+00> : vector<128x128xf32>
    %330 = tpu.matmul %329, %328, %cst_413 {dimension_numbers = #tpu.dot_dimension_numbers<[1], [0], [0], [1], [0, 0, 1, 1], [], []>} : vector<128x128xbf16>, vector<128x128xbf16>, vector<128x128xf32> -> vector<128x128xf32>
    %331 = arith.addf %324, %330 : vector<128x128xf32>
    %c0_414 = arith.constant 0 : index
    %c2_415 = arith.constant 2 : index
    %c0_416 = arith.constant 0 : index
    %c0_417 = arith.constant 0 : index
    %332 = vector.load %arg5[%c0_414, %c2_415, %c0_416, %c0_417] : memref<2x10x10x128xf32, #tpu.memory_space<vmem>>, vector<2x8x8x128xf32>
    %333 = vector.shape_cast %332 : vector<2x8x8x128xf32> to vector<128x128xf32>
    %c4_418 = arith.constant 4 : index
    %c6_419 = arith.constant 6 : index
    %c0_420 = arith.constant 0 : index
    %c0_421 = arith.constant 0 : index
    %334 = vector.load %arg2[%c4_418, %c6_419, %c0_420, %c0_421] : memref<7x9x128x128xbf16, #tpu.memory_space<vmem>>, vector<1x1x128x128xbf16>
    %335 = vector.shape_cast %334 : vector<1x1x128x128xbf16> to vector<128x128xbf16>
    %336 = arith.truncf %333 : vector<128x128xf32> to vector<128x128xbf16>
    %cst_422 = arith.constant dense<0.000000e+00> : vector<128x128xf32>
    %337 = tpu.matmul %336, %335, %cst_422 {dimension_numbers = #tpu.dot_dimension_numbers<[1], [0], [0], [1], [0, 0, 1, 1], [], []>} : vector<128x128xbf16>, vector<128x128xbf16>, vector<128x128xf32> -> vector<128x128xf32>
    %338 = arith.addf %331, %337 : vector<128x128xf32>
    %c0_423 = arith.constant 0 : index
    %c2_424 = arith.constant 2 : index
    %c1_425 = arith.constant 1 : index
    %c0_426 = arith.constant 0 : index
    %339 = vector.load %arg5[%c0_423, %c2_424, %c1_425, %c0_426] : memref<2x10x10x128xf32, #tpu.memory_space<vmem>>, vector<2x8x8x128xf32>
    %340 = vector.shape_cast %339 : vector<2x8x8x128xf32> to vector<128x128xf32>
    %c4_427 = arith.constant 4 : index
    %c7_428 = arith.constant 7 : index
    %c0_429 = arith.constant 0 : index
    %c0_430 = arith.constant 0 : index
    %341 = vector.load %arg2[%c4_427, %c7_428, %c0_429, %c0_430] : memref<7x9x128x128xbf16, #tpu.memory_space<vmem>>, vector<1x1x128x128xbf16>
    %342 = vector.shape_cast %341 : vector<1x1x128x128xbf16> to vector<128x128xbf16>
    %343 = arith.truncf %340 : vector<128x128xf32> to vector<128x128xbf16>
    %cst_431 = arith.constant dense<0.000000e+00> : vector<128x128xf32>
    %344 = tpu.matmul %343, %342, %cst_431 {dimension_numbers = #tpu.dot_dimension_numbers<[1], [0], [0], [1], [0, 0, 1, 1], [], []>} : vector<128x128xbf16>, vector<128x128xbf16>, vector<128x128xf32> -> vector<128x128xf32>
    %345 = arith.addf %338, %344 : vector<128x128xf32>
    %c0_432 = arith.constant 0 : index
    %c2_433 = arith.constant 2 : index
    %c2_434 = arith.constant 2 : index
    %c0_435 = arith.constant 0 : index
    %346 = vector.load %arg5[%c0_432, %c2_433, %c2_434, %c0_435] : memref<2x10x10x128xf32, #tpu.memory_space<vmem>>, vector<2x8x8x128xf32>
    %347 = vector.shape_cast %346 : vector<2x8x8x128xf32> to vector<128x128xf32>
    %c4_436 = arith.constant 4 : index
    %c8_437 = arith.constant 8 : index
    %c0_438 = arith.constant 0 : index
    %c0_439 = arith.constant 0 : index
    %348 = vector.load %arg2[%c4_436, %c8_437, %c0_438, %c0_439] : memref<7x9x128x128xbf16, #tpu.memory_space<vmem>>, vector<1x1x128x128xbf16>
    %349 = vector.shape_cast %348 : vector<1x1x128x128xbf16> to vector<128x128xbf16>
    %350 = arith.truncf %347 : vector<128x128xf32> to vector<128x128xbf16>
    %cst_440 = arith.constant dense<0.000000e+00> : vector<128x128xf32>
    %351 = tpu.matmul %350, %349, %cst_440 {dimension_numbers = #tpu.dot_dimension_numbers<[1], [0], [0], [1], [0, 0, 1, 1], [], []>} : vector<128x128xbf16>, vector<128x128xbf16>, vector<128x128xf32> -> vector<128x128xf32>
    %352 = arith.addf %345, %351 : vector<128x128xf32>
    %c4_441 = arith.constant 4 : index
    %c0_442 = arith.constant 0 : index
    %353 = vector.load %arg3[%c4_441, %c0_442] : memref<7x128xf32, #tpu.memory_space<vmem>>, vector<1x128xf32>
    %354 = vector.broadcast %353 : vector<1x128xf32> to vector<128x128xf32>
    %355 = arith.addf %352, %354 : vector<128x128xf32>
    %356 = arith.addf %355, %215 : vector<128x128xf32>
    %cst_443 = arith.constant 0.000000e+00 : f32
    %357 = vector.broadcast %cst_443 : f32 to vector<128x128xf32>
    %358 = arith.maximumf %356, %357 : vector<128x128xf32>
    %359 = vector.shape_cast %358 : vector<128x128xf32> to vector<2x8x8x128xf32>
    %c0_444 = arith.constant 0 : index
    %c1_445 = arith.constant 1 : index
    %c1_446 = arith.constant 1 : index
    %c0_447 = arith.constant 0 : index
    %360 = vector.load %arg5[%c0_444, %c1_445, %c1_446, %c0_447] : memref<2x10x10x128xf32, #tpu.memory_space<vmem>>, vector<2x8x8x128xf32>
    tpu.vector_store %arg5[%c0_444, %c1_445, %c1_446, %c0_447], %359 {strides = array<i32>} : memref<2x10x10x128xf32, #tpu.memory_space<vmem>>, vector<2x8x8x128xf32>,
    %cst_448 = arith.constant 0.000000e+00 : f32
    %361 = vector.broadcast %cst_448 : f32 to vector<128x128xf32>
    %c0_449 = arith.constant 0 : index
    %c0_450 = arith.constant 0 : index
    %c0_451 = arith.constant 0 : index
    %c0_452 = arith.constant 0 : index
    %362 = vector.load %arg5[%c0_449, %c0_450, %c0_451, %c0_452] : memref<2x10x10x128xf32, #tpu.memory_space<vmem>>, vector<2x8x8x128xf32>
    %363 = vector.shape_cast %362 : vector<2x8x8x128xf32> to vector<128x128xf32>
    %c5_453 = arith.constant 5 : index
    %c0_454 = arith.constant 0 : index
    %c0_455 = arith.constant 0 : index
    %c0_456 = arith.constant 0 : index
    %364 = vector.load %arg2[%c5_453, %c0_454, %c0_455, %c0_456] : memref<7x9x128x128xbf16, #tpu.memory_space<vmem>>, vector<1x1x128x128xbf16>
    %365 = vector.shape_cast %364 : vector<1x1x128x128xbf16> to vector<128x128xbf16>
    %366 = arith.truncf %363 : vector<128x128xf32> to vector<128x128xbf16>
    %cst_457 = arith.constant dense<0.000000e+00> : vector<128x128xf32>
    %367 = tpu.matmul %366, %365, %cst_457 {dimension_numbers = #tpu.dot_dimension_numbers<[1], [0], [0], [1], [0, 0, 1, 1], [], []>} : vector<128x128xbf16>, vector<128x128xbf16>, vector<128x128xf32> -> vector<128x128xf32>
    %368 = arith.addf %361, %367 : vector<128x128xf32>
    %c0_458 = arith.constant 0 : index
    %c0_459 = arith.constant 0 : index
    %c1_460 = arith.constant 1 : index
    %c0_461 = arith.constant 0 : index
    %369 = vector.load %arg5[%c0_458, %c0_459, %c1_460, %c0_461] : memref<2x10x10x128xf32, #tpu.memory_space<vmem>>, vector<2x8x8x128xf32>
    %370 = vector.shape_cast %369 : vector<2x8x8x128xf32> to vector<128x128xf32>
    %c5_462 = arith.constant 5 : index
    %c1_463 = arith.constant 1 : index
    %c0_464 = arith.constant 0 : index
    %c0_465 = arith.constant 0 : index
    %371 = vector.load %arg2[%c5_462, %c1_463, %c0_464, %c0_465] : memref<7x9x128x128xbf16, #tpu.memory_space<vmem>>, vector<1x1x128x128xbf16>
    %372 = vector.shape_cast %371 : vector<1x1x128x128xbf16> to vector<128x128xbf16>
    %373 = arith.truncf %370 : vector<128x128xf32> to vector<128x128xbf16>
    %cst_466 = arith.constant dense<0.000000e+00> : vector<128x128xf32>
    %374 = tpu.matmul %373, %372, %cst_466 {dimension_numbers = #tpu.dot_dimension_numbers<[1], [0], [0], [1], [0, 0, 1, 1], [], []>} : vector<128x128xbf16>, vector<128x128xbf16>, vector<128x128xf32> -> vector<128x128xf32>
    %375 = arith.addf %368, %374 : vector<128x128xf32>
    %c0_467 = arith.constant 0 : index
    %c0_468 = arith.constant 0 : index
    %c2_469 = arith.constant 2 : index
    %c0_470 = arith.constant 0 : index
    %376 = vector.load %arg5[%c0_467, %c0_468, %c2_469, %c0_470] : memref<2x10x10x128xf32, #tpu.memory_space<vmem>>, vector<2x8x8x128xf32>
    %377 = vector.shape_cast %376 : vector<2x8x8x128xf32> to vector<128x128xf32>
    %c5_471 = arith.constant 5 : index
    %c2_472 = arith.constant 2 : index
    %c0_473 = arith.constant 0 : index
    %c0_474 = arith.constant 0 : index
    %378 = vector.load %arg2[%c5_471, %c2_472, %c0_473, %c0_474] : memref<7x9x128x128xbf16, #tpu.memory_space<vmem>>, vector<1x1x128x128xbf16>
    %379 = vector.shape_cast %378 : vector<1x1x128x128xbf16> to vector<128x128xbf16>
    %380 = arith.truncf %377 : vector<128x128xf32> to vector<128x128xbf16>
    %cst_475 = arith.constant dense<0.000000e+00> : vector<128x128xf32>
    %381 = tpu.matmul %380, %379, %cst_475 {dimension_numbers = #tpu.dot_dimension_numbers<[1], [0], [0], [1], [0, 0, 1, 1], [], []>} : vector<128x128xbf16>, vector<128x128xbf16>, vector<128x128xf32> -> vector<128x128xf32>
    %382 = arith.addf %375, %381 : vector<128x128xf32>
    %c0_476 = arith.constant 0 : index
    %c1_477 = arith.constant 1 : index
    %c0_478 = arith.constant 0 : index
    %c0_479 = arith.constant 0 : index
    %383 = vector.load %arg5[%c0_476, %c1_477, %c0_478, %c0_479] : memref<2x10x10x128xf32, #tpu.memory_space<vmem>>, vector<2x8x8x128xf32>
    %384 = vector.shape_cast %383 : vector<2x8x8x128xf32> to vector<128x128xf32>
    %c5_480 = arith.constant 5 : index
    %c3_481 = arith.constant 3 : index
    %c0_482 = arith.constant 0 : index
    %c0_483 = arith.constant 0 : index
    %385 = vector.load %arg2[%c5_480, %c3_481, %c0_482, %c0_483] : memref<7x9x128x128xbf16, #tpu.memory_space<vmem>>, vector<1x1x128x128xbf16>
    %386 = vector.shape_cast %385 : vector<1x1x128x128xbf16> to vector<128x128xbf16>
    %387 = arith.truncf %384 : vector<128x128xf32> to vector<128x128xbf16>
    %cst_484 = arith.constant dense<0.000000e+00> : vector<128x128xf32>
    %388 = tpu.matmul %387, %386, %cst_484 {dimension_numbers = #tpu.dot_dimension_numbers<[1], [0], [0], [1], [0, 0, 1, 1], [], []>} : vector<128x128xbf16>, vector<128x128xbf16>, vector<128x128xf32> -> vector<128x128xf32>
    %389 = arith.addf %382, %388 : vector<128x128xf32>
    %c0_485 = arith.constant 0 : index
    %c1_486 = arith.constant 1 : index
    %c1_487 = arith.constant 1 : index
    %c0_488 = arith.constant 0 : index
    %390 = vector.load %arg5[%c0_485, %c1_486, %c1_487, %c0_488] : memref<2x10x10x128xf32, #tpu.memory_space<vmem>>, vector<2x8x8x128xf32>
    %391 = vector.shape_cast %390 : vector<2x8x8x128xf32> to vector<128x128xf32>
    %c5_489 = arith.constant 5 : index
    %c4_490 = arith.constant 4 : index
    %c0_491 = arith.constant 0 : index
    %c0_492 = arith.constant 0 : index
    %392 = vector.load %arg2[%c5_489, %c4_490, %c0_491, %c0_492] : memref<7x9x128x128xbf16, #tpu.memory_space<vmem>>, vector<1x1x128x128xbf16>
    %393 = vector.shape_cast %392 : vector<1x1x128x128xbf16> to vector<128x128xbf16>
    %394 = arith.truncf %391 : vector<128x128xf32> to vector<128x128xbf16>
    %cst_493 = arith.constant dense<0.000000e+00> : vector<128x128xf32>
    %395 = tpu.matmul %394, %393, %cst_493 {dimension_numbers = #tpu.dot_dimension_numbers<[1], [0], [0], [1], [0, 0, 1, 1], [], []>} : vector<128x128xbf16>, vector<128x128xbf16>, vector<128x128xf32> -> vector<128x128xf32>
    %396 = arith.addf %389, %395 : vector<128x128xf32>
    %c0_494 = arith.constant 0 : index
    %c1_495 = arith.constant 1 : index
    %c2_496 = arith.constant 2 : index
    %c0_497 = arith.constant 0 : index
    %397 = vector.load %arg5[%c0_494, %c1_495, %c2_496, %c0_497] : memref<2x10x10x128xf32, #tpu.memory_space<vmem>>, vector<2x8x8x128xf32>
    %398 = vector.shape_cast %397 : vector<2x8x8x128xf32> to vector<128x128xf32>
    %c5_498 = arith.constant 5 : index
    %c5_499 = arith.constant 5 : index
    %c0_500 = arith.constant 0 : index
    %c0_501 = arith.constant 0 : index
    %399 = vector.load %arg2[%c5_498, %c5_499, %c0_500, %c0_501] : memref<7x9x128x128xbf16, #tpu.memory_space<vmem>>, vector<1x1x128x128xbf16>
    %400 = vector.shape_cast %399 : vector<1x1x128x128xbf16> to vector<128x128xbf16>
    %401 = arith.truncf %398 : vector<128x128xf32> to vector<128x128xbf16>
    %cst_502 = arith.constant dense<0.000000e+00> : vector<128x128xf32>
    %402 = tpu.matmul %401, %400, %cst_502 {dimension_numbers = #tpu.dot_dimension_numbers<[1], [0], [0], [1], [0, 0, 1, 1], [], []>} : vector<128x128xbf16>, vector<128x128xbf16>, vector<128x128xf32> -> vector<128x128xf32>
    %403 = arith.addf %396, %402 : vector<128x128xf32>
    %c0_503 = arith.constant 0 : index
    %c2_504 = arith.constant 2 : index
    %c0_505 = arith.constant 0 : index
    %c0_506 = arith.constant 0 : index
    %404 = vector.load %arg5[%c0_503, %c2_504, %c0_505, %c0_506] : memref<2x10x10x128xf32, #tpu.memory_space<vmem>>, vector<2x8x8x128xf32>
    %405 = vector.shape_cast %404 : vector<2x8x8x128xf32> to vector<128x128xf32>
    %c5_507 = arith.constant 5 : index
    %c6_508 = arith.constant 6 : index
    %c0_509 = arith.constant 0 : index
    %c0_510 = arith.constant 0 : index
    %406 = vector.load %arg2[%c5_507, %c6_508, %c0_509, %c0_510] : memref<7x9x128x128xbf16, #tpu.memory_space<vmem>>, vector<1x1x128x128xbf16>
    %407 = vector.shape_cast %406 : vector<1x1x128x128xbf16> to vector<128x128xbf16>
    %408 = arith.truncf %405 : vector<128x128xf32> to vector<128x128xbf16>
    %cst_511 = arith.constant dense<0.000000e+00> : vector<128x128xf32>
    %409 = tpu.matmul %408, %407, %cst_511 {dimension_numbers = #tpu.dot_dimension_numbers<[1], [0], [0], [1], [0, 0, 1, 1], [], []>} : vector<128x128xbf16>, vector<128x128xbf16>, vector<128x128xf32> -> vector<128x128xf32>
    %410 = arith.addf %403, %409 : vector<128x128xf32>
    %c0_512 = arith.constant 0 : index
    %c2_513 = arith.constant 2 : index
    %c1_514 = arith.constant 1 : index
    %c0_515 = arith.constant 0 : index
    %411 = vector.load %arg5[%c0_512, %c2_513, %c1_514, %c0_515] : memref<2x10x10x128xf32, #tpu.memory_space<vmem>>, vector<2x8x8x128xf32>
    %412 = vector.shape_cast %411 : vector<2x8x8x128xf32> to vector<128x128xf32>
    %c5_516 = arith.constant 5 : index
    %c7_517 = arith.constant 7 : index
    %c0_518 = arith.constant 0 : index
    %c0_519 = arith.constant 0 : index
    %413 = vector.load %arg2[%c5_516, %c7_517, %c0_518, %c0_519] : memref<7x9x128x128xbf16, #tpu.memory_space<vmem>>, vector<1x1x128x128xbf16>
    %414 = vector.shape_cast %413 : vector<1x1x128x128xbf16> to vector<128x128xbf16>
    %415 = arith.truncf %412 : vector<128x128xf32> to vector<128x128xbf16>
    %cst_520 = arith.constant dense<0.000000e+00> : vector<128x128xf32>
    %416 = tpu.matmul %415, %414, %cst_520 {dimension_numbers = #tpu.dot_dimension_numbers<[1], [0], [0], [1], [0, 0, 1, 1], [], []>} : vector<128x128xbf16>, vector<128x128xbf16>, vector<128x128xf32> -> vector<128x128xf32>
    %417 = arith.addf %410, %416 : vector<128x128xf32>
    %c0_521 = arith.constant 0 : index
    %c2_522 = arith.constant 2 : index
    %c2_523 = arith.constant 2 : index
    %c0_524 = arith.constant 0 : index
    %418 = vector.load %arg5[%c0_521, %c2_522, %c2_523, %c0_524] : memref<2x10x10x128xf32, #tpu.memory_space<vmem>>, vector<2x8x8x128xf32>
    %419 = vector.shape_cast %418 : vector<2x8x8x128xf32> to vector<128x128xf32>
    %c5_525 = arith.constant 5 : index
    %c8_526 = arith.constant 8 : index
    %c0_527 = arith.constant 0 : index
    %c0_528 = arith.constant 0 : index
    %420 = vector.load %arg2[%c5_525, %c8_526, %c0_527, %c0_528] : memref<7x9x128x128xbf16, #tpu.memory_space<vmem>>, vector<1x1x128x128xbf16>
    %421 = vector.shape_cast %420 : vector<1x1x128x128xbf16> to vector<128x128xbf16>
    %422 = arith.truncf %419 : vector<128x128xf32> to vector<128x128xbf16>
    %cst_529 = arith.constant dense<0.000000e+00> : vector<128x128xf32>
    %423 = tpu.matmul %422, %421, %cst_529 {dimension_numbers = #tpu.dot_dimension_numbers<[1], [0], [0], [1], [0, 0, 1, 1], [], []>} : vector<128x128xbf16>, vector<128x128xbf16>, vector<128x128xf32> -> vector<128x128xf32>
    %424 = arith.addf %417, %423 : vector<128x128xf32>
    %c5_530 = arith.constant 5 : index
    %c0_531 = arith.constant 0 : index
    %425 = vector.load %arg3[%c5_530, %c0_531] : memref<7x128xf32, #tpu.memory_space<vmem>>, vector<1x128xf32>
    %426 = vector.broadcast %425 : vector<1x128xf32> to vector<128x128xf32>
    %427 = arith.addf %424, %426 : vector<128x128xf32>
    %cst_532 = arith.constant 0.000000e+00 : f32
    %428 = vector.broadcast %cst_532 : f32 to vector<128x128xf32>
    %429 = arith.maximumf %427, %428 : vector<128x128xf32>
    %430 = vector.shape_cast %429 : vector<128x128xf32> to vector<2x8x8x128xf32>
    %c0_533 = arith.constant 0 : index
    %c1_534 = arith.constant 1 : index
    %c1_535 = arith.constant 1 : index
    %c0_536 = arith.constant 0 : index
    %431 = vector.load %arg5[%c0_533, %c1_534, %c1_535, %c0_536] : memref<2x10x10x128xf32, #tpu.memory_space<vmem>>, vector<2x8x8x128xf32>
    tpu.vector_store %arg5[%c0_533, %c1_534, %c1_535, %c0_536], %430 {strides = array<i32>} : memref<2x10x10x128xf32, #tpu.memory_space<vmem>>, vector<2x8x8x128xf32>,
    %cst_537 = arith.constant 0.000000e+00 : f32
    %432 = vector.broadcast %cst_537 : f32 to vector<128x128xf32>
    %c0_538 = arith.constant 0 : index
    %c0_539 = arith.constant 0 : index
    %c0_540 = arith.constant 0 : index
    %c0_541 = arith.constant 0 : index
    %433 = vector.load %arg5[%c0_538, %c0_539, %c0_540, %c0_541] : memref<2x10x10x128xf32, #tpu.memory_space<vmem>>, vector<2x8x8x128xf32>
    %434 = vector.shape_cast %433 : vector<2x8x8x128xf32> to vector<128x128xf32>
    %c6_542 = arith.constant 6 : index
    %c0_543 = arith.constant 0 : index
    %c0_544 = arith.constant 0 : index
    %c0_545 = arith.constant 0 : index
    %435 = vector.load %arg2[%c6_542, %c0_543, %c0_544, %c0_545] : memref<7x9x128x128xbf16, #tpu.memory_space<vmem>>, vector<1x1x128x128xbf16>
    %436 = vector.shape_cast %435 : vector<1x1x128x128xbf16> to vector<128x128xbf16>
    %437 = arith.truncf %434 : vector<128x128xf32> to vector<128x128xbf16>
    %cst_546 = arith.constant dense<0.000000e+00> : vector<128x128xf32>
    %438 = tpu.matmul %437, %436, %cst_546 {dimension_numbers = #tpu.dot_dimension_numbers<[1], [0], [0], [1], [0, 0, 1, 1], [], []>} : vector<128x128xbf16>, vector<128x128xbf16>, vector<128x128xf32> -> vector<128x128xf32>
    %439 = arith.addf %432, %438 : vector<128x128xf32>
    %c0_547 = arith.constant 0 : index
    %c0_548 = arith.constant 0 : index
    %c1_549 = arith.constant 1 : index
    %c0_550 = arith.constant 0 : index
    %440 = vector.load %arg5[%c0_547, %c0_548, %c1_549, %c0_550] : memref<2x10x10x128xf32, #tpu.memory_space<vmem>>, vector<2x8x8x128xf32>
    %441 = vector.shape_cast %440 : vector<2x8x8x128xf32> to vector<128x128xf32>
    %c6_551 = arith.constant 6 : index
    %c1_552 = arith.constant 1 : index
    %c0_553 = arith.constant 0 : index
    %c0_554 = arith.constant 0 : index
    %442 = vector.load %arg2[%c6_551, %c1_552, %c0_553, %c0_554] : memref<7x9x128x128xbf16, #tpu.memory_space<vmem>>, vector<1x1x128x128xbf16>
    %443 = vector.shape_cast %442 : vector<1x1x128x128xbf16> to vector<128x128xbf16>
    %444 = arith.truncf %441 : vector<128x128xf32> to vector<128x128xbf16>
    %cst_555 = arith.constant dense<0.000000e+00> : vector<128x128xf32>
    %445 = tpu.matmul %444, %443, %cst_555 {dimension_numbers = #tpu.dot_dimension_numbers<[1], [0], [0], [1], [0, 0, 1, 1], [], []>} : vector<128x128xbf16>, vector<128x128xbf16>, vector<128x128xf32> -> vector<128x128xf32>
    %446 = arith.addf %439, %445 : vector<128x128xf32>
    %c0_556 = arith.constant 0 : index
    %c0_557 = arith.constant 0 : index
    %c2_558 = arith.constant 2 : index
    %c0_559 = arith.constant 0 : index
    %447 = vector.load %arg5[%c0_556, %c0_557, %c2_558, %c0_559] : memref<2x10x10x128xf32, #tpu.memory_space<vmem>>, vector<2x8x8x128xf32>
    %448 = vector.shape_cast %447 : vector<2x8x8x128xf32> to vector<128x128xf32>
    %c6_560 = arith.constant 6 : index
    %c2_561 = arith.constant 2 : index
    %c0_562 = arith.constant 0 : index
    %c0_563 = arith.constant 0 : index
    %449 = vector.load %arg2[%c6_560, %c2_561, %c0_562, %c0_563] : memref<7x9x128x128xbf16, #tpu.memory_space<vmem>>, vector<1x1x128x128xbf16>
    %450 = vector.shape_cast %449 : vector<1x1x128x128xbf16> to vector<128x128xbf16>
    %451 = arith.truncf %448 : vector<128x128xf32> to vector<128x128xbf16>
    %cst_564 = arith.constant dense<0.000000e+00> : vector<128x128xf32>
    %452 = tpu.matmul %451, %450, %cst_564 {dimension_numbers = #tpu.dot_dimension_numbers<[1], [0], [0], [1], [0, 0, 1, 1], [], []>} : vector<128x128xbf16>, vector<128x128xbf16>, vector<128x128xf32> -> vector<128x128xf32>
    %453 = arith.addf %446, %452 : vector<128x128xf32>
    %c0_565 = arith.constant 0 : index
    %c1_566 = arith.constant 1 : index
    %c0_567 = arith.constant 0 : index
    %c0_568 = arith.constant 0 : index
    %454 = vector.load %arg5[%c0_565, %c1_566, %c0_567, %c0_568] : memref<2x10x10x128xf32, #tpu.memory_space<vmem>>, vector<2x8x8x128xf32>
    %455 = vector.shape_cast %454 : vector<2x8x8x128xf32> to vector<128x128xf32>
    %c6_569 = arith.constant 6 : index
    %c3_570 = arith.constant 3 : index
    %c0_571 = arith.constant 0 : index
    %c0_572 = arith.constant 0 : index
    %456 = vector.load %arg2[%c6_569, %c3_570, %c0_571, %c0_572] : memref<7x9x128x128xbf16, #tpu.memory_space<vmem>>, vector<1x1x128x128xbf16>
    %457 = vector.shape_cast %456 : vector<1x1x128x128xbf16> to vector<128x128xbf16>
    %458 = arith.truncf %455 : vector<128x128xf32> to vector<128x128xbf16>
    %cst_573 = arith.constant dense<0.000000e+00> : vector<128x128xf32>
    %459 = tpu.matmul %458, %457, %cst_573 {dimension_numbers = #tpu.dot_dimension_numbers<[1], [0], [0], [1], [0, 0, 1, 1], [], []>} : vector<128x128xbf16>, vector<128x128xbf16>, vector<128x128xf32> -> vector<128x128xf32>
    %460 = arith.addf %453, %459 : vector<128x128xf32>
    %c0_574 = arith.constant 0 : index
    %c1_575 = arith.constant 1 : index
    %c1_576 = arith.constant 1 : index
    %c0_577 = arith.constant 0 : index
    %461 = vector.load %arg5[%c0_574, %c1_575, %c1_576, %c0_577] : memref<2x10x10x128xf32, #tpu.memory_space<vmem>>, vector<2x8x8x128xf32>
    %462 = vector.shape_cast %461 : vector<2x8x8x128xf32> to vector<128x128xf32>
    %c6_578 = arith.constant 6 : index
    %c4_579 = arith.constant 4 : index
    %c0_580 = arith.constant 0 : index
    %c0_581 = arith.constant 0 : index
    %463 = vector.load %arg2[%c6_578, %c4_579, %c0_580, %c0_581] : memref<7x9x128x128xbf16, #tpu.memory_space<vmem>>, vector<1x1x128x128xbf16>
    %464 = vector.shape_cast %463 : vector<1x1x128x128xbf16> to vector<128x128xbf16>
    %465 = arith.truncf %462 : vector<128x128xf32> to vector<128x128xbf16>
    %cst_582 = arith.constant dense<0.000000e+00> : vector<128x128xf32>
    %466 = tpu.matmul %465, %464, %cst_582 {dimension_numbers = #tpu.dot_dimension_numbers<[1], [0], [0], [1], [0, 0, 1, 1], [], []>} : vector<128x128xbf16>, vector<128x128xbf16>, vector<128x128xf32> -> vector<128x128xf32>
    %467 = arith.addf %460, %466 : vector<128x128xf32>
    %c0_583 = arith.constant 0 : index
    %c1_584 = arith.constant 1 : index
    %c2_585 = arith.constant 2 : index
    %c0_586 = arith.constant 0 : index
    %468 = vector.load %arg5[%c0_583, %c1_584, %c2_585, %c0_586] : memref<2x10x10x128xf32, #tpu.memory_space<vmem>>, vector<2x8x8x128xf32>
    %469 = vector.shape_cast %468 : vector<2x8x8x128xf32> to vector<128x128xf32>
    %c6_587 = arith.constant 6 : index
    %c5_588 = arith.constant 5 : index
    %c0_589 = arith.constant 0 : index
    %c0_590 = arith.constant 0 : index
    %470 = vector.load %arg2[%c6_587, %c5_588, %c0_589, %c0_590] : memref<7x9x128x128xbf16, #tpu.memory_space<vmem>>, vector<1x1x128x128xbf16>
    %471 = vector.shape_cast %470 : vector<1x1x128x128xbf16> to vector<128x128xbf16>
    %472 = arith.truncf %469 : vector<128x128xf32> to vector<128x128xbf16>
    %cst_591 = arith.constant dense<0.000000e+00> : vector<128x128xf32>
    %473 = tpu.matmul %472, %471, %cst_591 {dimension_numbers = #tpu.dot_dimension_numbers<[1], [0], [0], [1], [0, 0, 1, 1], [], []>} : vector<128x128xbf16>, vector<128x128xbf16>, vector<128x128xf32> -> vector<128x128xf32>
    %474 = arith.addf %467, %473 : vector<128x128xf32>
    %c0_592 = arith.constant 0 : index
    %c2_593 = arith.constant 2 : index
    %c0_594 = arith.constant 0 : index
    %c0_595 = arith.constant 0 : index
    %475 = vector.load %arg5[%c0_592, %c2_593, %c0_594, %c0_595] : memref<2x10x10x128xf32, #tpu.memory_space<vmem>>, vector<2x8x8x128xf32>
    %476 = vector.shape_cast %475 : vector<2x8x8x128xf32> to vector<128x128xf32>
    %c6_596 = arith.constant 6 : index
    %c6_597 = arith.constant 6 : index
    %c0_598 = arith.constant 0 : index
    %c0_599 = arith.constant 0 : index
    %477 = vector.load %arg2[%c6_596, %c6_597, %c0_598, %c0_599] : memref<7x9x128x128xbf16, #tpu.memory_space<vmem>>, vector<1x1x128x128xbf16>
    %478 = vector.shape_cast %477 : vector<1x1x128x128xbf16> to vector<128x128xbf16>
    %479 = arith.truncf %476 : vector<128x128xf32> to vector<128x128xbf16>
    %cst_600 = arith.constant dense<0.000000e+00> : vector<128x128xf32>
    %480 = tpu.matmul %479, %478, %cst_600 {dimension_numbers = #tpu.dot_dimension_numbers<[1], [0], [0], [1], [0, 0, 1, 1], [], []>} : vector<128x128xbf16>, vector<128x128xbf16>, vector<128x128xf32> -> vector<128x128xf32>
    %481 = arith.addf %474, %480 : vector<128x128xf32>
    %c0_601 = arith.constant 0 : index
    %c2_602 = arith.constant 2 : index
    %c1_603 = arith.constant 1 : index
    %c0_604 = arith.constant 0 : index
    %482 = vector.load %arg5[%c0_601, %c2_602, %c1_603, %c0_604] : memref<2x10x10x128xf32, #tpu.memory_space<vmem>>, vector<2x8x8x128xf32>
    %483 = vector.shape_cast %482 : vector<2x8x8x128xf32> to vector<128x128xf32>
    %c6_605 = arith.constant 6 : index
    %c7_606 = arith.constant 7 : index
    %c0_607 = arith.constant 0 : index
    %c0_608 = arith.constant 0 : index
    %484 = vector.load %arg2[%c6_605, %c7_606, %c0_607, %c0_608] : memref<7x9x128x128xbf16, #tpu.memory_space<vmem>>, vector<1x1x128x128xbf16>
    %485 = vector.shape_cast %484 : vector<1x1x128x128xbf16> to vector<128x128xbf16>
    %486 = arith.truncf %483 : vector<128x128xf32> to vector<128x128xbf16>
    %cst_609 = arith.constant dense<0.000000e+00> : vector<128x128xf32>
    %487 = tpu.matmul %486, %485, %cst_609 {dimension_numbers = #tpu.dot_dimension_numbers<[1], [0], [0], [1], [0, 0, 1, 1], [], []>} : vector<128x128xbf16>, vector<128x128xbf16>, vector<128x128xf32> -> vector<128x128xf32>
    %488 = arith.addf %481, %487 : vector<128x128xf32>
    %c0_610 = arith.constant 0 : index
    %c2_611 = arith.constant 2 : index
    %c2_612 = arith.constant 2 : index
    %c0_613 = arith.constant 0 : index
    %489 = vector.load %arg5[%c0_610, %c2_611, %c2_612, %c0_613] : memref<2x10x10x128xf32, #tpu.memory_space<vmem>>, vector<2x8x8x128xf32>
    %490 = vector.shape_cast %489 : vector<2x8x8x128xf32> to vector<128x128xf32>
    %c6_614 = arith.constant 6 : index
    %c8_615 = arith.constant 8 : index
    %c0_616 = arith.constant 0 : index
    %c0_617 = arith.constant 0 : index
    %491 = vector.load %arg2[%c6_614, %c8_615, %c0_616, %c0_617] : memref<7x9x128x128xbf16, #tpu.memory_space<vmem>>, vector<1x1x128x128xbf16>
    %492 = vector.shape_cast %491 : vector<1x1x128x128xbf16> to vector<128x128xbf16>
    %493 = arith.truncf %490 : vector<128x128xf32> to vector<128x128xbf16>
    %cst_618 = arith.constant dense<0.000000e+00> : vector<128x128xf32>
    %494 = tpu.matmul %493, %492, %cst_618 {dimension_numbers = #tpu.dot_dimension_numbers<[1], [0], [0], [1], [0, 0, 1, 1], [], []>} : vector<128x128xbf16>, vector<128x128xbf16>, vector<128x128xf32> -> vector<128x128xf32>
    %495 = arith.addf %488, %494 : vector<128x128xf32>
    %c6_619 = arith.constant 6 : index
    %c0_620 = arith.constant 0 : index
    %496 = vector.load %arg3[%c6_619, %c0_620] : memref<7x128xf32, #tpu.memory_space<vmem>>, vector<1x128xf32>
    %497 = vector.broadcast %496 : vector<1x128xf32> to vector<128x128xf32>
    %498 = arith.addf %495, %497 : vector<128x128xf32>
    %499 = arith.addf %498, %358 : vector<128x128xf32>
    %cst_621 = arith.constant 0.000000e+00 : f32
    %500 = vector.broadcast %cst_621 : f32 to vector<128x128xf32>
    %501 = arith.maximumf %499, %500 : vector<128x128xf32>
    %c0_622 = arith.constant 0 : index
    %c0_623 = arith.constant 0 : index
    %502 = vector.load %arg4[%c0_622, %c0_623] : memref<128x128xf32, #tpu.memory_space<vmem>>, vector<128x128xf32>
    tpu.vector_store %arg4[%c0_622, %c0_623], %501 {strides = array<i32>} : memref<128x128xf32, #tpu.memory_space<vmem>>, vector<128x128xf32>,
    return
  }
  func.func @transform_0(%arg0: i32) -> (i32, i32, i32, i32) {
    %c0_i32 = arith.constant 0 : i32
    %c0_i32_0 = arith.constant 0 : i32
    %c0_i32_1 = arith.constant 0 : i32
    %c0_i32_2 = arith.constant 0 : i32
    %c0_i32_3 = arith.constant 0 : i32
    return %c0_i32, %c0_i32_0, %c0_i32_1, %c0_i32_2 : i32, i32, i32, i32
  }
  func.func @transform_1(%arg0: i32) -> (i32, i32, i32, i32) {
    %c0_i32 = arith.constant 0 : i32
    %c0_i32_0 = arith.constant 0 : i32
    %c0_i32_1 = arith.constant 0 : i32
    %c0_i32_2 = arith.constant 0 : i32
    %c0_i32_3 = arith.constant 0 : i32
    return %c0_i32, %c0_i32_0, %c0_i32_1, %c0_i32_2 : i32, i32, i32, i32
  }
  func.func @transform_2(%arg0: i32) -> (i32, i32) {
    %c0_i32 = arith.constant 0 : i32
    %c0_i32_0 = arith.constant 0 : i32
    %c0_i32_1 = arith.constant 0 : i32
    return %c0_i32, %c0_i32_0 : i32, i32
  }
  func.func @transform_3(%arg0: i32) -> (i32, i32) {
    %c0_i32 = arith.constant 0 : i32
    %c0_i32_0 = arith.constant 0 : i32
    %c0_i32_1 = arith.constant 0 : i32
    return %c0_i32, %c0_i32_0 : i32, i32
  }
}

</mosaic_0001>

<bundles_post_ra>
// kernel: conv_resnet_forward.1
= control target key start
LH: loop header
LB: loop body
LE: loop exit
PB: predicated region body
PF: predicated region fallthrough
CT: control target
= control target key end

     0   :  { %8 = vsyncpa [#allocation4], 0  ;;  %s21318_s0 = inlined_call_operand.vmem [shape: f32[2,8,8,4], index: 0, kind: input, shape index: {}]   ;;  %s21319_s1 = inlined_call_operand.hbm [shape: bf16[7,9,128,128], index: 1, kind: input, shape index: {}]   ;;  %s21320_s2 = inlined_call_operand.hbm [shape: f32[7,128], index: 2, kind: input, shape index: {}]   ;;  %s21321_s3 = inlined_call_operand.hbm [shape: f32[128,128], index: 3, kind: output, shape index: {}]  }
   0x1   :  { %9 = vsyncpa [#allocation7], 0 }
   0x2   :  { %10 = vsyncpa [#allocation5], 0  ;;  %s17193_s12 = smov [#allocation3]  }
   0x3   :  { %s18_s13 = sshll.u32 %s17193_s12, 4  ;;  %s19_s13 = int_to_ptr.vmem [resolvable:$true] %s18_s13 }
   0x4   :  { %s17135_s14 = scalar_lea.vmem %s19_s13, 64512  ;;  %p17140_p1 = scmp.lt.s32.totalorder %s19_s13, %s19_s13 }
   0x5   :  { %p17136_p0 = scmp.ne.s32.totalorder %s19_s13, %s17135_s14  ;;  %p17141_p2 = scmp.lt.s32.totalorder %s17135_s14, %s17135_s14 }
   0x7   :  { %p17142_p3 = por %p17141_p2, %p17140_p1 }
   0x9   :  { %p17143_p4 = pnand %p17142_p3, %p17136_p0 }
   0xb   :  { %17146 = shalt.err (!%p17143_p4)
}
   0xc   :  { %s17194_s15 = smov 64   ;;  %s17195_s16 = smov 4  }
   0xd   :  { %24 = dma.hbm_to_vmem [thread:$0]  %s21319_s1, 64512, %s19_s13, [#allocation4], %s17194_s15, %s17194_s15, %s17195_s16  }
   0xe   :  { %s17196_s19 = smov [#allocation6]  }
   0xf   :  { %s31_s20 = sshll.u32 %s17196_s19, 4  ;;  %s32_s20 = int_to_ptr.vmem [resolvable:$true] %s31_s20 }
  0x10   :  { %s17155_s21 = scalar_lea.vmem %s32_s20, 128  ;;  %p17160_p6 = scmp.lt.s32.totalorder %s32_s20, %s32_s20 }
  0x11   :  { %p17156_p5 = scmp.ne.s32.totalorder %s32_s20, %s17155_s21  ;;  %p17161_p7 = scmp.lt.s32.totalorder %s17155_s21, %s17155_s21 }
  0x13   :  { %p17162_p8 = por %p17161_p7, %p17160_p6 }
  0x15   :  { %p17163_p9 = pnand %p17162_p8, %p17156_p5 }
  0x17   :  { %17166 = shalt.err (!%p17163_p9)
}
  0x18   :  { %34 = dma.hbm_to_vmem [thread:$0]  %s21320_s2, 128, %s32_s20, [#allocation7]  }
  0x19   :  { %17187 = dma.done.wait [#allocation4], 64512  }
  0x1a   :  { %17188 = vsyncadd [#allocation4], 4294902784 }
  0x1b   :  { %17189 = dma.done.wait [#allocation7], 128  }
  0x1c   :  { %17190 = vsyncadd [#allocation7], 4294967168  ;;  %v17197_v0 = vmov 0.0   ;;  %v16614_v1 = vld [vmem:[#allocation3 + $0x78] sm:$0xff]   ;;  %v16616_v3 = vld [vmem:[#allocation3 + $0x70] sm:$0xff]   ;;  %vm99_vm0 = vcmask 31744  }
  0x1d   :  { %42 = vst [vmem:[#allocation2] sm:$0xff] %v17197_v0  ;;  %43 = vst [vmem:[#allocation2 + $0x8] sm:$0x3] %v17197_v0  ;;  %v16615_v2 = vld [vmem:[#allocation3 + $0x38] sm:$0xff]   ;;  %14574 = vmatprep.subr.bf16.mxu0 %v16614_v1  ;;  %v16617_v4 = vld [vmem:[#allocation3 + $0x30] sm:$0xff]  }
  0x1e   :  { %44 = vst [vmem:[#allocation2 + $0x10] sm:$0xff] %v17197_v0  ;;  %45 = vst [vmem:[#allocation2 + $0x18] sm:$0x3] %v17197_v0  ;;  %14606 = vmatprep.subr.bf16.mxu1 %v16615_v2  ;;  %14575 = vmatpush3.bf16.msra.mxu0 %v16614_v1  ;;  %v16618_v5 = vld [vmem:[#allocation3 + $0x68] sm:$0xff]   ;;  %v16620_v7 = vld [vmem:[#allocation3 + $0x60] sm:$0xff]  }
  0x1f   :  { %46 = vst [vmem:[#allocation2 + $0x20] sm:$0xff] %v17197_v0  ;;  %47 = vst [vmem:[#allocation2 + $0x28] sm:$0x3] %v17197_v0  ;;  %14607 = vmatpush3.bf16.msra.mxu1 %v16615_v2  ;;  %14576 = vmatprep.subr.bf16.mxu0 %v16616_v3  ;;  %v16619_v6 = vld [vmem:[#allocation3 + $0x28] sm:$0xff]   ;;  %v16621_v8 = vld [vmem:[#allocation3 + $0x20] sm:$0xff]  }
  0x20   :  { %48 = vst [vmem:[#allocation2 + $0x30] sm:$0xff] %v17197_v0  ;;  %49 = vst [vmem:[#allocation2 + $0x38] sm:$0x3] %v17197_v0  ;;  %14608 = vmatprep.subr.bf16.mxu1 %v16617_v4  ;;  %v16622_v9 = vld [vmem:[#allocation3 + $0x58] sm:$0xff]   ;;  %v16624_v11 = vld [vmem:[#allocation3 + $0x50] sm:$0xff]  }
  0x21   :  { %50 = vst [vmem:[#allocation2 + $0x40] sm:$0xff] %v17197_v0  ;;  %51 = vst [vmem:[#allocation2 + $0x48] sm:$0x3] %v17197_v0  ;;  %v16623_v10 = vld [vmem:[#allocation3 + $0x18] sm:$0xff]   ;;  %v16625_v12 = vld [vmem:[#allocation3 + $0x10] sm:$0xff]  }
  0x22   :  { %52 = vst [vmem:[#allocation2 + $0x50] sm:$0xff] %v17197_v0  ;;  %53 = vst [vmem:[#allocation2 + $0x58] sm:$0x3] %v17197_v0  ;;  %14577 = vmatpush3.bf16.msra.mxu0 %v16616_v3  ;;  %v82_v13 = vld [vmem:[%s21318_s0] sm:$0xff]  ;;  %v83_v14 = vld [vmem:[%s21318_s0 + $0x8] sm:$0xff] }
  0x23   :  { %54 = vst [vmem:[#allocation2 + $0x60] sm:$0xff] %v17197_v0  ;;  %55 = vst [vmem:[#allocation2 + $0x68] sm:$0x3] %v17197_v0  ;;  %14609 = vmatpush3.bf16.msra.mxu1 %v16617_v4  ;;  %14578 = vmatprep.subr.bf16.mxu0 %v16618_v5  ;;  %v84_v15 = vld [vmem:[%s21318_s0 + $0x10] sm:$0xff]  ;;  %v16626_v16 = vld [vmem:[#allocation3 + $0x48] sm:$0xff]  }
  0x24   :  { %56 = vst [vmem:[#allocation2 + $0x70] sm:$0xff] %v17197_v0  ;;  %57 = vst [vmem:[#allocation2 + $0x78] sm:$0x3] %v17197_v0  ;;  %14610 = vmatprep.subr.bf16.mxu1 %v16619_v6  ;;  %v16627_v17 = vld [vmem:[#allocation3 + $0x8] sm:$0xff]   ;;  %v85_v19 = vld [vmem:[%s21318_s0 + $0x18] sm:$0xff] }
  0x25   :  { %58 = vst [vmem:[#allocation2 + $0x80] sm:$0xff] %v17197_v0  ;;  %59 = vst [vmem:[#allocation2 + $0x88] sm:$0x3] %v17197_v0  ;;  %v156_v18 = vld [vmem:[#allocation2 + $0x1] sm:$0xff]  ;;  %v88_v22 = vld [vmem:[%s21318_s0 + $0x30] sm:$0xff] }
  0x26   :  { %60 = vst [vmem:[#allocation2 + $0x90] sm:$0xff] %v17197_v0  ;;  %61 = vst [vmem:[#allocation2 + $0x98] sm:$0x3] %v17197_v0  ;;  %14579 = vmatpush3.bf16.msra.mxu0 %v16618_v5  ;;  %v86_v20 = vld [vmem:[%s21318_s0 + $0x20] sm:$0xff]  ;;  %v87_v21 = vld [vmem:[%s21318_s0 + $0x28] sm:$0xff] }
  0x27   :  { %62 = vst [vmem:[#allocation2 + $0xa0] sm:$0xff] %v17197_v0  ;;  %63 = vst [vmem:[#allocation2 + $0xa8] sm:$0x3] %v17197_v0  ;;  %14611 = vmatpush3.bf16.msra.mxu1 %v16619_v6  ;;  %14580 = vmatprep.subr.bf16.mxu0 %v16620_v7  ;;  %v16628_v23 = vld [vmem:[#allocation3 + $0x40] sm:$0xff]   ;;  %v16630_v31 = vld [vmem:[#allocation3 + $0xb8] sm:$0xff]  }
  0x28   :  { %64 = vst [vmem:[#allocation2 + $0xb0] sm:$0xff] %v17197_v0  ;;  %65 = vst [vmem:[#allocation2 + $0xb8] sm:$0x3] %v17197_v0  ;;  %14612 = vmatprep.subr.bf16.mxu1 %v16621_v8  ;;  %v16629_v26 = vld [vmem:[#allocation3] sm:$0xff]   ;;  %v16631_v35 = vld [vmem:[#allocation3 + $0xf8] sm:$0xff]  }
  0x29   :  { %66 = vst [vmem:[#allocation2 + $0xc0] sm:$0xff] %v17197_v0  ;;  %67 = vst [vmem:[#allocation2 + $0xc8] sm:$0x3] %v17197_v0  ;;  %v90_v34 = vld [vmem:[%s21318_s0 + $0x40] sm:$0xff]  ;;  %v16632_v37 = vld [vmem:[#allocation3 + $0xb0] sm:$0xff]  }
  0x2a   :  { %68 = vst [vmem:[#allocation2 + $0xd0] sm:$0xff] %v17197_v0  ;;  %69 = vst [vmem:[#allocation2 + $0xd8] sm:$0x3] %v17197_v0  ;;  %14581 = vmatpush3.bf16.msra.mxu0 %v16620_v7  ;;  %v16633_v41 = vld [vmem:[#allocation3 + $0xf0] sm:$0xff]   ;;  %v91_v44 = vld [vmem:[%s21318_s0 + $0x48] sm:$0xff] }
  0x2b   :  { %70 = vst [vmem:[#allocation2 + $0xe0] sm:$0xff] %v17197_v0  ;;  %71 = vst [vmem:[#allocation2 + $0xe8] sm:$0x3] %v17197_v0  ;;  %14613 = vmatpush3.bf16.msra.mxu1 %v16621_v8  ;;  %14582 = vmatprep.subr.bf16.mxu0 %v16622_v9  ;;  %v92_v45 = vld [vmem:[%s21318_s0 + $0x50] sm:$0xff]  ;;  %v16634_v50 = vld [vmem:[#allocation3 + $0xa8] sm:$0xff]  }
  0x2c   :  { %72 = vst [vmem:[#allocation2 + $0xf0] sm:$0xff] %v17197_v0  ;;  %73 = vst [vmem:[#allocation2 + $0xf8] sm:$0x3] %v17197_v0  ;;  %14614 = vmatprep.subr.bf16.mxu1 %v16623_v10  ;;  %v16635_v52 = vld [vmem:[#allocation3 + $0xe8] sm:$0xff]   ;;  %v93_v56 = vld [vmem:[%s21318_s0 + $0x58] sm:$0xff] }
  0x2d   :  { %74 = vst [vmem:[#allocation2 + $0x100] sm:$0xff] %v17197_v0  ;;  %75 = vst [vmem:[#allocation2 + $0x108] sm:$0x3] %v17197_v0  ;;  %v94_v57 = vld [vmem:[%s21318_s0 + $0x60] sm:$0xff]  ;;  %v95_v59 = vld [vmem:[%s21318_s0 + $0x68] sm:$0xff] }
  0x2e   :  { %76 = vst [vmem:[#allocation2 + $0x110] sm:$0xff] %v17197_v0  ;;  %77 = vst [vmem:[#allocation2 + $0x118] sm:$0x3] %v17197_v0  ;;  %14583 = vmatpush3.bf16.msra.mxu0 %v16622_v9  ;;  %v164_v54 = vld [vmem:[#allocation2 + $0xa1] sm:$0xff]  ;;  %v96_v60 = vld [vmem:[%s21318_s0 + $0x70] sm:$0xff] }
  0x2f   :  { %78 = vst [vmem:[#allocation2 + $0x120] sm:$0xff] %v17197_v0  ;;  %79 = vst [vmem:[#allocation2 + $0x128] sm:$0x3] %v17197_v0  ;;  %14615 = vmatpush3.bf16.msra.mxu1 %v16623_v10  ;;  %14584 = vmatprep.subr.bf16.mxu0 %v16624_v11  ;;  %v16636_v63 = vld [vmem:[#allocation3 + $0xa0] sm:$0xff]   ;;  %v16638_v8 = vld [vmem:[#allocation3 + $0x98] sm:$0xff]  }
  0x30   :  { %80 = vst [vmem:[#allocation2 + $0x130] sm:$0xff] %v17197_v0  ;;  %81 = vst [vmem:[#allocation2 + $0x138] sm:$0x3] %v17197_v0  ;;  %14616 = vmatprep.subr.bf16.mxu1 %v16625_v12  ;;  %v16637_v1 = vld [vmem:[#allocation3 + $0xe0] sm:$0xff]   ;;  %v16639_v9 = vld [vmem:[#allocation3 + $0xd8] sm:$0xff]  }
  0x31   :  { %100 = vst.msk [vmem:[#allocation2 + $0x11] sm:$0xff] %vm99_vm0, %v82_v13  ;;  %101 = vst.msk [vmem:[#allocation2 + $0x21] sm:$0xff] %vm99_vm0, %v83_v14 }
  0x32   :  { %102 = vst.msk [vmem:[#allocation2 + $0x31] sm:$0xff] %vm99_vm0, %v84_v15  ;;  %103 = vst.msk [vmem:[#allocation2 + $0x41] sm:$0xff] %vm99_vm0, %v85_v19  ;;  %14585 = vmatpush3.bf16.msra.mxu0 %v16624_v11  ;;  %v16640_v15 = vld [vmem:[#allocation3 + $0x90] sm:$0xff]  }
  0x33   :  { %104 = vst.msk [vmem:[#allocation2 + $0x51] sm:$0xff] %vm99_vm0, %v86_v20  ;;  %105 = vst.msk [vmem:[#allocation2 + $0x61] sm:$0xff] %vm99_vm0, %v87_v21  ;;  %14617 = vmatpush3.bf16.msra.mxu1 %v16625_v12  ;;  %14586 = vmatprep.subr.bf16.mxu0 %v16626_v16  ;;  %v16642_v20 = vld [vmem:[#allocation3 + $0x88] sm:$0xff]  }
  0x34   :  { %106 = vst.msk [vmem:[#allocation2 + $0x71] sm:$0xff] %vm99_vm0, %v88_v22  ;;  %14618 = vmatprep.subr.bf16.mxu1 %v16627_v17  ;;  %108 = vst.msk [vmem:[#allocation2 + $0xb1] sm:$0xff] %vm99_vm0, %v90_v34  ;;  %v89_v34 = vld [vmem:[%s21318_s0 + $0x38] sm:$0xff] }
  0x35   :  { %109 = vst.msk [vmem:[#allocation2 + $0xc1] sm:$0xff] %vm99_vm0, %v91_v44  ;;  %110 = vst.msk [vmem:[#allocation2 + $0xd1] sm:$0xff] %vm99_vm0, %v92_v45 }
  0x36   :  { %14587 = vmatpush3.bf16.msra.mxu0 %v16626_v16  ;;  %111 = vst.msk [vmem:[#allocation2 + $0xe1] sm:$0xff] %vm99_vm0, %v93_v56  ;;  %112 = vst.msk [vmem:[#allocation2 + $0xf1] sm:$0xff] %vm99_vm0, %v94_v57  ;;  %v16641_v16 = vld [vmem:[#allocation3 + $0xd0] sm:$0xff]   ;;  %v16647_v56 = vld [vmem:[#allocation3 + $0x178] sm:$0xff]  }
  0x37   :  { %14619 = vmatpush3.bf16.msra.mxu1 %v16627_v17  ;;  %14588 = vmatprep.subr.bf16.mxu0 %v16628_v23  ;;  %113 = vst.msk [vmem:[#allocation2 + $0x101] sm:$0xff] %vm99_vm0, %v95_v59  ;;  %114 = vst.msk [vmem:[#allocation2 + $0x111] sm:$0xff] %vm99_vm0, %v96_v60 }
  0x38   :  { %v17295_v24 = vld [vmem:[#allocation2 + $0x11] sm:$0xff]  ;;  %v17302_v29 = vld [vmem:[#allocation2 + $0x21] sm:$0xff]  ;;  %14620 = vmatprep.subr.bf16.mxu1 %v16629_v26  ;;  %107 = vst.msk [vmem:[#allocation2 + $0x81] sm:$0xff] %vm99_vm0, %v89_v34 }
  0x39   :  { %v17297_v25 = vld [vmem:[#allocation2 + $0x10] sm:$0xff]  ;;  %v189_v27 = vpack.c.bf16 %v17295_v24, %v156_v18  ;;  %v17306_v32 = vld [vmem:[#allocation2 + $0x20] sm:$0xff] }
  0x3a   :  { %v148_v28 = vpack.c.bf16 %v17297_v25, %v17197_v0  ;;  %v17304_v30 = vld [vmem:[#allocation2 + $0x31] sm:$0xff]  ;;  %v17318_v38 = vld [vmem:[#allocation2 + $0x41] sm:$0xff]  ;;  %14589 = vmatpush3.bf16.msra.mxu0 %v16628_v23 }
  0x3b   :  { %14590 = vmatprep.mubr.bf16.mxu0 %v189_v27  ;;  %v17308_v33 = vld [vmem:[#allocation2 + $0x30] sm:$0xff]  ;;  %v17316_v36 = vpack.c.bf16 %v17304_v30, %v17302_v29  ;;  %v17326_v42 = vld [vmem:[#allocation2 + $0x40] sm:$0xff]  ;;  %14621 = vmatpush3.bf16.msra.mxu1 %v16629_v26  ;;  %v16643_v26 = vld [vmem:[#allocation3 + $0xc8] sm:$0xff]  }
  0x3c   :  { %14622 = vmatprep.mubr.bf16.mxu1 %v148_v28  ;;  %v17320_v39 = vld [vmem:[#allocation2 + $0x51] sm:$0xff]  ;;  %v17324_v40 = vpack.c.bf16 %v17308_v33, %v17306_v32  ;;  %14638 = vmatprep.subr.bf16.mxu0 %v16630_v31  ;;  %v17340_v47 = vld [vmem:[#allocation2 + $0x61] sm:$0xff] }
  0x3d   :  { %v17328_v43 = vld [vmem:[#allocation2 + $0x50] sm:$0xff]  ;;  %14670 = vmatprep.subr.bf16.mxu1 %v16631_v35  ;;  %v17338_v46 = vpack.c.bf16 %v17320_v39, %v17318_v38  ;;  %14591 = vmatmul.mubr.bf16.vlgmr.msra.gmra.mxu0 %v17316_v36  ;;  %v17352_v51 = vld [vmem:[#allocation2 + $0x60] sm:$0xff] }
  0x3e   :  { %v17347_v48 = vpack.c.bf16 %v17328_v43, %v17326_v42  ;;  %v17349_v49 = vld [vmem:[#allocation2 + $0x71] sm:$0xff]  ;;  %14623 = vmatmul.mubr.bf16.vlgmr.msra.gmra.mxu1 %v17324_v40  ;;  %14639 = vmatpush3.bf16.msra.mxu0 %v16630_v31  ;;  %v17390_v4 = vld [vmem:[#allocation2 + $0xc1] sm:$0xff] }
  0x3f   :  { %14671 = vmatpush3.bf16.msra.mxu1 %v16631_v35  ;;  %14640 = vmatprep.subr.bf16.mxu0 %v16632_v37  ;;  %v17354_v53 = vld [vmem:[#allocation2 + $0x70] sm:$0xff]  ;;  %v17368_v58 = vpack.c.bf16 %v17349_v49, %v17340_v47  ;;  %v17395_v6 = vld [vmem:[#allocation2 + $0xc0] sm:$0xff] }
  0x40   :  { %14672 = vmatprep.subr.bf16.mxu1 %v16633_v41  ;;  %14594 = vmatprep.mubr.bf16.mxu0 %v17338_v46  ;;  %v17357_v55 = vld [vmem:[#allocation2 + $0xb1] sm:$0xff]  ;;  %v17380_v61 = vpack.c.bf16 %v17354_v53, %v17352_v51  ;;  %v17403_v10 = vld [vmem:[#allocation2 + $0xe1] sm:$0xff] }
  0x41   :  { %14626 = vmatprep.mubr.bf16.mxu1 %v17347_v48  ;;  %v17382_v62 = vld [vmem:[#allocation2 + $0xb0] sm:$0xff]  ;;  %v193_v2 = vpack.c.bf16 %v17357_v55, %v164_v54  ;;  %v17411_v13 = vld [vmem:[#allocation2 + $0xe0] sm:$0xff]  ;;  %v16646_v54 = vld [vmem:[#allocation3 + $0x138] sm:$0xff]  }
  0x42   :  { %14641 = vmatpush3.bf16.msra.mxu0 %v16632_v37  ;;  %v152_v3 = vpack.c.bf16 %v17382_v62, %v17197_v0  ;;  %v17393_v5 = vld [vmem:[#allocation2 + $0xd1] sm:$0xff]  ;;  %v17424_v19 = vld [vmem:[#allocation2 + $0x101] sm:$0xff] }
  0x43   :  { %14673 = vmatpush3.bf16.msra.mxu1 %v16633_v41  ;;  %14642 = vmatprep.subr.bf16.mxu0 %v16634_v50  ;;  %v17397_v7 = vld [vmem:[#allocation2 + $0xd0] sm:$0xff]  ;;  %v17401_v0 = vpack.c.bf16 %v17393_v5, %v17390_v4  ;;  %v17429_v22 = vld [vmem:[#allocation2 + $0x100] sm:$0xff] }
  0x44   :  { %14674 = vmatprep.subr.bf16.mxu1 %v16635_v52  ;;  %v17405_v11 = vld [vmem:[#allocation2 + $0xf1] sm:$0xff]  ;;  %v17409_v12 = vpack.c.bf16 %v17397_v7, %v17395_v6  ;;  %v487_v27 = vld [vmem:[#allocation2 + $0x2] sm:$0xff] }
  0x45   :  { %14595 = vmatmul.mubr.bf16.gmra.mxu0 %v17368_v58  ;;  %v17413_v14 = vld [vmem:[#allocation2 + $0xf0] sm:$0xff]  ;;  %v17417_v17 = vpack.c.bf16 %v17405_v11, %v17403_v10  ;;  %v16644_v37 = vld [vmem:[#allocation3 + $0x80] sm:$0xff]  }
  0x46   :  { %14627 = vmatmul.mubr.bf16.gmra.mxu1 %v17380_v61  ;;  %14643 = vmatpush3.bf16.msra.mxu0 %v16634_v50  ;;  %v17422_v18 = vpack.c.bf16 %v17413_v14, %v17411_v13  ;;  %v17427_v21 = vld [vmem:[#allocation2 + $0x111] sm:$0xff]  ;;  %v16645_v41 = vld [vmem:[#allocation3 + $0xc0] sm:$0xff]  }
  0x47   :  { %14675 = vmatpush3.bf16.msra.mxu1 %v16635_v52  ;;  %14644 = vmatprep.subr.bf16.mxu0 %v16636_v63  ;;  %v17431_v23 = vld [vmem:[#allocation2 + $0x110] sm:$0xff]  ;;  %v17437_v28 = vpack.c.bf16 %v17427_v21, %v17424_v19  ;;  %v17451_v45 = vld [vmem:[#allocation2 + $0x22] sm:$0xff]  ;;  %v722_v52 = vpack.c.bf16 %v17306_v32, %v17297_v25  ;;  %v723_v25 = vpack.c.bf16 %v17326_v42, %v17308_v33 }
  0x48   :  { %14676 = vmatprep.subr.bf16.mxu1 %v16637_v1  ;;  %14598 = vmatprep.mubr.bf16.mxu0 %v193_v2  ;;  %v17439_v31 = vld [vmem:[#allocation2 + $0x12] sm:$0xff]  ;;  %v17446_v35 = vpack.c.bf16 %v17431_v23, %v17429_v22  ;;  %v17458_v57 = vld [vmem:[#allocation2 + $0x42] sm:$0xff]  ;;  %v724_v42 = vpack.c.bf16 %v17352_v51, %v17328_v43 }
  0x49   :  { %14630 = vmatprep.mubr.bf16.mxu1 %v152_v3  ;;  %v520_v44 = vpack.c.bf16 %v17439_v31, %v487_v27  ;;  %v17453_v50 = vld [vmem:[#allocation2 + $0x32] sm:$0xff]  ;;  %v17472_v2 = vld [vmem:[#allocation2 + $0x62] sm:$0xff] }
  0x4a   :  { %14645 = vmatpush3.bf16.msra.mxu0 %v16636_v63  ;;  %v17462_v59 = vpack.c.bf16 %v17453_v50, %v17451_v45  ;;  %v17464_v60 = vld [vmem:[#allocation2 + $0x52] sm:$0xff]  ;;  %v16650_v33 = vld [vmem:[#allocation3 + $0x128] sm:$0xff]   ;;  %v16652_v51 = vld [vmem:[#allocation3 + $0x120] sm:$0xff]  }
  0x4b   :  { %14677 = vmatpush3.bf16.msra.mxu1 %v16637_v1  ;;  %14646 = vmatprep.subr.bf16.mxu0 %v16638_v8  ;;  %v16648_v32 = vld [vmem:[#allocation3 + $0x130] sm:$0xff]   ;;  %v17470_v1 = vpack.c.bf16 %v17464_v60, %v17458_v57  ;;  %v16653_v27 = vld [vmem:[#allocation3 + $0x160] sm:$0xff]  }
  0x4c   :  { %14678 = vmatprep.subr.bf16.mxu1 %v16639_v9  ;;  %v16649_v63 = vld [vmem:[#allocation3 + $0x170] sm:$0xff]  }
  0x4d   :  { %14599 = vmatmul.mubr.bf16.gmra.mxu0 %v17401_v0  ;;  %v17474_v3 = vld [vmem:[#allocation2 + $0x72] sm:$0xff] }
  0x4e   :  { %14631 = vmatmul.mubr.bf16.gmra.mxu1 %v17409_v12  ;;  %14647 = vmatpush3.bf16.msra.mxu0 %v16638_v8  ;;  %v97_v8 = vld [vmem:[%s21318_s0 + $0x78] sm:$0xff]  ;;  %s17198_s0 = smov [#allocation8]  }
  0x4f   :  { %14679 = vmatpush3.bf16.msra.mxu1 %v16639_v9  ;;  %14648 = vmatprep.subr.bf16.mxu0 %v16640_v15  ;;  %115 = vst.msk [vmem:[#allocation2 + $0x121] sm:$0xff] %vm99_vm0, %v97_v8  ;;  %v16651_v9 = vld [vmem:[#allocation3 + $0x168] sm:$0xff]   ;;  %s13042_s25 = sshll.u32 %s17198_s0, 4  ;;  %s13043_s25 = int_to_ptr.vmem [resolvable:$true] %s13042_s25 }
  0x50   :  { %14680 = vmatprep.subr.bf16.mxu1 %v16641_v16  ;;  %14602 = vmatprep.mubr.bf16.mxu0 %v17417_v17  ;;  %v17517_v8 = vld [vmem:[#allocation2 + $0x102] sm:$0xff]  ;;  %s17167_s26 = scalar_lea.vmem %s13043_s25, 2048  ;;  %p17172_p11 = scmp.lt.s32.totalorder %s13043_s25, %s13043_s25 }
  0x51   :  { %14634 = vmatprep.mubr.bf16.mxu1 %v17422_v18  ;;  %p17168_p10 = scmp.ne.s32.totalorder %s13043_s25, %s17167_s26  ;;  %p17173_p12 = scmp.lt.s32.totalorder %s17167_s26, %s17167_s26 }
  0x52   :  { %14649 = vmatpush3.bf16.msra.mxu0 %v16640_v15  ;;  %v17483_v15 = vld [vmem:[#allocation2 + $0x80] sm:$0xff] }
  0x53   :  { %14681 = vmatpush3.bf16.msra.mxu1 %v16641_v16  ;;  %14650 = vmatprep.subr.bf16.mxu0 %v16642_v20  ;;  %v495_v16 = vld [vmem:[#allocation2 + $0xa2] sm:$0xff]  ;;  %v725_v43 = vpack.c.bf16 %v17483_v15, %v17354_v53  ;;  %v16655_v53 = vld [vmem:[#allocation3 + $0x158] sm:$0xff]   ;;  %p17174_p13 = por %p17173_p12, %p17172_p11 }
  0x54   :  { %14682 = vmatprep.subr.bf16.mxu1 %v16643_v26 }
  0x55   :  { %14603 = vmatmul.mubr.bf16.gmra.mxu0 %v17437_v28  ;;  %p17175_p0 = pnand %p17174_p13, %p17168_p10 }
  0x56   :  { %14635 = vmatmul.mubr.bf16.gmra.mxu1 %v17446_v35  ;;  %14651 = vmatpush3.bf16.msra.mxu0 %v16642_v20  ;;  %v17488_v20 = vpack.c.bf16 %v17474_v3, %v17472_v2 }
  0x57   :  { %14683 = vmatpush3.bf16.msra.mxu1 %v16643_v26  ;;  %14652 = vmatprep.subr.bf16.mxu0 %v16644_v37  ;;  %v17490_v26 = vld [vmem:[#allocation2 + $0xb2] sm:$0xff] }
  0x58   :  { %14684 = vmatprep.subr.bf16.mxu1 %v16645_v41  ;;  %14654 = vmatprep.mubr.bf16.mxu0 %v520_v44  ;;  %v524_v34 = vpack.c.bf16 %v17490_v26, %v495_v16  ;;  %v726_v44 = vpack.c.bf16 %v17395_v6, %v17382_v62  ;;  %v727_v62 = vpack.c.bf16 %v17411_v13, %v17397_v7  ;;  %v16656_v6 = vld [vmem:[#allocation3 + $0x110] sm:$0xff]   ;;  %v16658_v7 = vld [vmem:[#allocation3 + $0x108] sm:$0xff]   ;;  %v17523_v13 = vld [vmem:[#allocation2 + $0x120] sm:$0xff] }
  0x59   :  { %14686 = vmatprep.mubr.bf16.mxu1 %v722_v52  ;;  %v16654_v52 = vld [vmem:[#allocation3 + $0x118] sm:$0xff]  }
  0x5a   :  { %14653 = vmatpush3.bf16.msra.mxu0 %v16644_v37  ;;  %v17496_v37 = vld [vmem:[#allocation2 + $0xc2] sm:$0xff] }
  0x5b   :  { %14685 = vmatpush3.bf16.msra.mxu1 %v16645_v41  ;;  %14702 = vmatprep.subr.bf16.mxu0 %v16646_v54  ;;  %v17498_v41 = vld [vmem:[#allocation2 + $0xd2] sm:$0xff] }
  0x5c   :  { %14734 = vmatprep.subr.bf16.mxu1 %v16647_v56 }
  0x5d   :  { %14655 = vmatmul.mubr.bf16.vlgmr.msra.gmra.mxu0 %v17462_v59 }
  0x5e   :  { %14703 = vmatpush3.bf16.msra.mxu0 %v16646_v54  ;;  %14687 = vmatmul.mubr.bf16.vlgmr.msra.gmra.mxu1 %v723_v25  ;;  %v17502_v54 = vld [vmem:[#allocation2 + $0xe2] sm:$0xff]  ;;  %v17508_v25 = vld [vmem:[#allocation2 + $0xf2] sm:$0xff] }
  0x5f   :  { %14735 = vmatpush3.bf16.msra.mxu1 %v16647_v56  ;;  %14704 = vmatprep.subr.bf16.mxu0 %v16648_v32  ;;  %v17506_v56 = vpack.c.bf16 %v17498_v41, %v17496_v37 }
  0x60   :  { %14736 = vmatprep.subr.bf16.mxu1 %v16649_v63  ;;  %14658 = vmatprep.mubr.bf16.mxu0 %v17470_v1 }
  0x61   :  { %14690 = vmatprep.mubr.bf16.mxu1 %v724_v42  ;;  %v17521_v42 = vld [vmem:[#allocation2 + $0x112] sm:$0xff] }
  0x62   :  { %14705 = vmatpush3.bf16.msra.mxu0 %v16648_v32  ;;  %v16657_v32 = vld [vmem:[#allocation3 + $0x150] sm:$0xff]   ;;  %v17528_v16 = vpack.c.bf16 %v17521_v42, %v17517_v8 }
  0x63   :  { %14737 = vmatpush3.bf16.msra.mxu1 %v16649_v63  ;;  %14706 = vmatprep.subr.bf16.mxu0 %v16650_v33  ;;  %v17514_v63 = vpack.c.bf16 %v17508_v25, %v17502_v54 }
  0x64   :  { %14738 = vmatprep.subr.bf16.mxu1 %v16651_v9 }
  0x65   :  { %14659 = vmatmul.mubr.bf16.gmra.mxu0 %v17488_v20 }
  0x66   :  { %14707 = vmatpush3.bf16.msra.mxu0 %v16650_v33  ;;  %14691 = vmatmul.mubr.bf16.gmra.mxu1 %v725_v43  ;;  %v728_v33 = vpack.c.bf16 %v17429_v22, %v17413_v14  ;;  %v729_v14 = vpack.c.bf16 %v17523_v13, %v17431_v23  ;;  %v16660_v22 = vld [vmem:[#allocation3 + $0x100] sm:$0xff]   ;;  %v16663_v23 = vld [vmem:[#allocation3 + $0x1f8] sm:$0xff]  }
  0x67   :  { %14739 = vmatpush3.bf16.msra.mxu1 %v16651_v9  ;;  %14708 = vmatprep.subr.bf16.mxu0 %v16652_v51  ;;  %v16659_v9 = vld [vmem:[#allocation3 + $0x148] sm:$0xff]   ;;  %v16661_v43 = vld [vmem:[#allocation3 + $0x140] sm:$0xff]  }
  0x68   :  { %14740 = vmatprep.subr.bf16.mxu1 %v16653_v27  ;;  %14662 = vmatprep.mubr.bf16.mxu0 %v524_v34  ;;  %v16662_v34 = vld [vmem:[#allocation3 + $0x1b8] sm:$0xff]  }
  0x69   :  { %14694 = vmatprep.mubr.bf16.mxu1 %v726_v44  ;;  %v925_v44 = vpack.c.bf16 %v17318_v38, %v17304_v30  ;;  %v1128_v30 = vpack.c.bf16 %v17472_v2, %v17464_v60  ;;  %v17547_v38 = vld [vmem:[#allocation2 + $0x82] sm:$0xff]  ;;  %v928_v60 = vpack.c.bf16 %v17390_v4, %v17357_v55  ;;  %v16670_v2 = vld [vmem:[#allocation3 + $0x198] sm:$0xff]   ;;  %v1131_v55 = vpack.c.bf16 %v17502_v54, %v17498_v41  ;;  %v16673_v4 = vld [vmem:[#allocation3 + $0x1d0] sm:$0xff]  }
  0x6a   :  { %14709 = vmatpush3.bf16.msra.mxu0 %v16652_v51  ;;  %v924_v51 = vpack.c.bf16 %v17302_v29, %v17295_v24  ;;  %v1127_v24 = vpack.c.bf16 %v17458_v57, %v17453_v50  ;;  %v16664_v29 = vld [vmem:[#allocation3 + $0x1b0] sm:$0xff]   ;;  %v16667_v50 = vld [vmem:[#allocation3 + $0x1e8] sm:$0xff]   ;;  %v16677_v54 = vld [vmem:[#allocation3 + $0x1c0] sm:$0xff]  }
  0x6b   :  { %14741 = vmatpush3.bf16.msra.mxu1 %v16653_v27  ;;  %14710 = vmatprep.subr.bf16.mxu0 %v16654_v52  ;;  %v1126_v27 = vpack.c.bf16 %v17451_v45, %v17439_v31  ;;  %v926_v31 = vpack.c.bf16 %v17340_v47, %v17320_v39  ;;  %v17543_v45 = vld [vmem:[#allocation2 + $0x81] sm:$0xff]  ;;  %v1129_v47 = vpack.c.bf16 %v17547_v38, %v17474_v3 }
  0x6c   :  { %14742 = vmatprep.subr.bf16.mxu1 %v16655_v53  ;;  %v927_v57 = vpack.c.bf16 %v17543_v45, %v17349_v49  ;;  %v16668_v39 = vld [vmem:[#allocation3 + $0x1a0] sm:$0xff]   ;;  %v16671_v49 = vld [vmem:[#allocation3 + $0x1d8] sm:$0xff]   ;;  %v929_v3 = vpack.c.bf16 %v17403_v10, %v17393_v5  ;;  %v1132_v5 = vpack.c.bf16 %v17517_v8, %v17508_v25  ;;  %v16680_v8 = vld [vmem:[#allocation3 + $0x228] sm:$0xff]  }
  0x6d   :  { %14663 = vmatmul.mubr.bf16.gmra.mxu0 %v17506_v56  ;;  %v17567_v10 = vld [vmem:[#allocation2 + $0x122] sm:$0xff]  ;;  %v16678_v25 = vld [vmem:[#allocation3 + $0x238] sm:$0xff]  }
  0x6e   :  { %14711 = vmatpush3.bf16.msra.mxu0 %v16654_v52  ;;  %14695 = vmatmul.mubr.bf16.gmra.mxu1 %v727_v62  ;;  %v16665_v52 = vld [vmem:[#allocation3 + $0x1f0] sm:$0xff]   ;;  %v16669_v62 = vld [vmem:[#allocation3 + $0x1e0] sm:$0xff]  }
  0x6f   :  { %14743 = vmatpush3.bf16.msra.mxu1 %v16655_v53  ;;  %14712 = vmatprep.subr.bf16.mxu0 %v16656_v6  ;;  %v16666_v53 = vld [vmem:[#allocation3 + $0x1a8] sm:$0xff]  }
  0x70   :  { %14744 = vmatprep.subr.bf16.mxu1 %v16657_v32  ;;  %14666 = vmatprep.mubr.bf16.mxu0 %v17514_v63 }
  0x71   :  { %14698 = vmatprep.mubr.bf16.mxu1 %v728_v33  ;;  %v16674_v33 = vld [vmem:[#allocation3 + $0x188] sm:$0xff]  }
  0x72   :  { %14713 = vmatpush3.bf16.msra.mxu0 %v16656_v6  ;;  %v1130_v6 = vpack.c.bf16 %v17496_v37, %v17490_v26  ;;  %v930_v26 = vpack.c.bf16 %v17424_v19, %v17405_v11  ;;  %v17563_v37 = vld [vmem:[#allocation2 + $0x121] sm:$0xff]  ;;  %v1133_v19 = vpack.c.bf16 %v17567_v10, %v17521_v42  ;;  %v1505_v42 = vld [vmem:[#allocation2 + $0x91] sm:$0xff] }
  0x73   :  { %14745 = vmatpush3.bf16.msra.mxu1 %v16657_v32  ;;  %14714 = vmatprep.subr.bf16.mxu0 %v16658_v7  ;;  %v16672_v32 = vld [vmem:[#allocation3 + $0x190] sm:$0xff]   ;;  %v931_v41 = vpack.c.bf16 %v17563_v37, %v17427_v21  ;;  %v16676_v11 = vld [vmem:[#allocation3 + $0x180] sm:$0xff]  }
  0x74   :  { %14746 = vmatprep.subr.bf16.mxu1 %v16659_v9  ;;  %v16679_v21 = vld [vmem:[#allocation3 + $0x230] sm:$0xff]  }
  0x75   :  { %14667 = vmatmul.mubr.bf16.gmra.mxu0 %v17528_v16 }
  0x76   :  { %14715 = vmatpush3.bf16.msra.mxu0 %v16658_v7  ;;  %14699 = vmatmul.mubr.bf16.gmra.mxu1 %v729_v14  ;;  %v16675_v7 = vld [vmem:[#allocation3 + $0x1c8] sm:$0xff]   ;;  %v1534_v14 = vpack.c.bf16 %v1505_v42, %v17543_v45 }
  0x77   :  { %14747 = vmatpush3.bf16.msra.mxu1 %v16659_v9  ;;  %14716 = vmatprep.subr.bf16.mxu0 %v16660_v22  ;;  %v17118_v9 = vld [vmem:[#allocation2] sm:$0xff] }
  0x78   :  { %14748 = vmatprep.subr.bf16.mxu1 %v16661_v43  ;;  %14718 = vmatprep.mubr.bf16.mxu0 %v924_v51 }
  0x79   :  { %14750 = vmatprep.mubr.bf16.mxu1 %v1126_v27 }
  0x7a   :  { %14717 = vmatpush3.bf16.msra.mxu0 %v16660_v22  ;;  %v16692_v22 = vld [vmem:[#allocation3 + $0x2a0] sm:$0xff]  }
  0x7b   :  { %14749 = vmatpush3.bf16.msra.mxu1 %v16661_v43  ;;  %14766 = vmatprep.subr.bf16.mxu0 %v16662_v34 }
  0x7c   :  { %14798 = vmatprep.subr.bf16.mxu1 %v16663_v23 }
  0x7d   :  { %14719 = vmatmul.mubr.bf16.vlgmr.msra.gmra.mxu0 %v925_v44  ;;  %v16696_v44 = vld [vmem:[#allocation3 + $0x290] sm:$0xff]  }
  0x7e   :  { %14767 = vmatpush3.bf16.msra.mxu0 %v16662_v34  ;;  %14751 = vmatmul.mubr.bf16.vlgmr.msra.gmra.mxu1 %v1127_v24 }
  0x7f   :  { %14799 = vmatpush3.bf16.msra.mxu1 %v16663_v23  ;;  %14768 = vmatprep.subr.bf16.mxu0 %v16664_v29  ;;  %v16693_v23 = vld [vmem:[#allocation3 + $0x260] sm:$0xff]  }
  0x80   :  { %14800 = vmatprep.subr.bf16.mxu1 %v16665_v52  ;;  %14722 = vmatprep.mubr.bf16.mxu0 %v926_v31 }
  0x81   :  { %14754 = vmatprep.mubr.bf16.mxu1 %v1128_v30  ;;  %v16695_v30 = vld [vmem:[#allocation3 + $0x258] sm:$0xff]  }
  0x82   :  { %14769 = vmatpush3.bf16.msra.mxu0 %v16664_v29 }
  0x83   :  { %14801 = vmatpush3.bf16.msra.mxu1 %v16665_v52  ;;  %14770 = vmatprep.subr.bf16.mxu0 %v16666_v53 }
  0x84   :  { %14802 = vmatprep.subr.bf16.mxu1 %v16667_v50 }
  0x85   :  { %14723 = vmatmul.mubr.bf16.gmra.mxu0 %v927_v57 }
  0x86   :  { %14771 = vmatpush3.bf16.msra.mxu0 %v16666_v53  ;;  %14755 = vmatmul.mubr.bf16.gmra.mxu1 %v1129_v47 }
  0x87   :  { %14803 = vmatpush3.bf16.msra.mxu1 %v16667_v50  ;;  %14772 = vmatprep.subr.bf16.mxu0 %v16668_v39 }
  0x88   :  { %14804 = vmatprep.subr.bf16.mxu1 %v16669_v62  ;;  %14726 = vmatprep.mubr.bf16.mxu0 %v928_v60  ;;  %v16697_v60 = vld [vmem:[#allocation3 + $0x250] sm:$0xff]  }
  0x89   :  { %14758 = vmatprep.mubr.bf16.mxu1 %v1130_v6 }
  0x8a   :  { %14773 = vmatpush3.bf16.msra.mxu0 %v16668_v39 }
  0x8b   :  { %14805 = vmatpush3.bf16.msra.mxu1 %v16669_v62  ;;  %14774 = vmatprep.subr.bf16.mxu0 %v16670_v2 }
  0x8c   :  { %14806 = vmatprep.subr.bf16.mxu1 %v16671_v49 }
  0x8d   :  { %14727 = vmatmul.mubr.bf16.gmra.mxu0 %v929_v3 }
  0x8e   :  { %14775 = vmatpush3.bf16.msra.mxu0 %v16670_v2  ;;  %14759 = vmatmul.mubr.bf16.gmra.mxu1 %v1131_v55  ;;  %v16700_v2 = vld [vmem:[#allocation3 + $0x280] sm:$0xff]  }
  0x8f   :  { %14807 = vmatpush3.bf16.msra.mxu1 %v16671_v49  ;;  %14776 = vmatprep.subr.bf16.mxu0 %v16672_v32 }
  0x90   :  { %14808 = vmatprep.subr.bf16.mxu1 %v16673_v4  ;;  %14730 = vmatprep.mubr.bf16.mxu0 %v930_v26  ;;  %v16699_v26 = vld [vmem:[#allocation3 + $0x248] sm:$0xff]  }
  0x91   :  { %14762 = vmatprep.mubr.bf16.mxu1 %v1132_v5 }
  0x92   :  { %14777 = vmatpush3.bf16.msra.mxu0 %v16672_v32 }
  0x93   :  { %14809 = vmatpush3.bf16.msra.mxu1 %v16673_v4  ;;  %14778 = vmatprep.subr.bf16.mxu0 %v16674_v33 }
  0x94   :  { %14810 = vmatprep.subr.bf16.mxu1 %v16675_v7 }
  0x95   :  { %14731 = vmatmul.mubr.bf16.gmra.mxu0 %v931_v41 }
  0x96   :  { %14779 = vmatpush3.bf16.msra.mxu0 %v16674_v33  ;;  %14763 = vmatmul.mubr.bf16.gmra.mxu1 %v1133_v19 }
  0x97   :  { %14811 = vmatpush3.bf16.msra.mxu1 %v16675_v7  ;;  %14780 = vmatprep.subr.bf16.mxu0 %v16676_v11 }
  0x98   :  { %14812 = vmatprep.subr.bf16.mxu1 %v16677_v54  ;;  %14782 = vmatprep.mubr.bf16.mxu0 %v17324_v40  ;;  %v1332_v40 = vpack.c.bf16 %v17118_v9, %v17483_v15  ;;  %v1336_v15 = vpack.c.bf16 %v17118_v9, %v17523_v13  ;;  %v16688_v13 = vld [vmem:[#allocation3 + $0x2b0] sm:$0xff]   ;;  %v16703_v9 = vld [vmem:[#allocation3 + $0x338] sm:$0xff]  }
  0x99   :  { %14814 = vmatprep.mubr.bf16.mxu1 %v17316_v36  ;;  %v16681_v36 = vld [vmem:[#allocation3 + $0x220] sm:$0xff]  }
  0x9a   :  { %14781 = vmatpush3.bf16.msra.mxu0 %v16676_v11  ;;  %v16701_v11 = vld [vmem:[#allocation3 + $0x240] sm:$0xff]  }
  0x9b   :  { %14813 = vmatpush3.bf16.msra.mxu1 %v16677_v54  ;;  %14830 = vmatprep.subr.bf16.mxu0 %v16678_v25 }
  0x9d   :  { %14783 = vmatmul.mubr.bf16.vlgmr.msra.gmra.mxu0 %v17347_v48  ;;  %v16682_v48 = vld [vmem:[#allocation3 + $0x218] sm:$0xff]  }
  0x9e   :  { %14831 = vmatpush3.bf16.msra.mxu0 %v16678_v25  ;;  %14815 = vmatmul.mubr.bf16.vlgmr.msra.gmra.mxu1 %v17338_v46  ;;  %v16683_v46 = vld [vmem:[#allocation3 + $0x210] sm:$0xff]  }
  0x9f   :  { %14832 = vmatprep.subr.bf16.mxu0 %v16679_v21  ;;  %14786 = vmatprep.mubr.bf16.mxu0 %v17380_v61  ;;  %v1513_v61 = vld [vmem:[#allocation2 + $0x131] sm:$0xff] }
  0xa0   :  { %14818 = vmatprep.mubr.bf16.mxu1 %v17368_v58  ;;  %v16684_v58 = vld [vmem:[#allocation3 + $0x208] sm:$0xff]  }
  0xa2   :  { %14833 = vmatpush3.bf16.msra.mxu0 %v16679_v21 }
  0xa3   :  { %14834 = vmatprep.subr.bf16.mxu0 %v16680_v8 }
  0xa5   :  { %14787 = vmatmul.mubr.bf16.gmra.mxu0 %v1332_v40 }
  0xa6   :  { %14835 = vmatpush3.bf16.msra.mxu0 %v16680_v8  ;;  %14819 = vmatmul.mubr.bf16.gmra.mxu1 %v1534_v14 }
  0xa7   :  { %14836 = vmatprep.subr.bf16.mxu0 %v16681_v36  ;;  %14790 = vmatprep.mubr.bf16.mxu0 %v17409_v12  ;;  %v16685_v12 = vld [vmem:[#allocation3 + $0x200] sm:$0xff]  }
  0xa8   :  { %14822 = vmatprep.mubr.bf16.mxu1 %v17401_v0  ;;  %v1538_v0 = vpack.c.bf16 %v1513_v61, %v17563_v37  ;;  %v16702_v37 = vld [vmem:[#allocation3 + $0x2f8] sm:$0xff]  }
  0xaa   :  { %14837 = vmatpush3.bf16.msra.mxu0 %v16681_v36 }
  0xab   :  { %14838 = vmatprep.subr.bf16.mxu0 %v16682_v48 }
  0xad   :  { %14791 = vmatmul.mubr.bf16.gmra.mxu0 %v17422_v18 }
  0xae   :  { %14839 = vmatpush3.bf16.msra.mxu0 %v16682_v48  ;;  %14823 = vmatmul.mubr.bf16.gmra.mxu1 %v17417_v17  ;;  %v1707_v17 = vld [vmem:[#allocation2 + $0x92] sm:$0xff] }
  0xaf   :  { %14840 = vmatprep.subr.bf16.mxu0 %v16683_v46  ;;  %14794 = vmatprep.mubr.bf16.mxu0 %v17446_v35  ;;  %v1736_v18 = vpack.c.bf16 %v1707_v17, %v17547_v38  ;;  %v16698_v38 = vld [vmem:[#allocation3 + $0x288] sm:$0xff]  }
  0xb0   :  { %14826 = vmatprep.mubr.bf16.mxu1 %v17437_v28  ;;  %v1715_v28 = vld [vmem:[#allocation2 + $0x132] sm:$0xff] }
  0xb1   :  { %v1740_v35 = vpack.c.bf16 %v1715_v28, %v17567_v10 }
  0xb2   :  { %14841 = vmatpush3.bf16.msra.mxu0 %v16683_v46 }
  0xb3   :  { %14842 = vmatprep.subr.bf16.mxu0 %v16684_v58 }
  0xb5   :  { %14795 = vmatmul.mubr.bf16.gmra.mxu0 %v1336_v15 }
  0xb6   :  { %14843 = vmatpush3.bf16.msra.mxu0 %v16684_v58  ;;  %14827 = vmatmul.mubr.bf16.gmra.mxu1 %v1538_v0 }
  0xb7   :  { %14844 = vmatprep.subr.bf16.mxu0 %v16685_v12  ;;  %14846 = vmatprep.mubr.bf16.mxu0 %v17462_v59  ;;  %v16686_v59 = vld [vmem:[#allocation3 + $0x2b8] sm:$0xff]  }
  0xb8   :  { %14862 = vmatprep.subr.bf16.mxu1 %v16686_v59 }
  0xb9   :  { %14863 = vmatpush3.bf16.msra.mxu1 %v16686_v59 }
  0xba   :  { %14845 = vmatpush3.bf16.msra.mxu0 %v16685_v12  ;;  %14864 = vmatprep.subr.bf16.mxu1 %v16688_v13 }
  0xbd   :  { %14847 = vmatmul.mubr.bf16.vlgmr.msra.gmra.mxu0 %v17470_v1  ;;  %14865 = vmatpush3.bf16.msra.mxu1 %v16688_v13  ;;  %v16687_v1 = vld [vmem:[#allocation3 + $0x278] sm:$0xff]  }
  0xbe   :  { %14850 = vmatprep.mubr.bf16.mxu0 %v17488_v20  ;;  %v16690_v20 = vld [vmem:[#allocation3 + $0x2a8] sm:$0xff]   ;;  %14894 = vmatprep.subr.bf16.mxu0 %v16687_v1 }
  0xbf   :  { %14866 = vmatprep.subr.bf16.mxu1 %v16690_v20  ;;  %14895 = vmatpush3.bf16.msra.mxu0 %v16687_v1 }
  0xc1   :  { %14867 = vmatpush3.bf16.msra.mxu1 %v16690_v20 }
  0xc2   :  { %14868 = vmatprep.subr.bf16.mxu1 %v16692_v22 }
  0xc5   :  { %14851 = vmatmul.mubr.bf16.gmra.mxu0 %v1736_v18  ;;  %14869 = vmatpush3.bf16.msra.mxu1 %v16692_v22 }
  0xc6   :  { %14854 = vmatprep.mubr.bf16.mxu0 %v17506_v56  ;;  %v16689_v56 = vld [vmem:[#allocation3 + $0x270] sm:$0xff]  }
  0xc7   :  { %14896 = vmatprep.subr.bf16.mxu0 %v16689_v56 }
  0xc8   :  { %14897 = vmatpush3.bf16.msra.mxu0 %v16689_v56 }
  0xcd   :  { %14855 = vmatmul.mubr.bf16.gmra.mxu0 %v17514_v63  ;;  %v16691_v63 = vld [vmem:[#allocation3 + $0x268] sm:$0xff]  }
  0xce   :  { %14858 = vmatprep.mubr.bf16.mxu0 %v17528_v16  ;;  %v16694_v16 = vld [vmem:[#allocation3 + $0x298] sm:$0xff]   ;;  %14898 = vmatprep.subr.bf16.mxu0 %v16691_v63 }
  0xcf   :  { %14870 = vmatprep.subr.bf16.mxu1 %v16694_v16  ;;  %14899 = vmatpush3.bf16.msra.mxu0 %v16691_v63 }
  0xd0   :  { %14871 = vmatpush3.bf16.msra.mxu1 %v16694_v16  ;;  %14900 = vmatprep.subr.bf16.mxu0 %v16693_v23 }
  0xd1   :  { %14872 = vmatprep.subr.bf16.mxu1 %v16696_v44 }
  0xd3   :  { %14901 = vmatpush3.bf16.msra.mxu0 %v16693_v23 }
  0xd4   :  { %14873 = vmatpush3.bf16.msra.mxu1 %v16696_v44  ;;  %14902 = vmatprep.subr.bf16.mxu0 %v16695_v30 }
  0xd5   :  { %14859 = vmatmul.mubr.bf16.gmra.mxu0 %v1740_v35  ;;  %14874 = vmatprep.subr.bf16.mxu1 %v16698_v38 }
  0xd7   :  { %14903 = vmatpush3.bf16.msra.mxu0 %v16695_v30 }
  0xd8   :  { %14875 = vmatpush3.bf16.msra.mxu1 %v16698_v38  ;;  %14904 = vmatprep.subr.bf16.mxu0 %v16697_v60 }
  0xd9   :  { %14876 = vmatprep.subr.bf16.mxu1 %v16700_v2 }
  0xdb   :  { %14905 = vmatpush3.bf16.msra.mxu0 %v16697_v60 }
  0xdc   :  { %14877 = vmatpush3.bf16.msra.mxu1 %v16700_v2  ;;  %14906 = vmatprep.subr.bf16.mxu0 %v16699_v26 }
  0xdd   :  { %14926 = vmatprep.subr.bf16.mxu1 %v16702_v37 }
  0xdf   :  { %14907 = vmatpush3.bf16.msra.mxu0 %v16699_v26 }
  0xe0   :  { %14908 = vmatprep.subr.bf16.mxu0 %v16701_v11 }
  0xe3   :  { %14909 = vmatpush3.bf16.msra.mxu0 %v16701_v11 }
  0xe4   :  { %14958 = vmatprep.subr.bf16.mxu0 %v16703_v9 }
  0xfd   :  { %v14592_v43 = vpop.f32.mrf.mxu0 }
  0xfe   :  { %v14624_v51 = vpop.f32.mrf.mxu1 }
  0xff   :  { %v17597_v27 = vadd.f32 %v14624_v51, %v14592_v43  ;;  %v279_v34 = vpop.f32.mrf.mxu0 }
 0x100   :  { %v424_v24 = vpop.f32.mrf.mxu1 }
 0x101   :  { %v17599_v29 = vadd.f32 %v424_v24, %v279_v34  ;;  %v14593_v52 = vpop.f32.mrf.mxu0 }
 0x102   :  { %v14625_v31 = vpop.f32.mrf.mxu1 }
 0x103   :  { %v17601_v45 = vadd.f32 %v14625_v31, %v14593_v52  ;;  %v17603_v53 = vpop.f32.mrf.mxu0 }
 0x104   :  { %v17605_v50 = vpop.f32.mrf.mxu1 }
 0x105   :  { %v14596_v57 = vpop.f32.mrf.mxu0 }
 0x106   :  { %v14628_v39 = vpop.f32.mrf.mxu1 }
 0x107   :  { %v449_v47 = vadd.f32 %v14628_v39, %v14596_v57  ;;  %v295_v62 = vpop.f32.mrf.mxu0 }
 0x108   :  { %v440_v6 = vpop.f32.mrf.mxu1 }
 0x109   :  { %v441_v49 = vadd.f32 %v440_v6, %v295_v62  ;;  %v14597_v3 = vpop.f32.mrf.mxu0 }
 0x10a   :  { %v14629_v32 = vpop.f32.mrf.mxu1 }
 0x10b   :  { %v452_v55 = vadd.f32 %v14629_v32, %v14597_v3  ;;  %v17607_v4 = vpop.f32.mrf.mxu0 }
 0x10c   :  { %v17609_v33 = vpop.f32.mrf.mxu1 }
 0x10d   :  { %v14600_v5 = vpop.f32.mrf.mxu0 }
 0x10e   :  { %v14632_v10 = vpop.f32.mrf.mxu1 }
 0x10f   :  { %v465_v7 = vadd.f32 %v14632_v10, %v14600_v5  ;;  %v311_v41 = vpop.f32.mrf.mxu0 }
 0x110   :  { %v456_v19 = vpop.f32.mrf.mxu1 }
 0x111   :  { %v457_v54 = vadd.f32 %v456_v19, %v311_v41  ;;  %v14601_v25 = vpop.f32.mrf.mxu0 }
 0x112   :  { %v14633_v21 = vpop.f32.mrf.mxu1 }
 0x113   :  { %v468_v8 = vadd.f32 %v14633_v21, %v14601_v25  ;;  %v17611_v42 = vpop.f32.mrf.mxu0 }
 0x114   :  { %v17613_v40 = vpop.f32.mrf.mxu1 }
 0x115   :  { %v14604_v36 = vpop.f32.mrf.mxu0 }
 0x116   :  { %v14636_v14 = vpop.f32.mrf.mxu1 }
 0x117   :  { %v481_v48 = vadd.f32 %v14636_v14, %v14604_v36  ;;  %v327_v46 = vpop.f32.mrf.mxu0 }
 0x118   :  { %v472_v58 = vpop.f32.mrf.mxu1 }
 0x119   :  { %v473_v61 = vadd.f32 %v472_v58, %v327_v46  ;;  %v14605_v15 = vpop.f32.mrf.mxu0 }
 0x11a   :  { %v14637_v12 = vpop.f32.mrf.mxu1 }
 0x11b   :  { %v484_v0 = vadd.f32 %v14637_v12, %v14605_v15  ;;  %v17615_v17 = vpop.f32.mrf.mxu0 }
 0x11c   :  { %v17617_v18 = vpop.f32.mrf.mxu1 }
 0x11d   :  { %v14656_v28 = vpop.f32.mrf.mxu0 }
 0x11e   :  { %v17620_v35 = vadd.f32 %v14656_v28, %v17597_v27  ;;  %v17622_v59 = vpop.f32.mrf.mxu1 }
 0x11f   :  { %v610_v13 = vpop.f32.mrf.mxu0 }
 0x120   :  { %v17625_v1 = vadd.f32 %v610_v13, %v17599_v29  ;;  %v17627_v20 = vpop.f32.mrf.mxu1 }
 0x121   :  { %v14657_v56 = vpop.f32.mrf.mxu0 }
 0x122   :  { %v17630_v22 = vadd.f32 %v14657_v56, %v17601_v45  ;;  %v17632_v63 = vpop.f32.mrf.mxu1 }
 0x123   :  { %v17634_v16 = vpop.f32.mrf.mxu0 }
 0x124   :  { %v17636_v43 = vpop.f32.mrf.mxu1 }
 0x125   :  { %v14660_v51 = vpop.f32.mrf.mxu0 }
 0x126   :  { %v17638_v27 = vadd.f32 %v14660_v51, %v449_v47  ;;  %v17640_v34 = vpop.f32.mrf.mxu1 }
 0x127   :  { %v626_v23 = vpop.f32.mrf.mxu0 }
 0x128   :  { %v17642_v44 = vadd.f32 %v626_v23, %v441_v49  ;;  %v17644_v24 = vpop.f32.mrf.mxu1 }
 0x129   :  { %v14661_v29 = vpop.f32.mrf.mxu0 }
 0x12a   :  { %v17646_v52 = vadd.f32 %v14661_v29, %v452_v55  ;;  %v17648_v31 = vpop.f32.mrf.mxu1 }
 0x12b   :  { %v17650_v45 = vpop.f32.mrf.mxu0 }
 0x12c   :  { %v17652_v30 = vpop.f32.mrf.mxu1 }
 0x12d   :  { %v14664_v38 = vpop.f32.mrf.mxu0 }
 0x12e   :  { %v17654_v57 = vadd.f32 %v14664_v38, %v465_v7  ;;  %v17656_v39 = vpop.f32.mrf.mxu1 }
 0x12f   :  { %v642_v47 = vpop.f32.mrf.mxu0 }
 0x130   :  { %v17658_v62 = vadd.f32 %v642_v47, %v457_v54  ;;  %v17660_v60 = vpop.f32.mrf.mxu1 }
 0x131   :  { %v14665_v2 = vpop.f32.mrf.mxu0 }
 0x132   :  { %v17662_v6 = vadd.f32 %v14665_v2, %v468_v8  ;;  %v17664_v49 = vpop.f32.mrf.mxu1 }
 0x133   :  { %v17666_v3 = vpop.f32.mrf.mxu0 }
 0x134   :  { %v17668_v32 = vpop.f32.mrf.mxu1 }
 0x135   :  { %v14668_v55 = vpop.f32.mrf.mxu0 }
 0x136   :  { %v17670_v26 = vadd.f32 %v14668_v55, %v481_v48  ;;  %v17672_v37 = vpop.f32.mrf.mxu1 }
 0x137   :  { %21380 = vst [vmem:[#allocation12_spill] sm:$0xff] %v17672_v37  ;;  %v658_v5 = vpop.f32.mrf.mxu0 }
 0x138   :  { %v17674_v10 = vadd.f32 %v658_v5, %v473_v61  ;;  %v17676_v7 = vpop.f32.mrf.mxu1 }
 0x139   :  { %21382 = vst [vmem:[#allocation14_spill] sm:$0xff] %v17676_v7  ;;  %v14669_v41 = vpop.f32.mrf.mxu0 }
 0x13a   :  { %21381 = vst [vmem:[#allocation13_spill] sm:$0xff] %v17674_v10  ;;  %v17678_v11 = vadd.f32 %v14669_v41, %v484_v0  ;;  %v17680_v19 = vpop.f32.mrf.mxu1 }
 0x13b   :  { %21384 = vst [vmem:[#allocation16_spill] sm:$0xff] %v17680_v19  ;;  %v17682_v54 = vpop.f32.mrf.mxu0 }
 0x13c   :  { %21383 = vst [vmem:[#allocation15_spill] sm:$0xff] %v17678_v11  ;;  %21385 = vst [vmem:[#allocation17_spill] sm:$0xff] %v17682_v54  ;;  %v17684_v25 = vpop.f32.mrf.mxu1 }
 0x13d   :  { %21386 = vst [vmem:[#allocation18_spill] sm:$0xff] %v17684_v25  ;;  %v14720_v21 = vpop.f32.mrf.mxu0 }
 0x13e   :  { %v14752_v8 = vpop.f32.mrf.mxu1 }
 0x13f   :  { %v1014_v9 = vpop.f32.mrf.mxu0 }
 0x140   :  { %v17686_v36 = vpop.f32.mrf.mxu1 }
 0x141   :  { %v14721_v14 = vpop.f32.mrf.mxu0 }
 0x142   :  { %v17688_v48 = vpop.f32.mrf.mxu1 }
 0x143   :  { %v1017_v46 = vpop.f32.mrf.mxu0 }
 0x144   :  { %v17690_v58 = vpop.f32.mrf.mxu1 }
 0x145   :  { %v17692_v61 = vpop.f32.mrf.mxu0 }
 0x146   :  { %v17694_v15 = vpop.f32.mrf.mxu1 }
 0x147   :  { %v17696_v12 = vpop.f32.mrf.mxu0 }
 0x148   :  { %v17698_v0 = vpop.f32.mrf.mxu1 }
 0x149   :  { %v17700_v28 = vpop.f32.mrf.mxu0 }
 0x14a   :  { %v17702_v13 = vpop.f32.mrf.mxu1 }
 0x14b   :  { %21387 = vst [vmem:[#allocation19_spill] sm:$0xff] %v17702_v13  ;;  %v17704_v56 = vpop.f32.mrf.mxu0 }
 0x14c   :  { %v17706_v51 = vpop.f32.mrf.mxu1 }
 0x14d   :  { %21388 = vst [vmem:[#allocation20_spill] sm:$0xff] %v17706_v51  ;;  %v17708_v23 = vpop.f32.mrf.mxu0 }
 0x14e   :  { %21389 = vst [vmem:[#allocation21_spill] sm:$0xff] %v17708_v23  ;;  %v17710_v29 = vpop.f32.mrf.mxu1 }
 0x14f   :  { %21390 = vst [vmem:[#allocation22_spill] sm:$0xff] %v17710_v29  ;;  %v17712_v38 = vpop.f32.mrf.mxu0 }
 0x150   :  { %21391 = vst [vmem:[#allocation23_spill] sm:$0xff] %v17712_v38  ;;  %v17714_v47 = vpop.f32.mrf.mxu1 }
 0x151   :  { %21392 = vst [vmem:[#allocation24_spill] sm:$0xff] %v17714_v47  ;;  %v17716_v2 = vpop.f32.mrf.mxu0 }
 0x152   :  { %21393 = vst [vmem:[#allocation25_spill] sm:$0xff] %v17716_v2  ;;  %v17718_v55 = vpop.f32.mrf.mxu1 }
 0x153   :  { %21394 = vst [vmem:[#allocation26_spill] sm:$0xff] %v17718_v55  ;;  %v17720_v5 = vpop.f32.mrf.mxu0 }
 0x154   :  { %21395 = vst [vmem:[#allocation27_spill] sm:$0xff] %v17720_v5  ;;  %v17722_v41 = vpop.f32.mrf.mxu1 }
 0x155   :  { %21396 = vst [vmem:[#allocation28_spill] sm:$0xff] %v17722_v41  ;;  %v17724_v25 = vpop.f32.mrf.mxu0 }
 0x156   :  { %21397 = vst [vmem:[#allocation29_spill] sm:$0xff] %v17724_v25  ;;  %v17726_v19 = vpop.f32.mrf.mxu1 }
 0x157   :  { %21398 = vst [vmem:[#allocation30_spill] sm:$0xff] %v17726_v19  ;;  %v17728_v11 = vpop.f32.mrf.mxu0 }
 0x158   :  { %21399 = vst [vmem:[#allocation31_spill] sm:$0xff] %v17728_v11  ;;  %v17730_v51 = vpop.f32.mrf.mxu1 }
 0x159   :  { %21400 = vst [vmem:[#allocation32_spill] sm:$0xff] %v17730_v51  ;;  %v17732_v29 = vpop.f32.mrf.mxu0 }
 0x15a   :  { %21401 = vst [vmem:[#allocation33_spill] sm:$0xff] %v17732_v29  ;;  %v17734_v38 = vpop.f32.mrf.mxu1 }
 0x15b   :  { %21402 = vst [vmem:[#allocation34_spill] sm:$0xff] %v17734_v38  ;;  %v17736_v47 = vpop.f32.mrf.mxu0 }
 0x15c   :  { %21403 = vst [vmem:[#allocation35_spill] sm:$0xff] %v17736_v47  ;;  %v17738_v2 = vpop.f32.mrf.mxu1 }
 0x15d   :  { %21404 = vst [vmem:[#allocation36_spill] sm:$0xff] %v17738_v2  ;;  %v14784_v55 = vpop.f32.mrf.mxu0 }
 0x15e   :  { %v14816_v5 = vpop.f32.mrf.mxu1 }
 0x15f   :  { %v1419_v54 = vpop.f32.mrf.mxu0 }
 0x160   :  { %v1621_v41 = vpop.f32.mrf.mxu1 }
 0x161   :  { %v14785_v23 = vpop.f32.mrf.mxu0 }
 0x162   :  { %v17740_v25 = vpop.f32.mrf.mxu1 }
 0x163   :  { %21405 = vst [vmem:[#allocation37_spill] sm:$0xff] %v17740_v25  ;;  %v1422_v19 = vpop.f32.mrf.mxu0  ;;  %v428_v25 = vadd.f32 %v17605_v50, %v17603_v53  ;;  %v444_v50 = vadd.f32 %v17609_v33, %v17607_v4  ;;  %v460_v4 = vadd.f32 %v17613_v40, %v17611_v42  ;;  %v879_v33 = vadd.f32 %v17644_v24, %v17642_v44  ;;  %v17804_v24 = vld [vmem:[#allocation6] ss:$0 sm:$0xff] }
 0x164   :  { %v17742_v11 = vpop.f32.mrf.mxu1 }
 0x165   :  { %v14788_v13 = vpop.f32.mrf.mxu0  ;;  %21406 = vst [vmem:[#allocation38_spill] sm:$0xff] %v17742_v11  ;;  %v877_v11 = vadd.f32 %v17622_v59, %v17620_v35  ;;  %v682_v42 = vadd.f32 %v17666_v3, %v460_v4  ;;  %v1081_v40 = vadd.f32 %v17696_v12, %v879_v33  ;;  %v21425_v4 = vld [vmem:[#allocation23_spill] sm:$0xff] }
 0x166   :  { %v17748_v38 = vpop.f32.mrf.mxu1 }
 0x167   :  { %v17744_v51 = vpop.f32.mrf.mxu0  ;;  %21409 = vst [vmem:[#allocation41_spill] sm:$0xff] %v17748_v38  ;;  %v674_v38 = vadd.f32 %v17634_v16, %v428_v25  ;;  %v881_v16 = vadd.f32 %v17640_v34, %v17638_v27  ;;  %v678_v25 = vadd.f32 %v17650_v45, %v444_v50  ;;  %v476_v45 = vadd.f32 %v17617_v18, %v17615_v17 }
 0x168   :  { %21407 = vst [vmem:[#allocation39_spill] sm:$0xff] %v17744_v51  ;;  %v17754_v7 = vpop.f32.mrf.mxu1  ;;  %v885_v17 = vadd.f32 %v17656_v39, %v17654_v57  ;;  %v883_v18 = vadd.f32 %v17660_v60, %v17658_v62  ;;  %v884_v12 = vadd.f32 %v17668_v32, %v682_v42  ;;  %v1283_v57 = vadd.f32 %v17698_v0, %v1081_v40  ;;  %v21419_v32 = vld [vmem:[#allocation21_spill] sm:$0xff] }
 0x169   :  { %v17746_v29 = vpop.f32.mrf.mxu0  ;;  %21412 = vst [vmem:[#allocation44_spill] sm:$0xff] %v17754_v7  ;;  %v876_v35 = vadd.f32 %v17636_v43, %v674_v38  ;;  %v1083_v43 = vadd.f32 %v17692_v61, %v881_v16  ;;  %v21417_v38 = vld [vmem:[#allocation14_spill] sm:$0xff] }
 0x16a   :  { %21408 = vst [vmem:[#allocation40_spill] sm:$0xff] %v17746_v29  ;;  %v875_v29 = vadd.f32 %v17627_v20, %v17625_v1  ;;  %v17767_v51 = vpop.f32.mrf.mxu1  ;;  %v1085_v33 = vadd.f32 %v21425_v4, %v883_v18 }
 0x16b   :  { %v17750_v47 = vpop.f32.mrf.mxu0 }
 0x16c   :  { %21410 = vst [vmem:[#allocation42_spill] sm:$0xff] %v17750_v47  ;;  %v1079_v47 = vadd.f32 %v14720_v21, %v877_v11  ;;  %v1077_v7 = vadd.f32 %v1014_v9, %v875_v29  ;;  %v17778_v20 = vpop.f32.mrf.mxu1  ;;  %v880_v9 = vadd.f32 %v17652_v30, %v678_v25  ;;  %v21423_v25 = vld [vmem:[#allocation17_spill] sm:$0xff] }
 0x16d   :  { %v17752_v2 = vpop.f32.mrf.mxu0 }
 0x16e   :  { %21411 = vst [vmem:[#allocation43_spill] sm:$0xff] %v17752_v2  ;;  %v1281_v59 = vadd.f32 %v14752_v8, %v1079_v47  ;;  %v17794_v8 = vpop.f32.mrf.mxu1  ;;  %v1082_v39 = vadd.f32 %v17704_v56, %v880_v9 }
 0x16f   :  { %v17756_v10 = vpop.f32.mrf.mxu0  ;;  %v21420_v0 = vld [vmem:[#allocation39_spill] sm:$0xff] }
 0x170   :  { %21413 = vst [vmem:[#allocation45_spill] sm:$0xff] %v17756_v10  ;;  %v878_v10 = vadd.f32 %v17632_v63, %v17630_v22  ;;  %v1279_v22 = vadd.f32 %v17686_v36, %v1077_v7  ;;  %v1078_v63 = vadd.f32 %v1017_v46, %v876_v35  ;;  %v1484_v21 = vadd.f32 %v14784_v55, %v1281_v59  ;;  %v17816_v61 = vpop.f32.mrf.mxu1  ;;  %v21418_v55 = vld [vmem:[#allocation19_spill] sm:$0xff] }
 0x171   :  { %v17762_v37 = vpop.f32.mrf.mxu0  ;;  %v882_v7 = vadd.f32 %v17648_v31, %v17646_v52  ;;  %v1285_v52 = vadd.f32 %v17694_v15, %v1083_v43  ;;  %v21414_v15 = vld [vmem:[#allocation12_spill] sm:$0xff]  ;;  %v1486_v50 = vadd.f32 %v21420_v0, %v1283_v57  ;;  %v21426_v43 = vld [vmem:[#allocation41_spill] sm:$0xff] }
 0x172   :  { %v1080_v1 = vadd.f32 %v14721_v14, %v878_v10  ;;  %v1482_v34 = vadd.f32 %v1419_v54, %v1279_v22  ;;  %v1280_v54 = vadd.f32 %v17690_v58, %v1078_v63  ;;  %v1686_v36 = vadd.f32 %v14816_v5, %v1484_v21  ;;  %v17831_v59 = vpop.f32.mrf.mxu1  ;;  %v21424_v63 = vld [vmem:[#allocation20_spill] sm:$0xff] }
 0x173   :  { %v17769_v2 = vpop.f32.mrf.mxu0  ;;  %v1084_v31 = vadd.f32 %v17700_v28, %v882_v7  ;;  %v1488_v62 = vadd.f32 %v14788_v13, %v1285_v52  ;;  %v889_v28 = vadd.f32 %v21414_v15, %v17670_v26  ;;  %v21421_v13 = vld [vmem:[#allocation38_spill] sm:$0xff]  ;;  %v686_v22 = vadd.f32 %v21423_v25, %v476_v45  ;;  %v1996_v7 = vld [vmem:[#allocation2 + $0x1] sm:$0xff]  ;;  %v21430_v45 = vld [vmem:[#allocation25_spill] sm:$0xff] }
 0x174   :  { %v1282_v27 = vadd.f32 %v17688_v48, %v1080_v1  ;;  %v886_v48 = vadd.f32 %v17664_v49, %v17662_v6  ;;  %v1684_v46 = vadd.f32 %v1621_v41, %v1482_v34  ;;  %v1483_v30 = vadd.f32 %v1422_v19, %v1280_v54  ;;  %v21416_v19 = vld [vmem:[#allocation13_spill] sm:$0xff]  ;;  %v21427_v42 = vld [vmem:[#allocation40_spill] sm:$0xff]  ;;  %v21432_v18 = vld [vmem:[#allocation42_spill] sm:$0xff] }
 0x175   :  { %v17773_v53 = vpop.f32.mrf.mxu0  ;;  %v887_v47 = vadd.f32 %v21417_v38, %v21416_v19  ;;  %v1286_v5 = vadd.f32 %v21418_v55, %v1084_v31  ;;  %v1087_v41 = vadd.f32 %v21419_v32, %v885_v17  ;;  %v1284_v21 = vadd.f32 %v21424_v63, %v1082_v39  ;;  %v21431_v31 = vld [vmem:[#allocation44_spill] sm:$0xff]  ;;  %v21434_v15 = vld [vmem:[#allocation15_spill] sm:$0xff] }
 0x176   :  { %v1485_v14 = vadd.f32 %v14785_v23, %v1282_v27  ;;  %v21415_v23 = vld [vmem:[#allocation37_spill] sm:$0xff]  ;;  %v1685_v35 = vadd.f32 %v21421_v13, %v1483_v30  ;;  %v1690_v27 = vadd.f32 %v21426_v43, %v1488_v62  ;;  %v1088_v52 = vadd.f32 %v21430_v45, %v886_v48  ;;  %v21436_v48 = vld [vmem:[#allocation24_spill] sm:$0xff]  ;;  %v21438_v38 = vld [vmem:[#allocation43_spill] sm:$0xff] }
 0x177   :  { %v17782_v11 = vpop.f32.mrf.mxu0  ;;  %v1489_v40 = vadd.f32 %v21427_v42, %v1286_v5  ;;  %v21446_v42 = vld [vmem:[#allocation31_spill] sm:$0xff] }
 0x178   :  { %v1687_v29 = vadd.f32 %v21415_v23, %v1485_v14  ;;  %v21429_v14 = vld [vmem:[#allocation22_spill] sm:$0xff]  ;;  %v21435_v23 = vld [vmem:[#allocation16_spill] sm:$0xff] }
 0x179   :  { %v17791_v10 = vpop.f32.mrf.mxu0  ;;  %v1289_v17 = vadd.f32 %v21429_v14, %v1087_v41  ;;  %v1691_v32 = vadd.f32 %v17767_v51, %v1489_v40  ;;  %v1089_v40 = vadd.f32 %v21446_v42, %v887_v47 }
 0x17b   :  { %v17802_v44 = vpop.f32.mrf.mxu0  ;;  %v1492_v55 = vadd.f32 %v21438_v38, %v1289_v17 }
 0x17d   :  { %v14848_v3 = vpop.f32.mrf.mxu0 }
 0x17e   :  { %v1888_v58 = vadd.f32 %v14848_v3, %v1686_v36  ;;  %v1688_v3 = vadd.f32 %v21431_v31, %v1486_v50  ;;  %v21448_v31 = vld [vmem:[#allocation30_spill] sm:$0xff] }
 0x17f   :  { %v1823_v60 = vpop.f32.mrf.mxu0 }
 0x180   :  { %v1909_v6 = vadd.f32 %v17804_v24, %v1888_v58  ;;  %v1886_v49 = vadd.f32 %v1823_v60, %v1684_v46  ;;  %v1487_v46 = vadd.f32 %v21432_v18, %v1284_v21  ;;  %v17849_v58 = vpop.f32.mrf.mxu1 }
 0x181   :  { %v14849_v56 = vpop.f32.mrf.mxu0 }
 0x182   :  { %v17833_v26 = vmax.f32 %v1909_v6, 0.0  ;;  %v1907_v1 = vadd.f32 %v17804_v24, %v1886_v49  ;;  %v1889_v16 = vadd.f32 %v14849_v56, %v1687_v29  ;;  %v890_v29 = vadd.f32 %v21435_v23, %v21434_v15  ;;  %v21437_v49 = vld [vmem:[#allocation27_spill] sm:$0xff]  ;;  %v21440_v56 = vld [vmem:[#allocation26_spill] sm:$0xff]  ;;  %v17870_v21 = vpop.f32.mrf.mxu1 }
 0x183   :  { %v1826_v34 = vpop.f32.mrf.mxu0  ;;  %v1287_v6 = vadd.f32 %v21436_v48, %v1085_v33  ;;  %v1086_v19 = vadd.f32 %v21437_v49, %v884_v12  ;;  %v1290_v13 = vadd.f32 %v21440_v56, %v1088_v52  ;;  %v21442_v12 = vld [vmem:[#allocation45_spill] sm:$0xff]  ;;  %v17897_v23 = vld [vmem:[#allocation2] sm:$0xff]  ;;  %v21454_v56 = vld [vmem:[#allocation34_spill] sm:$0xff] }
 0x184   :  { %21422 = vst [vmem:[#allocation12_spill] sm:$0xff] %v17833_v26  ;;  %1941 = vst [vmem:[#allocation2 + $0x31] sm:$0xff] %v17833_v26  ;;  %v17842_v9 = vmax.f32 %v1907_v1, 0.0  ;;  %v1910_v54 = vadd.f32 %v17804_v24, %v1889_v16  ;;  %v1887_v36 = vadd.f32 %v1826_v34, %v1685_v35  ;;  %v21441_v35 = vld [vmem:[#allocation29_spill] sm:$0xff]  ;;  %v1689_v16 = vadd.f32 %v17778_v20, %v1487_v46  ;;  %v21444_v34 = vld [vmem:[#allocation18_spill] sm:$0xff] }
 0x185   :  { %v14852_v30 = vpop.f32.mrf.mxu0  ;;  %v1091_v1 = vadd.f32 %v21441_v35, %v889_v28  ;;  %v1490_v25 = vadd.f32 %v21442_v12, %v1287_v6  ;;  %v888_v28 = vadd.f32 %v21444_v34, %v686_v22  ;;  %v1493_v14 = vadd.f32 %v17762_v37, %v1290_v13  ;;  %v21449_v22 = vld [vmem:[#allocation33_spill] sm:$0xff]  ;;  %v17119_v37 = vld [vmem:[#allocation3 + $0x2f8] sm:$0xff]   ;;  %v21452_v6 = vld [vmem:[#allocation35_spill] sm:$0xff] }
 0x186   :  { %21428 = vst [vmem:[#allocation37_spill] sm:$0xff] %v17842_v9  ;;  %1939 = vst [vmem:[#allocation2 + $0x11] sm:$0xff] %v17842_v9  ;;  %v17852_v57 = vmax.f32 %v1910_v54, 0.0  ;;  %v1908_v39 = vadd.f32 %v17804_v24, %v1887_v36  ;;  %v1892_v62 = vadd.f32 %v14852_v30, %v1690_v27  ;;  %v2029_v60 = vpack.c.bf16 %v17842_v9, %v1996_v7  ;;  %v16704_v27 = vld [vmem:[#allocation3 + $0x2f0] sm:$0xff]   ;;  %v21445_v7 = vld [vmem:[#allocation28_spill] sm:$0xff] }
 0x187   :  { %v1839_v5 = vpop.f32.mrf.mxu0  ;;  %v1288_v20 = vadd.f32 %v21445_v7, %v1086_v19  ;;  %v1694_v54 = vadd.f32 %v17794_v8, %v1492_v55  ;;  %v1092_v18 = vadd.f32 %v21449_v22, %v890_v29  ;;  %v1692_v46 = vadd.f32 %v17816_v61, %v1490_v25  ;;  %v21451_v29 = vld [vmem:[#allocation32_spill] sm:$0xff]  ;;  %v16708_v7 = vld [vmem:[#allocation3 + $0x2e0] sm:$0xff]  }
 0x188   :  { %21433 = vst [vmem:[#allocation13_spill] sm:$0xff] %v17852_v57  ;;  %1942 = vst [vmem:[#allocation2 + $0x41] sm:$0xff] %v17852_v57  ;;  %v17863_v41 = vmax.f32 %v1908_v39, 0.0  ;;  %v1913_v0 = vadd.f32 %v17804_v24, %v1892_v62  ;;  %v1890_v50 = vadd.f32 %v1839_v5, %v1688_v3  ;;  %14878 = vmatprep.mubr.bf16.mxu1 %v2029_v60  ;;  %v1669_v39 = vpop.f32.mrf.mxu1 }
 0x189   :  { %v14853_v63 = vpop.f32.mrf.mxu0  ;;  %v1293_v3 = vadd.f32 %v21448_v31, %v1091_v1  ;;  %v1491_v47 = vadd.f32 %v17769_v2, %v1288_v20  ;;  %v16706_v2 = vld [vmem:[#allocation3 + $0x2e8] sm:$0xff]   ;;  %v1291_v48 = vadd.f32 %v21451_v29, %v1089_v40  ;;  %v1090_v49 = vadd.f32 %v21452_v6, %v888_v28 }
 0x18a   :  { %21439 = vst [vmem:[#allocation14_spill] sm:$0xff] %v17863_v41  ;;  %1940 = vst [vmem:[#allocation2 + $0x21] sm:$0xff] %v17863_v41  ;;  %v17873_v51 = vmax.f32 %v1913_v0, 0.0  ;;  %v1911_v4 = vadd.f32 %v17804_v24, %v1890_v50  ;;  %v1893_v33 = vadd.f32 %v14853_v63, %v1691_v32  ;;  %v2030_v43 = vpack.c.bf16 %v17833_v26, %v17863_v41 }
 0x18b   :  { %v1842_v36 = vpop.f32.mrf.mxu0  ;;  %v1496_v19 = vadd.f32 %v17773_v53, %v1293_v3  ;;  %v1695_v5 = vadd.f32 %v17831_v59, %v1493_v14  ;;  %v1294_v13 = vadd.f32 %v21454_v56, %v1092_v18  ;;  %v1693_v35 = vadd.f32 %v17849_v58, %v1491_v47  ;;  %v17916_v12 = vld [vmem:[#allocation2 + $0x30] sm:$0xff]  ;;  %v14829_v59 = vpop.f32.mrf.mxu1 }
 0x18c   :  { %21443 = vst [vmem:[#allocation19_spill] sm:$0xff] %v17873_v51  ;;  %1945 = vst [vmem:[#allocation2 + $0x71] sm:$0xff] %v17873_v51  ;;  %v17884_v17 = vmax.f32 %v1911_v4, 0.0  ;;  %v1914_v45 = vadd.f32 %v17804_v24, %v1893_v33  ;;  %v1891_v52 = vadd.f32 %v1842_v36, %v1689_v16  ;;  %14879 = vmatmul.mubr.bf16.vlgmr.msra.gmra.mxu1 %v2030_v43  ;;  %v21456_v33 = vld [vmem:[#allocation36_spill] sm:$0xff] }
 0x18d   :  { %v14856_v8 = vpop.f32.mrf.mxu0  ;;  %v17891_v30 = vld [vmem:[#allocation2 + $0x10] sm:$0xff]  ;;  %14927 = vmatpush3.bf16.msra.mxu1 %v17119_v37  ;;  %v1494_v53 = vadd.f32 %v17782_v11, %v1291_v48  ;;  %v1292_v43 = vadd.f32 %v21456_v33, %v1090_v49  ;;  %v1698_v34 = vadd.f32 %v17870_v21, %v1496_v19  ;;  %v1497_v20 = vadd.f32 %v17791_v10, %v1294_v13  ;;  %v2004_v36 = vld [vmem:[#allocation2 + $0xa1] sm:$0xff]  ;;  %v1672_v10 = vpop.f32.mrf.mxu1  ;;  %v16711_v33 = vld [vmem:[#allocation3 + $0x318] sm:$0xff]  }
 0x18e   :  { %21447 = vst [vmem:[#allocation21_spill] sm:$0xff] %v17884_v17  ;;  %1943 = vst [vmem:[#allocation2 + $0x51] sm:$0xff] %v17884_v17  ;;  %v17894_v62 = vmax.f32 %v1914_v45, 0.0  ;;  %v1912_v60 = vadd.f32 %v17804_v24, %v1891_v52  ;;  %v1896_v15 = vadd.f32 %v14856_v8, %v1694_v54  ;;  %v1988_v61 = vpack.c.bf16 %v17891_v30, %v17897_v23  ;;  %v16705_v11 = vld [vmem:[#allocation3 + $0x330] sm:$0xff]   ;;  %v17121_v52 = vld [vmem:[#allocation3 + $0x338] sm:$0xff]  }
 0x18f   :  { %14928 = vmatprep.subr.bf16.mxu1 %v16704_v27  ;;  %v1855_v38 = vpop.f32.mrf.mxu0  ;;  %v2031_v55 = vpack.c.bf16 %v17884_v17, %v17852_v57  ;;  %v1696_v14 = vadd.f32 %v1669_v39, %v1494_v53  ;;  %v1495_v21 = vadd.f32 %v17802_v44, %v1292_v43  ;;  %v17937_v31 = vld [vmem:[#allocation2 + $0x40] sm:$0xff]  ;;  %v16707_v44 = vld [vmem:[#allocation3 + $0x328] sm:$0xff]   ;;  %v16710_v39 = vld [vmem:[#allocation3 + $0x2d8] sm:$0xff]  }
 0x190   :  { %21450 = vst [vmem:[#allocation39_spill] sm:$0xff] %v17894_v62  ;;  %1946 = vst [vmem:[#allocation2 + $0x81] sm:$0xff] %v17894_v62  ;;  %v17908_v32 = vmax.f32 %v1912_v60, 0.0  ;;  %v1917_v0 = vadd.f32 %v17804_v24, %v1896_v15  ;;  %v1894_v50 = vadd.f32 %v1855_v38, %v1692_v46  ;;  %14910 = vmatprep.mubr.bf16.mxu0 %v1988_v61  ;;  %v16712_v13 = vld [vmem:[#allocation3 + $0x2d0] sm:$0xff]  }
 0x191   :  { %v14857_v1 = vpop.f32.mrf.mxu0  ;;  %v17914_v16 = vld [vmem:[#allocation2 + $0x20] sm:$0xff]  ;;  %14882 = vmatprep.mubr.bf16.mxu1 %v2031_v55  ;;  %14929 = vmatpush3.bf16.msra.mxu1 %v16704_v27  ;;  %v1699_v60 = vadd.f32 %v14829_v59, %v1497_v20  ;;  %v1697_v48 = vadd.f32 %v1672_v10, %v1495_v21  ;;  %v16715_v21 = vld [vmem:[#allocation3 + $0x308] sm:$0xff]  }
 0x192   :  { %21453 = vst [vmem:[#allocation38_spill] sm:$0xff] %v17908_v32  ;;  %1944 = vst [vmem:[#allocation2 + $0x61] sm:$0xff] %v17908_v32  ;;  %v17919_v25 = vmax.f32 %v1917_v0, 0.0  ;;  %v1915_v63 = vadd.f32 %v17804_v24, %v1894_v50  ;;  %v1897_v4 = vadd.f32 %v14857_v1, %v1695_v5  ;;  %v17924_v58 = vpack.c.bf16 %v17916_v12, %v17914_v16  ;;  %v16709_v0 = vld [vmem:[#allocation3 + $0x320] sm:$0xff]  }
 0x193   :  { %14930 = vmatprep.subr.bf16.mxu1 %v16706_v2  ;;  %v1858_v28 = vpop.f32.mrf.mxu0  ;;  %v2032_v27 = vpack.c.bf16 %v17873_v51, %v17908_v32 }
 0x194   :  { %21455 = vst [vmem:[#allocation17_spill] sm:$0xff] %v17919_v25  ;;  %1949 = vst [vmem:[#allocation2 + $0xd1] sm:$0xff] %v17919_v25  ;;  %v17932_v42 = vmax.f32 %v1915_v63, 0.0  ;;  %v1918_v40 = vadd.f32 %v17804_v24, %v1897_v4  ;;  %v1895_v54 = vadd.f32 %v1858_v28, %v1693_v35  ;;  %14911 = vmatmul.mubr.bf16.vlgmr.msra.gmra.mxu0 %v17924_v58 }
 0x195   :  { %v14860_v45 = vpop.f32.mrf.mxu0  ;;  %14959 = vmatpush3.bf16.msra.mxu0 %v17121_v52  ;;  %v17939_v3 = vld [vmem:[#allocation2 + $0x50] sm:$0xff]  ;;  %14883 = vmatmul.mubr.bf16.gmra.mxu1 %v2032_v27 }
 0x196   :  { %21457 = vst [vmem:[#allocation20_spill] sm:$0xff] %v17932_v42  ;;  %1947 = vst [vmem:[#allocation2 + $0xb1] sm:$0xff] %v17932_v42  ;;  %v17942_v22 = vmax.f32 %v1918_v40, 0.0  ;;  %v1916_v18 = vadd.f32 %v17804_v24, %v1895_v54  ;;  %v1900_v46 = vadd.f32 %v14860_v45, %v1698_v34  ;;  %v17947_v47 = vpack.c.bf16 %v17939_v3, %v17937_v31  ;;  %v16714_v34 = vld [vmem:[#allocation3 + $0x2c8] sm:$0xff]   ;;  %v16713_v27 = vld [vmem:[#allocation3 + $0x310] sm:$0xff]  }
 0x197   :  { %14960 = vmatprep.subr.bf16.mxu0 %v16705_v11  ;;  %14931 = vmatpush3.bf16.msra.mxu1 %v16706_v2  ;;  %v1871_v8 = vpop.f32.mrf.mxu0  ;;  %v2033_v37 = vpack.c.bf16 %v17932_v42, %v2004_v36  ;;  %v17957_v2 = vld [vmem:[#allocation2 + $0x70] sm:$0xff] }
 0x198   :  { %21458 = vst [vmem:[#allocation23_spill] sm:$0xff] %v17942_v22  ;;  %14932 = vmatprep.subr.bf16.mxu1 %v16708_v7  ;;  %1950 = vst [vmem:[#allocation2 + $0xe1] sm:$0xff] %v17942_v22  ;;  %v17951_v15 = vmax.f32 %v1916_v18, 0.0  ;;  %v1921_v61 = vadd.f32 %v17804_v24, %v1900_v46  ;;  %v1898_v29 = vadd.f32 %v1871_v8, %v1696_v14  ;;  %14914 = vmatprep.mubr.bf16.mxu0 %v17947_v47  ;;  %v16716_v14 = vld [vmem:[#allocation3 + $0x2c0] sm:$0xff]  }
 0x199   :  { %v14861_v6 = vpop.f32.mrf.mxu0  ;;  %14961 = vmatpush3.bf16.msra.mxu0 %v16705_v11  ;;  %v17955_v49 = vld [vmem:[#allocation2 + $0x60] sm:$0xff]  ;;  %14886 = vmatprep.mubr.bf16.mxu1 %v2033_v37  ;;  %v18016_v37 = vld [vmem:[#allocation2 + $0x52] sm:$0xff] }
 0x19a   :  { %21459 = vst [vmem:[#allocation41_spill] sm:$0xff] %v17951_v15  ;;  %1948 = vst [vmem:[#allocation2 + $0xc1] sm:$0xff] %v17951_v15  ;;  %v17960_v19 = vmax.f32 %v1921_v61, 0.0  ;;  %v1919_v38 = vadd.f32 %v17804_v24, %v1898_v29  ;;  %v1901_v55 = vadd.f32 %v14861_v6, %v1699_v60  ;;  %v17965_v5 = vpack.c.bf16 %v17957_v2, %v17955_v49  ;;  %v18013_v46 = vld [vmem:[#allocation2 + $0x22] sm:$0xff]  ;;  %v18022_v61 = vld [vmem:[#allocation2 + $0x32] sm:$0xff] }
 0x19b   :  { %14962 = vmatprep.subr.bf16.mxu0 %v16707_v44  ;;  %14933 = vmatpush3.bf16.msra.mxu1 %v16708_v7  ;;  %v1874_v50 = vpop.f32.mrf.mxu0  ;;  %v2034_v56 = vpack.c.bf16 %v17919_v25, %v17951_v15  ;;  %v2327_v7 = vld [vmem:[#allocation2 + $0x2] sm:$0xff]  ;;  %v17991_v40 = vld [vmem:[#allocation2 + $0xd0] sm:$0xff] }
 0x19c   :  { %21460 = vst [vmem:[#allocation40_spill] sm:$0xff] %v17960_v19  ;;  %14934 = vmatprep.subr.bf16.mxu1 %v16710_v39  ;;  %1953 = vst [vmem:[#allocation2 + $0x111] sm:$0xff] %v17960_v19  ;;  %v17970_v35 = vmax.f32 %v1919_v38, 0.0  ;;  %v1922_v53 = vadd.f32 %v17804_v24, %v1901_v55  ;;  %v1899_v1 = vadd.f32 %v1874_v50, %v1697_v48  ;;  %14915 = vmatmul.mubr.bf16.gmra.mxu0 %v17965_v5  ;;  %v16717_v8 = vld [vmem:[#allocation3 + $0x300] sm:$0xff]   ;;  %v16720_v6 = vld [vmem:[#allocation3 + $0x370] sm:$0xff]  }
 0x19d   :  { %14963 = vmatpush3.bf16.msra.mxu0 %v16707_v44  ;;  %v17974_v59 = vld [vmem:[#allocation2 + $0xb0] sm:$0xff]  ;;  %14887 = vmatmul.mubr.bf16.gmra.mxu1 %v2034_v56  ;;  %v16718_v44 = vld [vmem:[#allocation3 + $0x378] sm:$0xff]   ;;  %v18028_v48 = vld [vmem:[#allocation2 + $0x42] sm:$0xff]  ;;  %v2562_v38 = vpack.c.bf16 %v17914_v16, %v17891_v30  ;;  %v18035_v55 = vpack.c.bf16 %v18022_v61, %v18013_v46 }
 0x19e   :  { %21461 = vst [vmem:[#allocation22_spill] sm:$0xff] %v17970_v35  ;;  %1951 = vst [vmem:[#allocation2 + $0xf1] sm:$0xff] %v17970_v35  ;;  %v17977_v63 = vmax.f32 %v1922_v53, 0.0  ;;  %v1920_v4 = vadd.f32 %v17804_v24, %v1899_v1  ;;  %v1992_v11 = vpack.c.bf16 %v17974_v59, %v17897_v23  ;;  %14964 = vmatprep.subr.bf16.mxu0 %v16709_v0  ;;  %v17987_v24 = vld [vmem:[#allocation2 + $0x12] sm:$0xff]  ;;  %v16722_v56 = vld [vmem:[#allocation3 + $0x368] sm:$0xff]  }
 0x19f   :  { %14935 = vmatpush3.bf16.msra.mxu1 %v16710_v39  ;;  %v2035_v43 = vpack.c.bf16 %v17970_v35, %v17942_v22  ;;  %v18003_v45 = vld [vmem:[#allocation2 + $0xe0] sm:$0xff]  ;;  %v2360_v10 = vpack.c.bf16 %v17987_v24, %v2327_v7  ;;  %v18039_v50 = vpack.c.bf16 %v18016_v37, %v18028_v48  ;;  %v16721_v16 = vld [vmem:[#allocation3 + $0x3b0] sm:$0xff]  }
 0x1a0   :  { %21462 = vst [vmem:[#allocation25_spill] sm:$0xff] %v17977_v63  ;;  %14936 = vmatprep.subr.bf16.mxu1 %v16712_v13  ;;  %1954 = vst [vmem:[#allocation2 + $0x121] sm:$0xff] %v17977_v63  ;;  %v17985_v28 = vmax.f32 %v1920_v4, 0.0  ;;  %14918 = vmatprep.mubr.bf16.mxu0 %v1992_v11  ;;  %v18043_v30 = vld [vmem:[#allocation2 + $0x62] sm:$0xff]  ;;  %v18045_v53 = vld [vmem:[#allocation2 + $0xb2] sm:$0xff]  ;;  %v2563_v4 = vpack.c.bf16 %v17937_v31, %v17916_v12 }
 0x1a1   :  { %14890 = vmatprep.mubr.bf16.mxu1 %v2035_v43  ;;  %14965 = vmatpush3.bf16.msra.mxu0 %v16709_v0  ;;  %v17989_v20 = vld [vmem:[#allocation2 + $0xc0] sm:$0xff]  ;;  %v16719_v0 = vld [vmem:[#allocation3 + $0x3b8] sm:$0xff]  }
 0x1a2   :  { %21463 = vst [vmem:[#allocation44_spill] sm:$0xff] %v17985_v28  ;;  %1952 = vst [vmem:[#allocation2 + $0x101] sm:$0xff] %v17985_v28  ;;  %v17996_v54 = vpack.c.bf16 %v17991_v40, %v17989_v20  ;;  %14966 = vmatprep.subr.bf16.mxu0 %v16711_v33  ;;  %v18000_v36 = vpack.c.bf16 %v17960_v19, %v17985_v28  ;;  %v18047_v1 = vld [vmem:[#allocation2 + $0x72] sm:$0xff]  ;;  %v16724_v11 = vld [vmem:[#allocation3 + $0x360] sm:$0xff]  }
 0x1a3   :  { %14937 = vmatpush3.bf16.msra.mxu1 %v16712_v13  ;;  %v18020_v60 = vld [vmem:[#allocation2 + $0x110] sm:$0xff]  ;;  %v2335_v13 = vld [vmem:[#allocation2 + $0xa2] sm:$0xff]  ;;  %v18055_v43 = vpack.c.bf16 %v18047_v1, %v18043_v30  ;;  %v16726_v12 = vld [vmem:[#allocation3 + $0x358] sm:$0xff]  }
 0x1a4   :  { %14938 = vmatprep.subr.bf16.mxu1 %v16714_v34  ;;  %14919 = vmatmul.mubr.bf16.gmra.mxu0 %v17996_v54  ;;  %v2364_v7 = vpack.c.bf16 %v18045_v53, %v2335_v13  ;;  %v18061_v31 = vld [vmem:[#allocation2 + $0xc2] sm:$0xff] }
 0x1a5   :  { %14967 = vmatpush3.bf16.msra.mxu0 %v16711_v33  ;;  %v18005_v52 = vld [vmem:[#allocation2 + $0xf0] sm:$0xff]  ;;  %14891 = vmatmul.mubr.bf16.gmra.mxu1 %v18000_v36  ;;  %v2564_v33 = vpack.c.bf16 %v17955_v49, %v17939_v3  ;;  %v16725_v3 = vld [vmem:[#allocation3 + $0x3a0] sm:$0xff]  }
 0x1a6   :  { %v18011_v18 = vpack.c.bf16 %v18005_v52, %v18003_v45  ;;  %14968 = vmatprep.subr.bf16.mxu0 %v16713_v27  ;;  %14942 = vmatprep.mubr.bf16.mxu1 %v2360_v10  ;;  %v18063_v49 = vld [vmem:[#allocation2 + $0xf2] sm:$0xff]  ;;  %v18069_v10 = vld [vmem:[#allocation2 + $0xe2] sm:$0xff] }
 0x1a7   :  { %14939 = vmatpush3.bf16.msra.mxu1 %v16714_v34  ;;  %v16723_v34 = vld [vmem:[#allocation3 + $0x3a8] sm:$0xff]   ;;  %v16732_v13 = vld [vmem:[#allocation3 + $0x340] sm:$0xff]  }
 0x1a8   :  { %14940 = vmatprep.subr.bf16.mxu1 %v16716_v14  ;;  %14922 = vmatprep.mubr.bf16.mxu0 %v18011_v18 }
 0x1a9   :  { %14969 = vmatpush3.bf16.msra.mxu0 %v16713_v27  ;;  %v18018_v39 = vld [vmem:[#allocation2 + $0x100] sm:$0xff] }
 0x1aa   :  { %v18026_v29 = vpack.c.bf16 %v18020_v60, %v18018_v39  ;;  %14970 = vmatprep.subr.bf16.mxu0 %v16715_v21  ;;  %v18057_v27 = vld [vmem:[#allocation2 + $0x80] sm:$0xff] }
 0x1ab   :  { %14941 = vmatpush3.bf16.msra.mxu1 %v16716_v14  ;;  %v18065_v14 = vld [vmem:[#allocation2 + $0xd2] sm:$0xff] }
 0x1ac   :  { %14990 = vmatprep.subr.bf16.mxu1 %v16718_v44  ;;  %14923 = vmatmul.mubr.bf16.gmra.mxu0 %v18026_v29 }
 0x1ad   :  { %14971 = vmatpush3.bf16.msra.mxu0 %v16715_v21  ;;  %14974 = vmatprep.mubr.bf16.mxu0 %v2562_v38  ;;  %v2565_v21 = vpack.c.bf16 %v18057_v27, %v17957_v2  ;;  %v16727_v38 = vld [vmem:[#allocation3 + $0x398] sm:$0xff]   ;;  %v18079_v2 = vpack.c.bf16 %v18063_v49, %v18069_v10 }
 0x1ae   :  { %14972 = vmatprep.subr.bf16.mxu0 %v16717_v8  ;;  %14943 = vmatmul.mubr.bf16.vlgmr.msra.gmra.mxu1 %v18035_v55 }
 0x1af   :  { %14946 = vmatprep.mubr.bf16.mxu1 %v18039_v50  ;;  %14991 = vmatpush3.bf16.msra.mxu1 %v16718_v44  ;;  %v16728_v44 = vld [vmem:[#allocation3 + $0x350] sm:$0xff]  }
 0x1b0   :  { %14992 = vmatprep.subr.bf16.mxu1 %v16720_v6 }
 0x1b1   :  { %14973 = vmatpush3.bf16.msra.mxu0 %v16717_v8  ;;  %v2566_v8 = vpack.c.bf16 %v17989_v20, %v17974_v59  ;;  %v18083_v59 = vld [vmem:[#allocation2 + $0x102] sm:$0xff]  ;;  %v16729_v20 = vld [vmem:[#allocation3 + $0x390] sm:$0xff]  }
 0x1b2   :  { %15022 = vmatprep.subr.bf16.mxu0 %v16719_v0 }
 0x1b3   :  { %14993 = vmatpush3.bf16.msra.mxu1 %v16720_v6  ;;  %v18075_v6 = vpack.c.bf16 %v18065_v14, %v18061_v31 }
 0x1b4   :  { %14975 = vmatmul.mubr.bf16.vlgmr.msra.gmra.mxu0 %v2563_v4  ;;  %14994 = vmatprep.subr.bf16.mxu1 %v16722_v56  ;;  %v2568_v4 = vpack.c.bf16 %v18018_v39, %v18005_v52  ;;  %v16733_v39 = vld [vmem:[#allocation3 + $0x380] sm:$0xff]  }
 0x1b5   :  { %14978 = vmatprep.mubr.bf16.mxu0 %v2564_v33  ;;  %15023 = vmatpush3.bf16.msra.mxu0 %v16719_v0  ;;  %v16730_v0 = vld [vmem:[#allocation3 + $0x348] sm:$0xff]  }
 0x1b6   :  { %15024 = vmatprep.subr.bf16.mxu0 %v16721_v16  ;;  %14947 = vmatmul.mubr.bf16.gmra.mxu1 %v18055_v43  ;;  %v16731_v33 = vld [vmem:[#allocation3 + $0x388] sm:$0xff]  }
 0x1b7   :  { %14950 = vmatprep.mubr.bf16.mxu1 %v2364_v7  ;;  %14995 = vmatpush3.bf16.msra.mxu1 %v16722_v56  ;;  %v18085_v56 = vld [vmem:[#allocation2 + $0x112] sm:$0xff]  ;;  %v2966_v7 = vpack.c.bf16 %v18013_v46, %v17987_v24  ;;  %v2967_v24 = vpack.c.bf16 %v18028_v48, %v18022_v61  ;;  %v16739_v61 = vld [vmem:[#allocation3 + $0x428] sm:$0xff]  }
 0x1b8   :  { %14996 = vmatprep.subr.bf16.mxu1 %v16724_v11  ;;  %v16737_v46 = vld [vmem:[#allocation3 + $0x430] sm:$0xff]   ;;  %v18116_v48 = vld [vmem:[#allocation2 + $0x82] sm:$0xff] }
 0x1b9   :  { %15025 = vmatpush3.bf16.msra.mxu0 %v16721_v16  ;;  %v2567_v16 = vpack.c.bf16 %v18003_v45, %v17991_v40  ;;  %v2764_v40 = vpack.c.bf16 %v17863_v41, %v17842_v9  ;;  %v16734_v45 = vld [vmem:[#allocation3 + $0x3f8] sm:$0xff]  }
 0x1ba   :  { %15026 = vmatprep.subr.bf16.mxu0 %v16723_v34 }
 0x1bb   :  { %14997 = vmatpush3.bf16.msra.mxu1 %v16724_v11  ;;  %v18093_v11 = vpack.c.bf16 %v18085_v56, %v18083_v59 }
 0x1bc   :  { %14979 = vmatmul.mubr.bf16.gmra.mxu0 %v2565_v21  ;;  %14998 = vmatprep.subr.bf16.mxu1 %v16726_v12  ;;  %v2766_v21 = vpack.c.bf16 %v17908_v32, %v17884_v17 }
 0x1bd   :  { %14982 = vmatprep.mubr.bf16.mxu0 %v2566_v8  ;;  %15027 = vmatpush3.bf16.msra.mxu0 %v16723_v34  ;;  %v18095_v34 = vld [vmem:[#allocation2 + $0x120] sm:$0xff]  ;;  %v2968_v8 = vpack.c.bf16 %v18043_v30, %v18016_v37  ;;  %v16742_v37 = vld [vmem:[#allocation3 + $0x3d8] sm:$0xff]   ;;  %v2969_v30 = vpack.c.bf16 %v18116_v48, %v18047_v1 }
 0x1be   :  { %15028 = vmatprep.subr.bf16.mxu0 %v16725_v3  ;;  %14951 = vmatmul.mubr.bf16.gmra.mxu1 %v18075_v6  ;;  %v2569_v52 = vpack.c.bf16 %v18095_v34, %v18020_v60  ;;  %v16735_v60 = vld [vmem:[#allocation3 + $0x438] sm:$0xff]  }
 0x1bf   :  { %14954 = vmatprep.mubr.bf16.mxu1 %v18079_v2  ;;  %14999 = vmatpush3.bf16.msra.mxu1 %v16726_v12  ;;  %v2765_v12 = vpack.c.bf16 %v17852_v57, %v17833_v26  ;;  %v16743_v1 = vld [vmem:[#allocation3 + $0x418] sm:$0xff]  }
 0x1c0   :  { %15000 = vmatprep.subr.bf16.mxu1 %v16728_v44 }
 0x1c1   :  { %15029 = vmatpush3.bf16.msra.mxu0 %v16725_v3  ;;  %v16736_v3 = vld [vmem:[#allocation3 + $0x3f0] sm:$0xff]  }
 0x1c2   :  { %15030 = vmatprep.subr.bf16.mxu0 %v16727_v38 }
 0x1c3   :  { %15001 = vmatpush3.bf16.msra.mxu1 %v16728_v44  ;;  %v16738_v44 = vld [vmem:[#allocation3 + $0x3e8] sm:$0xff]  }
 0x1c4   :  { %14983 = vmatmul.mubr.bf16.gmra.mxu0 %v2567_v16  ;;  %15002 = vmatprep.subr.bf16.mxu1 %v16730_v0  ;;  %v16741_v16 = vld [vmem:[#allocation3 + $0x420] sm:$0xff]  }
 0x1c5   :  { %14986 = vmatprep.mubr.bf16.mxu0 %v2568_v4  ;;  %15031 = vmatpush3.bf16.msra.mxu0 %v16727_v38  ;;  %v2767_v38 = vpack.c.bf16 %v17894_v62, %v17873_v51  ;;  %v2769_v4 = vpack.c.bf16 %v17942_v22, %v17919_v25 }
 0x1c6   :  { %15032 = vmatprep.subr.bf16.mxu0 %v16729_v20  ;;  %14955 = vmatmul.mubr.bf16.gmra.mxu1 %v18093_v11 }
 0x1c7   :  { %15003 = vmatpush3.bf16.msra.mxu1 %v16730_v0  ;;  %15006 = vmatprep.mubr.bf16.mxu1 %v2764_v40  ;;  %v16740_v0 = vld [vmem:[#allocation3 + $0x3e0] sm:$0xff]   ;;  %v2770_v40 = vpack.c.bf16 %v17985_v28, %v17970_v35 }
 0x1c8   :  { %15004 = vmatprep.subr.bf16.mxu1 %v16732_v13 }
 0x1c9   :  { %15033 = vmatpush3.bf16.msra.mxu0 %v16729_v20  ;;  %v2768_v20 = vpack.c.bf16 %v17951_v15, %v17932_v42 }
 0x1ca   :  { %15034 = vmatprep.subr.bf16.mxu0 %v16731_v33 }
 0x1cb   :  { %15005 = vmatpush3.bf16.msra.mxu1 %v16732_v13  ;;  %v2970_v13 = vpack.c.bf16 %v18061_v31, %v18045_v53  ;;  %v2971_v53 = vpack.c.bf16 %v18069_v10, %v18065_v14  ;;  %v16745_v31 = vld [vmem:[#allocation3 + $0x410] sm:$0xff]   ;;  %v3337_v14 = vld [vmem:[#allocation2 + $0x21] sm:$0xff] }
 0x1cc   :  { %14987 = vmatmul.mubr.bf16.gmra.mxu0 %v2569_v52  ;;  %15054 = vmatprep.subr.bf16.mxu1 %v16734_v45  ;;  %v2972_v52 = vpack.c.bf16 %v18083_v59, %v18063_v49  ;;  %v16750_v49 = vld [vmem:[#allocation3 + $0x478] sm:$0xff]  }
 0x1cd   :  { %15035 = vmatpush3.bf16.msra.mxu0 %v16731_v33  ;;  %15038 = vmatprep.mubr.bf16.mxu0 %v2966_v7  ;;  %v16744_v33 = vld [vmem:[#allocation3 + $0x3d0] sm:$0xff]   ;;  %v16748_v7 = vld [vmem:[#allocation3 + $0x3c0] sm:$0xff]  }
 0x1ce   :  { %15036 = vmatprep.subr.bf16.mxu0 %v16733_v39  ;;  %15007 = vmatmul.mubr.bf16.vlgmr.msra.gmra.mxu1 %v2765_v12  ;;  %v16747_v12 = vld [vmem:[#allocation3 + $0x408] sm:$0xff]   ;;  %v3338_v59 = vld [vmem:[#allocation2 + $0x31] sm:$0xff] }
 0x1cf   :  { %15010 = vmatprep.mubr.bf16.mxu1 %v2766_v21  ;;  %15055 = vmatpush3.bf16.msra.mxu1 %v16734_v45  ;;  %v16746_v45 = vld [vmem:[#allocation3 + $0x3c8] sm:$0xff]   ;;  %v16749_v21 = vld [vmem:[#allocation3 + $0x400] sm:$0xff]  }
 0x1d0   :  { %15056 = vmatprep.subr.bf16.mxu1 %v16736_v3 }
 0x1d1   :  { %15037 = vmatpush3.bf16.msra.mxu0 %v16733_v39  ;;  %v2771_v39 = vpack.c.bf16 %v17977_v63, %v17960_v19 }
 0x1d2   :  { %15086 = vmatprep.subr.bf16.mxu0 %v16735_v60 }
 0x1d3   :  { %15057 = vmatpush3.bf16.msra.mxu1 %v16736_v3  ;;  %v18132_v3 = vld [vmem:[#allocation2 + $0x122] sm:$0xff] }
 0x1d4   :  { %15039 = vmatmul.mubr.bf16.vlgmr.msra.gmra.mxu0 %v2967_v24  ;;  %15058 = vmatprep.subr.bf16.mxu1 %v16738_v44  ;;  %v2973_v10 = vpack.c.bf16 %v18132_v3, %v18085_v56  ;;  %v3341_v24 = vld [vmem:[#allocation2 + $0x61] sm:$0xff] }
 0x1d5   :  { %15042 = vmatprep.mubr.bf16.mxu0 %v2968_v8  ;;  %15087 = vmatpush3.bf16.msra.mxu0 %v16735_v60  ;;  %v3370_v60 = vpack.c.bf16 %v3338_v59, %v3337_v14  ;;  %v16752_v56 = vld [vmem:[#allocation3 + $0x468] sm:$0xff]   ;;  %v16768_v14 = vld [vmem:[#allocation3 + $0x4d0] sm:$0xff]  }
 0x1d6   :  { %15088 = vmatprep.subr.bf16.mxu0 %v16737_v46  ;;  %15011 = vmatmul.mubr.bf16.gmra.mxu1 %v2767_v38  ;;  %v3342_v38 = vld [vmem:[#allocation2 + $0x71] sm:$0xff] }
 0x1d7   :  { %15014 = vmatprep.mubr.bf16.mxu1 %v2768_v20  ;;  %15059 = vmatpush3.bf16.msra.mxu1 %v16738_v44  ;;  %v16751_v44 = vld [vmem:[#allocation3 + $0x470] sm:$0xff]   ;;  %v3171_v20 = vpack.c.bf16 %v17897_v23, %v18057_v27  ;;  %v3347_v27 = vld [vmem:[#allocation2 + $0xe1] sm:$0xff] }
 0x1d8   :  { %15060 = vmatprep.subr.bf16.mxu1 %v16740_v0 }
 0x1d9   :  { %15089 = vmatpush3.bf16.msra.mxu0 %v16737_v46  ;;  %v3339_v46 = vld [vmem:[#allocation2 + $0x41] sm:$0xff] }
 0x1da   :  { %15090 = vmatprep.subr.bf16.mxu0 %v16739_v61 }
 0x1db   :  { %15061 = vmatpush3.bf16.msra.mxu1 %v16740_v0  ;;  %v3372_v0 = vpack.c.bf16 %v3342_v38, %v3341_v24  ;;  %v16770_v24 = vld [vmem:[#allocation3 + $0x4c8] sm:$0xff]  }
 0x1dc   :  { %15043 = vmatmul.mubr.bf16.gmra.mxu0 %v2969_v30  ;;  %15062 = vmatprep.subr.bf16.mxu1 %v16742_v37  ;;  %v16754_v30 = vld [vmem:[#allocation3 + $0x458] sm:$0xff]  }
 0x1dd   :  { %15046 = vmatprep.mubr.bf16.mxu0 %v2970_v13  ;;  %15091 = vmatpush3.bf16.msra.mxu0 %v16739_v61  ;;  %v16753_v61 = vld [vmem:[#allocation3 + $0x460] sm:$0xff]  }
 0x1de   :  { %15092 = vmatprep.subr.bf16.mxu0 %v16741_v16  ;;  %15015 = vmatmul.mubr.bf16.gmra.mxu1 %v2769_v4  ;;  %v16755_v4 = vld [vmem:[#allocation3 + $0x450] sm:$0xff]  }
 0x1df   :  { %15018 = vmatprep.mubr.bf16.mxu1 %v2770_v40  ;;  %15063 = vmatpush3.bf16.msra.mxu1 %v16742_v37  ;;  %v3346_v37 = vld [vmem:[#allocation2 + $0xd1] sm:$0xff]  ;;  %v3175_v40 = vpack.c.bf16 %v17897_v23, %v18095_v34 }
 0x1e0   :  { %15064 = vmatprep.subr.bf16.mxu1 %v16744_v33  ;;  %v3374_v13 = vpack.c.bf16 %v3346_v37, %v17951_v15  ;;  %v16758_v34 = vld [vmem:[#allocation3 + $0x4f8] sm:$0xff]  }
 0x1e1   :  { %15093 = vmatpush3.bf16.msra.mxu0 %v16741_v16 }
 0x1e2   :  { %15094 = vmatprep.subr.bf16.mxu0 %v16743_v1 }
 0x1e3   :  { %15065 = vmatpush3.bf16.msra.mxu1 %v16744_v33  ;;  %v3375_v33 = vpack.c.bf16 %v17970_v35, %v3347_v27  ;;  %v18166_v27 = vld [vmem:[#allocation3 + $0x538] sm:$0xff]  }
 0x1e4   :  { %15047 = vmatmul.mubr.bf16.gmra.mxu0 %v2971_v53  ;;  %15066 = vmatprep.subr.bf16.mxu1 %v16746_v45  ;;  %v16762_v53 = vld [vmem:[#allocation3 + $0x4e8] sm:$0xff]   ;;  %21464 = vst [vmem:[#allocation42_spill] sm:$0xff] %v18166_v27 }
 0x1e5   :  { %15050 = vmatprep.mubr.bf16.mxu0 %v2972_v52  ;;  %15095 = vmatpush3.bf16.msra.mxu0 %v16743_v1  ;;  %v16757_v1 = vld [vmem:[#allocation3 + $0x440] sm:$0xff]   ;;  %v16763_v52 = vld [vmem:[#allocation3 + $0x4a8] sm:$0xff]  }
 0x1e6   :  { %15096 = vmatprep.subr.bf16.mxu0 %v16745_v31  ;;  %15019 = vmatmul.mubr.bf16.gmra.mxu1 %v2771_v39  ;;  %v16766_v39 = vld [vmem:[#allocation3 + $0x4d8] sm:$0xff]  }
 0x1e7   :  { %15067 = vmatpush3.bf16.msra.mxu1 %v16746_v45  ;;  %15070 = vmatprep.mubr.bf16.mxu1 %v17924_v58  ;;  %v3340_v58 = vld [vmem:[#allocation2 + $0x51] sm:$0xff] }
 0x1e8   :  { %15068 = vmatprep.subr.bf16.mxu1 %v16748_v7  ;;  %v3371_v8 = vpack.c.bf16 %v3340_v58, %v3339_v46  ;;  %v3352_v45 = vld [vmem:[#allocation2 + $0x131] sm:$0xff] }
 0x1e9   :  { %15097 = vmatpush3.bf16.msra.mxu0 %v16745_v31  ;;  %v16767_v58 = vld [vmem:[#allocation3 + $0x498] sm:$0xff]  }
 0x1ea   :  { %15098 = vmatprep.subr.bf16.mxu0 %v16747_v12 }
 0x1eb   :  { %15069 = vmatpush3.bf16.msra.mxu1 %v16748_v7 }
 0x1ec   :  { %15051 = vmatmul.mubr.bf16.gmra.mxu0 %v2973_v10  ;;  %15118 = vmatprep.subr.bf16.mxu1 %v16750_v49 }
 0x1ed   :  { %15099 = vmatpush3.bf16.msra.mxu0 %v16747_v12  ;;  %15102 = vmatprep.mubr.bf16.mxu0 %v3370_v60 }
 0x1ee   :  { %15100 = vmatprep.subr.bf16.mxu0 %v16749_v21  ;;  %15071 = vmatmul.mubr.bf16.vlgmr.msra.gmra.mxu1 %v17947_v47  ;;  %v3343_v47 = vld [vmem:[#allocation2 + $0x81] sm:$0xff] }
 0x1ef   :  { %15074 = vmatprep.mubr.bf16.mxu1 %v17965_v5  ;;  %15119 = vmatpush3.bf16.msra.mxu1 %v16750_v49  ;;  %v3344_v5 = vld [vmem:[#allocation2 + $0x91] sm:$0xff] }
 0x1f0   :  { %15120 = vmatprep.subr.bf16.mxu1 %v16751_v44  ;;  %v3373_v16 = vpack.c.bf16 %v3344_v5, %v3343_v47 }
 0x1f1   :  { %15101 = vmatpush3.bf16.msra.mxu0 %v16749_v21 }
 0x1f2   :  { %15150 = vmatprep.subr.bf16.mxu0 %v16758_v34 }
 0x1f3   :  { %15121 = vmatpush3.bf16.msra.mxu1 %v16751_v44 }
 0x1f4   :  { %15103 = vmatmul.mubr.bf16.vlgmr.msra.gmra.mxu0 %v3371_v8  ;;  %15122 = vmatprep.subr.bf16.mxu1 %v16752_v56 }
 0x1f5   :  { %15106 = vmatprep.mubr.bf16.mxu0 %v3372_v0  ;;  %15151 = vmatpush3.bf16.msra.mxu0 %v16758_v34 }
 0x1f6   :  { %15075 = vmatmul.mubr.bf16.gmra.mxu1 %v3171_v20  ;;  %v16769_v20 = vld [vmem:[#allocation3 + $0x490] sm:$0xff]  }
 0x1f7   :  { %15078 = vmatprep.mubr.bf16.mxu1 %v17996_v54  ;;  %15123 = vmatpush3.bf16.msra.mxu1 %v16752_v56  ;;  %v16756_v54 = vld [vmem:[#allocation3 + $0x448] sm:$0xff]  }
 0x1f8   :  { %15124 = vmatprep.subr.bf16.mxu1 %v16753_v61 }
 0x1fb   :  { %15125 = vmatpush3.bf16.msra.mxu1 %v16753_v61  ;;  %v16772_v61 = vld [vmem:[#allocation3 + $0x4c0] sm:$0xff]  }
 0x1fc   :  { %15107 = vmatmul.mubr.bf16.gmra.mxu0 %v3373_v16  ;;  %15126 = vmatprep.subr.bf16.mxu1 %v16754_v30 }
 0x1fd   :  { %15110 = vmatprep.mubr.bf16.mxu0 %v3374_v13 }
 0x1fe   :  { %15079 = vmatmul.mubr.bf16.gmra.mxu1 %v18011_v18  ;;  %v3377_v18 = vpack.c.bf16 %v3352_v45, %v17977_v63 }
 0x1ff   :  { %15082 = vmatprep.mubr.bf16.mxu1 %v18026_v29  ;;  %15127 = vmatpush3.bf16.msra.mxu1 %v16754_v30  ;;  %v3546_v29 = vld [vmem:[#allocation2 + $0x92] sm:$0xff] }
 0x200   :  { %15128 = vmatprep.subr.bf16.mxu1 %v16755_v4  ;;  %v3575_v23 = vpack.c.bf16 %v3546_v29, %v18116_v48  ;;  %v16764_v48 = vld [vmem:[#allocation3 + $0x4e0] sm:$0xff]  }
 0x203   :  { %15129 = vmatpush3.bf16.msra.mxu1 %v16755_v4  ;;  %v16771_v4 = vld [vmem:[#allocation3 + $0x488] sm:$0xff]  }
 0x204   :  { %15111 = vmatmul.mubr.bf16.gmra.mxu0 %v3375_v33  ;;  %15130 = vmatprep.subr.bf16.mxu1 %v16756_v54 }
 0x205   :  { %15114 = vmatprep.mubr.bf16.mxu0 %v18000_v36  ;;  %v3554_v36 = vld [vmem:[#allocation2 + $0x132] sm:$0xff] }
 0x206   :  { %15083 = vmatmul.mubr.bf16.gmra.mxu1 %v3175_v40 }
 0x207   :  { %15131 = vmatpush3.bf16.msra.mxu1 %v16756_v54  ;;  %15134 = vmatprep.mubr.bf16.mxu1 %v18035_v55  ;;  %v3579_v55 = vpack.c.bf16 %v3554_v36, %v18132_v3  ;;  %v16765_v3 = vld [vmem:[#allocation3 + $0x4a0] sm:$0xff]  }
 0x208   :  { %15132 = vmatprep.subr.bf16.mxu1 %v16757_v1 }
 0x20b   :  { %15133 = vmatpush3.bf16.msra.mxu1 %v16757_v1 }
 0x20c   :  { %15115 = vmatmul.mubr.bf16.gmra.mxu0 %v3377_v18  ;;  %v16773_v18 = vld [vmem:[#allocation3 + $0x480] sm:$0xff]  }
 0x20e   :  { %15135 = vmatmul.mubr.bf16.vlgmr.msra.gmra.mxu1 %v18039_v50  ;;  %v16760_v50 = vld [vmem:[#allocation3 + $0x4f0] sm:$0xff]  }
 0x20f   :  { %15138 = vmatprep.mubr.bf16.mxu1 %v18055_v43  ;;  %15152 = vmatprep.subr.bf16.mxu0 %v16760_v50  ;;  %v16759_v43 = vld [vmem:[#allocation3 + $0x4b8] sm:$0xff]  }
 0x210   :  { %15153 = vmatpush3.bf16.msra.mxu0 %v16760_v50  ;;  %15182 = vmatprep.subr.bf16.mxu1 %v16759_v43 }
 0x211   :  { %15154 = vmatprep.subr.bf16.mxu0 %v16762_v53  ;;  %15183 = vmatpush3.bf16.msra.mxu1 %v16759_v43  ;;  %v18173_v43 = vld [vmem:[#allocation3 + $0x578] sm:$0xff]  }
 0x212   :  { %21465 = vst [vmem:[#allocation15_spill] sm:$0xff] %v18173_v43 }
 0x214   :  { %15155 = vmatpush3.bf16.msra.mxu0 %v16762_v53 }
 0x215   :  { %15156 = vmatprep.subr.bf16.mxu0 %v16764_v48 }
 0x216   :  { %15139 = vmatmul.mubr.bf16.gmra.mxu1 %v3575_v23 }
 0x217   :  { %15142 = vmatprep.mubr.bf16.mxu1 %v18075_v6 }
 0x218   :  { %15157 = vmatpush3.bf16.msra.mxu0 %v16764_v48 }
 0x219   :  { %15158 = vmatprep.subr.bf16.mxu0 %v16766_v39 }
 0x21c   :  { %15159 = vmatpush3.bf16.msra.mxu0 %v16766_v39 }
 0x21d   :  { %15160 = vmatprep.subr.bf16.mxu0 %v16768_v14 }
 0x21e   :  { %15143 = vmatmul.mubr.bf16.gmra.mxu1 %v18079_v2  ;;  %v16761_v2 = vld [vmem:[#allocation3 + $0x4b0] sm:$0xff]  }
 0x21f   :  { %15146 = vmatprep.mubr.bf16.mxu1 %v18093_v11  ;;  %15184 = vmatprep.subr.bf16.mxu1 %v16761_v2 }
 0x220   :  { %15185 = vmatpush3.bf16.msra.mxu1 %v16761_v2  ;;  %15161 = vmatpush3.bf16.msra.mxu0 %v16768_v14 }
 0x221   :  { %15186 = vmatprep.subr.bf16.mxu1 %v16763_v52  ;;  %15162 = vmatprep.subr.bf16.mxu0 %v16770_v24 }
 0x224   :  { %15187 = vmatpush3.bf16.msra.mxu1 %v16763_v52  ;;  %15163 = vmatpush3.bf16.msra.mxu0 %v16770_v24 }
 0x225   :  { %15188 = vmatprep.subr.bf16.mxu1 %v16765_v3  ;;  %15164 = vmatprep.subr.bf16.mxu0 %v16772_v61 }
 0x226   :  { %15147 = vmatmul.mubr.bf16.gmra.mxu1 %v3579_v55 }
 0x228   :  { %15189 = vmatpush3.bf16.msra.mxu1 %v16765_v3  ;;  %15165 = vmatpush3.bf16.msra.mxu0 %v16772_v61 }
 0x229   :  { %15190 = vmatprep.subr.bf16.mxu1 %v16767_v58  ;;  %15214 = vmatprep.subr.bf16.mxu0 %v18166_v27 }
 0x22c   :  { %15191 = vmatpush3.bf16.msra.mxu1 %v16767_v58 }
 0x22d   :  { %15192 = vmatprep.subr.bf16.mxu1 %v16769_v20 }
 0x230   :  { %15193 = vmatpush3.bf16.msra.mxu1 %v16769_v20 }
 0x231   :  { %15194 = vmatprep.subr.bf16.mxu1 %v16771_v4 }
 0x234   :  { %15195 = vmatpush3.bf16.msra.mxu1 %v16771_v4 }
 0x235   :  { %15196 = vmatprep.subr.bf16.mxu1 %v16773_v18 }
 0x238   :  { %15197 = vmatpush3.bf16.msra.mxu1 %v16773_v18 }
 0x239   :  { %15246 = vmatprep.subr.bf16.mxu1 %v18173_v43 }
 0x24c   :  { %v14880_v6 = vpop.f32.mrf.mxu1 }
 0x24e   :  { %v2119_v11 = vpop.f32.mrf.mxu1 }
 0x250   :  { %v14881_v31 = vpop.f32.mrf.mxu1 }
 0x252   :  { %v18158_v7 = vpop.f32.mrf.mxu1 }
 0x254   :  { %v14912_v12 = vpop.f32.mrf.mxu0 }
 0x255   :  { %v18160_v49 = vadd.f32 %v14912_v12, %v14880_v6  ;;  %v14884_v10 = vpop.f32.mrf.mxu1 }
 0x256   :  { %v2264_v59 = vpop.f32.mrf.mxu0 }
 0x257   :  { %v2265_v21 = vadd.f32 %v2264_v59, %v2119_v11  ;;  %v2135_v60 = vpop.f32.mrf.mxu1 }
 0x258   :  { %v14913_v44 = vpop.f32.mrf.mxu0 }
 0x259   :  { %v2276_v56 = vadd.f32 %v14913_v44, %v14881_v31  ;;  %v14885_v46 = vpop.f32.mrf.mxu1 }
 0x25a   :  { %v18162_v8 = vpop.f32.mrf.mxu0 }
 0x25b   :  { %v18164_v38 = vpop.f32.mrf.mxu1 }
 0x25c   :  { %v14916_v0 = vpop.f32.mrf.mxu0 }
 0x25d   :  { %v2289_v47 = vadd.f32 %v14916_v0, %v14884_v10  ;;  %v14888_v5 = vpop.f32.mrf.mxu1 }
 0x25e   :  { %v2280_v37 = vpop.f32.mrf.mxu0 }
 0x25f   :  { %v2281_v30 = vadd.f32 %v2280_v37, %v2135_v60  ;;  %v2151_v16 = vpop.f32.mrf.mxu1 }
 0x260   :  { %v14917_v13 = vpop.f32.mrf.mxu0 }
 0x261   :  { %v2292_v54 = vadd.f32 %v14917_v13, %v14885_v46  ;;  %v14889_v33 = vpop.f32.mrf.mxu1 }
 0x262   :  { %v18168_v40 = vpop.f32.mrf.mxu0 }
 0x263   :  { %v18171_v1 = vpop.f32.mrf.mxu1 }
 0x264   :  { %v14920_v45 = vpop.f32.mrf.mxu0 }
 0x265   :  { %v2305_v29 = vadd.f32 %v14920_v45, %v14888_v5  ;;  %v14892_v23 = vpop.f32.mrf.mxu1 }
 0x266   :  { %v2296_v36 = vpop.f32.mrf.mxu0 }
 0x267   :  { %v2297_v55 = vadd.f32 %v2296_v36, %v2151_v16  ;;  %v2167_v34 = vpop.f32.mrf.mxu1 }
 0x268   :  { %v14921_v50 = vpop.f32.mrf.mxu0 }
 0x269   :  { %v2308_v53 = vadd.f32 %v14921_v50, %v14889_v33  ;;  %v14893_v6 = vpop.f32.mrf.mxu1 }
 0x26a   :  { %v18175_v2 = vpop.f32.mrf.mxu0 }
 0x26b   :  { %v18178_v48 = vpop.f32.mrf.mxu1 }
 0x26c   :  { %v14924_v11 = vpop.f32.mrf.mxu0 }
 0x26d   :  { %v2321_v31 = vadd.f32 %v14924_v11, %v14892_v23 }
 0x26e   :  { %v2312_v52 = vpop.f32.mrf.mxu0  ;;  %v14944_v39 = vpop.f32.mrf.mxu1 }
 0x26f   :  { %v2313_v12 = vadd.f32 %v2312_v52, %v2167_v34  ;;  %v18181_v3 = vadd.f32 %v14944_v39, %v18160_v49 }
 0x270   :  { %v14925_v14 = vpop.f32.mrf.mxu0  ;;  %v2450_v10 = vpop.f32.mrf.mxu1 }
 0x271   :  { %v2324_v59 = vadd.f32 %v14925_v14, %v14893_v6  ;;  %v18183_v60 = vadd.f32 %v2450_v10, %v2265_v21 }
 0x272   :  { %v18185_v44 = vpop.f32.mrf.mxu0  ;;  %v14945_v58 = vpop.f32.mrf.mxu1 }
 0x273   :  { %v18187_v24 = vadd.f32 %v14945_v58, %v2276_v56 }
 0x274   :  { %v18189_v46 = vpop.f32.mrf.mxu0  ;;  %v18191_v0 = vpop.f32.mrf.mxu1 }
 0x276   :  { %v18193_v20 = vpop.f32.mrf.mxu0  ;;  %v14948_v61 = vpop.f32.mrf.mxu1 }
 0x277   :  { %v18195_v5 = vadd.f32 %v14948_v61, %v2289_v47 }
 0x278   :  { %v18197_v49 = vpop.f32.mrf.mxu0  ;;  %v2466_v37 = vpop.f32.mrf.mxu1 }
 0x279   :  { %v18199_v16 = vadd.f32 %v2466_v37, %v2281_v30 }
 0x27a   :  { %v18201_v21 = vpop.f32.mrf.mxu0  ;;  %v14949_v13 = vpop.f32.mrf.mxu1 }
 0x27b   :  { %v18203_v4 = vadd.f32 %v14949_v13, %v2292_v54 }
 0x27c   :  { %v18205_v56 = vpop.f32.mrf.mxu0  ;;  %v18207_v33 = vpop.f32.mrf.mxu1 }
 0x27e   :  { %v18209_v45 = vpop.f32.mrf.mxu0  ;;  %v14952_v18 = vpop.f32.mrf.mxu1 }
 0x27f   :  { %v18211_v23 = vadd.f32 %v14952_v18, %v2305_v29 }
 0x280   :  { %v18213_v47 = vpop.f32.mrf.mxu0  ;;  %v2482_v36 = vpop.f32.mrf.mxu1 }
 0x281   :  { %v18215_v34 = vadd.f32 %v2482_v36, %v2297_v55 }
 0x282   :  { %v18217_v30 = vpop.f32.mrf.mxu0  ;;  %v14953_v50 = vpop.f32.mrf.mxu1 }
 0x283   :  { %v18219_v6 = vadd.f32 %v14953_v50, %v2308_v53 }
 0x284   :  { %v18221_v54 = vpop.f32.mrf.mxu0  ;;  %v18223_v11 = vpop.f32.mrf.mxu1 }
 0x286   :  { %v18225_v52 = vpop.f32.mrf.mxu0  ;;  %v14956_v39 = vpop.f32.mrf.mxu1 }
 0x287   :  { %v18227_v14 = vadd.f32 %v14956_v39, %v2321_v31 }
 0x288   :  { %v18229_v29 = vpop.f32.mrf.mxu0  ;;  %v2498_v10 = vpop.f32.mrf.mxu1 }
 0x289   :  { %v18231_v58 = vadd.f32 %v2498_v10, %v2313_v12 }
 0x28a   :  { %v18233_v55 = vpop.f32.mrf.mxu0  ;;  %v14957_v61 = vpop.f32.mrf.mxu1 }
 0x28b   :  { %v18235_v37 = vadd.f32 %v14957_v61, %v2324_v59 }
 0x28c   :  { %v18237_v53 = vpop.f32.mrf.mxu0  ;;  %v18239_v13 = vpop.f32.mrf.mxu1 }
 0x28e   :  { %v18241_v18 = vpop.f32.mrf.mxu0  ;;  %v15008_v36 = vpop.f32.mrf.mxu1 }
 0x290   :  { %v18243_v50 = vpop.f32.mrf.mxu0  ;;  %v18245_v31 = vpop.f32.mrf.mxu1 }
 0x291   :  { %21466 = vst [vmem:[#allocation16_spill] sm:$0xff] %v18243_v50 }
 0x292   :  { %v18247_v39 = vpop.f32.mrf.mxu0  ;;  %v18249_v12 = vpop.f32.mrf.mxu1 }
 0x293   :  { %21467 = vst [vmem:[#allocation24_spill] sm:$0xff] %v18247_v39 }
 0x294   :  { %v15040_v10 = vpop.f32.mrf.mxu0  ;;  %v18251_v28 = vpop.f32.mrf.mxu1 }
 0x296   :  { %v18253_v59 = vpop.f32.mrf.mxu0  ;;  %v18255_v61 = vpop.f32.mrf.mxu1 }
 0x298   :  { %v18257_v63 = vpop.f32.mrf.mxu0  ;;  %v18259_v35 = vpop.f32.mrf.mxu1 }
 0x299   :  { %21468 = vst [vmem:[#allocation27_spill] sm:$0xff] %v18259_v35 }
 0x29a   :  { %v18261_v19 = vpop.f32.mrf.mxu0  ;;  %v18263_v15 = vpop.f32.mrf.mxu1 }
 0x29b   :  { %21469 = vst [vmem:[#allocation43_spill] sm:$0xff] %v18263_v15 }
 0x29c   :  { %v18265_v22 = vpop.f32.mrf.mxu0  ;;  %v18267_v42 = vpop.f32.mrf.mxu1 }
 0x29d   :  { %21470 = vst [vmem:[#allocation26_spill] sm:$0xff] %v18265_v22  ;;  %21471 = vst [vmem:[#allocation29_spill] sm:$0xff] %v18267_v42 }
 0x29e   :  { %v18269_v25 = vpop.f32.mrf.mxu0  ;;  %v18271_v32 = vpop.f32.mrf.mxu1 }
 0x29f   :  { %21472 = vst [vmem:[#allocation45_spill] sm:$0xff] %v18269_v25  ;;  %21473 = vst [vmem:[#allocation18_spill] sm:$0xff] %v18271_v32 }
 0x2a0   :  { %v18273_v62 = vpop.f32.mrf.mxu0  ;;  %v18275_v17 = vpop.f32.mrf.mxu1 }
 0x2a1   :  { %21474 = vst [vmem:[#allocation28_spill] sm:$0xff] %v18273_v62  ;;  %21475 = vst [vmem:[#allocation31_spill] sm:$0xff] %v18275_v17 }
 0x2a2   :  { %v18277_v51 = vpop.f32.mrf.mxu0  ;;  %v18279_v41 = vpop.f32.mrf.mxu1 }
 0x2a3   :  { %21476 = vst [vmem:[#allocation30_spill] sm:$0xff] %v18277_v51  ;;  %21477 = vst [vmem:[#allocation33_spill] sm:$0xff] %v18279_v41 }
 0x2a4   :  { %v18281_v57 = vpop.f32.mrf.mxu0  ;;  %v18283_v9 = vpop.f32.mrf.mxu1 }
 0x2a5   :  { %21478 = vst [vmem:[#allocation32_spill] sm:$0xff] %v18281_v57  ;;  %21479 = vst [vmem:[#allocation35_spill] sm:$0xff] %v18283_v9 }
 0x2a6   :  { %v18285_v26 = vpop.f32.mrf.mxu0  ;;  %v18287_v43 = vpop.f32.mrf.mxu1 }
 0x2a7   :  { %21480 = vst [vmem:[#allocation34_spill] sm:$0xff] %v18285_v26  ;;  %21481 = vst [vmem:[#allocation36_spill] sm:$0xff] %v18287_v43 }
 0x2a8   :  { %v18289_v27 = vpop.f32.mrf.mxu0  ;;  %v18291_v42 = vpop.f32.mrf.mxu1 }
 0x2a9   :  { %21482 = vst [vmem:[#allocation46_spill] sm:$0xff] %v18289_v27  ;;  %21483 = vst [vmem:[#allocation47_spill] sm:$0xff] %v18291_v42 }
 0x2aa   :  { %v18293_v32 = vpop.f32.mrf.mxu0  ;;  %v18295_v62 = vpop.f32.mrf.mxu1 }
 0x2ab   :  { %21484 = vst [vmem:[#allocation48_spill] sm:$0xff] %v18293_v32  ;;  %21485 = vst [vmem:[#allocation49_spill] sm:$0xff] %v18295_v62 }
 0x2ac   :  { %v18297_v17 = vpop.f32.mrf.mxu0  ;;  %v18299_v51 = vpop.f32.mrf.mxu1 }
 0x2ad   :  { %21486 = vst [vmem:[#allocation50_spill] sm:$0xff] %v18297_v17  ;;  %21487 = vst [vmem:[#allocation51_spill] sm:$0xff] %v18299_v51 }
 0x2ae   :  { %v18301_v41 = vpop.f32.mrf.mxu0  ;;  %v15072_v57 = vpop.f32.mrf.mxu1 }
 0x2af   :  { %21488 = vst [vmem:[#allocation52_spill] sm:$0xff] %v18301_v41 }
 0x2b0   :  { %v18303_v9 = vpop.f32.mrf.mxu0  ;;  %v3258_v26 = vpop.f32.mrf.mxu1 }
 0x2b1   :  { %21489 = vst [vmem:[#allocation53_spill] sm:$0xff] %v18303_v9 }
 0x2b2   :  { %v18305_v15 = vpop.f32.mrf.mxu0  ;;  %v15073_v43 = vpop.f32.mrf.mxu1 }
 0x2b3   :  { %21490 = vst [vmem:[#allocation54_spill] sm:$0xff] %v18305_v15 }
 0x2b4   :  { %v15104_v27 = vpop.f32.mrf.mxu0  ;;  %v18307_v25 = vpop.f32.mrf.mxu1 }
 0x2b5   :  { %21491 = vst [vmem:[#allocation55_spill] sm:$0xff] %v18307_v25 }
 0x2b6   :  { %v3460_v42 = vpop.f32.mrf.mxu0  ;;  %v18309_v32 = vpop.f32.mrf.mxu1 }
 0x2b7   :  { %21492 = vst [vmem:[#allocation56_spill] sm:$0xff] %v18309_v32 }
 0x2b8   :  { %v15105_v62 = vpop.f32.mrf.mxu0  ;;  %v18311_v39 = vpop.f32.mrf.mxu1 }
 0x2b9   :  { %21493 = vst [vmem:[#allocation57_spill] sm:$0xff] %v18311_v39  ;;  %v2717_v39 = vadd.f32 %v18189_v46, %v18181_v3  ;;  %v2316_v3 = vadd.f32 %v18185_v44, %v18178_v48 }
 0x2ba   :  { %v18313_v17 = vpop.f32.mrf.mxu0  ;;  %v18315_v51 = vpop.f32.mrf.mxu1 }
 0x2bb   :  { %21494 = vst [vmem:[#allocation58_spill] sm:$0xff] %v18315_v51  ;;  %v2268_v51 = vadd.f32 %v18162_v8, %v18158_v7  ;;  %v2718_v8 = vadd.f32 %v18197_v49, %v18187_v24  ;;  %v2726_v49 = vadd.f32 %v18229_v29, %v18219_v6  ;;  %v18390_v6 = vld [vmem:[#allocation6 + $0x1] ss:$0 sm:$0xff]  ;;  %v21502_v29 = vld [vmem:[#allocation26_spill] sm:$0xff] }
 0x2bc   :  { %v18317_v41 = vpop.f32.mrf.mxu0  ;;  %v18319_v9 = vpop.f32.mrf.mxu1 }
 0x2bd   :  { %21495 = vst [vmem:[#allocation59_spill] sm:$0xff] %v18317_v41  ;;  %21496 = vst [vmem:[#allocation60_spill] sm:$0xff] %v18319_v9  ;;  %v2919_v9 = vadd.f32 %v15008_v36, %v2717_v39  ;;  %v2514_v46 = vadd.f32 %v18191_v0, %v2268_v51  ;;  %v2722_v51 = vadd.f32 %v18213_v47, %v18203_v4  ;;  %v21505_v39 = vld [vmem:[#allocation24_spill] sm:$0xff] }
 0x2be   :  { %v18321_v35 = vpop.f32.mrf.mxu1  ;;  %v18323_v15 = vpop.f32.mrf.mxu0  ;;  %v2725_v0 = vadd.f32 %v18221_v54, %v18211_v23  ;;  %v18386_v23 = vadd.f32 %v18237_v53, %v18227_v14  ;;  %v2526_v47 = vadd.f32 %v18239_v13, %v2316_v3  ;;  %v21503_v53 = vld [vmem:[#allocation27_spill] sm:$0xff] }
 0x2bf   :  { %21497 = vst [vmem:[#allocation61_spill] sm:$0xff] %v18321_v35  ;;  %v2284_v35 = vadd.f32 %v18168_v40, %v18164_v38  ;;  %v3121_v40 = vadd.f32 %v15040_v10, %v2919_v9  ;;  %v2920_v9 = vadd.f32 %v18249_v12, %v2718_v8  ;;  %v21507_v10 = vld [vmem:[#allocation43_spill] sm:$0xff] }
 0x2c0   :  { %v18325_v22 = vpop.f32.mrf.mxu1  ;;  %v18329_v32 = vpop.f32.mrf.mxu0  ;;  %v18408_v12 = vadd.f32 %v21505_v39, %v2526_v47 }
 0x2c1   :  { %21498 = vst [vmem:[#allocation62_spill] sm:$0xff] %v18325_v22  ;;  %v2715_v22 = vadd.f32 %v18193_v20, %v18183_v60  ;;  %v2518_v38 = vadd.f32 %v18207_v33, %v2284_v35  ;;  %v2716_v20 = vadd.f32 %v18201_v21, %v2514_v46  ;;  %v3122_v4 = vadd.f32 %v18257_v63, %v2920_v9 }
 0x2c2   :  { %v18327_v25 = vpop.f32.mrf.mxu1 }
 0x2c3   :  { %21499 = vst [vmem:[#allocation63_spill] sm:$0xff] %v18327_v25  ;;  %v18343_v25 = vpop.f32.mrf.mxu0  ;;  %v2917_v60 = vadd.f32 %v18245_v31, %v2715_v22  ;;  %v2720_v44 = vadd.f32 %v18217_v30, %v2518_v38  ;;  %v3323_v22 = vadd.f32 %v15072_v57, %v3121_v40 }
 0x2c4   :  { %v18331_v50 = vpop.f32.mrf.mxu1 }
 0x2c5   :  { %21500 = vst [vmem:[#allocation64_spill] sm:$0xff] %v18331_v50  ;;  %v2300_v50 = vadd.f32 %v18175_v2, %v18171_v1  ;;  %v2721_v1 = vadd.f32 %v18205_v56, %v18195_v5  ;;  %v2719_v2 = vadd.f32 %v18209_v45, %v18199_v16  ;;  %v3119_v35 = vadd.f32 %v18253_v59, %v2917_v60  ;;  %v18368_v24 = vpop.f32.mrf.mxu0  ;;  %v21509_v60 = vld [vmem:[#allocation28_spill] sm:$0xff] }
 0x2c6   :  { %v18337_v41 = vpop.f32.mrf.mxu1  ;;  %v2723_v5 = vadd.f32 %v18225_v52, %v18215_v34  ;;  %v2918_v56 = vadd.f32 %v18251_v28, %v2716_v20  ;;  %v3525_v57 = vadd.f32 %v15104_v27, %v3323_v22  ;;  %v3324_v28 = vadd.f32 %v15073_v43, %v3122_v4  ;;  %v21501_v52 = vld [vmem:[#allocation16_spill] sm:$0xff]  ;;  %v21512_v22 = vld [vmem:[#allocation57_spill] sm:$0xff] }
 0x2c7   :  { %v2522_v16 = vadd.f32 %v18223_v11, %v2300_v50  ;;  %v3321_v33 = vadd.f32 %v3258_v26, %v3119_v35  ;;  %v2923_v34 = vadd.f32 %v18255_v61, %v2721_v1  ;;  %v18393_v27 = vpop.f32.mrf.mxu0  ;;  %v18397_v11 = vadd.f32 %v18241_v18, %v18231_v58  ;;  %v21506_v58 = vld [vmem:[#allocation45_spill] sm:$0xff]  ;;  %v21511_v35 = vld [vmem:[#allocation18_spill] sm:$0xff]  ;;  %v3835_v4 = vld [vmem:[#allocation2 + $0x1] sm:$0xff] }
 0x2c8   :  { %v18350_v7 = vpop.f32.mrf.mxu1  ;;  %v3120_v63 = vadd.f32 %v18261_v19, %v2918_v56  ;;  %v18401_v14 = vadd.f32 %v21501_v52, %v18235_v37  ;;  %v2921_v13 = vadd.f32 %v21503_v53, %v2719_v2  ;;  %v3526_v50 = vadd.f32 %v15105_v62, %v3324_v28  ;;  %v21504_v19 = vld [vmem:[#allocation55_spill] sm:$0xff]  ;;  %v21508_v37 = vld [vmem:[#allocation56_spill] sm:$0xff]  ;;  %v21510_v1 = vld [vmem:[#allocation29_spill] sm:$0xff] }
 0x2c9   :  { %v18382_v45 = vadd.f32 %v18233_v55, %v2522_v16  ;;  %v3523_v54 = vadd.f32 %v3460_v42, %v3321_v33  ;;  %v3125_v55 = vadd.f32 %v21502_v29, %v2923_v34  ;;  %v2924_v59 = vadd.f32 %v21507_v10, %v2722_v51  ;;  %v18414_v8 = vpop.f32.mrf.mxu0  ;;  %v21513_v56 = vld [vmem:[#allocation59_spill] sm:$0xff]  ;;  %v21514_v34 = vld [vmem:[#allocation30_spill] sm:$0xff] }
 0x2ca   :  { %v18363_v48 = vpop.f32.mrf.mxu1  ;;  %v3322_v42 = vadd.f32 %v21504_v19, %v3120_v63  ;;  %v3123_v18 = vadd.f32 %v21506_v58, %v2921_v13  ;;  %v2922_v2 = vadd.f32 %v21510_v1, %v2720_v44  ;;  %v2927_v9 = vadd.f32 %v21511_v35, %v2725_v0  ;;  %v21515_v63 = vld [vmem:[#allocation31_spill] sm:$0xff]  ;;  %v21516_v0 = vld [vmem:[#allocation58_spill] sm:$0xff]  ;;  %v21518_v19 = vld [vmem:[#allocation33_spill] sm:$0xff] }
 0x2cb   :  { %v3327_v61 = vadd.f32 %v21508_v37, %v3125_v55  ;;  %v3126_v20 = vadd.f32 %v21509_v60, %v2924_v59  ;;  %v18432_v52 = vpop.f32.mrf.mxu0  ;;  %v21520_v59 = vld [vmem:[#allocation34_spill] sm:$0xff]  ;;  %v16776_v35 = vld [vmem:[#allocation3 + $0x530] sm:$0xff]  }
 0x2cc   :  { %v18377_v21 = vpop.f32.mrf.mxu1  ;;  %v3524_v46 = vadd.f32 %v18313_v17, %v3322_v42  ;;  %v3325_v51 = vadd.f32 %v21512_v22, %v3123_v18  ;;  %v21519_v42 = vld [vmem:[#allocation60_spill] sm:$0xff] }
 0x2cd   :  { %v3328_v28 = vadd.f32 %v21516_v0, %v3126_v20  ;;  %v21529_v0 = vld [vmem:[#allocation63_spill] sm:$0xff] }
 0x2ce   :  { %v15136_v30 = vpop.f32.mrf.mxu1  ;;  %v3527_v44 = vadd.f32 %v18323_v15, %v3325_v51  ;;  %v21525_v51 = vld [vmem:[#allocation47_spill] sm:$0xff] }
 0x2cf   :  { %v3727_v26 = vadd.f32 %v15136_v30, %v3525_v57  ;;  %v3529_v57 = vadd.f32 %v21513_v56, %v3327_v61  ;;  %v3124_v30 = vadd.f32 %v21514_v34, %v2922_v2  ;;  %v3530_v15 = vadd.f32 %v18329_v32, %v3328_v28 }
 0x2d0   :  { %v3662_v36 = vpop.f32.mrf.mxu1 }
 0x2d1   :  { %v3748_v43 = vadd.f32 %v18390_v6, %v3727_v26  ;;  %v3725_v31 = vadd.f32 %v3662_v36, %v3523_v54  ;;  %v2925_v54 = vadd.f32 %v21515_v63, %v2723_v5  ;;  %v21517_v36 = vld [vmem:[#allocation32_spill] sm:$0xff]  ;;  %v2928_v5 = vadd.f32 %v21518_v19, %v2726_v49  ;;  %v21521_v49 = vld [vmem:[#allocation35_spill] sm:$0xff] }
 0x2d2   :  { %v15137_v3 = vpop.f32.mrf.mxu1  ;;  %v2926_v61 = vadd.f32 %v21521_v49, %v18382_v45  ;;  %v21527_v63 = vld [vmem:[#allocation48_spill] sm:$0xff]  ;;  %v18483_v19 = vld [vmem:[#allocation2] sm:$0xff] }
 0x2d3   :  { %v18416_v62 = vmax.f32 %v3748_v43, 0.0  ;;  %v3746_v38 = vadd.f32 %v18390_v6, %v3725_v31  ;;  %v3728_v40 = vadd.f32 %v15137_v3, %v3526_v50  ;;  %v3129_v50 = vadd.f32 %v21517_v36, %v2927_v9  ;;  %v21522_v3 = vld [vmem:[#allocation61_spill] sm:$0xff]  ;;  %v21523_v9 = vld [vmem:[#allocation46_spill] sm:$0xff] }
 0x2d4   :  { %v3665_v16 = vpop.f32.mrf.mxu1  ;;  %v3326_v43 = vadd.f32 %v21519_v42, %v3124_v30  ;;  %v3127_v37 = vadd.f32 %v21520_v59, %v2925_v54  ;;  %v3130_v45 = vadd.f32 %v21523_v9, %v2928_v5  ;;  %v3128_v54 = vadd.f32 %v21527_v63, %v2926_v61  ;;  %v21531_v5 = vld [vmem:[#allocation50_spill] sm:$0xff]  ;;  %v21532_v42 = vld [vmem:[#allocation52_spill] sm:$0xff] }
 0x2d5   :  { %3780 = vst [vmem:[#allocation2 + $0x31] sm:$0xff] %v18416_v62  ;;  %v18425_v17 = vmax.f32 %v3746_v38, 0.0  ;;  %v3749_v33 = vadd.f32 %v18390_v6, %v3728_v40  ;;  %v3726_v47 = vadd.f32 %v3665_v16, %v3524_v46  ;;  %v3331_v46 = vadd.f32 %v21522_v3, %v3129_v50  ;;  %v18454_v40 = vpop.f32.mrf.mxu0 }
 0x2d6   :  { %v15140_v26 = vpop.f32.mrf.mxu1  ;;  %v3528_v32 = vadd.f32 %v18343_v25, %v3326_v43  ;;  %v21524_v25 = vld [vmem:[#allocation36_spill] sm:$0xff]  ;;  %v2929_v16 = vadd.f32 %v21525_v51, %v18397_v11  ;;  %v3332_v28 = vadd.f32 %v21529_v0, %v3130_v45 }
 0x2d7   :  { %3778 = vst [vmem:[#allocation2 + $0x11] sm:$0xff] %v18425_v17  ;;  %v18435_v29 = vmax.f32 %v3749_v33, 0.0  ;;  %v3747_v55 = vadd.f32 %v18390_v6, %v3726_v47  ;;  %v3731_v53 = vadd.f32 %v15140_v26, %v3529_v57  ;;  %v3868_v13 = vpack.c.bf16 %v18425_v17, %v3835_v4  ;;  %v21526_v4 = vld [vmem:[#allocation62_spill] sm:$0xff] }
 0x2d8   :  { %v3678_v31 = vpop.f32.mrf.mxu1  ;;  %v2931_v22 = vadd.f32 %v21524_v25, %v18386_v23  ;;  %v3329_v56 = vadd.f32 %v21526_v4, %v3127_v37  ;;  %v3533_v33 = vadd.f32 %v18368_v24, %v3331_v46  ;;  %v21528_v23 = vld [vmem:[#allocation49_spill] sm:$0xff]  ;;  %v21530_v24 = vld [vmem:[#allocation42_spill] sm:$0xff]  ;;  %v3131_v43 = vadd.f32 %v21532_v42, %v2929_v16 }
 0x2d9   :  { %3781 = vst [vmem:[#allocation2 + $0x41] sm:$0xff] %v18435_v29  ;;  %v18444_v39 = vmax.f32 %v3747_v55, 0.0  ;;  %v3752_v58 = vadd.f32 %v18390_v6, %v3731_v53  ;;  %v3729_v18 = vadd.f32 %v3678_v31, %v3527_v44  ;;  %15166 = vmatprep.mubr.bf16.mxu0 %v3868_v13  ;;  %v4604_v10 = vpack.c.bf16 %v18435_v29, %v18416_v62  ;;  %v3508_v53 = vpop.f32.mrf.mxu0  ;;  %v21533_v31 = vld [vmem:[#allocation64_spill] sm:$0xff]  ;;  %v16777_v25 = vld [vmem:[#allocation3 + $0x570] sm:$0xff]  }
 0x2da   :  { %v15141_v38 = vpop.f32.mrf.mxu1  ;;  %v2932_v44 = vadd.f32 %v21528_v23, %v18401_v14  ;;  %v3531_v11 = vadd.f32 %v18393_v27, %v3329_v56  ;;  %v16778_v27 = vld [vmem:[#allocation3 + $0x528] sm:$0xff]   ;;  %v3534_v37 = vadd.f32 %v18414_v8, %v3332_v28  ;;  %v3333_v4 = vadd.f32 %v18350_v7, %v3131_v43 }
 0x2db   :  { %3779 = vst [vmem:[#allocation2 + $0x21] sm:$0xff] %v18444_v39  ;;  %v18457_v60 = vmax.f32 %v3752_v58, 0.0  ;;  %v3750_v20 = vadd.f32 %v18390_v6, %v3729_v18  ;;  %v3732_v1 = vadd.f32 %v15141_v38, %v3530_v15  ;;  %v3869_v2 = vpack.c.bf16 %v18416_v62, %v18444_v39  ;;  %v3843_v23 = vld [vmem:[#allocation2 + $0xa1] sm:$0xff] }
 0x2dc   :  { %v3681_v57 = vpop.f32.mrf.mxu1  ;;  %v3133_v15 = vadd.f32 %v21531_v5, %v2931_v22  ;;  %v3330_v58 = vadd.f32 %v21533_v31, %v3128_v54  ;;  %v21534_v22 = vld [vmem:[#allocation53_spill] sm:$0xff]  ;;  %v3535_v7 = vadd.f32 %v3508_v53, %v3333_v4 }
 0x2dd   :  { %3784 = vst [vmem:[#allocation2 + $0x71] sm:$0xff] %v18457_v60  ;;  %v18470_v47 = vmax.f32 %v3750_v20, 0.0  ;;  %v3753_v34 = vadd.f32 %v18390_v6, %v3732_v1  ;;  %v3730_v30 = vadd.f32 %v3681_v57, %v3528_v32  ;;  %15167 = vmatmul.mubr.bf16.vlgmr.msra.gmra.mxu0 %v3869_v2  ;;  %v18500_v1 = vld [vmem:[#allocation2 + $0x30] sm:$0xff]  ;;  %v15117_v2 = vpop.f32.mrf.mxu0  ;;  %v3134_v51 = vadd.f32 %v21534_v22, %v2932_v44 }
 0x2de   :  { %v15144_v26 = vpop.f32.mrf.mxu1  ;;  %v18478_v55 = vld [vmem:[#allocation2 + $0x10] sm:$0xff]  ;;  %15215 = vmatpush3.bf16.msra.mxu0 %v21530_v24  ;;  %v3532_v3 = vadd.f32 %v18432_v52, %v3330_v58  ;;  %v3335_v46 = vadd.f32 %v18337_v41, %v3133_v15  ;;  %v16782_v15 = vld [vmem:[#allocation3 + $0x518] sm:$0xff]  }
 0x2df   :  { %3782 = vst [vmem:[#allocation2 + $0x51] sm:$0xff] %v18470_v47  ;;  %v3769_v13 = vmax.f32 %v3753_v34, 0.0  ;;  %v3751_v36 = vadd.f32 %v18390_v6, %v3730_v30  ;;  %v3735_v50 = vadd.f32 %v15144_v26, %v3533_v33  ;;  %v3827_v14 = vpack.c.bf16 %v18478_v55, %v18483_v19  ;;  %15216 = vmatprep.subr.bf16.mxu0 %v16776_v35  ;;  %v16780_v33 = vld [vmem:[#allocation3 + $0x520] sm:$0xff]   ;;  %v3511_v26 = vpop.f32.mrf.mxu0 }
 0x2e0   :  { %v3694_v18 = vpop.f32.mrf.mxu1  ;;  %v3870_v59 = vpack.c.bf16 %v18470_v47, %v18435_v29  ;;  %v3537_v34 = vadd.f32 %v18454_v40, %v3335_v46  ;;  %v18528_v28 = vld [vmem:[#allocation2 + $0x40] sm:$0xff]  ;;  %v16811_v29 = vld [vmem:[#allocation3 + $0x668] sm:$0xff]  }
 0x2e1   :  { %3785 = vst [vmem:[#allocation2 + $0x81] sm:$0xff] %v3769_v13  ;;  %v18493_v49 = vmax.f32 %v3751_v36, 0.0  ;;  %v3756_v61 = vadd.f32 %v18390_v6, %v3735_v50  ;;  %v3733_v32 = vadd.f32 %v3694_v18, %v3531_v11  ;;  %15198 = vmatprep.mubr.bf16.mxu1 %v3827_v14  ;;  %v18503_v8 = vpack.c.bf16 %v3769_v13, %v18457_v60 }
 0x2e2   :  { %v15145_v38 = vpop.f32.mrf.mxu1  ;;  %v18498_v20 = vld [vmem:[#allocation2 + $0x20] sm:$0xff]  ;;  %15170 = vmatprep.mubr.bf16.mxu0 %v3870_v59  ;;  %15217 = vmatpush3.bf16.msra.mxu0 %v16776_v35  ;;  %v3336_v11 = vadd.f32 %v18363_v48, %v3134_v51  ;;  %v16779_v48 = vld [vmem:[#allocation3 + $0x568] sm:$0xff]  }
 0x2e3   :  { %3783 = vst [vmem:[#allocation2 + $0x61] sm:$0xff] %v18493_v49  ;;  %v18506_v9 = vmax.f32 %v3756_v61, 0.0  ;;  %v3754_v45 = vadd.f32 %v18390_v6, %v3733_v32  ;;  %v3736_v52 = vadd.f32 %v15145_v38, %v3534_v37  ;;  %v18511_v41 = vpack.c.bf16 %v18500_v1, %v18498_v20  ;;  %15218 = vmatprep.subr.bf16.mxu0 %v16778_v27  ;;  %v21535_v35 = vld [vmem:[#allocation51_spill] sm:$0xff] }
 0x2e4   :  { %v2930_v16 = vadd.f32 %v21535_v35, %v18408_v12  ;;  %v3697_v56 = vpop.f32.mrf.mxu1  ;;  %v3871_v57 = vpack.c.bf16 %v18457_v60, %v18493_v49  ;;  %v21536_v12 = vld [vmem:[#allocation54_spill] sm:$0xff]  ;;  %v21537_v60 = vld [vmem:[#allocation15_spill] sm:$0xff]  ;;  %v3538_v42 = vadd.f32 %v15117_v2, %v3336_v11 }
 0x2e5   :  { %3788 = vst [vmem:[#allocation2 + $0xd1] sm:$0xff] %v18506_v9  ;;  %v18521_v30 = vmax.f32 %v3754_v45, 0.0  ;;  %v3757_v63 = vadd.f32 %v18390_v6, %v3736_v52  ;;  %v3734_v54 = vadd.f32 %v3697_v56, %v3532_v3  ;;  %15199 = vmatmul.mubr.bf16.vlgmr.msra.gmra.mxu1 %v18511_v41  ;;  %v16781_v38 = vld [vmem:[#allocation3 + $0x560] sm:$0xff]   ;;  %v16784_v52 = vld [vmem:[#allocation3 + $0x510] sm:$0xff]  }
 0x2e6   :  { %v3132_v44 = vadd.f32 %v21536_v12, %v2930_v16  ;;  %v15148_v0 = vpop.f32.mrf.mxu1  ;;  %15247 = vmatpush3.bf16.msra.mxu1 %v21537_v60  ;;  %v18530_v40 = vld [vmem:[#allocation2 + $0x50] sm:$0xff]  ;;  %15171 = vmatmul.mubr.bf16.gmra.mxu0 %v3871_v57  ;;  %v16783_v57 = vld [vmem:[#allocation3 + $0x558] sm:$0xff]   ;;  %v4166_v11 = vld [vmem:[#allocation2 + $0x2] sm:$0xff] }
 0x2e7   :  { %3786 = vst [vmem:[#allocation2 + $0xb1] sm:$0xff] %v18521_v30  ;;  %v18533_v24 = vmax.f32 %v3757_v63, 0.0  ;;  %v3755_v13 = vadd.f32 %v18390_v6, %v3734_v54  ;;  %v3739_v36 = vadd.f32 %v15148_v0, %v3537_v34  ;;  %v18538_v53 = vpack.c.bf16 %v18530_v40, %v18528_v28  ;;  %15248 = vmatprep.subr.bf16.mxu1 %v16777_v25  ;;  %v16786_v34 = vld [vmem:[#allocation3 + $0x508] sm:$0xff]   ;;  %v18596_v0 = vld [vmem:[#allocation2 + $0x12] sm:$0xff]  ;;  %v16788_v60 = vld [vmem:[#allocation3 + $0x500] sm:$0xff]  }
 0x2e8   :  { %15219 = vmatpush3.bf16.msra.mxu0 %v16778_v27  ;;  %v3334_v50 = vadd.f32 %v18377_v21, %v3132_v44  ;;  %v3710_v14 = vpop.f32.mrf.mxu1  ;;  %v3872_v5 = vpack.c.bf16 %v18521_v30, %v3843_v23  ;;  %v18549_v21 = vld [vmem:[#allocation2 + $0x70] sm:$0xff] }
 0x2e9   :  { %15220 = vmatprep.subr.bf16.mxu0 %v16780_v33  ;;  %3789 = vst [vmem:[#allocation2 + $0xe1] sm:$0xff] %v18533_v24  ;;  %v18543_v43 = vmax.f32 %v3755_v13, 0.0  ;;  %v3760_v31 = vadd.f32 %v18390_v6, %v3739_v36  ;;  %v3737_v58 = vadd.f32 %v3710_v14, %v3535_v7  ;;  %15202 = vmatprep.mubr.bf16.mxu1 %v18538_v53  ;;  %v16785_v44 = vld [vmem:[#allocation3 + $0x550] sm:$0xff]   ;;  %v16790_v14 = vld [vmem:[#allocation3 + $0x5b8] sm:$0xff]  }
 0x2ea   :  { %v3536_v18 = vadd.f32 %v3511_v26, %v3334_v50  ;;  %v15149_v59 = vpop.f32.mrf.mxu1  ;;  %15249 = vmatpush3.bf16.msra.mxu1 %v16777_v25  ;;  %v18547_v27 = vld [vmem:[#allocation2 + $0x60] sm:$0xff]  ;;  %15174 = vmatprep.mubr.bf16.mxu0 %v3872_v5  ;;  %v4608_v37 = vpack.c.bf16 %v18533_v24, %v18506_v9  ;;  %v4199_v36 = vpack.c.bf16 %v18596_v0, %v4166_v11  ;;  %v16787_v50 = vld [vmem:[#allocation3 + $0x548] sm:$0xff]  }
 0x2eb   :  { %3787 = vst [vmem:[#allocation2 + $0xc1] sm:$0xff] %v18543_v43  ;;  %v18554_v61 = vmax.f32 %v3760_v31, 0.0  ;;  %v3758_v32 = vadd.f32 %v18390_v6, %v3737_v58  ;;  %v3740_v3 = vadd.f32 %v15149_v59, %v3538_v42  ;;  %v18559_v46 = vpack.c.bf16 %v18549_v21, %v18547_v27  ;;  %15250 = vmatprep.subr.bf16.mxu1 %v16779_v48  ;;  %v18614_v42 = vld [vmem:[#allocation2 + $0x22] sm:$0xff] }
 0x2ec   :  { %15221 = vmatpush3.bf16.msra.mxu0 %v16780_v33  ;;  %v3713_v2 = vpop.f32.mrf.mxu1  ;;  %v3873_v45 = vpack.c.bf16 %v18506_v9, %v18543_v43  ;;  %v18585_v23 = vld [vmem:[#allocation2 + $0xd0] sm:$0xff]  ;;  %v16789_v58 = vld [vmem:[#allocation3 + $0x540] sm:$0xff]   ;;  %v4401_v59 = vpack.c.bf16 %v18498_v20, %v18478_v55  ;;  %v16791_v55 = vld [vmem:[#allocation3 + $0x5f8] sm:$0xff]   ;;  %v4607_v62 = vpack.c.bf16 %v18543_v43, %v18521_v30 }
 0x2ed   :  { %15222 = vmatprep.subr.bf16.mxu0 %v16782_v15  ;;  %3792 = vst [vmem:[#allocation2 + $0x111] sm:$0xff] %v18554_v61  ;;  %v18564_v25 = vmax.f32 %v3758_v32, 0.0  ;;  %v3761_v22 = vadd.f32 %v18390_v6, %v3740_v3  ;;  %v3738_v51 = vadd.f32 %v3713_v2, %v3536_v18  ;;  %15203 = vmatmul.mubr.bf16.gmra.mxu1 %v18559_v46  ;;  %v18620_v18 = vld [vmem:[#allocation2 + $0x52] sm:$0xff]  ;;  %v16794_v20 = vld [vmem:[#allocation3 + $0x5a8] sm:$0xff]   ;;  %v18655_v11 = vld [vmem:[#allocation2 + $0x80] sm:$0xff] }
 0x2ee   :  { %15251 = vmatpush3.bf16.msra.mxu1 %v16779_v48  ;;  %v18568_v35 = vld [vmem:[#allocation2 + $0xb0] sm:$0xff]  ;;  %15175 = vmatmul.mubr.bf16.gmra.mxu0 %v3873_v45  ;;  %v16819_v9 = vld [vmem:[#allocation3 + $0x648] sm:$0xff]  }
 0x2ef   :  { %3790 = vst [vmem:[#allocation2 + $0xf1] sm:$0xff] %v18564_v25  ;;  %v18571_v16 = vmax.f32 %v3761_v22, 0.0  ;;  %v3759_v4 = vadd.f32 %v18390_v6, %v3738_v51  ;;  %v3831_v56 = vpack.c.bf16 %v18568_v35, %v18483_v19  ;;  %15252 = vmatprep.subr.bf16.mxu1 %v16781_v38  ;;  %v3874_v33 = vpack.c.bf16 %v18564_v25, %v18533_v24  ;;  %v18624_v32 = vld [vmem:[#allocation2 + $0x32] sm:$0xff] }
 0x2f0   :  { %15223 = vmatpush3.bf16.msra.mxu0 %v16782_v15  ;;  %v18599_v26 = vld [vmem:[#allocation2 + $0xe0] sm:$0xff]  ;;  %v18629_v3 = vpack.c.bf16 %v18624_v32, %v18614_v42  ;;  %v16792_v2 = vld [vmem:[#allocation3 + $0x5b0] sm:$0xff]   ;;  %v4402_v22 = vpack.c.bf16 %v18528_v28, %v18500_v1  ;;  %v16795_v28 = vld [vmem:[#allocation3 + $0x5e8] sm:$0xff]  }
 0x2f1   :  { %15224 = vmatprep.subr.bf16.mxu0 %v16784_v52  ;;  %3793 = vst [vmem:[#allocation2 + $0x121] sm:$0xff] %v18571_v16  ;;  %v18579_v63 = vmax.f32 %v3759_v4, 0.0  ;;  %15206 = vmatprep.mubr.bf16.mxu1 %v3831_v56  ;;  %v4610_v6 = vpack.c.bf16 %v18571_v16, %v18554_v61  ;;  %v16793_v51 = vld [vmem:[#allocation3 + $0x5f0] sm:$0xff]   ;;  %v4174_v4 = vld [vmem:[#allocation2 + $0xa2] sm:$0xff] }
 0x2f2   :  { %15178 = vmatprep.mubr.bf16.mxu0 %v3874_v33  ;;  %15253 = vmatpush3.bf16.msra.mxu1 %v16781_v38  ;;  %v18583_v54 = vld [vmem:[#allocation2 + $0xc0] sm:$0xff]  ;;  %v18643_v56 = vld [vmem:[#allocation2 + $0xb2] sm:$0xff] }
 0x2f3   :  { %3791 = vst [vmem:[#allocation2 + $0x101] sm:$0xff] %v18579_v63  ;;  %v18590_v12 = vpack.c.bf16 %v18585_v23, %v18583_v54  ;;  %15254 = vmatprep.subr.bf16.mxu1 %v16783_v57  ;;  %v18594_v7 = vpack.c.bf16 %v18554_v61, %v18579_v63  ;;  %v18631_v38 = vld [vmem:[#allocation2 + $0x42] sm:$0xff]  ;;  %v18647_v33 = vld [vmem:[#allocation2 + $0x72] sm:$0xff]  ;;  %v4203_v1 = vpack.c.bf16 %v18643_v56, %v4174_v4 }
 0x2f4   :  { %15225 = vmatpush3.bf16.msra.mxu0 %v16784_v52  ;;  %v18612_v15 = vld [vmem:[#allocation2 + $0x110] sm:$0xff]  ;;  %v18635_v45 = vpack.c.bf16 %v18620_v18, %v18631_v38  ;;  %v18639_v52 = vld [vmem:[#allocation2 + $0x62] sm:$0xff]  ;;  %v4609_v30 = vpack.c.bf16 %v18579_v63, %v18564_v25 }
 0x2f5   :  { %15226 = vmatprep.subr.bf16.mxu0 %v16786_v34  ;;  %15207 = vmatmul.mubr.bf16.gmra.mxu1 %v18590_v12  ;;  %v16820_v63 = vld [vmem:[#allocation3 + $0x600] sm:$0xff]   ;;  %v16823_v61 = vld [vmem:[#allocation3 + $0x6b0] sm:$0xff]  }
 0x2f6   :  { %15255 = vmatpush3.bf16.msra.mxu1 %v16783_v57  ;;  %v18601_v13 = vld [vmem:[#allocation2 + $0xf0] sm:$0xff]  ;;  %15179 = vmatmul.mubr.bf16.gmra.mxu0 %v18594_v7  ;;  %v4403_v57 = vpack.c.bf16 %v18547_v27, %v18530_v40  ;;  %v16798_v40 = vld [vmem:[#allocation3 + $0x598] sm:$0xff]   ;;  %v18657_v27 = vld [vmem:[#allocation2 + $0xc2] sm:$0xff] }
 0x2f7   :  { %v18607_v48 = vpack.c.bf16 %v18601_v13, %v18599_v26  ;;  %15256 = vmatprep.subr.bf16.mxu1 %v16785_v44  ;;  %15230 = vmatprep.mubr.bf16.mxu0 %v4199_v36  ;;  %v16797_v36 = vld [vmem:[#allocation3 + $0x5e0] sm:$0xff]  }
 0x2f8   :  { %15227 = vmatpush3.bf16.msra.mxu0 %v16786_v34  ;;  %v18651_v34 = vpack.c.bf16 %v18647_v33, %v18639_v52  ;;  %v18730_v24 = vld [vmem:[#allocation2 + $0x122] sm:$0xff] }
 0x2f9   :  { %15228 = vmatprep.subr.bf16.mxu0 %v16788_v60  ;;  %15210 = vmatprep.mubr.bf16.mxu1 %v18607_v48 }
 0x2fa   :  { %15257 = vmatpush3.bf16.msra.mxu1 %v16785_v44  ;;  %v18610_v5 = vld [vmem:[#allocation2 + $0x100] sm:$0xff] }
 0x2fb   :  { %v18618_v31 = vpack.c.bf16 %v18612_v15, %v18610_v5  ;;  %15258 = vmatprep.subr.bf16.mxu1 %v16787_v50  ;;  %v16796_v44 = vld [vmem:[#allocation3 + $0x5a0] sm:$0xff]   ;;  %v4407_v4 = vpack.c.bf16 %v18610_v5, %v18601_v13  ;;  %v16806_v5 = vld [vmem:[#allocation3 + $0x638] sm:$0xff]  }
 0x2fc   :  { %15229 = vmatpush3.bf16.msra.mxu0 %v16788_v60  ;;  %v4404_v60 = vpack.c.bf16 %v18655_v11, %v18549_v21  ;;  %v18694_v13 = vld [vmem:[#allocation2 + $0x120] sm:$0xff] }
 0x2fd   :  { %15278 = vmatprep.subr.bf16.mxu0 %v16790_v14  ;;  %15211 = vmatmul.mubr.bf16.gmra.mxu1 %v18618_v31 }
 0x2fe   :  { %15259 = vmatpush3.bf16.msra.mxu1 %v16787_v50  ;;  %15262 = vmatprep.mubr.bf16.mxu1 %v4401_v59  ;;  %v18661_v50 = vld [vmem:[#allocation2 + $0xf2] sm:$0xff] }
 0x2ff   :  { %15260 = vmatprep.subr.bf16.mxu1 %v16789_v58  ;;  %15231 = vmatmul.mubr.bf16.vlgmr.msra.gmra.mxu0 %v18629_v3 }
 0x300   :  { %15234 = vmatprep.mubr.bf16.mxu0 %v18635_v45  ;;  %15279 = vmatpush3.bf16.msra.mxu0 %v16790_v14  ;;  %v4405_v14 = vpack.c.bf16 %v18583_v54, %v18568_v35  ;;  %v16799_v35 = vld [vmem:[#allocation3 + $0x5d8] sm:$0xff]   ;;  %v16802_v54 = vld [vmem:[#allocation3 + $0x588] sm:$0xff]  }
 0x301   :  { %15280 = vmatprep.subr.bf16.mxu0 %v16792_v2 }
 0x302   :  { %15261 = vmatpush3.bf16.msra.mxu1 %v16789_v58  ;;  %v18665_v58 = vld [vmem:[#allocation2 + $0xd2] sm:$0xff] }
 0x303   :  { %15310 = vmatprep.subr.bf16.mxu1 %v16791_v55  ;;  %v18669_v59 = vpack.c.bf16 %v18665_v58, %v18657_v27 }
 0x304   :  { %15281 = vmatpush3.bf16.msra.mxu0 %v16792_v2  ;;  %v18671_v2 = vld [vmem:[#allocation2 + $0xe2] sm:$0xff] }
 0x305   :  { %15263 = vmatmul.mubr.bf16.vlgmr.msra.gmra.mxu1 %v4402_v22  ;;  %15282 = vmatprep.subr.bf16.mxu0 %v16794_v20  ;;  %v18675_v21 = vpack.c.bf16 %v18661_v50, %v18671_v2  ;;  %v4406_v22 = vpack.c.bf16 %v18599_v26, %v18585_v23  ;;  %v4603_v23 = vpack.c.bf16 %v18444_v39, %v18425_v17  ;;  %v16803_v26 = vld [vmem:[#allocation3 + $0x5c8] sm:$0xff]   ;;  %v16808_v17 = vld [vmem:[#allocation3 + $0x630] sm:$0xff]  }
 0x306   :  { %15266 = vmatprep.mubr.bf16.mxu1 %v4403_v57  ;;  %15311 = vmatpush3.bf16.msra.mxu1 %v16791_v55  ;;  %v16800_v55 = vld [vmem:[#allocation3 + $0x590] sm:$0xff]   ;;  %v4605_v39 = vpack.c.bf16 %v18493_v49, %v18470_v47  ;;  %v16812_v47 = vld [vmem:[#allocation3 + $0x620] sm:$0xff]   ;;  %v16814_v49 = vld [vmem:[#allocation3 + $0x618] sm:$0xff]  }
 0x307   :  { %15312 = vmatprep.subr.bf16.mxu1 %v16793_v51  ;;  %15235 = vmatmul.mubr.bf16.gmra.mxu0 %v18651_v34  ;;  %v18685_v57 = vld [vmem:[#allocation2 + $0x112] sm:$0xff] }
 0x308   :  { %15238 = vmatprep.mubr.bf16.mxu0 %v4203_v1  ;;  %15283 = vmatpush3.bf16.msra.mxu0 %v16794_v20  ;;  %v18679_v20 = vld [vmem:[#allocation2 + $0x102] sm:$0xff] }
 0x309   :  { %15284 = vmatprep.subr.bf16.mxu0 %v16796_v44  ;;  %v16804_v1 = vld [vmem:[#allocation3 + $0x580] sm:$0xff]  }
 0x30a   :  { %15313 = vmatpush3.bf16.msra.mxu1 %v16793_v51  ;;  %v16801_v51 = vld [vmem:[#allocation3 + $0x5d0] sm:$0xff]  }
 0x30b   :  { %15314 = vmatprep.subr.bf16.mxu1 %v16795_v28 }
 0x30c   :  { %15285 = vmatpush3.bf16.msra.mxu0 %v16796_v44  ;;  %v18689_v44 = vpack.c.bf16 %v18685_v57, %v18679_v20 }
 0x30d   :  { %15267 = vmatmul.mubr.bf16.gmra.mxu1 %v4404_v60  ;;  %15286 = vmatprep.subr.bf16.mxu0 %v16798_v40  ;;  %v4805_v60 = vpack.c.bf16 %v18614_v42, %v18596_v0  ;;  %v4806_v0 = vpack.c.bf16 %v18631_v38, %v18624_v32  ;;  %v16809_v42 = vld [vmem:[#allocation3 + $0x670] sm:$0xff]   ;;  %v16813_v32 = vld [vmem:[#allocation3 + $0x660] sm:$0xff]   ;;  %v4809_v38 = vpack.c.bf16 %v18657_v27, %v18643_v56 }
 0x30e   :  { %15270 = vmatprep.mubr.bf16.mxu1 %v4405_v14  ;;  %15315 = vmatpush3.bf16.msra.mxu1 %v16795_v28  ;;  %v4408_v28 = vpack.c.bf16 %v18694_v13, %v18612_v15  ;;  %v16807_v15 = vld [vmem:[#allocation3 + $0x678] sm:$0xff]   ;;  %v4807_v14 = vpack.c.bf16 %v18639_v52, %v18620_v18  ;;  %v4810_v56 = vpack.c.bf16 %v18671_v2, %v18665_v58  ;;  %v16817_v27 = vld [vmem:[#allocation3 + $0x650] sm:$0xff]  }
 0x30f   :  { %15316 = vmatprep.subr.bf16.mxu1 %v16797_v36  ;;  %15239 = vmatmul.mubr.bf16.gmra.mxu0 %v18669_v59  ;;  %v16815_v52 = vld [vmem:[#allocation3 + $0x658] sm:$0xff]   ;;  %v4812_v58 = vpack.c.bf16 %v18730_v24, %v18685_v57 }
 0x310   :  { %15242 = vmatprep.mubr.bf16.mxu0 %v18675_v21  ;;  %15287 = vmatpush3.bf16.msra.mxu0 %v16798_v40  ;;  %v16805_v40 = vld [vmem:[#allocation3 + $0x5c0] sm:$0xff]   ;;  %v5177_v2 = vld [vmem:[#allocation2 + $0x31] sm:$0xff] }
 0x311   :  { %15288 = vmatprep.subr.bf16.mxu0 %v16800_v55 }
 0x312   :  { %15317 = vmatpush3.bf16.msra.mxu1 %v16797_v36  ;;  %v16810_v36 = vld [vmem:[#allocation3 + $0x628] sm:$0xff]  }
 0x313   :  { %15318 = vmatprep.subr.bf16.mxu1 %v16799_v35 }
 0x314   :  { %15289 = vmatpush3.bf16.msra.mxu0 %v16800_v55  ;;  %v4811_v55 = vpack.c.bf16 %v18679_v20, %v18661_v50  ;;  %v16822_v50 = vld [vmem:[#allocation3 + $0x6b8] sm:$0xff]   ;;  %v16824_v20 = vld [vmem:[#allocation3 + $0x6a8] sm:$0xff]  }
 0x315   :  { %15271 = vmatmul.mubr.bf16.gmra.mxu1 %v4406_v22  ;;  %15290 = vmatprep.subr.bf16.mxu0 %v16802_v54  ;;  %v5178_v22 = vld [vmem:[#allocation2 + $0x41] sm:$0xff] }
 0x316   :  { %15274 = vmatprep.mubr.bf16.mxu1 %v4407_v4  ;;  %15319 = vmatpush3.bf16.msra.mxu1 %v16799_v35  ;;  %v16821_v35 = vld [vmem:[#allocation3 + $0x640] sm:$0xff]   ;;  %v5181_v4 = vld [vmem:[#allocation2 + $0x71] sm:$0xff] }
 0x317   :  { %15320 = vmatprep.subr.bf16.mxu1 %v16801_v51  ;;  %15243 = vmatmul.mubr.bf16.gmra.mxu0 %v18689_v44 }
 0x318   :  { %15291 = vmatpush3.bf16.msra.mxu0 %v16802_v54  ;;  %15294 = vmatprep.mubr.bf16.mxu0 %v4603_v23  ;;  %v16825_v23 = vld [vmem:[#allocation3 + $0x6a0] sm:$0xff]  }
 0x319   :  { %15292 = vmatprep.subr.bf16.mxu0 %v16804_v1 }
 0x31a   :  { %15321 = vmatpush3.bf16.msra.mxu1 %v16801_v51 }
 0x31b   :  { %15322 = vmatprep.subr.bf16.mxu1 %v16803_v26 }
 0x31c   :  { %15293 = vmatpush3.bf16.msra.mxu0 %v16804_v1  ;;  %v5010_v1 = vpack.c.bf16 %v18483_v19, %v18655_v11  ;;  %v5186_v11 = vld [vmem:[#allocation2 + $0xe1] sm:$0xff] }
 0x31d   :  { %15275 = vmatmul.mubr.bf16.gmra.mxu1 %v4408_v28  ;;  %15342 = vmatprep.subr.bf16.mxu0 %v16806_v5 }
 0x31e   :  { %15323 = vmatpush3.bf16.msra.mxu1 %v16803_v26  ;;  %15326 = vmatprep.mubr.bf16.mxu1 %v4805_v60  ;;  %v5185_v26 = vld [vmem:[#allocation2 + $0xd1] sm:$0xff] }
 0x31f   :  { %15324 = vmatprep.subr.bf16.mxu1 %v16805_v40  ;;  %15295 = vmatmul.mubr.bf16.vlgmr.msra.gmra.mxu0 %v4604_v10  ;;  %v18712_v10 = vld [vmem:[#allocation2 + $0x82] sm:$0xff]  ;;  %v16827_v60 = vld [vmem:[#allocation3 + $0x690] sm:$0xff]  }
 0x320   :  { %15298 = vmatprep.mubr.bf16.mxu0 %v4605_v39  ;;  %15343 = vmatpush3.bf16.msra.mxu0 %v16806_v5  ;;  %v4808_v18 = vpack.c.bf16 %v18712_v10, %v18647_v33  ;;  %v16818_v33 = vld [vmem:[#allocation3 + $0x608] sm:$0xff]   ;;  %v16826_v5 = vld [vmem:[#allocation3 + $0x698] sm:$0xff]   ;;  %v16829_v39 = vld [vmem:[#allocation3 + $0x680] sm:$0xff]  }
 0x321   :  { %15344 = vmatprep.subr.bf16.mxu0 %v16808_v17 }
 0x322   :  { %15325 = vmatpush3.bf16.msra.mxu1 %v16805_v40  ;;  %v5213_v40 = vpack.c.bf16 %v5185_v26, %v18543_v43  ;;  %v5014_v43 = vpack.c.bf16 %v18483_v19, %v18694_v13 }
 0x323   :  { %15374 = vmatprep.subr.bf16.mxu1 %v16807_v15 }
 0x324   :  { %15345 = vmatpush3.bf16.msra.mxu0 %v16808_v17  ;;  %v5214_v17 = vpack.c.bf16 %v18564_v25, %v5186_v11  ;;  %v5385_v25 = vld [vmem:[#allocation2 + $0x92] sm:$0xff] }
 0x325   :  { %15327 = vmatmul.mubr.bf16.vlgmr.msra.gmra.mxu1 %v4806_v0  ;;  %15346 = vmatprep.subr.bf16.mxu0 %v16810_v36  ;;  %v5414_v19 = vpack.c.bf16 %v5385_v25, %v18712_v10  ;;  %v18775_v11 = vld [vmem:[#allocation3 + $0x7b8] sm:$0xff]  }
 0x326   :  { %15330 = vmatprep.mubr.bf16.mxu1 %v4807_v14  ;;  %15375 = vmatpush3.bf16.msra.mxu1 %v16807_v15  ;;  %v5191_v15 = vld [vmem:[#allocation2 + $0x131] sm:$0xff]  ;;  %21539 = vst [vmem:[#allocation26_spill] sm:$0xff] %v18775_v11 }
 0x327   :  { %15376 = vmatprep.subr.bf16.mxu1 %v16809_v42  ;;  %15299 = vmatmul.mubr.bf16.gmra.mxu0 %v18503_v8  ;;  %v16816_v8 = vld [vmem:[#allocation3 + $0x610] sm:$0xff]   ;;  %v16838_v14 = vld [vmem:[#allocation3 + $0x718] sm:$0xff]  }
 0x328   :  { %15302 = vmatprep.mubr.bf16.mxu0 %v4607_v62  ;;  %15347 = vmatpush3.bf16.msra.mxu0 %v16810_v36 }
 0x329   :  { %15348 = vmatprep.subr.bf16.mxu0 %v16812_v47 }
 0x32a   :  { %15377 = vmatpush3.bf16.msra.mxu1 %v16809_v42  ;;  %v16835_v42 = vld [vmem:[#allocation3 + $0x6e8] sm:$0xff]  }
 0x32b   :  { %15378 = vmatprep.subr.bf16.mxu1 %v16811_v29 }
 0x32c   :  { %15349 = vmatpush3.bf16.msra.mxu0 %v16812_v47 }
 0x32d   :  { %15331 = vmatmul.mubr.bf16.gmra.mxu1 %v4808_v18  ;;  %15350 = vmatprep.subr.bf16.mxu0 %v16814_v49  ;;  %v16840_v18 = vld [vmem:[#allocation3 + $0x710] sm:$0xff]  }
 0x32e   :  { %15334 = vmatprep.mubr.bf16.mxu1 %v4809_v38  ;;  %15379 = vmatpush3.bf16.msra.mxu1 %v16811_v29 }
 0x32f   :  { %15380 = vmatprep.subr.bf16.mxu1 %v16813_v32  ;;  %15303 = vmatmul.mubr.bf16.gmra.mxu0 %v4608_v37  ;;  %v5176_v37 = vld [vmem:[#allocation2 + $0x21] sm:$0xff] }
 0x330   :  { %15306 = vmatprep.mubr.bf16.mxu0 %v4609_v30  ;;  %15351 = vmatpush3.bf16.msra.mxu0 %v16814_v49  ;;  %v5209_v54 = vpack.c.bf16 %v5177_v2, %v5176_v37  ;;  %v16837_v49 = vld [vmem:[#allocation3 + $0x6e0] sm:$0xff]  }
 0x331   :  { %15352 = vmatprep.subr.bf16.mxu0 %v16816_v8 }
 0x332   :  { %15381 = vmatpush3.bf16.msra.mxu1 %v16813_v32 }
 0x333   :  { %15382 = vmatprep.subr.bf16.mxu1 %v16815_v52 }
 0x334   :  { %15353 = vmatpush3.bf16.msra.mxu0 %v16816_v8 }
 0x335   :  { %15335 = vmatmul.mubr.bf16.gmra.mxu1 %v4810_v56  ;;  %15354 = vmatprep.subr.bf16.mxu0 %v16818_v33  ;;  %v16839_v56 = vld [vmem:[#allocation3 + $0x6d8] sm:$0xff]  }
 0x336   :  { %15338 = vmatprep.mubr.bf16.mxu1 %v4811_v55  ;;  %15383 = vmatpush3.bf16.msra.mxu1 %v16815_v52 }
 0x337   :  { %15384 = vmatprep.subr.bf16.mxu1 %v16817_v27  ;;  %15307 = vmatmul.mubr.bf16.gmra.mxu0 %v4610_v6  ;;  %v5180_v6 = vld [vmem:[#allocation2 + $0x61] sm:$0xff] }
 0x338   :  { %15355 = vmatpush3.bf16.msra.mxu0 %v16818_v33  ;;  %15358 = vmatprep.mubr.bf16.mxu0 %v18511_v41  ;;  %v5179_v41 = vld [vmem:[#allocation2 + $0x51] sm:$0xff]  ;;  %v5211_v57 = vpack.c.bf16 %v5181_v4, %v5180_v6 }
 0x339   :  { %15356 = vmatprep.subr.bf16.mxu0 %v16820_v63  ;;  %v5210_v51 = vpack.c.bf16 %v5179_v41, %v5178_v22  ;;  %v18768_v22 = vld [vmem:[#allocation3 + $0x778] sm:$0xff]  }
 0x33a   :  { %15385 = vmatpush3.bf16.msra.mxu1 %v16817_v27  ;;  %v16842_v27 = vld [vmem:[#allocation3 + $0x708] sm:$0xff]   ;;  %21538 = vst [vmem:[#allocation16_spill] sm:$0xff] %v18768_v22 }
 0x33b   :  { %15386 = vmatprep.subr.bf16.mxu1 %v16819_v9 }
 0x33c   :  { %15357 = vmatpush3.bf16.msra.mxu0 %v16820_v63 }
 0x33d   :  { %15339 = vmatmul.mubr.bf16.gmra.mxu1 %v4812_v58  ;;  %15406 = vmatprep.subr.bf16.mxu0 %v16822_v50  ;;  %v16844_v58 = vld [vmem:[#allocation3 + $0x700] sm:$0xff]  }
 0x33e   :  { %15387 = vmatpush3.bf16.msra.mxu1 %v16819_v9  ;;  %15390 = vmatprep.mubr.bf16.mxu1 %v5209_v54 }
 0x33f   :  { %15388 = vmatprep.subr.bf16.mxu1 %v16821_v35  ;;  %15359 = vmatmul.mubr.bf16.vlgmr.msra.gmra.mxu0 %v18538_v53  ;;  %v5182_v53 = vld [vmem:[#allocation2 + $0x81] sm:$0xff] }
 0x340   :  { %15362 = vmatprep.mubr.bf16.mxu0 %v18559_v46  ;;  %15407 = vmatpush3.bf16.msra.mxu0 %v16822_v50  ;;  %v5183_v46 = vld [vmem:[#allocation2 + $0x91] sm:$0xff] }
 0x341   :  { %15408 = vmatprep.subr.bf16.mxu0 %v16823_v61  ;;  %v5212_v28 = vpack.c.bf16 %v5183_v46, %v5182_v53  ;;  %v16841_v50 = vld [vmem:[#allocation3 + $0x6d0] sm:$0xff]   ;;  %v16845_v53 = vld [vmem:[#allocation3 + $0x6c0] sm:$0xff]  }
 0x342   :  { %15389 = vmatpush3.bf16.msra.mxu1 %v16821_v35 }
 0x344   :  { %15409 = vmatpush3.bf16.msra.mxu0 %v16823_v61 }
 0x345   :  { %15391 = vmatmul.mubr.bf16.vlgmr.msra.gmra.mxu1 %v5210_v51  ;;  %15410 = vmatprep.subr.bf16.mxu0 %v16824_v20 }
 0x346   :  { %15394 = vmatprep.mubr.bf16.mxu1 %v5211_v57 }
 0x347   :  { %15363 = vmatmul.mubr.bf16.gmra.mxu0 %v5010_v1 }
 0x348   :  { %15366 = vmatprep.mubr.bf16.mxu0 %v18590_v12  ;;  %15411 = vmatpush3.bf16.msra.mxu0 %v16824_v20  ;;  %v16828_v12 = vld [vmem:[#allocation3 + $0x688] sm:$0xff]  }
 0x349   :  { %15412 = vmatprep.subr.bf16.mxu0 %v16825_v23  ;;  %v16843_v20 = vld [vmem:[#allocation3 + $0x6c8] sm:$0xff]  }
 0x34c   :  { %15413 = vmatpush3.bf16.msra.mxu0 %v16825_v23 }
 0x34d   :  { %15395 = vmatmul.mubr.bf16.gmra.mxu1 %v5212_v28  ;;  %15414 = vmatprep.subr.bf16.mxu0 %v16826_v5 }
 0x34e   :  { %15398 = vmatprep.mubr.bf16.mxu1 %v5213_v40 }
 0x34f   :  { %15367 = vmatmul.mubr.bf16.gmra.mxu0 %v18607_v48  ;;  %v5216_v48 = vpack.c.bf16 %v5191_v15, %v18571_v16  ;;  %v16830_v16 = vld [vmem:[#allocation3 + $0x738] sm:$0xff]  }
 0x350   :  { %15370 = vmatprep.mubr.bf16.mxu0 %v18618_v31  ;;  %15415 = vmatpush3.bf16.msra.mxu0 %v16826_v5 }
 0x351   :  { %15416 = vmatprep.subr.bf16.mxu0 %v16827_v60  ;;  %15438 = vmatprep.subr.bf16.mxu1 %v16830_v16 }
 0x352   :  { %15439 = vmatpush3.bf16.msra.mxu1 %v16830_v16 }
 0x354   :  { %15417 = vmatpush3.bf16.msra.mxu0 %v16827_v60 }
 0x355   :  { %15399 = vmatmul.mubr.bf16.gmra.mxu1 %v5214_v17  ;;  %15418 = vmatprep.subr.bf16.mxu0 %v16828_v12 }
 0x356   :  { %15402 = vmatprep.mubr.bf16.mxu1 %v18594_v7  ;;  %v5393_v7 = vld [vmem:[#allocation2 + $0x132] sm:$0xff] }
 0x357   :  { %15371 = vmatmul.mubr.bf16.gmra.mxu0 %v5014_v43  ;;  %v5418_v31 = vpack.c.bf16 %v5393_v7, %v18730_v24 }
 0x358   :  { %15419 = vmatpush3.bf16.msra.mxu0 %v16828_v12  ;;  %15422 = vmatprep.mubr.bf16.mxu0 %v18629_v3  ;;  %v16832_v3 = vld [vmem:[#allocation3 + $0x730] sm:$0xff]  }
 0x359   :  { %15420 = vmatprep.subr.bf16.mxu0 %v16829_v39  ;;  %15440 = vmatprep.subr.bf16.mxu1 %v16832_v3 }
 0x35a   :  { %15441 = vmatpush3.bf16.msra.mxu1 %v16832_v3 }
 0x35c   :  { %15421 = vmatpush3.bf16.msra.mxu0 %v16829_v39 }
 0x35d   :  { %15403 = vmatmul.mubr.bf16.gmra.mxu1 %v5216_v48 }
 0x35f   :  { %15423 = vmatmul.mubr.bf16.vlgmr.msra.gmra.mxu0 %v18635_v45  ;;  %v16831_v45 = vld [vmem:[#allocation3 + $0x6f8] sm:$0xff]  }
 0x360   :  { %15426 = vmatprep.mubr.bf16.mxu0 %v18651_v34  ;;  %v16834_v34 = vld [vmem:[#allocation3 + $0x728] sm:$0xff]   ;;  %15470 = vmatprep.subr.bf16.mxu0 %v16831_v45 }
 0x361   :  { %15442 = vmatprep.subr.bf16.mxu1 %v16834_v34  ;;  %15471 = vmatpush3.bf16.msra.mxu0 %v16831_v45 }
 0x362   :  { %15443 = vmatpush3.bf16.msra.mxu1 %v16834_v34 }
 0x367   :  { %15427 = vmatmul.mubr.bf16.gmra.mxu0 %v5414_v19 }
 0x368   :  { %15430 = vmatprep.mubr.bf16.mxu0 %v18669_v59 }
 0x36f   :  { %15431 = vmatmul.mubr.bf16.gmra.mxu0 %v18675_v21  ;;  %v16833_v21 = vld [vmem:[#allocation3 + $0x6f0] sm:$0xff]  }
 0x370   :  { %15434 = vmatprep.mubr.bf16.mxu0 %v18689_v44  ;;  %v16836_v44 = vld [vmem:[#allocation3 + $0x720] sm:$0xff]   ;;  %15472 = vmatprep.subr.bf16.mxu0 %v16833_v21 }
 0x371   :  { %15444 = vmatprep.subr.bf16.mxu1 %v16836_v44  ;;  %15473 = vmatpush3.bf16.msra.mxu0 %v16833_v21 }
 0x372   :  { %15445 = vmatpush3.bf16.msra.mxu1 %v16836_v44  ;;  %15474 = vmatprep.subr.bf16.mxu0 %v16835_v42 }
 0x373   :  { %15446 = vmatprep.subr.bf16.mxu1 %v16838_v14 }
 0x375   :  { %15475 = vmatpush3.bf16.msra.mxu0 %v16835_v42 }
 0x376   :  { %15447 = vmatpush3.bf16.msra.mxu1 %v16838_v14  ;;  %15476 = vmatprep.subr.bf16.mxu0 %v16837_v49 }
 0x377   :  { %15435 = vmatmul.mubr.bf16.gmra.mxu0 %v5418_v31  ;;  %15448 = vmatprep.subr.bf16.mxu1 %v16840_v18 }
 0x379   :  { %15477 = vmatpush3.bf16.msra.mxu0 %v16837_v49 }
 0x37a   :  { %15449 = vmatpush3.bf16.msra.mxu1 %v16840_v18  ;;  %15478 = vmatprep.subr.bf16.mxu0 %v16839_v56 }
 0x37b   :  { %15450 = vmatprep.subr.bf16.mxu1 %v16842_v27 }
 0x37d   :  { %15479 = vmatpush3.bf16.msra.mxu0 %v16839_v56 }
 0x37e   :  { %15451 = vmatpush3.bf16.msra.mxu1 %v16842_v27  ;;  %15480 = vmatprep.subr.bf16.mxu0 %v16841_v50 }
 0x37f   :  { %15452 = vmatprep.subr.bf16.mxu1 %v16844_v58 }
 0x381   :  { %15481 = vmatpush3.bf16.msra.mxu0 %v16841_v50 }
 0x382   :  { %15453 = vmatpush3.bf16.msra.mxu1 %v16844_v58  ;;  %15482 = vmatprep.subr.bf16.mxu0 %v16843_v20 }
 0x383   :  { %15502 = vmatprep.subr.bf16.mxu1 %v18768_v22 }
 0x385   :  { %15483 = vmatpush3.bf16.msra.mxu0 %v16843_v20 }
 0x386   :  { %15484 = vmatprep.subr.bf16.mxu0 %v16845_v53 }
 0x389   :  { %15485 = vmatpush3.bf16.msra.mxu0 %v16845_v53 }
 0x38a   :  { %15534 = vmatprep.subr.bf16.mxu0 %v18775_v11 }
 0x39d   :  { %v15168_v13 = vpop.f32.mrf.mxu0 }
 0x39f   :  { %v3958_v59 = vpop.f32.mrf.mxu0 }
 0x3a1   :  { %v15169_v36 = vpop.f32.mrf.mxu0 }
 0x3a3   :  { %v18756_v0 = vpop.f32.mrf.mxu0 }
 0x3a5   :  { %v15200_v47 = vpop.f32.mrf.mxu1 }
 0x3a6   :  { %v18758_v62 = vadd.f32 %v15200_v47, %v15168_v13  ;;  %v15172_v29 = vpop.f32.mrf.mxu0 }
 0x3a7   :  { %v4103_v10 = vpop.f32.mrf.mxu1 }
 0x3a8   :  { %v18760_v32 = vadd.f32 %v4103_v10, %v3958_v59  ;;  %v3974_v38 = vpop.f32.mrf.mxu0 }
 0x3a9   :  { %v15201_v8 = vpop.f32.mrf.mxu1 }
 0x3aa   :  { %v4115_v30 = vadd.f32 %v15201_v8, %v15169_v36  ;;  %v15173_v52 = vpop.f32.mrf.mxu0 }
 0x3ab   :  { %v18762_v33 = vpop.f32.mrf.mxu1 }
 0x3ac   :  { %v18764_v55 = vpop.f32.mrf.mxu0 }
 0x3ad   :  { %v15204_v63 = vpop.f32.mrf.mxu1 }
 0x3ae   :  { %v4128_v9 = vadd.f32 %v15204_v63, %v15172_v29  ;;  %v15176_v24 = vpop.f32.mrf.mxu0 }
 0x3af   :  { %v4119_v37 = vpop.f32.mrf.mxu1 }
 0x3b0   :  { %v4120_v2 = vadd.f32 %v4119_v37, %v3974_v38  ;;  %v3990_v35 = vpop.f32.mrf.mxu0 }
 0x3b1   :  { %v15205_v54 = vpop.f32.mrf.mxu1 }
 0x3b2   :  { %v4131_v61 = vadd.f32 %v15205_v54, %v15173_v52  ;;  %v15177_v41 = vpop.f32.mrf.mxu0 }
 0x3b3   :  { %v18766_v6 = vpop.f32.mrf.mxu1 }
 0x3b4   :  { %v18770_v51 = vpop.f32.mrf.mxu0 }
 0x3b5   :  { %v15208_v4 = vpop.f32.mrf.mxu1 }
 0x3b6   :  { %v4144_v57 = vadd.f32 %v15208_v4, %v15176_v24  ;;  %v15180_v1 = vpop.f32.mrf.mxu0 }
 0x3b7   :  { %v4135_v23 = vpop.f32.mrf.mxu1 }
 0x3b8   :  { %v4136_v46 = vadd.f32 %v4135_v23, %v3990_v35  ;;  %v4006_v26 = vpop.f32.mrf.mxu0 }
 0x3b9   :  { %v15209_v5 = vpop.f32.mrf.mxu1 }
 0x3ba   :  { %v4147_v28 = vadd.f32 %v15209_v5, %v15177_v41  ;;  %v15181_v40 = vpop.f32.mrf.mxu0 }
 0x3bb   :  { %v18773_v60 = vpop.f32.mrf.mxu1 }
 0x3bc   :  { %v18777_v12 = vpop.f32.mrf.mxu0 }
 0x3bd   :  { %v15212_v17 = vpop.f32.mrf.mxu1 }
 0x3be   :  { %v4160_v43 = vadd.f32 %v15212_v17, %v15180_v1 }
 0x3bf   :  { %v4151_v39 = vpop.f32.mrf.mxu1  ;;  %v15232_v15 = vpop.f32.mrf.mxu0 }
 0x3c0   :  { %v4152_v48 = vadd.f32 %v4151_v39, %v4006_v26  ;;  %v18781_v25 = vadd.f32 %v15232_v15, %v18758_v62 }
 0x3c1   :  { %v15213_v19 = vpop.f32.mrf.mxu1  ;;  %v4289_v7 = vpop.f32.mrf.mxu0 }
 0x3c2   :  { %v4163_v31 = vadd.f32 %v15213_v19, %v15181_v40  ;;  %v18784_v16 = vadd.f32 %v4289_v7, %v18760_v32 }
 0x3c3   :  { %v18786_v3 = vpop.f32.mrf.mxu1  ;;  %v15233_v45 = vpop.f32.mrf.mxu0 }
 0x3c4   :  { %v18788_v34 = vadd.f32 %v15233_v45, %v4115_v30 }
 0x3c5   :  { %v18790_v13 = vpop.f32.mrf.mxu1  ;;  %v18792_v59 = vpop.f32.mrf.mxu0 }
 0x3c7   :  { %v18794_v21 = vpop.f32.mrf.mxu1  ;;  %v15236_v44 = vpop.f32.mrf.mxu0 }
 0x3c8   :  { %v18796_v36 = vadd.f32 %v15236_v44, %v4128_v9 }
 0x3c9   :  { %v18798_v42 = vpop.f32.mrf.mxu1  ;;  %v4305_v14 = vpop.f32.mrf.mxu0 }
 0x3ca   :  { %v18800_v47 = vadd.f32 %v4305_v14, %v4120_v2 }
 0x3cb   :  { %v18802_v62 = vpop.f32.mrf.mxu1  ;;  %v15237_v29 = vpop.f32.mrf.mxu0 }
 0x3cc   :  { %v18804_v10 = vadd.f32 %v15237_v29, %v4131_v61 }
 0x3cd   :  { %v18806_v49 = vpop.f32.mrf.mxu1  ;;  %v18808_v18 = vpop.f32.mrf.mxu0 }
 0x3cf   :  { %v18810_v32 = vpop.f32.mrf.mxu1  ;;  %v15240_v38 = vpop.f32.mrf.mxu0 }
 0x3d0   :  { %v18812_v8 = vadd.f32 %v15240_v38, %v4144_v57 }
 0x3d1   :  { %v18814_v30 = vpop.f32.mrf.mxu1  ;;  %v4321_v52 = vpop.f32.mrf.mxu0 }
 0x3d2   :  { %v18816_v56 = vadd.f32 %v4321_v52, %v4136_v46 }
 0x3d3   :  { %v18818_v27 = vpop.f32.mrf.mxu1  ;;  %v15241_v63 = vpop.f32.mrf.mxu0 }
 0x3d4   :  { %v18820_v9 = vadd.f32 %v15241_v63, %v4147_v28 }
 0x3d5   :  { %v18822_v24 = vpop.f32.mrf.mxu1  ;;  %v18824_v37 = vpop.f32.mrf.mxu0 }
 0x3d7   :  { %v18826_v50 = vpop.f32.mrf.mxu1  ;;  %v15244_v58 = vpop.f32.mrf.mxu0 }
 0x3d8   :  { %v18828_v2 = vadd.f32 %v15244_v58, %v4160_v43 }
 0x3d9   :  { %v18830_v35 = vpop.f32.mrf.mxu1  ;;  %v4337_v54 = vpop.f32.mrf.mxu0 }
 0x3da   :  { %v18832_v61 = vadd.f32 %v4337_v54, %v4152_v48 }
 0x3db   :  { %v18834_v41 = vpop.f32.mrf.mxu1  ;;  %v15245_v20 = vpop.f32.mrf.mxu0 }
 0x3dc   :  { %v18836_v4 = vadd.f32 %v15245_v20, %v4163_v31 }
 0x3dd   :  { %v18838_v57 = vpop.f32.mrf.mxu1  ;;  %v18840_v1 = vpop.f32.mrf.mxu0 }
 0x3df   :  { %v18842_v23 = vpop.f32.mrf.mxu1  ;;  %v18844_v53 = vpop.f32.mrf.mxu0 }
 0x3e1   :  { %v18846_v46 = vpop.f32.mrf.mxu1  ;;  %v18848_v26 = vpop.f32.mrf.mxu0 }
 0x3e3   :  { %v18850_v5 = vpop.f32.mrf.mxu1  ;;  %v18852_v28 = vpop.f32.mrf.mxu0 }
 0x3e5   :  { %v18854_v40 = vpop.f32.mrf.mxu1  ;;  %v18856_v17 = vpop.f32.mrf.mxu0 }
 0x3e7   :  { %v18858_v43 = vpop.f32.mrf.mxu1  ;;  %v18860_v39 = vpop.f32.mrf.mxu0 }
 0x3e9   :  { %v18862_v15 = vpop.f32.mrf.mxu1  ;;  %v18864_v48 = vpop.f32.mrf.mxu0 }
 0x3ea   :  { %21540 = vst [vmem:[#allocation27_spill] sm:$0xff] %v18864_v48 }
 0x3eb   :  { %v18866_v19 = vpop.f32.mrf.mxu1  ;;  %v18868_v7 = vpop.f32.mrf.mxu0 }
 0x3ec   :  { %21541 = vst [vmem:[#allocation55_spill] sm:$0xff] %v18868_v7 }
 0x3ed   :  { %v18870_v31 = vpop.f32.mrf.mxu1  ;;  %v18872_v45 = vpop.f32.mrf.mxu0 }
 0x3ee   :  { %21542 = vst [vmem:[#allocation24_spill] sm:$0xff] %v18870_v31  ;;  %21543 = vst [vmem:[#allocation45_spill] sm:$0xff] %v18872_v45 }
 0x3ef   :  { %v18874_v44 = vpop.f32.mrf.mxu1  ;;  %v18876_v14 = vpop.f32.mrf.mxu0 }
 0x3f0   :  { %21544 = vst [vmem:[#allocation43_spill] sm:$0xff] %v18874_v44  ;;  %21545 = vst [vmem:[#allocation56_spill] sm:$0xff] %v18876_v14 }
 0x3f1   :  { %v18878_v29 = vpop.f32.mrf.mxu1  ;;  %v18880_v38 = vpop.f32.mrf.mxu0 }
 0x3f2   :  { %21546 = vst [vmem:[#allocation28_spill] sm:$0xff] %v18878_v29  ;;  %21547 = vst [vmem:[#allocation29_spill] sm:$0xff] %v18880_v38 }
 0x3f3   :  { %v18882_v52 = vpop.f32.mrf.mxu1  ;;  %v18884_v63 = vpop.f32.mrf.mxu0 }
 0x3f4   :  { %21548 = vst [vmem:[#allocation18_spill] sm:$0xff] %v18882_v52  ;;  %21549 = vst [vmem:[#allocation57_spill] sm:$0xff] %v18884_v63 }
 0x3f5   :  { %v18886_v58 = vpop.f32.mrf.mxu1  ;;  %v18888_v54 = vpop.f32.mrf.mxu0 }
 0x3f6   :  { %21550 = vst [vmem:[#allocation59_spill] sm:$0xff] %v18886_v58  ;;  %21551 = vst [vmem:[#allocation30_spill] sm:$0xff] %v18888_v54 }
 0x3f7   :  { %v18890_v20 = vpop.f32.mrf.mxu1  ;;  %v18892_v11 = vpop.f32.mrf.mxu0 }
 0x3f8   :  { %21552 = vst [vmem:[#allocation31_spill] sm:$0xff] %v18890_v20  ;;  %21553 = vst [vmem:[#allocation58_spill] sm:$0xff] %v18892_v11 }
 0x3f9   :  { %v18894_v22 = vpop.f32.mrf.mxu1  ;;  %v18896_v45 = vpop.f32.mrf.mxu0 }
 0x3fa   :  { %21554 = vst [vmem:[#allocation32_spill] sm:$0xff] %v18894_v22  ;;  %21555 = vst [vmem:[#allocation33_spill] sm:$0xff] %v18896_v45 }
 0x3fb   :  { %v18898_v14 = vpop.f32.mrf.mxu1  ;;  %v18900_v29 = vpop.f32.mrf.mxu0 }
 0x3fc   :  { %21556 = vst [vmem:[#allocation60_spill] sm:$0xff] %v18898_v14  ;;  %21557 = vst [vmem:[#allocation34_spill] sm:$0xff] %v18900_v29 }
 0x3fd   :  { %v18902_v38 = vpop.f32.mrf.mxu1  ;;  %v18904_v52 = vpop.f32.mrf.mxu0 }
 0x3fe   :  { %21558 = vst [vmem:[#allocation35_spill] sm:$0xff] %v18902_v38  ;;  %21559 = vst [vmem:[#allocation61_spill] sm:$0xff] %v18904_v52 }
 0x3ff   :  { %v18906_v63 = vpop.f32.mrf.mxu1  ;;  %v15360_v58 = vpop.f32.mrf.mxu0 }
 0x400   :  { %21560 = vst [vmem:[#allocation46_spill] sm:$0xff] %v18906_v63 }
 0x401   :  { %v18908_v54 = vpop.f32.mrf.mxu1  ;;  %v5097_v20 = vpop.f32.mrf.mxu0 }
 0x402   :  { %21561 = vst [vmem:[#allocation36_spill] sm:$0xff] %v18908_v54 }
 0x403   :  { %v18910_v44 = vpop.f32.mrf.mxu1  ;;  %v18912_v11 = vpop.f32.mrf.mxu0 }
 0x404   :  { %21562 = vst [vmem:[#allocation47_spill] sm:$0xff] %v18910_v44  ;;  %21563 = vst [vmem:[#allocation62_spill] sm:$0xff] %v18912_v11 }
 0x405   :  { %v15392_v22 = vpop.f32.mrf.mxu1  ;;  %v18914_v45 = vpop.f32.mrf.mxu0 }
 0x406   :  { %21564 = vst [vmem:[#allocation48_spill] sm:$0xff] %v18914_v45 }
 0x407   :  { %v5299_v14 = vpop.f32.mrf.mxu1  ;;  %v18916_v31 = vpop.f32.mrf.mxu0 }
 0x408   :  { %21565 = vst [vmem:[#allocation49_spill] sm:$0xff] %v18916_v31 }
 0x409   :  { %v18918_v29 = vpop.f32.mrf.mxu1  ;;  %v18920_v38 = vpop.f32.mrf.mxu0 }
 0x40a   :  { %21566 = vst [vmem:[#allocation63_spill] sm:$0xff] %v18920_v38  ;;  %v4107_v38 = vadd.f32 %v18762_v33, %v18756_v0  ;;  %v4554_v0 = vadd.f32 %v18794_v21, %v18784_v16  ;;  %v4557_v33 = vadd.f32 %v18798_v42, %v18788_v34  ;;  %v4561_v34 = vadd.f32 %v18814_v30, %v18804_v10 }
 0x40b   :  { %v18922_v52 = vpop.f32.mrf.mxu1  ;;  %v18924_v63 = vpop.f32.mrf.mxu0  ;;  %v4564_v42 = vadd.f32 %v18822_v24, %v18812_v8  ;;  %v4568_v10 = vadd.f32 %v18838_v57, %v18828_v2  ;;  %v4566_v8 = vadd.f32 %v18842_v23, %v18832_v61  ;;  %v21574_v23 = vld [vmem:[#allocation27_spill] sm:$0xff] }
 0x40c   :  { %21567 = vst [vmem:[#allocation42_spill] sm:$0xff] %v18922_v52  ;;  %21568 = vst [vmem:[#allocation50_spill] sm:$0xff] %v18924_v63  ;;  %v4123_v63 = vadd.f32 %v18766_v6, %v18764_v55  ;;  %v4756_v21 = vadd.f32 %v18848_v26, %v4554_v0  ;;  %v19009_v26 = vld [vmem:[#allocation6 + $0x2] ss:$0 sm:$0xff] }
 0x40d   :  { %v18926_v54 = vpop.f32.mrf.mxu1  ;;  %v18928_v7 = vpop.f32.mrf.mxu0  ;;  %v21582_v0 = vld [vmem:[#allocation48_spill] sm:$0xff] }
 0x40e   :  { %21569 = vst [vmem:[#allocation52_spill] sm:$0xff] %v18928_v7  ;;  %v4556_v7 = vadd.f32 %v18790_v13, %v18781_v25  ;;  %v4357_v55 = vadd.f32 %v18808_v18, %v4123_v63  ;;  %v4958_v18 = vadd.f32 %v18858_v43, %v4756_v21  ;;  %v21577_v43 = vld [vmem:[#allocation62_spill] sm:$0xff] }
 0x40f   :  { %v18930_v44 = vpop.f32.mrf.mxu0  ;;  %v18932_v11 = vpop.f32.mrf.mxu1 }
 0x410   :  { %21570 = vst [vmem:[#allocation64_spill] sm:$0xff] %v18930_v44  ;;  %v4139_v44 = vadd.f32 %v18773_v60, %v18770_v51  ;;  %v4758_v6 = vadd.f32 %v18844_v53, %v4556_v7  ;;  %v4560_v60 = vadd.f32 %v18806_v49, %v18796_v36  ;;  %v4559_v13 = vadd.f32 %v18818_v27, %v4357_v55  ;;  %v21575_v53 = vld [vmem:[#allocation55_spill] sm:$0xff]  ;;  %v21579_v7 = vld [vmem:[#allocation28_spill] sm:$0xff] }
 0x411   :  { %v18934_v45 = vpop.f32.mrf.mxu0  ;;  %v18938_v31 = vpop.f32.mrf.mxu1  ;;  %v4562_v36 = vadd.f32 %v18826_v50, %v18816_v56  ;;  %v18995_v56 = vadd.f32 %v18846_v46, %v18836_v4  ;;  %v4763_v46 = vadd.f32 %v21575_v53, %v4561_v34  ;;  %v21593_v53 = vld [vmem:[#allocation37_spill] sm:$0xff] }
 0x412   :  { %21571 = vst [vmem:[#allocation53_spill] sm:$0xff] %v18934_v45  ;;  %21573 = vst [vmem:[#allocation54_spill] sm:$0xff] %v18938_v31  ;;  %v4155_v45 = vadd.f32 %v18786_v3, %v18777_v12  ;;  %v4558_v12 = vadd.f32 %v18810_v32, %v18800_v47  ;;  %v4361_v3 = vadd.f32 %v18824_v37, %v4139_v44 }
 0x413   :  { %v18936_v48 = vpop.f32.mrf.mxu0  ;;  %v18961_v25 = vpop.f32.mrf.mxu1  ;;  %v4565_v47 = vadd.f32 %v18830_v35, %v18820_v9  ;;  %v4759_v32 = vadd.f32 %v18852_v28, %v4557_v33  ;;  %v4762_v2 = vadd.f32 %v18860_v39, %v4560_v60  ;;  %v21576_v28 = vld [vmem:[#allocation24_spill] sm:$0xff]  ;;  %v21584_v60 = vld [vmem:[#allocation29_spill] sm:$0xff] }
 0x414   :  { %21572 = vst [vmem:[#allocation51_spill] sm:$0xff] %v18936_v48  ;;  %v4353_v48 = vadd.f32 %v18792_v59, %v4107_v38  ;;  %v4960_v59 = vadd.f32 %v18854_v40, %v4758_v6  ;;  %v4365_v9 = vadd.f32 %v18840_v1, %v4155_v45  ;;  %v4760_v4 = vadd.f32 %v21574_v23, %v4558_v12  ;;  %v21581_v38 = vld [vmem:[#allocation56_spill] sm:$0xff]  ;;  %v21583_v6 = vld [vmem:[#allocation18_spill] sm:$0xff] }
 0x415   :  { %v18942_v52 = vpop.f32.mrf.mxu0  ;;  %v18989_v27 = vpop.f32.mrf.mxu1  ;;  %v4961_v50 = vadd.f32 %v18862_v15, %v4759_v32  ;;  %v4964_v40 = vadd.f32 %v21576_v28, %v4762_v2  ;;  %v4965_v45 = vadd.f32 %v21579_v7, %v4763_v46  ;;  %v4766_v63 = vadd.f32 %v21581_v38, %v4564_v42 }
 0x416   :  { %v4555_v51 = vadd.f32 %v18802_v62, %v4353_v48  ;;  %v4563_v62 = vadd.f32 %v18834_v41, %v4361_v3  ;;  %v5162_v30 = vadd.f32 %v15360_v58, %v4960_v59  ;;  %v5160_v41 = vadd.f32 %v5097_v20, %v4958_v18  ;;  %v21578_v48 = vld [vmem:[#allocation43_spill] sm:$0xff]  ;;  %v21585_v3 = vld [vmem:[#allocation57_spill] sm:$0xff] }
 0x417   :  { %v18953_v31 = vpop.f32.mrf.mxu0  ;;  %v19004_v57 = vadd.f32 %v18850_v5, %v4365_v9  ;;  %v5163_v15 = vadd.f32 %v21577_v43, %v4961_v50  ;;  %v19013_v39 = vpop.f32.mrf.mxu1  ;;  %v4962_v5 = vadd.f32 %v21578_v48, %v4760_v4  ;;  %v4764_v12 = vadd.f32 %v21584_v60, %v4562_v36  ;;  %v21586_v59 = vld [vmem:[#allocation49_spill] sm:$0xff]  ;;  %v21589_v50 = vld [vmem:[#allocation59_spill] sm:$0xff]  ;;  %v21595_v43 = vld [vmem:[#allocation58_spill] sm:$0xff] }
 0x418   :  { %v4757_v24 = vadd.f32 %v18856_v17, %v4555_v51  ;;  %v5364_v35 = vadd.f32 %v15392_v22, %v5162_v30  ;;  %v5362_v17 = vadd.f32 %v5299_v14, %v5160_v41  ;;  %v4767_v34 = vadd.f32 %v21585_v3, %v4565_v47  ;;  %v21588_v30 = vld [vmem:[#allocation12_spill] sm:$0xff]  ;;  %v21596_v48 = vld [vmem:[#allocation50_spill] sm:$0xff] }
 0x419   :  { %v18969_v16 = vpop.f32.mrf.mxu0  ;;  %v5365_v20 = vadd.f32 %v18918_v29, %v5163_v15  ;;  %v5166_v21 = vadd.f32 %v21586_v59, %v4964_v40  ;;  %v19027_v42 = vpop.f32.mrf.mxu1  ;;  %v4968_v2 = vadd.f32 %v21589_v50, %v4766_v63  ;;  %v21594_v40 = vld [vmem:[#allocation31_spill] sm:$0xff]  ;;  %v4770_v15 = vadd.f32 %v21595_v43, %v4568_v10  ;;  %v21600_v10 = vld [vmem:[#allocation33_spill] sm:$0xff] }
 0x41a   :  { %v4959_v61 = vadd.f32 %v18866_v19, %v4757_v24  ;;  %v21580_v19 = vld [vmem:[#allocation45_spill] sm:$0xff] }
 0x41b   :  { %v18983_v49 = vpop.f32.mrf.mxu0  ;;  %v4761_v44 = vadd.f32 %v21580_v19, %v4559_v13  ;;  %v21587_v13 = vld [vmem:[#allocation42_spill] sm:$0xff]  ;;  %v5368_v36 = vadd.f32 %v18926_v54, %v5166_v21  ;;  %v19043_v54 = vpop.f32.mrf.mxu1  ;;  %v21598_v19 = vld [vmem:[#allocation13_spill] sm:$0xff] }
 0x41c   :  { %v5161_v33 = vadd.f32 %v21582_v0, %v4959_v61  ;;  %v21591_v61 = vld [vmem:[#allocation63_spill] sm:$0xff] }
 0x41d   :  { %v18999_v37 = vpop.f32.mrf.mxu0  ;;  %v4963_v51 = vadd.f32 %v21583_v6, %v4761_v44  ;;  %v5164_v47 = vadd.f32 %v21591_v61, %v4962_v5  ;;  %v21609_v61 = vld [vmem:[#allocation35_spill] sm:$0xff] }
 0x41e   :  { %v5363_v32 = vadd.f32 %v21587_v13, %v5161_v33  ;;  %v4768_v33 = vadd.f32 %v21600_v10, %v4566_v8 }
 0x41f   :  { %v15424_v1 = vpop.f32.mrf.mxu0 }
 0x420   :  { %v5566_v22 = vadd.f32 %v15424_v1, %v5364_v35  ;;  %v21590_v35 = vld [vmem:[#allocation30_spill] sm:$0xff] }
 0x421   :  { %v5501_v58 = vpop.f32.mrf.mxu0  ;;  %v4765_v41 = vadd.f32 %v21590_v35, %v4563_v62  ;;  %v5167_v62 = vadd.f32 %v21596_v48, %v4965_v45  ;;  %v21602_v45 = vld [vmem:[#allocation52_spill] sm:$0xff] }
 0x422   :  { %v5587_v14 = vadd.f32 %v19009_v26, %v5566_v22  ;;  %v5564_v55 = vadd.f32 %v5501_v58, %v5362_v17  ;;  %v4966_v17 = vadd.f32 %v21594_v40, %v4764_v12  ;;  %v5366_v22 = vadd.f32 %v18932_v11, %v5164_v47  ;;  %v5690_v58 = vld [vmem:[#allocation2 + $0x1] sm:$0xff]  ;;  %v21601_v11 = vld [vmem:[#allocation54_spill] sm:$0xff] }
 0x423   :  { %v15425_v18 = vpop.f32.mrf.mxu0  ;;  %v21604_v12 = vld [vmem:[#allocation14_spill] sm:$0xff]  ;;  %v4972_v47 = vadd.f32 %v21609_v61, %v4770_v15  ;;  %v21614_v15 = vld [vmem:[#allocation61_spill] sm:$0xff] }
 0x424   :  { %v5603_v29 = vadd.f32 %v5587_v14, %v21588_v30  ;;  %v5585_v9 = vadd.f32 %v19009_v26, %v5564_v55  ;;  %v5567_v24 = vadd.f32 %v15425_v18, %v5365_v20  ;;  %v21599_v20 = vld [vmem:[#allocation32_spill] sm:$0xff]  ;;  %v5369_v14 = vadd.f32 %v21601_v11, %v5167_v62  ;;  %v21615_v62 = vld [vmem:[#allocation51_spill] sm:$0xff] }
 0x425   :  { %v5504_v23 = vpop.f32.mrf.mxu0  ;;  %v4969_v0 = vadd.f32 %v21599_v20, %v4767_v34  ;;  %v5165_v55 = vadd.f32 %v21602_v45, %v4963_v51  ;;  %v21605_v18 = vld [vmem:[#allocation60_spill] sm:$0xff]  ;;  %v15404_v51 = vpop.f32.mrf.mxu1  ;;  %v4769_v48 = vadd.f32 %v21614_v15, %v19004_v57  ;;  %v21618_v57 = vld [vmem:[#allocation46_spill] sm:$0xff] }
 0x426   :  { %v19035_v4 = vmax.f32 %v5603_v29, 0.0  ;;  %v5601_v46 = vadd.f32 %v5585_v9, %v21593_v53  ;;  %v5588_v1 = vadd.f32 %v19009_v26, %v5567_v24  ;;  %v5565_v28 = vadd.f32 %v5504_v23, %v5363_v32  ;;  %v21606_v32 = vld [vmem:[#allocation64_spill] sm:$0xff]  ;;  %v21608_v24 = vld [vmem:[#allocation19_spill] sm:$0xff]  ;;  %v21611_v23 = vld [vmem:[#allocation53_spill] sm:$0xff] }
 0x427   :  { %v15428_v7 = vpop.f32.mrf.mxu0  ;;  %v4967_v13 = vadd.f32 %v21605_v18, %v4765_v41  ;;  %v5367_v34 = vadd.f32 %v18961_v25, %v5165_v55  ;;  %v5170_v8 = vadd.f32 %v21606_v32, %v4968_v2  ;;  %v21610_v41 = vld [vmem:[#allocation34_spill] sm:$0xff]  ;;  %v5168_v53 = vadd.f32 %v21611_v23, %v4966_v17 }
 0x428   :  { %21592 = vst [vmem:[#allocation15_spill] sm:$0xff] %v19035_v4  ;;  %5635 = vst [vmem:[#allocation2 + $0x31] sm:$0xff] %v19035_v4  ;;  %v19046_v5 = vmax.f32 %v5601_v46, 0.0  ;;  %v5604_v44 = vadd.f32 %v5588_v1, %v21598_v19  ;;  %v5586_v38 = vadd.f32 %v19009_v26, %v5565_v28  ;;  %v5570_v63 = vadd.f32 %v15428_v7, %v5368_v36  ;;  %v21613_v28 = vld [vmem:[#allocation21_spill] sm:$0xff] }
 0x429   :  { %v5517_v6 = vpop.f32.mrf.mxu0  ;;  %v4771_v25 = vadd.f32 %v21610_v41, %v18995_v56  ;;  %v5372_v2 = vadd.f32 %v18989_v27, %v5170_v8  ;;  %v5370_v56 = vadd.f32 %v19013_v39, %v5168_v53  ;;  %v5171_v27 = vadd.f32 %v21615_v62, %v4969_v0  ;;  %v16848_v19 = vld [vmem:[#allocation3 + $0x770] sm:$0xff]   ;;  %v21619_v39 = vld [vmem:[#allocation36_spill] sm:$0xff]  ;;  %v16852_v62 = vld [vmem:[#allocation3 + $0x760] sm:$0xff]  }
 0x42a   :  { %21597 = vst [vmem:[#allocation27_spill] sm:$0xff] %v19046_v5  ;;  %5633 = vst [vmem:[#allocation2 + $0x11] sm:$0xff] %v19046_v5  ;;  %v19055_v60 = vmax.f32 %v5604_v44, 0.0  ;;  %v5602_v3 = vadd.f32 %v5586_v38, %v21604_v12  ;;  %v5591_v59 = vadd.f32 %v19009_v26, %v5570_v63  ;;  %v5568_v21 = vadd.f32 %v5517_v6, %v5366_v22  ;;  %v5347_v44 = vpop.f32.mrf.mxu1  ;;  %v21617_v63 = vld [vmem:[#allocation39_spill] sm:$0xff]  ;;  %v21627_v53 = vld [vmem:[#allocation20_spill] sm:$0xff] }
 0x42b   :  { %v15429_v30 = vpop.f32.mrf.mxu0  ;;  %v5723_v29 = vpack.c.bf16 %v19046_v5, %v5690_v58  ;;  %v4970_v11 = vadd.f32 %v21618_v57, %v4768_v33  ;;  %v5373_v0 = vadd.f32 %v19027_v42, %v5171_v27  ;;  %v5169_v45 = vadd.f32 %v18942_v52, %v4967_v13  ;;  %v21622_v33 = vld [vmem:[#allocation16_spill] sm:$0xff]  ;;  %v19103_v13 = vld [vmem:[#allocation2] sm:$0xff] }
 0x42c   :  { %21603 = vst [vmem:[#allocation55_spill] sm:$0xff] %v19055_v60  ;;  %5636 = vst [vmem:[#allocation2 + $0x41] sm:$0xff] %v19055_v60  ;;  %v19064_v9 = vmax.f32 %v5602_v3, 0.0  ;;  %v5607_v50 = vadd.f32 %v5591_v59, %v21608_v24  ;;  %v5589_v35 = vadd.f32 %v19009_v26, %v5568_v21  ;;  %v5571_v36 = vadd.f32 %v15429_v30, %v5369_v14  ;;  %v21621_v3 = vld [vmem:[#allocation38_spill] sm:$0xff]  ;;  %v16850_v30 = vld [vmem:[#allocation3 + $0x768] sm:$0xff]  }
 0x42d   :  { %v5520_v46 = vpop.f32.mrf.mxu0  ;;  %15454 = vmatprep.mubr.bf16.mxu1 %v5723_v29  ;;  %v4973_v14 = vadd.f32 %v21619_v39, %v4771_v25  ;;  %v5174_v42 = vadd.f32 %v18953_v31, %v4972_v47  ;;  %v15405_v29 = vpop.f32.mrf.mxu1  ;;  %v5172_v41 = vadd.f32 %v18969_v16, %v4970_v11  ;;  %v21631_v39 = vld [vmem:[#allocation41_spill] sm:$0xff] }
 0x42e   :  { %21607 = vst [vmem:[#allocation24_spill] sm:$0xff] %v19064_v9  ;;  %5634 = vst [vmem:[#allocation2 + $0x21] sm:$0xff] %v19064_v9  ;;  %v19074_v1 = vmax.f32 %v5607_v50, 0.0  ;;  %v5605_v40 = vadd.f32 %v5589_v35, %v21613_v28  ;;  %v5592_v43 = vadd.f32 %v19009_v26, %v5571_v36  ;;  %v5569_v22 = vadd.f32 %v5520_v46, %v5367_v34  ;;  %v21624_v50 = vld [vmem:[#allocation17_spill] sm:$0xff]  ;;  %v21625_v36 = vld [vmem:[#allocation47_spill] sm:$0xff] }
 0x42f   :  { %v15432_v7 = vpop.f32.mrf.mxu0  ;;  %v5724_v17 = vpack.c.bf16 %v19035_v4, %v19064_v9  ;;  %v5371_v34 = vadd.f32 %v19043_v54, %v5169_v45  ;;  %v4971_v61 = vadd.f32 %v21625_v36, %v4769_v48  ;;  %v5376_v47 = vadd.f32 %v15404_v51, %v5174_v42  ;;  %v16849_v48 = vld [vmem:[#allocation3 + $0x7b0] sm:$0xff]   ;;  %v5350_v27 = vpop.f32.mrf.mxu1 }
 0x430   :  { %21612 = vst [vmem:[#allocation62_spill] sm:$0xff] %v19074_v1  ;;  %5639 = vst [vmem:[#allocation2 + $0x71] sm:$0xff] %v19074_v1  ;;  %v19085_v38 = vmax.f32 %v5605_v40, 0.0  ;;  %v5608_v58 = vadd.f32 %v5592_v43, %v21617_v63  ;;  %v5590_v20 = vadd.f32 %v19009_v26, %v5569_v22  ;;  %v5574_v10 = vadd.f32 %v15432_v7, %v5372_v2  ;;  %v19123_v43 = vld [vmem:[#allocation2 + $0x30] sm:$0xff]  ;;  %v5698_v63 = vld [vmem:[#allocation2 + $0xa1] sm:$0xff] }
 0x431   :  { %v5533_v55 = vpop.f32.mrf.mxu0  ;;  %v19093_v6 = vld [vmem:[#allocation2 + $0x10] sm:$0xff]  ;;  %15455 = vmatmul.mubr.bf16.vlgmr.msra.gmra.mxu1 %v5724_v17  ;;  %v5374_v51 = vadd.f32 %v5347_v44, %v5172_v41  ;;  %v5175_v16 = vadd.f32 %v18983_v49, %v4973_v14  ;;  %v21629_v17 = vld [vmem:[#allocation23_spill] sm:$0xff] }
 0x432   :  { %21616 = vst [vmem:[#allocation43_spill] sm:$0xff] %v19085_v38  ;;  %5637 = vst [vmem:[#allocation2 + $0x51] sm:$0xff] %v19085_v38  ;;  %v19096_v12 = vmax.f32 %v5608_v58, 0.0  ;;  %v5606_v59 = vadd.f32 %v5590_v20, %v21621_v3  ;;  %v5595_v21 = vadd.f32 %v19009_v26, %v5574_v10  ;;  %v5572_v18 = vadd.f32 %v5533_v55, %v5370_v56  ;;  %v21632_v55 = vld [vmem:[#allocation26_spill] sm:$0xff] }
 0x433   :  { %15503 = vmatpush3.bf16.msra.mxu1 %v21622_v33  ;;  %v15433_v52 = vpop.f32.mrf.mxu0  ;;  %v5682_v32 = vpack.c.bf16 %v19093_v6, %v19103_v13  ;;  %v5725_v8 = vpack.c.bf16 %v19085_v38, %v19055_v60  ;;  %v5377_v58 = vadd.f32 %v15405_v29, %v5175_v16  ;;  %v5173_v20 = vadd.f32 %v18999_v37, %v4971_v61  ;;  %v19147_v3 = vld [vmem:[#allocation2 + $0x40] sm:$0xff] }
 0x434   :  { %21620 = vst [vmem:[#allocation28_spill] sm:$0xff] %v19096_v12  ;;  %15504 = vmatprep.subr.bf16.mxu1 %v16848_v19  ;;  %5640 = vst [vmem:[#allocation2 + $0x81] sm:$0xff] %v19096_v12  ;;  %v19110_v24 = vmax.f32 %v5606_v59, 0.0  ;;  %v5611_v54 = vadd.f32 %v5595_v21, %v21624_v50  ;;  %v5593_v31 = vadd.f32 %v19009_v26, %v5572_v18  ;;  %v16851_v18 = vld [vmem:[#allocation3 + $0x7a8] sm:$0xff]  }
 0x435   :  { %v5575_v35 = vadd.f32 %v15433_v52, %v5373_v0  ;;  %15486 = vmatprep.mubr.bf16.mxu0 %v5682_v32  ;;  %v5536_v25 = vpop.f32.mrf.mxu0  ;;  %v19116_v2 = vld [vmem:[#allocation2 + $0x20] sm:$0xff]  ;;  %15458 = vmatprep.mubr.bf16.mxu1 %v5725_v8  ;;  %v5375_v37 = vadd.f32 %v5350_v27, %v5173_v20  ;;  %v21634_v52 = vld [vmem:[#allocation40_spill] sm:$0xff] }
 0x436   :  { %21623 = vst [vmem:[#allocation45_spill] sm:$0xff] %v19110_v24  ;;  %5638 = vst [vmem:[#allocation2 + $0x61] sm:$0xff] %v19110_v24  ;;  %v19119_v23 = vmax.f32 %v5611_v54, 0.0  ;;  %v5609_v46 = vadd.f32 %v5593_v31, %v21627_v53  ;;  %v5573_v40 = vadd.f32 %v5536_v25, %v5371_v34  ;;  %v19128_v15 = vpack.c.bf16 %v19123_v43, %v19116_v2  ;;  %v16854_v34 = vld [vmem:[#allocation3 + $0x758] sm:$0xff]   ;;  %v16853_v25 = vld [vmem:[#allocation3 + $0x7a0] sm:$0xff]  }
 0x437   :  { %v5596_v28 = vadd.f32 %v19009_v26, %v5575_v35  ;;  %15505 = vmatpush3.bf16.msra.mxu1 %v16848_v19  ;;  %v15436_v22 = vpop.f32.mrf.mxu0  ;;  %v5726_v56 = vpack.c.bf16 %v19074_v1, %v19110_v24  ;;  %v21636_v31 = vld [vmem:[#allocation22_spill] sm:$0xff] }
 0x438   :  { %21626 = vst [vmem:[#allocation56_spill] sm:$0xff] %v19119_v23  ;;  %15506 = vmatprep.subr.bf16.mxu1 %v16850_v30  ;;  %5643 = vst [vmem:[#allocation2 + $0xd1] sm:$0xff] %v19119_v23  ;;  %v19133_v7 = vmax.f32 %v5609_v46, 0.0  ;;  %v5594_v49 = vadd.f32 %v19009_v26, %v5573_v40  ;;  %v5578_v44 = vadd.f32 %v15436_v22, %v5376_v47  ;;  %15487 = vmatmul.mubr.bf16.vlgmr.msra.gmra.mxu0 %v19128_v15  ;;  %v19167_v47 = vld [vmem:[#allocation2 + $0x70] sm:$0xff] }
 0x439   :  { %v5612_v19 = vadd.f32 %v5596_v28, %v21629_v17  ;;  %v5549_v10 = vpop.f32.mrf.mxu0  ;;  %v19139_v57 = vld [vmem:[#allocation2 + $0x50] sm:$0xff]  ;;  %15459 = vmatmul.mubr.bf16.gmra.mxu1 %v5726_v56  ;;  %15535 = vmatpush3.bf16.msra.mxu0 %v21632_v55  ;;  %v21640_v56 = vld [vmem:[#allocation44_spill] sm:$0xff] }
 0x43a   :  { %21628 = vst [vmem:[#allocation48_spill] sm:$0xff] %v19133_v7  ;;  %5641 = vst [vmem:[#allocation2 + $0xb1] sm:$0xff] %v19133_v7  ;;  %v5610_v14 = vadd.f32 %v5594_v49, %v21631_v39  ;;  %v5599_v0 = vadd.f32 %v19009_v26, %v5578_v44  ;;  %v5576_v45 = vadd.f32 %v5549_v10, %v5374_v51  ;;  %15536 = vmatprep.subr.bf16.mxu0 %v16849_v48  ;;  %v16856_v46 = vld [vmem:[#allocation3 + $0x750] sm:$0xff]   ;;  %v6021_v10 = vld [vmem:[#allocation2 + $0x2] sm:$0xff] }
 0x43b   :  { %v19142_v11 = vmax.f32 %v5612_v19, 0.0  ;;  %15507 = vmatpush3.bf16.msra.mxu1 %v16850_v30  ;;  %v15437_v59 = vpop.f32.mrf.mxu0  ;;  %v19151_v21 = vpack.c.bf16 %v19139_v57, %v19147_v3  ;;  %v5727_v33 = vpack.c.bf16 %v19133_v7, %v5698_v63  ;;  %v21638_v40 = vld [vmem:[#allocation25_spill] sm:$0xff]  ;;  %v16858_v19 = vld [vmem:[#allocation3 + $0x748] sm:$0xff]  }
 0x43c   :  { %15508 = vmatprep.subr.bf16.mxu1 %v16852_v62  ;;  %v19155_v42 = vmax.f32 %v5610_v14, 0.0  ;;  %v5615_v32 = vadd.f32 %v5599_v0, %v21634_v52  ;;  %v5597_v8 = vadd.f32 %v19009_v26, %v5576_v45  ;;  %v5579_v30 = vadd.f32 %v15437_v59, %v5377_v58  ;;  %v19205_v39 = vld [vmem:[#allocation2 + $0x12] sm:$0xff]  ;;  %v16860_v0 = vld [vmem:[#allocation3 + $0x740] sm:$0xff]  }
 0x43d   :  { %21630 = vst [vmem:[#allocation18_spill] sm:$0xff] %v19142_v11  ;;  %5644 = vst [vmem:[#allocation2 + $0xe1] sm:$0xff] %v19142_v11  ;;  %15490 = vmatprep.mubr.bf16.mxu0 %v19151_v21  ;;  %v5552_v29 = vpop.f32.mrf.mxu0  ;;  %v19160_v50 = vld [vmem:[#allocation2 + $0x60] sm:$0xff]  ;;  %15462 = vmatprep.mubr.bf16.mxu1 %v5727_v33  ;;  %v16857_v14 = vld [vmem:[#allocation3 + $0x790] sm:$0xff]  }
 0x43e   :  { %21633 = vst [vmem:[#allocation29_spill] sm:$0xff] %v19155_v42  ;;  %5642 = vst [vmem:[#allocation2 + $0xc1] sm:$0xff] %v19155_v42  ;;  %v19163_v54 = vmax.f32 %v5615_v32, 0.0  ;;  %v5613_v35 = vadd.f32 %v5597_v8, %v21636_v31  ;;  %v5600_v36 = vadd.f32 %v19009_v26, %v5579_v30  ;;  %v5577_v61 = vadd.f32 %v5552_v29, %v5375_v37  ;;  %v16862_v33 = vld [vmem:[#allocation3 + $0x7f8] sm:$0xff]   ;;  %v16861_v31 = vld [vmem:[#allocation3 + $0x780] sm:$0xff]  }
 0x43f   :  { %15537 = vmatpush3.bf16.msra.mxu0 %v16849_v48  ;;  %15509 = vmatpush3.bf16.msra.mxu1 %v16852_v62  ;;  %v19171_v41 = vpack.c.bf16 %v19167_v47, %v19160_v50  ;;  %v5728_v53 = vpack.c.bf16 %v19119_v23, %v19155_v42  ;;  %v19196_v63 = vld [vmem:[#allocation2 + $0xd0] sm:$0xff]  ;;  %v6054_v37 = vpack.c.bf16 %v19205_v39, %v6021_v10  ;;  %v16869_v10 = vld [vmem:[#allocation3 + $0x820] sm:$0xff]  }
 0x440   :  { %21635 = vst [vmem:[#allocation57_spill] sm:$0xff] %v19163_v54  ;;  %15538 = vmatprep.subr.bf16.mxu0 %v16851_v18  ;;  %15510 = vmatprep.subr.bf16.mxu1 %v16854_v34  ;;  %5647 = vst [vmem:[#allocation2 + $0x111] sm:$0xff] %v19163_v54  ;;  %v19176_v28 = vmax.f32 %v5613_v35, 0.0  ;;  %v5616_v51 = vadd.f32 %v5600_v36, %v21638_v40  ;;  %v5598_v16 = vadd.f32 %v19009_v26, %v5577_v61  ;;  %v16855_v26 = vld [vmem:[#allocation3 + $0x798] sm:$0xff]   ;;  %v19238_v61 = vld [vmem:[#allocation2 + $0x42] sm:$0xff] }
 0x441   :  { %15491 = vmatmul.mubr.bf16.gmra.mxu0 %v19171_v41  ;;  %v19181_v22 = vld [vmem:[#allocation2 + $0xb0] sm:$0xff]  ;;  %15463 = vmatmul.mubr.bf16.gmra.mxu1 %v5728_v53  ;;  %v6256_v36 = vpack.c.bf16 %v19116_v2, %v19093_v6  ;;  %v19247_v40 = vld [vmem:[#allocation2 + $0x62] sm:$0xff] }
 0x442   :  { %21637 = vst [vmem:[#allocation49_spill] sm:$0xff] %v19176_v28  ;;  %5645 = vst [vmem:[#allocation2 + $0xf1] sm:$0xff] %v19176_v28  ;;  %v19184_v48 = vmax.f32 %v5616_v51, 0.0  ;;  %v5614_v62 = vadd.f32 %v5598_v16, %v21640_v56  ;;  %v5686_v27 = vpack.c.bf16 %v19181_v22, %v19103_v13  ;;  %v5729_v17 = vpack.c.bf16 %v19176_v28, %v19142_v11  ;;  %v19228_v30 = vld [vmem:[#allocation2 + $0x32] sm:$0xff]  ;;  %v6029_v2 = vld [vmem:[#allocation2 + $0xa2] sm:$0xff] }
 0x443   :  { %15539 = vmatpush3.bf16.msra.mxu0 %v16851_v18  ;;  %15511 = vmatpush3.bf16.msra.mxu1 %v16854_v34  ;;  %v16859_v18 = vld [vmem:[#allocation3 + $0x788] sm:$0xff]   ;;  %v19230_v29 = vld [vmem:[#allocation2 + $0x52] sm:$0xff]  ;;  %v6257_v51 = vpack.c.bf16 %v19147_v3, %v19123_v43 }
 0x444   :  { %21639 = vst [vmem:[#allocation42_spill] sm:$0xff] %v19184_v48  ;;  %15540 = vmatprep.subr.bf16.mxu0 %v16853_v25  ;;  %15512 = vmatprep.subr.bf16.mxu1 %v16856_v46  ;;  %5648 = vst [vmem:[#allocation2 + $0x121] sm:$0xff] %v19184_v48  ;;  %v19192_v49 = vmax.f32 %v5614_v62, 0.0  ;;  %v19208_v45 = vld [vmem:[#allocation2 + $0xe0] sm:$0xff]  ;;  %v16864_v53 = vld [vmem:[#allocation3 + $0x7f0] sm:$0xff]  }
 0x445   :  { %15494 = vmatprep.mubr.bf16.mxu0 %v5686_v27  ;;  %15466 = vmatprep.mubr.bf16.mxu1 %v5729_v17  ;;  %v19194_v44 = vld [vmem:[#allocation2 + $0xc0] sm:$0xff]  ;;  %v19249_v6 = vld [vmem:[#allocation2 + $0x72] sm:$0xff]  ;;  %v16866_v62 = vld [vmem:[#allocation3 + $0x7e8] sm:$0xff]   ;;  %v6258_v17 = vpack.c.bf16 %v19160_v50, %v19139_v57 }
 0x446   :  { %21641 = vst [vmem:[#allocation12_spill] sm:$0xff] %v19192_v49  ;;  %5646 = vst [vmem:[#allocation2 + $0x101] sm:$0xff] %v19192_v49  ;;  %v19201_v58 = vpack.c.bf16 %v19196_v63, %v19194_v44  ;;  %v5730_v20 = vpack.c.bf16 %v19163_v54, %v19192_v49  ;;  %v19218_v34 = vld [vmem:[#allocation2 + $0x22] sm:$0xff]  ;;  %v16865_v16 = vld [vmem:[#allocation3 + $0x830] sm:$0xff]   ;;  %v19255_v56 = vpack.c.bf16 %v19249_v6, %v19247_v40 }
 0x447   :  { %15541 = vmatpush3.bf16.msra.mxu0 %v16853_v25  ;;  %15513 = vmatpush3.bf16.msra.mxu1 %v16856_v46  ;;  %v19222_v32 = vld [vmem:[#allocation2 + $0x110] sm:$0xff]  ;;  %v19234_v35 = vpack.c.bf16 %v19228_v30, %v19218_v34  ;;  %v19244_v25 = vpack.c.bf16 %v19230_v29, %v19238_v61  ;;  %v16863_v46 = vld [vmem:[#allocation3 + $0x838] sm:$0xff]   ;;  %v16867_v3 = vld [vmem:[#allocation3 + $0x828] sm:$0xff]  }
 0x448   :  { %15542 = vmatprep.subr.bf16.mxu0 %v16855_v26  ;;  %15514 = vmatprep.subr.bf16.mxu1 %v16858_v19  ;;  %v19257_v27 = vld [vmem:[#allocation2 + $0xb2] sm:$0xff] }
 0x449   :  { %15495 = vmatmul.mubr.bf16.gmra.mxu0 %v19201_v58  ;;  %v19210_v55 = vld [vmem:[#allocation2 + $0xf0] sm:$0xff]  ;;  %15467 = vmatmul.mubr.bf16.gmra.mxu1 %v5730_v20  ;;  %v6058_v43 = vpack.c.bf16 %v19257_v27, %v6029_v2  ;;  %v19265_v20 = vld [vmem:[#allocation2 + $0xc2] sm:$0xff] }
 0x44a   :  { %v19215_v59 = vpack.c.bf16 %v19210_v55, %v19208_v45  ;;  %15518 = vmatprep.mubr.bf16.mxu1 %v6054_v37  ;;  %v19267_v57 = vld [vmem:[#allocation2 + $0xd2] sm:$0xff] }
 0x44b   :  { %15543 = vmatpush3.bf16.msra.mxu0 %v16855_v26  ;;  %15515 = vmatpush3.bf16.msra.mxu1 %v16858_v19  ;;  %v16868_v26 = vld [vmem:[#allocation3 + $0x7e0] sm:$0xff]   ;;  %v19275_v37 = vld [vmem:[#allocation2 + $0xf2] sm:$0xff] }
 0x44c   :  { %15544 = vmatprep.subr.bf16.mxu0 %v16857_v14  ;;  %15498 = vmatprep.mubr.bf16.mxu0 %v19215_v59  ;;  %v19263_v19 = vld [vmem:[#allocation2 + $0x80] sm:$0xff] }
 0x44d   :  { %15516 = vmatprep.subr.bf16.mxu1 %v16860_v0  ;;  %v19220_v52 = vld [vmem:[#allocation2 + $0x100] sm:$0xff]  ;;  %v6259_v50 = vpack.c.bf16 %v19263_v19, %v19167_v47 }
 0x44e   :  { %v19226_v8 = vpack.c.bf16 %v19222_v32, %v19220_v52 }
 0x44f   :  { %15545 = vmatpush3.bf16.msra.mxu0 %v16857_v14  ;;  %15517 = vmatpush3.bf16.msra.mxu1 %v16860_v0  ;;  %v19273_v14 = vpack.c.bf16 %v19267_v57, %v19265_v20  ;;  %v16870_v0 = vld [vmem:[#allocation3 + $0x7d8] sm:$0xff]  }
 0x450   :  { %15546 = vmatprep.subr.bf16.mxu0 %v16859_v18  ;;  %15566 = vmatprep.subr.bf16.mxu1 %v16862_v33 }
 0x451   :  { %15499 = vmatmul.mubr.bf16.gmra.mxu0 %v19226_v8 }
 0x452   :  { %15519 = vmatmul.mubr.bf16.vlgmr.msra.gmra.mxu1 %v19234_v35  ;;  %15550 = vmatprep.mubr.bf16.mxu0 %v6256_v36  ;;  %v16871_v36 = vld [vmem:[#allocation3 + $0x818] sm:$0xff]  }
 0x453   :  { %15547 = vmatpush3.bf16.msra.mxu0 %v16859_v18  ;;  %15522 = vmatprep.mubr.bf16.mxu1 %v19244_v25  ;;  %v6260_v18 = vpack.c.bf16 %v19194_v44, %v19181_v22  ;;  %v19287_v22 = vld [vmem:[#allocation2 + $0x102] sm:$0xff]  ;;  %v19289_v44 = vld [vmem:[#allocation2 + $0x112] sm:$0xff] }
 0x454   :  { %15548 = vmatprep.subr.bf16.mxu0 %v16861_v31  ;;  %15567 = vmatpush3.bf16.msra.mxu1 %v16862_v33  ;;  %v19280_v33 = vld [vmem:[#allocation2 + $0xe2] sm:$0xff]  ;;  %v19295_v2 = vpack.c.bf16 %v19289_v44, %v19287_v22 }
 0x455   :  { %15568 = vmatprep.subr.bf16.mxu1 %v16864_v53  ;;  %v19284_v47 = vpack.c.bf16 %v19275_v37, %v19280_v33 }
 0x457   :  { %15549 = vmatpush3.bf16.msra.mxu0 %v16861_v31  ;;  %v16872_v31 = vld [vmem:[#allocation3 + $0x7d0] sm:$0xff]  }
 0x458   :  { %15598 = vmatprep.subr.bf16.mxu0 %v16863_v46  ;;  %15569 = vmatpush3.bf16.msra.mxu1 %v16864_v53  ;;  %v6261_v53 = vpack.c.bf16 %v19208_v45, %v19196_v63  ;;  %v6458_v63 = vpack.c.bf16 %v19064_v9, %v19046_v5  ;;  %v16875_v45 = vld [vmem:[#allocation3 + $0x808] sm:$0xff]  }
 0x459   :  { %15570 = vmatprep.subr.bf16.mxu1 %v16866_v62 }
 0x45a   :  { %15551 = vmatmul.mubr.bf16.vlgmr.msra.gmra.mxu0 %v6257_v51  ;;  %15523 = vmatmul.mubr.bf16.gmra.mxu1 %v19255_v56  ;;  %v16874_v51 = vld [vmem:[#allocation3 + $0x7c8] sm:$0xff]  }
 0x45b   :  { %15554 = vmatprep.mubr.bf16.mxu0 %v6258_v17  ;;  %15599 = vmatpush3.bf16.msra.mxu0 %v16863_v46  ;;  %v16873_v46 = vld [vmem:[#allocation3 + $0x810] sm:$0xff]   ;;  %v19302_v17 = vld [vmem:[#allocation2 + $0x120] sm:$0xff] }
 0x45c   :  { %15600 = vmatprep.subr.bf16.mxu0 %v16865_v16  ;;  %15526 = vmatprep.mubr.bf16.mxu1 %v6058_v43  ;;  %v6660_v43 = vpack.c.bf16 %v19218_v34, %v19205_v39  ;;  %v6661_v39 = vpack.c.bf16 %v19238_v61, %v19228_v30  ;;  %v16881_v34 = vld [vmem:[#allocation3 + $0x8b0] sm:$0xff]   ;;  %v16883_v30 = vld [vmem:[#allocation3 + $0x8a8] sm:$0xff]  }
 0x45d   :  { %15571 = vmatpush3.bf16.msra.mxu1 %v16866_v62  ;;  %v16876_v62 = vld [vmem:[#allocation3 + $0x7c0] sm:$0xff]  }
 0x45e   :  { %15572 = vmatprep.subr.bf16.mxu1 %v16868_v26  ;;  %v19320_v61 = vld [vmem:[#allocation2 + $0x82] sm:$0xff] }
 0x45f   :  { %15601 = vmatpush3.bf16.msra.mxu0 %v16865_v16  ;;  %v6262_v16 = vpack.c.bf16 %v19220_v52, %v19210_v55  ;;  %v6263_v55 = vpack.c.bf16 %v19302_v17, %v19222_v32  ;;  %v16877_v52 = vld [vmem:[#allocation3 + $0x800] sm:$0xff]   ;;  %v16879_v32 = vld [vmem:[#allocation3 + $0x8b8] sm:$0xff]  }
 0x460   :  { %15602 = vmatprep.subr.bf16.mxu0 %v16867_v3 }
 0x461   :  { %15573 = vmatpush3.bf16.msra.mxu1 %v16868_v26  ;;  %v16878_v26 = vld [vmem:[#allocation3 + $0x878] sm:$0xff]  }
 0x462   :  { %15555 = vmatmul.mubr.bf16.gmra.mxu0 %v6259_v50  ;;  %15527 = vmatmul.mubr.bf16.gmra.mxu1 %v19273_v14  ;;  %v16880_v50 = vld [vmem:[#allocation3 + $0x870] sm:$0xff]  }
 0x463   :  { %15558 = vmatprep.mubr.bf16.mxu0 %v6260_v18  ;;  %15603 = vmatpush3.bf16.msra.mxu0 %v16867_v3  ;;  %v6459_v3 = vpack.c.bf16 %v19055_v60, %v19035_v4  ;;  %v6662_v18 = vpack.c.bf16 %v19247_v40, %v19230_v29  ;;  %v16886_v29 = vld [vmem:[#allocation3 + $0x858] sm:$0xff]   ;;  %v6663_v40 = vpack.c.bf16 %v19320_v61, %v19249_v6 }
 0x464   :  { %15604 = vmatprep.subr.bf16.mxu0 %v16869_v10  ;;  %15574 = vmatprep.subr.bf16.mxu1 %v16870_v0  ;;  %v16887_v6 = vld [vmem:[#allocation3 + $0x898] sm:$0xff]  }
 0x465   :  { %15530 = vmatprep.mubr.bf16.mxu1 %v19284_v47  ;;  %15575 = vmatpush3.bf16.msra.mxu1 %v16870_v0  ;;  %v16882_v0 = vld [vmem:[#allocation3 + $0x868] sm:$0xff]  }
 0x466   :  { %15576 = vmatprep.subr.bf16.mxu1 %v16872_v31 }
 0x467   :  { %15605 = vmatpush3.bf16.msra.mxu0 %v16869_v10  ;;  %v6460_v10 = vpack.c.bf16 %v19110_v24, %v19085_v38 }
 0x468   :  { %15606 = vmatprep.subr.bf16.mxu0 %v16871_v36 }
 0x469   :  { %15577 = vmatpush3.bf16.msra.mxu1 %v16872_v31  ;;  %v6461_v31 = vpack.c.bf16 %v19096_v12, %v19074_v1 }
 0x46a   :  { %15559 = vmatmul.mubr.bf16.gmra.mxu0 %v6261_v53  ;;  %15531 = vmatmul.mubr.bf16.gmra.mxu1 %v19295_v2  ;;  %v6462_v53 = vpack.c.bf16 %v19155_v42, %v19133_v7 }
 0x46b   :  { %15562 = vmatprep.mubr.bf16.mxu0 %v6262_v16  ;;  %15607 = vmatpush3.bf16.msra.mxu0 %v16871_v36  ;;  %v16884_v36 = vld [vmem:[#allocation3 + $0x860] sm:$0xff]   ;;  %v6463_v16 = vpack.c.bf16 %v19142_v11, %v19119_v23 }
 0x46c   :  { %15608 = vmatprep.subr.bf16.mxu0 %v16873_v46  ;;  %15578 = vmatprep.subr.bf16.mxu1 %v16874_v51 }
 0x46d   :  { %15579 = vmatpush3.bf16.msra.mxu1 %v16874_v51  ;;  %15582 = vmatprep.mubr.bf16.mxu1 %v6458_v63  ;;  %v6664_v51 = vpack.c.bf16 %v19265_v20, %v19257_v27  ;;  %v6464_v63 = vpack.c.bf16 %v19192_v49, %v19176_v28  ;;  %v6665_v27 = vpack.c.bf16 %v19280_v33, %v19267_v57  ;;  %v16889_v20 = vld [vmem:[#allocation3 + $0x890] sm:$0xff]   ;;  %v7031_v57 = vld [vmem:[#allocation2 + $0x21] sm:$0xff] }
 0x46e   :  { %15580 = vmatprep.subr.bf16.mxu1 %v16876_v62 }
 0x46f   :  { %15609 = vmatpush3.bf16.msra.mxu0 %v16873_v46  ;;  %v16885_v46 = vld [vmem:[#allocation3 + $0x8a0] sm:$0xff]  }
 0x470   :  { %15610 = vmatprep.subr.bf16.mxu0 %v16875_v45 }
 0x471   :  { %15581 = vmatpush3.bf16.msra.mxu1 %v16876_v62  ;;  %v16888_v62 = vld [vmem:[#allocation3 + $0x850] sm:$0xff]  }
 0x472   :  { %15563 = vmatmul.mubr.bf16.gmra.mxu0 %v6263_v55  ;;  %15630 = vmatprep.subr.bf16.mxu1 %v16878_v26  ;;  %v6465_v55 = vpack.c.bf16 %v19184_v48, %v19163_v54 }
 0x473   :  { %15611 = vmatpush3.bf16.msra.mxu0 %v16875_v45  ;;  %15614 = vmatprep.mubr.bf16.mxu0 %v6660_v43  ;;  %v16890_v45 = vld [vmem:[#allocation3 + $0x848] sm:$0xff]  }
 0x474   :  { %15612 = vmatprep.subr.bf16.mxu0 %v16877_v52  ;;  %15583 = vmatmul.mubr.bf16.vlgmr.msra.gmra.mxu1 %v6459_v3  ;;  %v16891_v43 = vld [vmem:[#allocation3 + $0x888] sm:$0xff]  }
 0x475   :  { %15586 = vmatprep.mubr.bf16.mxu1 %v6460_v10  ;;  %15631 = vmatpush3.bf16.msra.mxu1 %v16878_v26  ;;  %v6666_v26 = vpack.c.bf16 %v19287_v22, %v19275_v37  ;;  %v19336_v3 = vld [vmem:[#allocation2 + $0x122] sm:$0xff]  ;;  %v16894_v37 = vld [vmem:[#allocation3 + $0x8f8] sm:$0xff]  }
 0x476   :  { %15632 = vmatprep.subr.bf16.mxu1 %v16880_v50  ;;  %v6667_v33 = vpack.c.bf16 %v19336_v3, %v19289_v44  ;;  %v7032_v22 = vld [vmem:[#allocation2 + $0x31] sm:$0xff]  ;;  %v16896_v44 = vld [vmem:[#allocation3 + $0x8e8] sm:$0xff]  }
 0x477   :  { %15613 = vmatpush3.bf16.msra.mxu0 %v16877_v52  ;;  %v16892_v52 = vld [vmem:[#allocation3 + $0x840] sm:$0xff]   ;;  %v7064_v10 = vpack.c.bf16 %v7032_v22, %v7031_v57 }
 0x478   :  { %15662 = vmatprep.subr.bf16.mxu0 %v16879_v32 }
 0x479   :  { %15633 = vmatpush3.bf16.msra.mxu1 %v16880_v50  ;;  %v16893_v50 = vld [vmem:[#allocation3 + $0x880] sm:$0xff]  }
 0x47a   :  { %15615 = vmatmul.mubr.bf16.vlgmr.msra.gmra.mxu0 %v6661_v39  ;;  %15634 = vmatprep.subr.bf16.mxu1 %v16882_v0  ;;  %v7033_v39 = vld [vmem:[#allocation2 + $0x41] sm:$0xff] }
 0x47b   :  { %15618 = vmatprep.mubr.bf16.mxu0 %v6662_v18  ;;  %15663 = vmatpush3.bf16.msra.mxu0 %v16879_v32  ;;  %v16895_v32 = vld [vmem:[#allocation3 + $0x8f0] sm:$0xff]  }
 0x47c   :  { %15664 = vmatprep.subr.bf16.mxu0 %v16881_v34  ;;  %15587 = vmatmul.mubr.bf16.gmra.mxu1 %v6461_v31  ;;  %v7036_v18 = vld [vmem:[#allocation2 + $0x71] sm:$0xff] }
 0x47d   :  { %15590 = vmatprep.mubr.bf16.mxu1 %v6462_v53  ;;  %15635 = vmatpush3.bf16.msra.mxu1 %v16882_v0  ;;  %v7035_v0 = vld [vmem:[#allocation2 + $0x61] sm:$0xff] }
 0x47e   :  { %15636 = vmatprep.subr.bf16.mxu1 %v16884_v36  ;;  %v7066_v31 = vpack.c.bf16 %v7036_v18, %v7035_v0  ;;  %v16897_v53 = vld [vmem:[#allocation3 + $0x8e0] sm:$0xff]  }
 0x47f   :  { %15665 = vmatpush3.bf16.msra.mxu0 %v16881_v34 }
 0x480   :  { %15666 = vmatprep.subr.bf16.mxu0 %v16883_v30 }
 0x481   :  { %15637 = vmatpush3.bf16.msra.mxu1 %v16884_v36  ;;  %v6865_v36 = vpack.c.bf16 %v19103_v13, %v19263_v19  ;;  %v7041_v19 = vld [vmem:[#allocation2 + $0xe1] sm:$0xff] }
 0x482   :  { %15619 = vmatmul.mubr.bf16.gmra.mxu0 %v6663_v40  ;;  %15638 = vmatprep.subr.bf16.mxu1 %v16886_v29 }
 0x483   :  { %15622 = vmatprep.mubr.bf16.mxu0 %v6664_v51  ;;  %15667 = vmatpush3.bf16.msra.mxu0 %v16883_v30  ;;  %v7040_v30 = vld [vmem:[#allocation2 + $0xd1] sm:$0xff] }
 0x484   :  { %15668 = vmatprep.subr.bf16.mxu0 %v16885_v46  ;;  %15591 = vmatmul.mubr.bf16.gmra.mxu1 %v6463_v16  ;;  %v16899_v51 = vld [vmem:[#allocation3 + $0x8d0] sm:$0xff]  }
 0x485   :  { %15594 = vmatprep.mubr.bf16.mxu1 %v6464_v63  ;;  %15639 = vmatpush3.bf16.msra.mxu1 %v16886_v29  ;;  %v16898_v29 = vld [vmem:[#allocation3 + $0x8d8] sm:$0xff]  }
 0x486   :  { %15640 = vmatprep.subr.bf16.mxu1 %v16888_v62  ;;  %v7044_v16 = vld [vmem:[#allocation2 + $0x111] sm:$0xff] }
 0x487   :  { %15669 = vmatpush3.bf16.msra.mxu0 %v16885_v46  ;;  %v7068_v46 = vpack.c.bf16 %v7040_v30, %v19155_v42  ;;  %v7070_v63 = vpack.c.bf16 %v7044_v16, %v19192_v49  ;;  %v16916_v16 = vld [vmem:[#allocation3 + $0x940] sm:$0xff]  }
 0x488   :  { %15670 = vmatprep.subr.bf16.mxu0 %v16887_v6 }
 0x489   :  { %15641 = vmatpush3.bf16.msra.mxu1 %v16888_v62  ;;  %v7069_v62 = vpack.c.bf16 %v19176_v28, %v7041_v19 }
 0x48a   :  { %15623 = vmatmul.mubr.bf16.gmra.mxu0 %v6665_v27  ;;  %15642 = vmatprep.subr.bf16.mxu1 %v16890_v45  ;;  %v7240_v27 = vld [vmem:[#allocation2 + $0x92] sm:$0xff] }
 0x48b   :  { %15626 = vmatprep.mubr.bf16.mxu0 %v6666_v26  ;;  %15671 = vmatpush3.bf16.msra.mxu0 %v16887_v6  ;;  %v6869_v6 = vpack.c.bf16 %v19103_v13, %v19302_v17  ;;  %v7269_v13 = vpack.c.bf16 %v7240_v27, %v19320_v61  ;;  %v16906_v61 = vld [vmem:[#allocation3 + $0x968] sm:$0xff]  }
 0x48c   :  { %15672 = vmatprep.subr.bf16.mxu0 %v16889_v20  ;;  %15595 = vmatmul.mubr.bf16.gmra.mxu1 %v6465_v55 }
 0x48d   :  { %15643 = vmatpush3.bf16.msra.mxu1 %v16890_v45  ;;  %15646 = vmatprep.mubr.bf16.mxu1 %v19128_v15  ;;  %v7034_v15 = vld [vmem:[#allocation2 + $0x51] sm:$0xff]  ;;  %v16901_v45 = vld [vmem:[#allocation3 + $0x8c0] sm:$0xff]  }
 0x48e   :  { %15644 = vmatprep.subr.bf16.mxu1 %v16892_v52  ;;  %v7065_v34 = vpack.c.bf16 %v7034_v15, %v7033_v39 }
 0x48f   :  { %15673 = vmatpush3.bf16.msra.mxu0 %v16889_v20  ;;  %v16902_v20 = vld [vmem:[#allocation3 + $0x978] sm:$0xff]  }
 0x490   :  { %15674 = vmatprep.subr.bf16.mxu0 %v16891_v43 }
 0x491   :  { %15645 = vmatpush3.bf16.msra.mxu1 %v16892_v52 }
 0x492   :  { %15627 = vmatmul.mubr.bf16.gmra.mxu0 %v6667_v33  ;;  %15694 = vmatprep.subr.bf16.mxu1 %v16894_v37 }
 0x493   :  { %15675 = vmatpush3.bf16.msra.mxu0 %v16891_v43  ;;  %15678 = vmatprep.mubr.bf16.mxu0 %v7064_v10  ;;  %v16907_v43 = vld [vmem:[#allocation3 + $0x928] sm:$0xff]  }
 0x494   :  { %15676 = vmatprep.subr.bf16.mxu0 %v16893_v50  ;;  %15647 = vmatmul.mubr.bf16.vlgmr.msra.gmra.mxu1 %v19151_v21  ;;  %v7037_v21 = vld [vmem:[#allocation2 + $0x81] sm:$0xff] }
 0x495   :  { %15650 = vmatprep.mubr.bf16.mxu1 %v19171_v41  ;;  %15695 = vmatpush3.bf16.msra.mxu1 %v16894_v37  ;;  %v7038_v41 = vld [vmem:[#allocation2 + $0x91] sm:$0xff] }
 0x496   :  { %15696 = vmatprep.subr.bf16.mxu1 %v16895_v32  ;;  %v7067_v40 = vpack.c.bf16 %v7038_v41, %v7037_v21  ;;  %v16910_v37 = vld [vmem:[#allocation3 + $0x958] sm:$0xff]   ;;  %v16914_v21 = vld [vmem:[#allocation3 + $0x948] sm:$0xff]  }
 0x497   :  { %15677 = vmatpush3.bf16.msra.mxu0 %v16893_v50 }
 0x498   :  { %15726 = vmatprep.subr.bf16.mxu0 %v16902_v20 }
 0x499   :  { %15697 = vmatpush3.bf16.msra.mxu1 %v16895_v32  ;;  %v16909_v32 = vld [vmem:[#allocation3 + $0x920] sm:$0xff]  }
 0x49a   :  { %15679 = vmatmul.mubr.bf16.vlgmr.msra.gmra.mxu0 %v7065_v34  ;;  %15698 = vmatprep.subr.bf16.mxu1 %v16896_v44 }
 0x49b   :  { %15682 = vmatprep.mubr.bf16.mxu0 %v7066_v31  ;;  %15727 = vmatpush3.bf16.msra.mxu0 %v16902_v20  ;;  %v16911_v31 = vld [vmem:[#allocation3 + $0x918] sm:$0xff]   ;;  %v16917_v20 = vld [vmem:[#allocation3 + $0x900] sm:$0xff]  }
 0x49c   :  { %15651 = vmatmul.mubr.bf16.gmra.mxu1 %v6865_v36 }
 0x49d   :  { %15654 = vmatprep.mubr.bf16.mxu1 %v19201_v58  ;;  %15699 = vmatpush3.bf16.msra.mxu1 %v16896_v44  ;;  %v16900_v58 = vld [vmem:[#allocation3 + $0x8c8] sm:$0xff]   ;;  %v16912_v44 = vld [vmem:[#allocation3 + $0x950] sm:$0xff]  }
 0x49e   :  { %15700 = vmatprep.subr.bf16.mxu1 %v16897_v53 }
 0x4a1   :  { %15701 = vmatpush3.bf16.msra.mxu1 %v16897_v53 }
 0x4a2   :  { %15683 = vmatmul.mubr.bf16.gmra.mxu0 %v7067_v40  ;;  %15702 = vmatprep.subr.bf16.mxu1 %v16898_v29 }
 0x4a3   :  { %15686 = vmatprep.mubr.bf16.mxu0 %v7068_v46  ;;  %v16913_v46 = vld [vmem:[#allocation3 + $0x910] sm:$0xff]  }
 0x4a4   :  { %15655 = vmatmul.mubr.bf16.gmra.mxu1 %v19215_v59  ;;  %v7046_v59 = vld [vmem:[#allocation2 + $0x131] sm:$0xff] }
 0x4a5   :  { %15658 = vmatprep.mubr.bf16.mxu1 %v19226_v8  ;;  %15703 = vmatpush3.bf16.msra.mxu1 %v16898_v29  ;;  %v7071_v8 = vpack.c.bf16 %v7046_v59, %v19184_v48 }
 0x4a6   :  { %15704 = vmatprep.subr.bf16.mxu1 %v16899_v51 }
 0x4a9   :  { %15705 = vmatpush3.bf16.msra.mxu1 %v16899_v51 }
 0x4aa   :  { %15687 = vmatmul.mubr.bf16.gmra.mxu0 %v7069_v62  ;;  %15706 = vmatprep.subr.bf16.mxu1 %v16900_v58 }
 0x4ab   :  { %15690 = vmatprep.mubr.bf16.mxu0 %v7070_v63 }
 0x4ac   :  { %15659 = vmatmul.mubr.bf16.gmra.mxu1 %v6869_v6  ;;  %v16915_v6 = vld [vmem:[#allocation3 + $0x908] sm:$0xff]  }
 0x4ad   :  { %15707 = vmatpush3.bf16.msra.mxu1 %v16900_v58  ;;  %15710 = vmatprep.mubr.bf16.mxu1 %v19234_v35  ;;  %v7248_v35 = vld [vmem:[#allocation2 + $0x132] sm:$0xff] }
 0x4ae   :  { %15708 = vmatprep.subr.bf16.mxu1 %v16901_v45  ;;  %v7273_v17 = vpack.c.bf16 %v7248_v35, %v19336_v3 }
 0x4b1   :  { %15709 = vmatpush3.bf16.msra.mxu1 %v16901_v45 }
 0x4b2   :  { %15691 = vmatmul.mubr.bf16.gmra.mxu0 %v7071_v8  ;;  %v19376_v8 = vld [vmem:[#allocation3 + $0x9b8] sm:$0xff]  }
 0x4b3   :  { %21642 = vst [vmem:[#allocation59_spill] sm:$0xff] %v19376_v8 }
 0x4b4   :  { %15711 = vmatmul.mubr.bf16.vlgmr.msra.gmra.mxu1 %v19244_v25  ;;  %v16904_v25 = vld [vmem:[#allocation3 + $0x970] sm:$0xff]  }
 0x4b5   :  { %15714 = vmatprep.mubr.bf16.mxu1 %v19255_v56  ;;  %15728 = vmatprep.subr.bf16.mxu0 %v16904_v25  ;;  %v16903_v56 = vld [vmem:[#allocation3 + $0x938] sm:$0xff]  }
 0x4b6   :  { %15729 = vmatpush3.bf16.msra.mxu0 %v16904_v25  ;;  %15758 = vmatprep.subr.bf16.mxu1 %v16903_v56 }
 0x4b7   :  { %15759 = vmatpush3.bf16.msra.mxu1 %v16903_v56  ;;  %15730 = vmatprep.subr.bf16.mxu0 %v16906_v61 }
 0x4ba   :  { %15731 = vmatpush3.bf16.msra.mxu0 %v16906_v61 }
 0x4bc   :  { %15715 = vmatmul.mubr.bf16.gmra.mxu1 %v7269_v13 }
 0x4bd   :  { %15718 = vmatprep.mubr.bf16.mxu1 %v19273_v14  ;;  %v16905_v14 = vld [vmem:[#allocation3 + $0x930] sm:$0xff]  }
 0x4be   :  { %15760 = vmatprep.subr.bf16.mxu1 %v16905_v14 }
 0x4bf   :  { %15761 = vmatpush3.bf16.msra.mxu1 %v16905_v14  ;;  %v19383_v14 = vld [vmem:[#allocation3 + $0x9f8] sm:$0xff]  }
 0x4c0   :  { %15762 = vmatprep.subr.bf16.mxu1 %v16907_v43  ;;  %21643 = vst [vmem:[#allocation30_spill] sm:$0xff] %v19383_v14 }
 0x4c3   :  { %15763 = vmatpush3.bf16.msra.mxu1 %v16907_v43 }
 0x4c4   :  { %15719 = vmatmul.mubr.bf16.gmra.mxu1 %v19284_v47  ;;  %15764 = vmatprep.subr.bf16.mxu1 %v16909_v32 }
 0x4c5   :  { %15722 = vmatprep.mubr.bf16.mxu1 %v19295_v2  ;;  %v16908_v2 = vld [vmem:[#allocation3 + $0x960] sm:$0xff]  }
 0x4c6   :  { %15732 = vmatprep.subr.bf16.mxu0 %v16908_v2 }
 0x4c7   :  { %15733 = vmatpush3.bf16.msra.mxu0 %v16908_v2  ;;  %15765 = vmatpush3.bf16.msra.mxu1 %v16909_v32 }
 0x4c8   :  { %15734 = vmatprep.subr.bf16.mxu0 %v16910_v37  ;;  %15766 = vmatprep.subr.bf16.mxu1 %v16911_v31 }
 0x4cb   :  { %15735 = vmatpush3.bf16.msra.mxu0 %v16910_v37  ;;  %15767 = vmatpush3.bf16.msra.mxu1 %v16911_v31 }
 0x4cc   :  { %15723 = vmatmul.mubr.bf16.gmra.mxu1 %v7273_v17  ;;  %15736 = vmatprep.subr.bf16.mxu0 %v16912_v44 }
 0x4cd   :  { %15768 = vmatprep.subr.bf16.mxu1 %v16913_v46 }
 0x4cf   :  { %15737 = vmatpush3.bf16.msra.mxu0 %v16912_v44  ;;  %15769 = vmatpush3.bf16.msra.mxu1 %v16913_v46 }
 0x4d0   :  { %15738 = vmatprep.subr.bf16.mxu0 %v16914_v21  ;;  %15770 = vmatprep.subr.bf16.mxu1 %v16915_v6 }
 0x4d3   :  { %15739 = vmatpush3.bf16.msra.mxu0 %v16914_v21  ;;  %15771 = vmatpush3.bf16.msra.mxu1 %v16915_v6 }
 0x4d4   :  { %15740 = vmatprep.subr.bf16.mxu0 %v16916_v16  ;;  %15772 = vmatprep.subr.bf16.mxu1 %v16917_v20 }
 0x4d7   :  { %15741 = vmatpush3.bf16.msra.mxu0 %v16916_v16  ;;  %15773 = vmatpush3.bf16.msra.mxu1 %v16917_v20 }
 0x4d8   :  { %15790 = vmatprep.subr.bf16.mxu0 %v19376_v8  ;;  %15822 = vmatprep.subr.bf16.mxu1 %v19383_v14 }
 0x4f1   :  { %v15456_v26 = vpop.f32.mrf.mxu1 }
 0x4f3   :  { %v5813_v55 = vpop.f32.mrf.mxu1 }
 0x4f5   :  { %v15457_v47 = vpop.f32.mrf.mxu1 }
 0x4f7   :  { %v19362_v52 = vpop.f32.mrf.mxu1 }
 0x4f8   :  { %v15488_v3 = vpop.f32.mrf.mxu0 }
 0x4f9   :  { %v15460_v57 = vpop.f32.mrf.mxu1  ;;  %v19364_v33 = vadd.f32 %v15488_v3, %v15456_v26 }
 0x4fa   :  { %v5958_v22 = vpop.f32.mrf.mxu0 }
 0x4fb   :  { %v5829_v50 = vpop.f32.mrf.mxu1  ;;  %v19366_v10 = vadd.f32 %v5958_v22, %v5813_v55 }
 0x4fc   :  { %v15489_v15 = vpop.f32.mrf.mxu0 }
 0x4fd   :  { %v15461_v0 = vpop.f32.mrf.mxu1  ;;  %v5970_v39 = vadd.f32 %v15489_v15, %v15457_v47 }
 0x4fe   :  { %v19368_v34 = vpop.f32.mrf.mxu0 }
 0x4ff   :  { %v19370_v18 = vpop.f32.mrf.mxu1 }
 0x501   :  { %v15492_v36 = vpop.f32.mrf.mxu0  ;;  %v15464_v53 = vpop.f32.mrf.mxu1 }
 0x502   :  { %v5983_v41 = vadd.f32 %v15492_v36, %v15460_v57 }
 0x503   :  { %v5974_v30 = vpop.f32.mrf.mxu0  ;;  %v5845_v29 = vpop.f32.mrf.mxu1 }
 0x504   :  { %v5975_v40 = vadd.f32 %v5974_v30, %v5829_v50 }
 0x505   :  { %v15493_v51 = vpop.f32.mrf.mxu0  ;;  %v15465_v19 = vpop.f32.mrf.mxu1 }
 0x506   :  { %v5986_v58 = vadd.f32 %v15493_v51, %v15461_v0 }
 0x507   :  { %v19372_v62 = vpop.f32.mrf.mxu0  ;;  %v19374_v63 = vpop.f32.mrf.mxu1 }
 0x509   :  { %v15496_v45 = vpop.f32.mrf.mxu0  ;;  %v15468_v59 = vpop.f32.mrf.mxu1 }
 0x50a   :  { %v5999_v27 = vadd.f32 %v15496_v45, %v15464_v53 }
 0x50b   :  { %v5990_v13 = vpop.f32.mrf.mxu0  ;;  %v5861_v35 = vpop.f32.mrf.mxu1 }
 0x50c   :  { %v5991_v17 = vadd.f32 %v5990_v13, %v5845_v29 }
 0x50d   :  { %v15497_v25 = vpop.f32.mrf.mxu0  ;;  %v15469_v56 = vpop.f32.mrf.mxu1 }
 0x50e   :  { %v6002_v26 = vadd.f32 %v15497_v25, %v15465_v19 }
 0x50f   :  { %v19379_v61 = vpop.f32.mrf.mxu0  ;;  %v19381_v55 = vpop.f32.mrf.mxu1 }
 0x511   :  { %v15500_v47 = vpop.f32.mrf.mxu0 }
 0x512   :  { %v15520_v2 = vpop.f32.mrf.mxu1  ;;  %v6015_v43 = vadd.f32 %v15500_v47, %v15468_v59 }
 0x513   :  { %v19386_v3 = vadd.f32 %v15520_v2, %v19364_v33  ;;  %v6006_v57 = vpop.f32.mrf.mxu0 }
 0x514   :  { %v6144_v37 = vpop.f32.mrf.mxu1  ;;  %v6007_v22 = vadd.f32 %v6006_v57, %v5861_v35 }
 0x515   :  { %v19390_v50 = vadd.f32 %v6144_v37, %v19366_v10  ;;  %v15501_v32 = vpop.f32.mrf.mxu0 }
 0x516   :  { %v15521_v15 = vpop.f32.mrf.mxu1  ;;  %v6018_v0 = vadd.f32 %v15501_v32, %v15469_v56 }
 0x517   :  { %v19392_v44 = vadd.f32 %v15521_v15, %v5970_v39  ;;  %v19394_v31 = vpop.f32.mrf.mxu0 }
 0x518   :  { %v19396_v36 = vpop.f32.mrf.mxu1 }
 0x51a   :  { %v19398_v53 = vpop.f32.mrf.mxu0  ;;  %v15524_v33 = vpop.f32.mrf.mxu1 }
 0x51b   :  { %v19400_v21 = vadd.f32 %v15524_v33, %v5983_v41 }
 0x51c   :  { %v19402_v30 = vpop.f32.mrf.mxu0  ;;  %v6160_v29 = vpop.f32.mrf.mxu1 }
 0x51d   :  { %v19404_v46 = vadd.f32 %v6160_v29, %v5975_v40 }
 0x51e   :  { %v19406_v10 = vpop.f32.mrf.mxu0  ;;  %v15525_v51 = vpop.f32.mrf.mxu1 }
 0x51f   :  { %v19408_v19 = vadd.f32 %v15525_v51, %v5986_v58 }
 0x520   :  { %v19410_v39 = vpop.f32.mrf.mxu0  ;;  %v19412_v16 = vpop.f32.mrf.mxu1 }
 0x522   :  { %v19414_v6 = vpop.f32.mrf.mxu0  ;;  %v15528_v45 = vpop.f32.mrf.mxu1 }
 0x523   :  { %v19416_v59 = vadd.f32 %v15528_v45, %v5999_v27 }
 0x524   :  { %v19418_v41 = vpop.f32.mrf.mxu0  ;;  %v6176_v13 = vpop.f32.mrf.mxu1 }
 0x525   :  { %v19420_v35 = vadd.f32 %v6176_v13, %v5991_v17 }
 0x526   :  { %v19422_v40 = vpop.f32.mrf.mxu0  ;;  %v15529_v20 = vpop.f32.mrf.mxu1 }
 0x527   :  { %v19424_v25 = vadd.f32 %v15529_v20, %v6002_v26 }
 0x528   :  { %v19426_v58 = vpop.f32.mrf.mxu0  ;;  %v19428_v56 = vpop.f32.mrf.mxu1 }
 0x52a   :  { %v19430_v47 = vpop.f32.mrf.mxu0  ;;  %v15532_v2 = vpop.f32.mrf.mxu1 }
 0x52b   :  { %v19432_v57 = vadd.f32 %v15532_v2, %v6015_v43 }
 0x52c   :  { %v19434_v27 = vpop.f32.mrf.mxu0  ;;  %v6192_v37 = vpop.f32.mrf.mxu1 }
 0x52d   :  { %v19436_v32 = vadd.f32 %v6192_v37, %v6007_v22 }
 0x52e   :  { %v19438_v17 = vpop.f32.mrf.mxu0  ;;  %v15533_v15 = vpop.f32.mrf.mxu1 }
 0x52f   :  { %v19440_v33 = vadd.f32 %v15533_v15, %v6018_v0 }
 0x530   :  { %v19442_v26 = vpop.f32.mrf.mxu0  ;;  %v19444_v29 = vpop.f32.mrf.mxu1 }
 0x532   :  { %v19446_v51 = vpop.f32.mrf.mxu0 }
 0x534   :  { %v19448_v45 = vpop.f32.mrf.mxu0  ;;  %v15584_v43 = vpop.f32.mrf.mxu1 }
 0x536   :  { %v19450_v13 = vpop.f32.mrf.mxu0  ;;  %v19452_v20 = vpop.f32.mrf.mxu1 }
 0x537   :  { %21644 = vst [vmem:[#allocation63_spill] sm:$0xff] %v19450_v13 }
 0x538   :  { %v19454_v22 = vpop.f32.mrf.mxu0  ;;  %v19456_v2 = vpop.f32.mrf.mxu1 }
 0x539   :  { %21645 = vst [vmem:[#allocation37_spill] sm:$0xff] %v19454_v22 }
 0x53a   :  { %v15616_v37 = vpop.f32.mrf.mxu0  ;;  %v19458_v0 = vpop.f32.mrf.mxu1 }
 0x53c   :  { %v19460_v15 = vpop.f32.mrf.mxu0  ;;  %v19462_v49 = vpop.f32.mrf.mxu1 }
 0x53e   :  { %v19464_v48 = vpop.f32.mrf.mxu0  ;;  %v19466_v28 = vpop.f32.mrf.mxu1 }
 0x53f   :  { %21646 = vst [vmem:[#allocation31_spill] sm:$0xff] %v19466_v28 }
 0x540   :  { %v19468_v54 = vpop.f32.mrf.mxu0  ;;  %v19470_v42 = vpop.f32.mrf.mxu1 }
 0x541   :  { %21647 = vst [vmem:[#allocation58_spill] sm:$0xff] %v19470_v42 }
 0x542   :  { %v19472_v11 = vpop.f32.mrf.mxu0  ;;  %v19474_v7 = vpop.f32.mrf.mxu1 }
 0x543   :  { %21648 = vst [vmem:[#allocation50_spill] sm:$0xff] %v19472_v11  ;;  %21649 = vst [vmem:[#allocation13_spill] sm:$0xff] %v19474_v7 }
 0x544   :  { %v19476_v23 = vpop.f32.mrf.mxu0  ;;  %v19478_v24 = vpop.f32.mrf.mxu1 }
 0x545   :  { %21650 = vst [vmem:[#allocation32_spill] sm:$0xff] %v19476_v23  ;;  %21651 = vst [vmem:[#allocation33_spill] sm:$0xff] %v19478_v24 }
 0x546   :  { %v19480_v12 = vpop.f32.mrf.mxu0  ;;  %v19482_v38 = vpop.f32.mrf.mxu1 }
 0x547   :  { %21652 = vst [vmem:[#allocation54_spill] sm:$0xff] %v19480_v12  ;;  %21653 = vst [vmem:[#allocation52_spill] sm:$0xff] %v19482_v38 }
 0x548   :  { %v19484_v1 = vpop.f32.mrf.mxu0  ;;  %v19486_v9 = vpop.f32.mrf.mxu1 }
 0x549   :  { %21654 = vst [vmem:[#allocation14_spill] sm:$0xff] %v19484_v1  ;;  %21655 = vst [vmem:[#allocation60_spill] sm:$0xff] %v19486_v9 }
 0x54a   :  { %v19488_v60 = vpop.f32.mrf.mxu0  ;;  %v19490_v5 = vpop.f32.mrf.mxu1 }
 0x54b   :  { %21656 = vst [vmem:[#allocation64_spill] sm:$0xff] %v19488_v60  ;;  %21657 = vst [vmem:[#allocation19_spill] sm:$0xff] %v19490_v5 }
 0x54c   :  { %v19492_v4 = vpop.f32.mrf.mxu0  ;;  %v19494_v14 = vpop.f32.mrf.mxu1 }
 0x54d   :  { %21658 = vst [vmem:[#allocation35_spill] sm:$0xff] %v19492_v4  ;;  %21659 = vst [vmem:[#allocation34_spill] sm:$0xff] %v19494_v14 }
 0x54e   :  { %v19496_v8 = vpop.f32.mrf.mxu0  ;;  %v19498_v7 = vpop.f32.mrf.mxu1 }
 0x54f   :  { %21660 = vst [vmem:[#allocation53_spill] sm:$0xff] %v19496_v8  ;;  %21661 = vst [vmem:[#allocation21_spill] sm:$0xff] %v19498_v7 }
 0x550   :  { %v19500_v24 = vpop.f32.mrf.mxu0  ;;  %v19502_v12 = vpop.f32.mrf.mxu1 }
 0x551   :  { %21662 = vst [vmem:[#allocation61_spill] sm:$0xff] %v19500_v24  ;;  %21663 = vst [vmem:[#allocation51_spill] sm:$0xff] %v19502_v12 }
 0x552   :  { %v19504_v38 = vpop.f32.mrf.mxu0  ;;  %v19506_v1 = vpop.f32.mrf.mxu1 }
 0x553   :  { %21664 = vst [vmem:[#allocation39_spill] sm:$0xff] %v19504_v38  ;;  %21665 = vst [vmem:[#allocation46_spill] sm:$0xff] %v19506_v1 }
 0x554   :  { %v19508_v9 = vpop.f32.mrf.mxu0  ;;  %v15648_v60 = vpop.f32.mrf.mxu1 }
 0x555   :  { %21666 = vst [vmem:[#allocation36_spill] sm:$0xff] %v19508_v9 }
 0x556   :  { %v19510_v5 = vpop.f32.mrf.mxu0  ;;  %v6952_v4 = vpop.f32.mrf.mxu1 }
 0x557   :  { %21667 = vst [vmem:[#allocation38_spill] sm:$0xff] %v19510_v5 }
 0x558   :  { %v19512_v42 = vpop.f32.mrf.mxu0  ;;  %v15649_v14 = vpop.f32.mrf.mxu1 }
 0x559   :  { %21668 = vst [vmem:[#allocation16_spill] sm:$0xff] %v19512_v42 }
 0x55a   :  { %v15680_v8 = vpop.f32.mrf.mxu0  ;;  %v19514_v23 = vpop.f32.mrf.mxu1 }
 0x55b   :  { %21669 = vst [vmem:[#allocation17_spill] sm:$0xff] %v19514_v23 }
 0x55c   :  { %v7154_v7 = vpop.f32.mrf.mxu0  ;;  %v19516_v24 = vpop.f32.mrf.mxu1 }
 0x55d   :  { %21670 = vst [vmem:[#allocation47_spill] sm:$0xff] %v19516_v24 }
 0x55e   :  { %v15681_v12 = vpop.f32.mrf.mxu0  ;;  %v19518_v22 = vpop.f32.mrf.mxu1 }
 0x55f   :  { %21671 = vst [vmem:[#allocation20_spill] sm:$0xff] %v19518_v22  ;;  %v6411_v22 = vadd.f32 %v19398_v53, %v19386_v3  ;;  %v6010_v3 = vadd.f32 %v19394_v31, %v19381_v55 }
 0x560   :  { %v19520_v38 = vpop.f32.mrf.mxu0  ;;  %v19522_v1 = vpop.f32.mrf.mxu1 }
 0x561   :  { %21672 = vst [vmem:[#allocation23_spill] sm:$0xff] %v19522_v1  ;;  %v5962_v1 = vadd.f32 %v19368_v34, %v19362_v52  ;;  %v6412_v34 = vadd.f32 %v19406_v10, %v19392_v44 }
 0x562   :  { %v19524_v9 = vpop.f32.mrf.mxu0  ;;  %v19526_v5 = vpop.f32.mrf.mxu1 }
 0x563   :  { %21673 = vst [vmem:[#allocation41_spill] sm:$0xff] %v19524_v9  ;;  %21674 = vst [vmem:[#allocation26_spill] sm:$0xff] %v19526_v5  ;;  %v6613_v5 = vadd.f32 %v15584_v43, %v6411_v22  ;;  %v6208_v53 = vadd.f32 %v19396_v36, %v5962_v1  ;;  %v6416_v1 = vadd.f32 %v19422_v40, %v19408_v19  ;;  %v21683_v22 = vld [vmem:[#allocation37_spill] sm:$0xff] }
 0x564   :  { %v19528_v28 = vpop.f32.mrf.mxu1  ;;  %v19530_v42 = vpop.f32.mrf.mxu0  ;;  %v6419_v36 = vadd.f32 %v19430_v47, %v19416_v59  ;;  %v19593_v59 = vadd.f32 %v19446_v51, %v19432_v57  ;;  %v21679_v57 = vld [vmem:[#allocation63_spill] sm:$0xff] }
 0x565   :  { %21675 = vst [vmem:[#allocation40_spill] sm:$0xff] %v19528_v28  ;;  %v5978_v28 = vadd.f32 %v19372_v62, %v19370_v18  ;;  %v6815_v62 = vadd.f32 %v15616_v37, %v6613_v5  ;;  %v6614_v5 = vadd.f32 %v19456_v2, %v6412_v34  ;;  %v21685_v37 = vld [vmem:[#allocation58_spill] sm:$0xff] }
 0x566   :  { %v19532_v11 = vpop.f32.mrf.mxu1  ;;  %v19536_v24 = vpop.f32.mrf.mxu0 }
 0x567   :  { %21676 = vst [vmem:[#allocation22_spill] sm:$0xff] %v19532_v11  ;;  %v6409_v11 = vadd.f32 %v19402_v30, %v19390_v50  ;;  %v6212_v18 = vadd.f32 %v19412_v16, %v5978_v28  ;;  %v6410_v30 = vadd.f32 %v19410_v39, %v6208_v53  ;;  %v6816_v39 = vadd.f32 %v19464_v48, %v6614_v5 }
 0x568   :  { %v19534_v23 = vpop.f32.mrf.mxu1 }
 0x569   :  { %21677 = vst [vmem:[#allocation25_spill] sm:$0xff] %v19534_v23  ;;  %v19550_v23 = vpop.f32.mrf.mxu0  ;;  %v6611_v50 = vadd.f32 %v19452_v20, %v6409_v11  ;;  %v6414_v44 = vadd.f32 %v19426_v58, %v6212_v18  ;;  %v7017_v11 = vadd.f32 %v15648_v60, %v6815_v62  ;;  %v6612_v16 = vadd.f32 %v19458_v0, %v6410_v30  ;;  %v19597_v58 = vld [vmem:[#allocation6 + $0x3] ss:$0 sm:$0xff] }
 0x56a   :  { %v19538_v13 = vpop.f32.mrf.mxu1  ;;  %v7018_v47 = vadd.f32 %v15649_v14, %v6816_v39  ;;  %v6618_v0 = vadd.f32 %v21685_v37, %v6416_v1  ;;  %v7529_v39 = vld [vmem:[#allocation2 + $0x1] sm:$0xff] }
 0x56b   :  { %21678 = vst [vmem:[#allocation44_spill] sm:$0xff] %v19538_v13  ;;  %v5994_v13 = vadd.f32 %v19379_v61, %v19374_v63  ;;  %v6415_v63 = vadd.f32 %v19414_v6, %v19400_v21  ;;  %v6413_v61 = vadd.f32 %v19418_v41, %v19404_v46  ;;  %v6813_v28 = vadd.f32 %v19460_v15, %v6611_v50  ;;  %v19575_v31 = vpop.f32.mrf.mxu0  ;;  %v21687_v50 = vld [vmem:[#allocation54_spill] sm:$0xff] }
 0x56c   :  { %v19544_v9 = vpop.f32.mrf.mxu1  ;;  %v6417_v21 = vadd.f32 %v19434_v27, %v19420_v35  ;;  %v6420_v46 = vadd.f32 %v19438_v17, %v19424_v25  ;;  %v7219_v60 = vadd.f32 %v15680_v8, %v7017_v11  ;;  %v6220_v35 = vadd.f32 %v19444_v29, %v6010_v3  ;;  %v21681_v29 = vld [vmem:[#allocation31_spill] sm:$0xff]  ;;  %v21690_v11 = vld [vmem:[#allocation20_spill] sm:$0xff] }
 0x56d   :  { %v6216_v10 = vadd.f32 %v19428_v56, %v5994_v13  ;;  %v7015_v6 = vadd.f32 %v6952_v4, %v6813_v28  ;;  %v6617_v40 = vadd.f32 %v19462_v49, %v6415_v63  ;;  %v6814_v48 = vadd.f32 %v19468_v54, %v6612_v16  ;;  %v19600_v8 = vpop.f32.mrf.mxu0  ;;  %v21682_v54 = vld [vmem:[#allocation17_spill] sm:$0xff] }
 0x56e   :  { %v19557_v52 = vpop.f32.mrf.mxu1  ;;  %v19604_v27 = vadd.f32 %v19448_v45, %v19436_v32  ;;  %v19608_v17 = vadd.f32 %v21679_v57, %v19440_v33  ;;  %v6615_v51 = vadd.f32 %v21681_v29, %v6413_v61  ;;  %v7220_v13 = vadd.f32 %v15681_v12, %v7018_v47  ;;  %v21684_v32 = vld [vmem:[#allocation32_spill] sm:$0xff]  ;;  %v21686_v33 = vld [vmem:[#allocation47_spill] sm:$0xff]  ;;  %v21688_v63 = vld [vmem:[#allocation13_spill] sm:$0xff] }
 0x56f   :  { %v19589_v41 = vadd.f32 %v19442_v26, %v6216_v10  ;;  %v7217_v56 = vadd.f32 %v7154_v7, %v7015_v6  ;;  %v21680_v26 = vld [vmem:[#allocation50_spill] sm:$0xff]  ;;  %v7016_v7 = vadd.f32 %v21682_v54, %v6814_v48  ;;  %v19615_v2 = vadd.f32 %v21683_v22, %v6220_v35  ;;  %v19621_v34 = vpop.f32.mrf.mxu0  ;;  %v21689_v28 = vld [vmem:[#allocation33_spill] sm:$0xff]  ;;  %v21693_v48 = vld [vmem:[#allocation52_spill] sm:$0xff] }
 0x570   :  { %v19570_v55 = vpop.f32.mrf.mxu1  ;;  %v6819_v49 = vadd.f32 %v21680_v26, %v6617_v40  ;;  %v6817_v45 = vadd.f32 %v21684_v32, %v6615_v51  ;;  %v6820_v30 = vadd.f32 %v21687_v50, %v6618_v0  ;;  %v6616_v61 = vadd.f32 %v21688_v63, %v6414_v44  ;;  %v21691_v16 = vld [vmem:[#allocation41_spill] sm:$0xff]  ;;  %v21692_v40 = vld [vmem:[#allocation14_spill] sm:$0xff]  ;;  %v21696_v54 = vld [vmem:[#allocation60_spill] sm:$0xff] }
 0x571   :  { %v7218_v53 = vadd.f32 %v19520_v38, %v7016_v7  ;;  %v6621_v5 = vadd.f32 %v21689_v28, %v6419_v36  ;;  %v21694_v36 = vld [vmem:[#allocation23_spill] sm:$0xff]  ;;  %v19639_v57 = vpop.f32.mrf.mxu0  ;;  %v21697_v7 = vld [vmem:[#allocation26_spill] sm:$0xff]  ;;  %v16920_v28 = vld [vmem:[#allocation3 + $0x9b0] sm:$0xff]  }
 0x572   :  { %v19584_v19 = vpop.f32.mrf.mxu1  ;;  %v7021_v15 = vadd.f32 %v21686_v33, %v6819_v49  ;;  %v7019_v1 = vadd.f32 %v21690_v11, %v6817_v45  ;;  %v7022_v47 = vadd.f32 %v21694_v36, %v6820_v30  ;;  %v21698_v0 = vld [vmem:[#allocation35_spill] sm:$0xff]  ;;  %v21707_v36 = vld [vmem:[#allocation25_spill] sm:$0xff] }
 0x574   :  { %v15712_v25 = vpop.f32.mrf.mxu1  ;;  %v7221_v44 = vadd.f32 %v19530_v42, %v7019_v1  ;;  %v7224_v42 = vadd.f32 %v19536_v24, %v7022_v47  ;;  %v21703_v1 = vld [vmem:[#allocation21_spill] sm:$0xff] }
 0x575   :  { %v7421_v4 = vadd.f32 %v15712_v25, %v7219_v60  ;;  %v7223_v60 = vadd.f32 %v21691_v16, %v7021_v15  ;;  %v6818_v25 = vadd.f32 %v21692_v40, %v6616_v61 }
 0x576   :  { %v7356_v43 = vpop.f32.mrf.mxu1 }
 0x577   :  { %v7442_v14 = vadd.f32 %v19597_v58, %v7421_v4  ;;  %v7419_v20 = vadd.f32 %v7356_v43, %v7217_v56  ;;  %v6619_v56 = vadd.f32 %v21693_v48, %v6417_v21  ;;  %v21695_v43 = vld [vmem:[#allocation64_spill] sm:$0xff]  ;;  %v6622_v21 = vadd.f32 %v21696_v54, %v6420_v46  ;;  %v21699_v46 = vld [vmem:[#allocation19_spill] sm:$0xff]  ;;  %v21705_v48 = vld [vmem:[#allocation61_spill] sm:$0xff] }
 0x578   :  { %v15713_v3 = vpop.f32.mrf.mxu1  ;;  %v6620_v15 = vadd.f32 %v21699_v46, %v19589_v41  ;;  %v19690_v54 = vld [vmem:[#allocation2] sm:$0xff] }
 0x579   :  { %v19623_v12 = vmax.f32 %v7442_v14, 0.0  ;;  %v7440_v18 = vadd.f32 %v19597_v58, %v7419_v20  ;;  %v7422_v62 = vadd.f32 %v15713_v3, %v7220_v13  ;;  %v6823_v13 = vadd.f32 %v21695_v43, %v6621_v5  ;;  %v21700_v3 = vld [vmem:[#allocation40_spill] sm:$0xff]  ;;  %v21701_v5 = vld [vmem:[#allocation53_spill] sm:$0xff] }
 0x57a   :  { %v7359_v10 = vpop.f32.mrf.mxu1  ;;  %v7020_v14 = vadd.f32 %v21697_v7, %v6818_v25  ;;  %v6821_v33 = vadd.f32 %v21698_v0, %v6619_v56  ;;  %v6824_v41 = vadd.f32 %v21701_v5, %v6622_v21  ;;  %v6822_v56 = vadd.f32 %v21705_v48, %v6620_v15  ;;  %v21709_v21 = vld [vmem:[#allocation39_spill] sm:$0xff]  ;;  %v21710_v7 = vld [vmem:[#allocation36_spill] sm:$0xff] }
 0x57b   :  { %7474 = vst [vmem:[#allocation2 + $0x31] sm:$0xff] %v19623_v12  ;;  %v19632_v38 = vmax.f32 %v7440_v18, 0.0  ;;  %v7443_v6 = vadd.f32 %v19597_v58, %v7422_v62  ;;  %v7420_v35 = vadd.f32 %v7359_v10, %v7218_v53  ;;  %v7025_v53 = vadd.f32 %v21700_v3, %v6823_v13  ;;  %v19661_v62 = vpop.f32.mrf.mxu0 }
 0x57c   :  { %v15716_v4 = vpop.f32.mrf.mxu1  ;;  %v7222_v24 = vadd.f32 %v19550_v23, %v7020_v14  ;;  %v21702_v23 = vld [vmem:[#allocation34_spill] sm:$0xff]  ;;  %v6623_v10 = vadd.f32 %v21703_v1, %v19604_v27  ;;  %v7026_v47 = vadd.f32 %v21707_v36, %v6824_v41 }
 0x57d   :  { %7472 = vst [vmem:[#allocation2 + $0x11] sm:$0xff] %v19632_v38  ;;  %v19642_v26 = vmax.f32 %v7443_v6, 0.0  ;;  %v7441_v49 = vadd.f32 %v19597_v58, %v7420_v35  ;;  %v7425_v29 = vadd.f32 %v15716_v4, %v7223_v60  ;;  %v7562_v51 = vpack.c.bf16 %v19632_v38, %v7529_v39  ;;  %v21704_v39 = vld [vmem:[#allocation22_spill] sm:$0xff] }
 0x57e   :  { %v7372_v20 = vpop.f32.mrf.mxu1  ;;  %v6625_v11 = vadd.f32 %v21702_v23, %v19593_v59  ;;  %v7023_v16 = vadd.f32 %v21704_v39, %v6821_v33  ;;  %v7227_v6 = vadd.f32 %v19575_v31, %v7025_v53  ;;  %v21706_v59 = vld [vmem:[#allocation51_spill] sm:$0xff]  ;;  %v6825_v14 = vadd.f32 %v21710_v7, %v6623_v10  ;;  %v16921_v23 = vld [vmem:[#allocation3 + $0x9f0] sm:$0xff]  }
 0x57f   :  { %7475 = vst [vmem:[#allocation2 + $0x41] sm:$0xff] %v19642_v26  ;;  %v19651_v22 = vmax.f32 %v7441_v49, 0.0  ;;  %v7446_v32 = vadd.f32 %v19597_v58, %v7425_v29  ;;  %v7423_v45 = vadd.f32 %v7372_v20, %v7221_v44  ;;  %15742 = vmatprep.mubr.bf16.mxu0 %v7562_v51  ;;  %v8298_v37 = vpack.c.bf16 %v19642_v26, %v19623_v12  ;;  %v21708_v31 = vld [vmem:[#allocation59_spill] sm:$0xff]  ;;  %v7202_v29 = vpop.f32.mrf.mxu0  ;;  %v21711_v20 = vld [vmem:[#allocation44_spill] sm:$0xff] }
 0x580   :  { %v15717_v18 = vpop.f32.mrf.mxu1  ;;  %v6626_v44 = vadd.f32 %v21706_v59, %v19608_v17  ;;  %v7225_v27 = vadd.f32 %v19600_v8, %v7023_v16  ;;  %v16922_v8 = vld [vmem:[#allocation3 + $0x9a8] sm:$0xff]   ;;  %v7228_v33 = vadd.f32 %v19621_v34, %v7026_v47  ;;  %v7027_v39 = vadd.f32 %v19557_v52, %v6825_v14 }
 0x581   :  { %7473 = vst [vmem:[#allocation2 + $0x21] sm:$0xff] %v19651_v22  ;;  %v19664_v50 = vmax.f32 %v7446_v32, 0.0  ;;  %v7444_v30 = vadd.f32 %v19597_v58, %v7423_v45  ;;  %v7426_v63 = vadd.f32 %v15717_v18, %v7224_v42  ;;  %v7563_v61 = vpack.c.bf16 %v19623_v12, %v19651_v22  ;;  %v7537_v59 = vld [vmem:[#allocation2 + $0xa1] sm:$0xff] }
 0x582   :  { %v7375_v60 = vpop.f32.mrf.mxu1  ;;  %v6827_v42 = vadd.f32 %v21709_v21, %v6625_v11  ;;  %v7024_v32 = vadd.f32 %v21711_v20, %v6822_v56  ;;  %v21712_v11 = vld [vmem:[#allocation38_spill] sm:$0xff]  ;;  %v7229_v52 = vadd.f32 %v7202_v29, %v7027_v39 }
 0x583   :  { %7478 = vst [vmem:[#allocation2 + $0x71] sm:$0xff] %v19664_v50  ;;  %v19677_v35 = vmax.f32 %v7444_v30, 0.0  ;;  %v7447_v40 = vadd.f32 %v19597_v58, %v7426_v63  ;;  %v7424_v25 = vadd.f32 %v7375_v60, %v7222_v24  ;;  %15743 = vmatmul.mubr.bf16.vlgmr.msra.gmra.mxu0 %v7563_v61  ;;  %v19707_v63 = vld [vmem:[#allocation2 + $0x30] sm:$0xff]  ;;  %v15693_v61 = vpop.f32.mrf.mxu0  ;;  %v6828_v1 = vadd.f32 %v21712_v11, %v6626_v44 }
 0x584   :  { %v15720_v4 = vpop.f32.mrf.mxu1  ;;  %v19685_v49 = vld [vmem:[#allocation2 + $0x10] sm:$0xff]  ;;  %15791 = vmatpush3.bf16.msra.mxu0 %v21708_v31  ;;  %v7226_v3 = vadd.f32 %v19639_v57, %v7024_v32  ;;  %v7029_v53 = vadd.f32 %v19544_v9, %v6827_v42  ;;  %v16926_v42 = vld [vmem:[#allocation3 + $0x998] sm:$0xff]  }
 0x585   :  { %7476 = vst [vmem:[#allocation2 + $0x51] sm:$0xff] %v19677_v35  ;;  %v7463_v51 = vmax.f32 %v7447_v40, 0.0  ;;  %v7445_v43 = vadd.f32 %v19597_v58, %v7424_v25  ;;  %v7429_v13 = vadd.f32 %v15720_v4, %v7227_v6  ;;  %v7521_v17 = vpack.c.bf16 %v19685_v49, %v19690_v54  ;;  %15792 = vmatprep.subr.bf16.mxu0 %v16920_v28  ;;  %v16924_v6 = vld [vmem:[#allocation3 + $0x9a0] sm:$0xff]   ;;  %v7205_v4 = vpop.f32.mrf.mxu0 }
 0x586   :  { %v7388_v45 = vpop.f32.mrf.mxu1  ;;  %v7564_v0 = vpack.c.bf16 %v19677_v35, %v19642_v26  ;;  %v7231_v40 = vadd.f32 %v19661_v62, %v7029_v53  ;;  %v19735_v47 = vld [vmem:[#allocation2 + $0x40] sm:$0xff]  ;;  %v16955_v26 = vld [vmem:[#allocation3 + $0xae8] sm:$0xff]  }
 0x587   :  { %7479 = vst [vmem:[#allocation2 + $0x81] sm:$0xff] %v7463_v51  ;;  %v19700_v46 = vmax.f32 %v7445_v43, 0.0  ;;  %v7450_v15 = vadd.f32 %v19597_v58, %v7429_v13  ;;  %v7427_v24 = vadd.f32 %v7388_v45, %v7225_v27  ;;  %15774 = vmatprep.mubr.bf16.mxu1 %v7521_v17  ;;  %v19710_v34 = vpack.c.bf16 %v7463_v51, %v19664_v50 }
 0x588   :  { %v15721_v18 = vpop.f32.mrf.mxu1  ;;  %v19705_v30 = vld [vmem:[#allocation2 + $0x20] sm:$0xff]  ;;  %15746 = vmatprep.mubr.bf16.mxu0 %v7564_v0  ;;  %15793 = vmatpush3.bf16.msra.mxu0 %v16920_v28  ;;  %v21713_v28 = vld [vmem:[#allocation46_spill] sm:$0xff]  ;;  %v7030_v27 = vadd.f32 %v19570_v55, %v6828_v1  ;;  %v16923_v55 = vld [vmem:[#allocation3 + $0x9e8] sm:$0xff]  }
 0x589   :  { %7477 = vst [vmem:[#allocation2 + $0x61] sm:$0xff] %v19700_v46  ;;  %v19713_v5 = vmax.f32 %v7450_v15, 0.0  ;;  %v7448_v41 = vadd.f32 %v19597_v58, %v7427_v24  ;;  %v7430_v57 = vadd.f32 %v15721_v18, %v7228_v33  ;;  %v19718_v9 = vpack.c.bf16 %v19707_v63, %v19705_v30  ;;  %15794 = vmatprep.subr.bf16.mxu0 %v16922_v8  ;;  %v16925_v18 = vld [vmem:[#allocation3 + $0x9e0] sm:$0xff]  }
 0x58a   :  { %v6624_v10 = vadd.f32 %v21713_v28, %v19615_v2  ;;  %v7391_v16 = vpop.f32.mrf.mxu1  ;;  %v7565_v60 = vpack.c.bf16 %v19664_v50, %v19700_v46  ;;  %v21714_v2 = vld [vmem:[#allocation16_spill] sm:$0xff]  ;;  %v21715_v50 = vld [vmem:[#allocation30_spill] sm:$0xff]  ;;  %v7232_v7 = vadd.f32 %v15693_v61, %v7030_v27 }
 0x58b   :  { %7482 = vst [vmem:[#allocation2 + $0xd1] sm:$0xff] %v19713_v5  ;;  %v19728_v25 = vmax.f32 %v7448_v41, 0.0  ;;  %v7451_v48 = vadd.f32 %v19597_v58, %v7430_v57  ;;  %v7428_v56 = vadd.f32 %v7391_v16, %v7226_v3  ;;  %15775 = vmatmul.mubr.bf16.vlgmr.msra.gmra.mxu1 %v19718_v9  ;;  %v16928_v57 = vld [vmem:[#allocation3 + $0x990] sm:$0xff]   ;;  %v7860_v27 = vld [vmem:[#allocation2 + $0x2] sm:$0xff] }
 0x58c   :  { %v6826_v44 = vadd.f32 %v21714_v2, %v6624_v10  ;;  %v15724_v36 = vpop.f32.mrf.mxu1  ;;  %15823 = vmatpush3.bf16.msra.mxu1 %v21715_v50  ;;  %v19737_v62 = vld [vmem:[#allocation2 + $0x50] sm:$0xff]  ;;  %15747 = vmatmul.mubr.bf16.gmra.mxu0 %v7565_v60  ;;  %v16927_v60 = vld [vmem:[#allocation3 + $0x9d8] sm:$0xff]   ;;  %v16932_v50 = vld [vmem:[#allocation3 + $0x980] sm:$0xff]  }
 0x58d   :  { %7480 = vst [vmem:[#allocation2 + $0xb1] sm:$0xff] %v19728_v25  ;;  %v19740_v31 = vmax.f32 %v7451_v48, 0.0  ;;  %v7449_v51 = vadd.f32 %v19597_v58, %v7428_v56  ;;  %v7433_v43 = vadd.f32 %v15724_v36, %v7231_v40  ;;  %v19745_v29 = vpack.c.bf16 %v19737_v62, %v19735_v47  ;;  %15824 = vmatprep.subr.bf16.mxu1 %v16921_v23  ;;  %v16930_v40 = vld [vmem:[#allocation3 + $0x988] sm:$0xff]   ;;  %v19803_v36 = vld [vmem:[#allocation2 + $0x12] sm:$0xff] }
 0x58e   :  { %15795 = vmatpush3.bf16.msra.mxu0 %v16922_v8  ;;  %v7028_v13 = vadd.f32 %v19584_v19, %v6826_v44  ;;  %v7404_v17 = vpop.f32.mrf.mxu1  ;;  %v7566_v21 = vpack.c.bf16 %v19728_v25, %v7537_v59  ;;  %v19756_v19 = vld [vmem:[#allocation2 + $0x70] sm:$0xff] }
 0x58f   :  { %15796 = vmatprep.subr.bf16.mxu0 %v16924_v6  ;;  %7483 = vst [vmem:[#allocation2 + $0xe1] sm:$0xff] %v19740_v31  ;;  %v19750_v14 = vmax.f32 %v7449_v51, 0.0  ;;  %v7454_v20 = vadd.f32 %v19597_v58, %v7433_v43  ;;  %v7431_v32 = vadd.f32 %v7404_v17, %v7229_v52  ;;  %15778 = vmatprep.mubr.bf16.mxu1 %v19745_v29  ;;  %v16929_v44 = vld [vmem:[#allocation3 + $0x9d0] sm:$0xff]   ;;  %v16934_v17 = vld [vmem:[#allocation3 + $0xa38] sm:$0xff]  }
 0x590   :  { %v7230_v45 = vadd.f32 %v7205_v4, %v7028_v13  ;;  %v15725_v0 = vpop.f32.mrf.mxu1  ;;  %15825 = vmatpush3.bf16.msra.mxu1 %v16921_v23  ;;  %v19754_v8 = vld [vmem:[#allocation2 + $0x60] sm:$0xff]  ;;  %15750 = vmatprep.mubr.bf16.mxu0 %v7566_v21  ;;  %v8302_v33 = vpack.c.bf16 %v19740_v31, %v19713_v5  ;;  %v7893_v43 = vpack.c.bf16 %v19803_v36, %v7860_v27  ;;  %v16931_v13 = vld [vmem:[#allocation3 + $0x9c8] sm:$0xff]  }
 0x591   :  { %7481 = vst [vmem:[#allocation2 + $0xc1] sm:$0xff] %v19750_v14  ;;  %v19761_v15 = vmax.f32 %v7454_v20, 0.0  ;;  %v7452_v24 = vadd.f32 %v19597_v58, %v7431_v32  ;;  %v7434_v3 = vadd.f32 %v15725_v0, %v7232_v7  ;;  %v19766_v53 = vpack.c.bf16 %v19756_v19, %v19754_v8  ;;  %15826 = vmatprep.subr.bf16.mxu1 %v16923_v55  ;;  %v19821_v7 = vld [vmem:[#allocation2 + $0x22] sm:$0xff] }
 0x592   :  { %15797 = vmatpush3.bf16.msra.mxu0 %v16924_v6  ;;  %v7407_v61 = vpop.f32.mrf.mxu1  ;;  %v7567_v41 = vpack.c.bf16 %v19713_v5, %v19750_v14  ;;  %v19792_v59 = vld [vmem:[#allocation2 + $0xd0] sm:$0xff]  ;;  %v16933_v32 = vld [vmem:[#allocation3 + $0x9c0] sm:$0xff]   ;;  %v8095_v0 = vpack.c.bf16 %v19705_v30, %v19685_v49  ;;  %v16935_v49 = vld [vmem:[#allocation3 + $0xa78] sm:$0xff]   ;;  %v8301_v12 = vpack.c.bf16 %v19750_v14, %v19728_v25 }
 0x593   :  { %15798 = vmatprep.subr.bf16.mxu0 %v16926_v42  ;;  %7486 = vst [vmem:[#allocation2 + $0x111] sm:$0xff] %v19761_v15  ;;  %v19771_v23 = vmax.f32 %v7452_v24, 0.0  ;;  %v7455_v11 = vadd.f32 %v19597_v58, %v7434_v3  ;;  %v7432_v1 = vadd.f32 %v7407_v61, %v7230_v45  ;;  %15779 = vmatmul.mubr.bf16.gmra.mxu1 %v19766_v53  ;;  %v19827_v45 = vld [vmem:[#allocation2 + $0x52] sm:$0xff]  ;;  %v16938_v30 = vld [vmem:[#allocation3 + $0xa28] sm:$0xff]   ;;  %v19862_v27 = vld [vmem:[#allocation2 + $0x80] sm:$0xff] }
 0x594   :  { %15827 = vmatpush3.bf16.msra.mxu1 %v16923_v55  ;;  %v19775_v28 = vld [vmem:[#allocation2 + $0xb0] sm:$0xff]  ;;  %15751 = vmatmul.mubr.bf16.gmra.mxu0 %v7567_v41  ;;  %v16963_v5 = vld [vmem:[#allocation3 + $0xac8] sm:$0xff]  }
 0x595   :  { %7484 = vst [vmem:[#allocation2 + $0xf1] sm:$0xff] %v19771_v23  ;;  %v19778_v10 = vmax.f32 %v7455_v11, 0.0  ;;  %v7453_v39 = vadd.f32 %v19597_v58, %v7432_v1  ;;  %v7525_v16 = vpack.c.bf16 %v19775_v28, %v19690_v54  ;;  %15828 = vmatprep.subr.bf16.mxu1 %v16925_v18  ;;  %v7568_v6 = vpack.c.bf16 %v19771_v23, %v19740_v31  ;;  %v19831_v24 = vld [vmem:[#allocation2 + $0x32] sm:$0xff] }
 0x596   :  { %15799 = vmatpush3.bf16.msra.mxu0 %v16926_v42  ;;  %v19806_v4 = vld [vmem:[#allocation2 + $0xe0] sm:$0xff]  ;;  %v19836_v3 = vpack.c.bf16 %v19831_v24, %v19821_v7  ;;  %v16936_v61 = vld [vmem:[#allocation3 + $0xa30] sm:$0xff]   ;;  %v8096_v11 = vpack.c.bf16 %v19735_v47, %v19707_v63  ;;  %v16939_v47 = vld [vmem:[#allocation3 + $0xa68] sm:$0xff]  }
 0x597   :  { %15800 = vmatprep.subr.bf16.mxu0 %v16928_v57  ;;  %7487 = vst [vmem:[#allocation2 + $0x121] sm:$0xff] %v19778_v10  ;;  %v19786_v48 = vmax.f32 %v7453_v39, 0.0  ;;  %15782 = vmatprep.mubr.bf16.mxu1 %v7525_v16  ;;  %v8304_v58 = vpack.c.bf16 %v19778_v10, %v19761_v15  ;;  %v16937_v1 = vld [vmem:[#allocation3 + $0xa70] sm:$0xff]   ;;  %v7868_v39 = vld [vmem:[#allocation2 + $0xa2] sm:$0xff] }
 0x598   :  { %15754 = vmatprep.mubr.bf16.mxu0 %v7568_v6  ;;  %15829 = vmatpush3.bf16.msra.mxu1 %v16925_v18  ;;  %v19790_v56 = vld [vmem:[#allocation2 + $0xc0] sm:$0xff]  ;;  %v19850_v16 = vld [vmem:[#allocation2 + $0xb2] sm:$0xff] }
 0x599   :  { %7485 = vst [vmem:[#allocation2 + $0x101] sm:$0xff] %v19786_v48  ;;  %v19797_v2 = vpack.c.bf16 %v19792_v59, %v19790_v56  ;;  %15830 = vmatprep.subr.bf16.mxu1 %v16927_v60  ;;  %v19801_v52 = vpack.c.bf16 %v19761_v15, %v19786_v48  ;;  %v19838_v18 = vld [vmem:[#allocation2 + $0x42] sm:$0xff]  ;;  %v19854_v6 = vld [vmem:[#allocation2 + $0x72] sm:$0xff]  ;;  %v7897_v63 = vpack.c.bf16 %v19850_v16, %v7868_v39 }
 0x59a   :  { %15801 = vmatpush3.bf16.msra.mxu0 %v16928_v57  ;;  %v19819_v42 = vld [vmem:[#allocation2 + $0x110] sm:$0xff]  ;;  %v19842_v41 = vpack.c.bf16 %v19827_v45, %v19838_v18  ;;  %v19846_v57 = vld [vmem:[#allocation2 + $0x62] sm:$0xff]  ;;  %v8303_v25 = vpack.c.bf16 %v19786_v48, %v19771_v23 }
 0x59b   :  { %15802 = vmatprep.subr.bf16.mxu0 %v16930_v40  ;;  %15783 = vmatmul.mubr.bf16.gmra.mxu1 %v19797_v2  ;;  %v16964_v48 = vld [vmem:[#allocation3 + $0xa80] sm:$0xff]   ;;  %v16967_v15 = vld [vmem:[#allocation3 + $0xb30] sm:$0xff]  }
 0x59c   :  { %15831 = vmatpush3.bf16.msra.mxu1 %v16927_v60  ;;  %v19808_v51 = vld [vmem:[#allocation2 + $0xf0] sm:$0xff]  ;;  %15755 = vmatmul.mubr.bf16.gmra.mxu0 %v19801_v52  ;;  %v8097_v60 = vpack.c.bf16 %v19754_v8, %v19737_v62  ;;  %v16942_v62 = vld [vmem:[#allocation3 + $0xa18] sm:$0xff]   ;;  %v19864_v8 = vld [vmem:[#allocation2 + $0xc2] sm:$0xff] }
 0x59d   :  { %v19814_v55 = vpack.c.bf16 %v19808_v51, %v19806_v4  ;;  %15832 = vmatprep.subr.bf16.mxu1 %v16929_v44  ;;  %15806 = vmatprep.mubr.bf16.mxu0 %v7893_v43  ;;  %v16941_v43 = vld [vmem:[#allocation3 + $0xa60] sm:$0xff]  }
 0x59e   :  { %15803 = vmatpush3.bf16.msra.mxu0 %v16930_v40  ;;  %v19858_v40 = vpack.c.bf16 %v19854_v6, %v19846_v57  ;;  %v19937_v31 = vld [vmem:[#allocation2 + $0x122] sm:$0xff] }
 0x59f   :  { %15804 = vmatprep.subr.bf16.mxu0 %v16932_v50  ;;  %15786 = vmatprep.mubr.bf16.mxu1 %v19814_v55 }
 0x5a0   :  { %15833 = vmatpush3.bf16.msra.mxu1 %v16929_v44  ;;  %v19817_v21 = vld [vmem:[#allocation2 + $0x100] sm:$0xff] }
 0x5a1   :  { %v19825_v20 = vpack.c.bf16 %v19819_v42, %v19817_v21  ;;  %15834 = vmatprep.subr.bf16.mxu1 %v16931_v13  ;;  %v16940_v44 = vld [vmem:[#allocation3 + $0xa20] sm:$0xff]   ;;  %v8101_v39 = vpack.c.bf16 %v19817_v21, %v19808_v51  ;;  %v16950_v21 = vld [vmem:[#allocation3 + $0xab8] sm:$0xff]  }
 0x5a2   :  { %15805 = vmatpush3.bf16.msra.mxu0 %v16932_v50  ;;  %v8098_v50 = vpack.c.bf16 %v19862_v27, %v19756_v19  ;;  %v19901_v51 = vld [vmem:[#allocation2 + $0x120] sm:$0xff] }
 0x5a3   :  { %15854 = vmatprep.subr.bf16.mxu0 %v16934_v17  ;;  %15787 = vmatmul.mubr.bf16.gmra.mxu1 %v19825_v20 }
 0x5a4   :  { %15835 = vmatpush3.bf16.msra.mxu1 %v16931_v13  ;;  %15838 = vmatprep.mubr.bf16.mxu1 %v8095_v0  ;;  %v19868_v13 = vld [vmem:[#allocation2 + $0xf2] sm:$0xff] }
 0x5a5   :  { %15836 = vmatprep.subr.bf16.mxu1 %v16933_v32  ;;  %15807 = vmatmul.mubr.bf16.vlgmr.msra.gmra.mxu0 %v19836_v3 }
 0x5a6   :  { %15810 = vmatprep.mubr.bf16.mxu0 %v19842_v41  ;;  %15855 = vmatpush3.bf16.msra.mxu0 %v16934_v17  ;;  %v8099_v17 = vpack.c.bf16 %v19790_v56, %v19775_v28  ;;  %v16943_v28 = vld [vmem:[#allocation3 + $0xa58] sm:$0xff]   ;;  %v16946_v56 = vld [vmem:[#allocation3 + $0xa08] sm:$0xff]  }
 0x5a7   :  { %15856 = vmatprep.subr.bf16.mxu0 %v16936_v61 }
 0x5a8   :  { %15837 = vmatpush3.bf16.msra.mxu1 %v16933_v32  ;;  %v19872_v32 = vld [vmem:[#allocation2 + $0xd2] sm:$0xff] }
 0x5a9   :  { %15886 = vmatprep.subr.bf16.mxu1 %v16935_v49  ;;  %v19876_v0 = vpack.c.bf16 %v19872_v32, %v19864_v8 }
 0x5aa   :  { %15857 = vmatpush3.bf16.msra.mxu0 %v16936_v61  ;;  %v19878_v61 = vld [vmem:[#allocation2 + $0xe2] sm:$0xff] }
 0x5ab   :  { %15839 = vmatmul.mubr.bf16.vlgmr.msra.gmra.mxu1 %v8096_v11  ;;  %15858 = vmatprep.subr.bf16.mxu0 %v16938_v30  ;;  %v19882_v19 = vpack.c.bf16 %v19868_v13, %v19878_v61  ;;  %v8100_v11 = vpack.c.bf16 %v19806_v4, %v19792_v59  ;;  %v8297_v59 = vpack.c.bf16 %v19651_v22, %v19632_v38  ;;  %v16947_v4 = vld [vmem:[#allocation3 + $0xa48] sm:$0xff]   ;;  %v16952_v38 = vld [vmem:[#allocation3 + $0xab0] sm:$0xff]  }
 0x5ac   :  { %15842 = vmatprep.mubr.bf16.mxu1 %v8097_v60  ;;  %15887 = vmatpush3.bf16.msra.mxu1 %v16935_v49  ;;  %v16944_v49 = vld [vmem:[#allocation3 + $0xa10] sm:$0xff]   ;;  %v8299_v22 = vpack.c.bf16 %v19700_v46, %v19677_v35  ;;  %v16956_v35 = vld [vmem:[#allocation3 + $0xaa0] sm:$0xff]   ;;  %v16958_v46 = vld [vmem:[#allocation3 + $0xa98] sm:$0xff]  }
 0x5ad   :  { %15888 = vmatprep.subr.bf16.mxu1 %v16937_v1  ;;  %15811 = vmatmul.mubr.bf16.gmra.mxu0 %v19858_v40  ;;  %v19892_v60 = vld [vmem:[#allocation2 + $0x112] sm:$0xff] }
 0x5ae   :  { %15814 = vmatprep.mubr.bf16.mxu0 %v7897_v63  ;;  %15859 = vmatpush3.bf16.msra.mxu0 %v16938_v30  ;;  %v19886_v30 = vld [vmem:[#allocation2 + $0x102] sm:$0xff] }
 0x5af   :  { %15860 = vmatprep.subr.bf16.mxu0 %v16940_v44  ;;  %v16948_v63 = vld [vmem:[#allocation3 + $0xa00] sm:$0xff]  }
 0x5b0   :  { %15889 = vmatpush3.bf16.msra.mxu1 %v16937_v1  ;;  %v16945_v1 = vld [vmem:[#allocation3 + $0xa50] sm:$0xff]  }
 0x5b1   :  { %15890 = vmatprep.subr.bf16.mxu1 %v16939_v47 }
 0x5b2   :  { %15861 = vmatpush3.bf16.msra.mxu0 %v16940_v44  ;;  %v19896_v44 = vpack.c.bf16 %v19892_v60, %v19886_v30 }
 0x5b3   :  { %15843 = vmatmul.mubr.bf16.gmra.mxu1 %v8098_v50  ;;  %15862 = vmatprep.subr.bf16.mxu0 %v16942_v62  ;;  %v8499_v50 = vpack.c.bf16 %v19821_v7, %v19803_v36  ;;  %v8500_v36 = vpack.c.bf16 %v19838_v18, %v19831_v24  ;;  %v16953_v7 = vld [vmem:[#allocation3 + $0xaf0] sm:$0xff]   ;;  %v16957_v24 = vld [vmem:[#allocation3 + $0xae0] sm:$0xff]   ;;  %v8503_v18 = vpack.c.bf16 %v19864_v8, %v19850_v16 }
 0x5b4   :  { %15846 = vmatprep.mubr.bf16.mxu1 %v8099_v17  ;;  %15891 = vmatpush3.bf16.msra.mxu1 %v16939_v47  ;;  %v8102_v47 = vpack.c.bf16 %v19901_v51, %v19819_v42  ;;  %v16951_v42 = vld [vmem:[#allocation3 + $0xaf8] sm:$0xff]   ;;  %v8501_v17 = vpack.c.bf16 %v19846_v57, %v19827_v45  ;;  %v8504_v16 = vpack.c.bf16 %v19878_v61, %v19872_v32  ;;  %v16961_v8 = vld [vmem:[#allocation3 + $0xad0] sm:$0xff]  }
 0x5b5   :  { %15892 = vmatprep.subr.bf16.mxu1 %v16941_v43  ;;  %15815 = vmatmul.mubr.bf16.gmra.mxu0 %v19876_v0  ;;  %v16959_v57 = vld [vmem:[#allocation3 + $0xad8] sm:$0xff]   ;;  %v8506_v32 = vpack.c.bf16 %v19937_v31, %v19892_v60 }
 0x5b6   :  { %15818 = vmatprep.mubr.bf16.mxu0 %v19882_v19  ;;  %15863 = vmatpush3.bf16.msra.mxu0 %v16942_v62  ;;  %v16949_v62 = vld [vmem:[#allocation3 + $0xa40] sm:$0xff]   ;;  %v8871_v61 = vld [vmem:[#allocation2 + $0x31] sm:$0xff] }
 0x5b7   :  { %15864 = vmatprep.subr.bf16.mxu0 %v16944_v49 }
 0x5b8   :  { %15893 = vmatpush3.bf16.msra.mxu1 %v16941_v43  ;;  %v16954_v43 = vld [vmem:[#allocation3 + $0xaa8] sm:$0xff]  }
 0x5b9   :  { %15894 = vmatprep.subr.bf16.mxu1 %v16943_v28 }
 0x5ba   :  { %15865 = vmatpush3.bf16.msra.mxu0 %v16944_v49  ;;  %v8505_v49 = vpack.c.bf16 %v19886_v30, %v19868_v13  ;;  %v16966_v13 = vld [vmem:[#allocation3 + $0xb38] sm:$0xff]   ;;  %v16968_v30 = vld [vmem:[#allocation3 + $0xb28] sm:$0xff]  }
 0x5bb   :  { %15847 = vmatmul.mubr.bf16.gmra.mxu1 %v8100_v11  ;;  %15866 = vmatprep.subr.bf16.mxu0 %v16946_v56  ;;  %v8872_v11 = vld [vmem:[#allocation2 + $0x41] sm:$0xff] }
 0x5bc   :  { %15850 = vmatprep.mubr.bf16.mxu1 %v8101_v39  ;;  %15895 = vmatpush3.bf16.msra.mxu1 %v16943_v28  ;;  %v16965_v28 = vld [vmem:[#allocation3 + $0xac0] sm:$0xff]   ;;  %v8875_v39 = vld [vmem:[#allocation2 + $0x71] sm:$0xff] }
 0x5bd   :  { %15896 = vmatprep.subr.bf16.mxu1 %v16945_v1  ;;  %15819 = vmatmul.mubr.bf16.gmra.mxu0 %v19896_v44 }
 0x5be   :  { %15867 = vmatpush3.bf16.msra.mxu0 %v16946_v56  ;;  %15870 = vmatprep.mubr.bf16.mxu0 %v8297_v59  ;;  %v16969_v59 = vld [vmem:[#allocation3 + $0xb20] sm:$0xff]  }
 0x5bf   :  { %15868 = vmatprep.subr.bf16.mxu0 %v16948_v63 }
 0x5c0   :  { %15897 = vmatpush3.bf16.msra.mxu1 %v16945_v1 }
 0x5c1   :  { %15898 = vmatprep.subr.bf16.mxu1 %v16947_v4 }
 0x5c2   :  { %15869 = vmatpush3.bf16.msra.mxu0 %v16948_v63  ;;  %v8704_v63 = vpack.c.bf16 %v19690_v54, %v19862_v27  ;;  %v8880_v27 = vld [vmem:[#allocation2 + $0xe1] sm:$0xff] }
 0x5c3   :  { %15851 = vmatmul.mubr.bf16.gmra.mxu1 %v8102_v47  ;;  %15918 = vmatprep.subr.bf16.mxu0 %v16950_v21 }
 0x5c4   :  { %15899 = vmatpush3.bf16.msra.mxu1 %v16947_v4  ;;  %15902 = vmatprep.mubr.bf16.mxu1 %v8499_v50  ;;  %v8879_v4 = vld [vmem:[#allocation2 + $0xd1] sm:$0xff] }
 0x5c5   :  { %15900 = vmatprep.subr.bf16.mxu1 %v16949_v62  ;;  %15871 = vmatmul.mubr.bf16.vlgmr.msra.gmra.mxu0 %v8298_v37  ;;  %v19919_v37 = vld [vmem:[#allocation2 + $0x82] sm:$0xff]  ;;  %v16971_v50 = vld [vmem:[#allocation3 + $0xb10] sm:$0xff]  }
 0x5c6   :  { %15874 = vmatprep.mubr.bf16.mxu0 %v8299_v22  ;;  %15919 = vmatpush3.bf16.msra.mxu0 %v16950_v21  ;;  %v8502_v45 = vpack.c.bf16 %v19919_v37, %v19854_v6  ;;  %v16962_v6 = vld [vmem:[#allocation3 + $0xa88] sm:$0xff]   ;;  %v16970_v21 = vld [vmem:[#allocation3 + $0xb18] sm:$0xff]   ;;  %v16973_v22 = vld [vmem:[#allocation3 + $0xb00] sm:$0xff]  }
 0x5c7   :  { %15920 = vmatprep.subr.bf16.mxu0 %v16952_v38 }
 0x5c8   :  { %15901 = vmatpush3.bf16.msra.mxu1 %v16949_v62  ;;  %v8907_v62 = vpack.c.bf16 %v8879_v4, %v19750_v14  ;;  %v8708_v14 = vpack.c.bf16 %v19690_v54, %v19901_v51  ;;  %v16978_v51 = vld [vmem:[#allocation3 + $0xba8] sm:$0xff]  }
 0x5c9   :  { %15950 = vmatprep.subr.bf16.mxu1 %v16951_v42 }
 0x5ca   :  { %15921 = vmatpush3.bf16.msra.mxu0 %v16952_v38  ;;  %v8908_v38 = vpack.c.bf16 %v19771_v23, %v8880_v27  ;;  %v9079_v23 = vld [vmem:[#allocation2 + $0x92] sm:$0xff] }
 0x5cb   :  { %15903 = vmatmul.mubr.bf16.vlgmr.msra.gmra.mxu1 %v8500_v36  ;;  %15922 = vmatprep.subr.bf16.mxu0 %v16954_v43  ;;  %v9108_v54 = vpack.c.bf16 %v9079_v23, %v19919_v37 }
 0x5cc   :  { %15906 = vmatprep.mubr.bf16.mxu1 %v8501_v17  ;;  %15951 = vmatpush3.bf16.msra.mxu1 %v16951_v42  ;;  %v8885_v42 = vld [vmem:[#allocation2 + $0x131] sm:$0xff]  ;;  %v16979_v17 = vld [vmem:[#allocation3 + $0xb68] sm:$0xff]  }
 0x5cd   :  { %15952 = vmatprep.subr.bf16.mxu1 %v16953_v7  ;;  %15875 = vmatmul.mubr.bf16.gmra.mxu0 %v19710_v34  ;;  %v16960_v34 = vld [vmem:[#allocation3 + $0xa90] sm:$0xff]  }
 0x5ce   :  { %15878 = vmatprep.mubr.bf16.mxu0 %v8301_v12  ;;  %15923 = vmatpush3.bf16.msra.mxu0 %v16954_v43 }
 0x5cf   :  { %15924 = vmatprep.subr.bf16.mxu0 %v16956_v35 }
 0x5d0   :  { %15953 = vmatpush3.bf16.msra.mxu1 %v16953_v7 }
 0x5d1   :  { %15954 = vmatprep.subr.bf16.mxu1 %v16955_v26 }
 0x5d2   :  { %15925 = vmatpush3.bf16.msra.mxu0 %v16956_v35  ;;  %v16982_v35 = vld [vmem:[#allocation3 + $0xb98] sm:$0xff]  }
 0x5d3   :  { %15907 = vmatmul.mubr.bf16.gmra.mxu1 %v8502_v45  ;;  %15926 = vmatprep.subr.bf16.mxu0 %v16958_v46 }
 0x5d4   :  { %15910 = vmatprep.mubr.bf16.mxu1 %v8503_v18  ;;  %15955 = vmatpush3.bf16.msra.mxu1 %v16955_v26  ;;  %v16981_v18 = vld [vmem:[#allocation3 + $0xb60] sm:$0xff]  }
 0x5d5   :  { %15956 = vmatprep.subr.bf16.mxu1 %v16957_v24  ;;  %15879 = vmatmul.mubr.bf16.gmra.mxu0 %v8302_v33  ;;  %v8870_v33 = vld [vmem:[#allocation2 + $0x21] sm:$0xff] }
 0x5d6   :  { %15882 = vmatprep.mubr.bf16.mxu0 %v8303_v25  ;;  %15927 = vmatpush3.bf16.msra.mxu0 %v16958_v46  ;;  %v8903_v56 = vpack.c.bf16 %v8871_v61, %v8870_v33 }
 0x5d7   :  { %15928 = vmatprep.subr.bf16.mxu0 %v16960_v34 }
 0x5d8   :  { %15957 = vmatpush3.bf16.msra.mxu1 %v16957_v24 }
 0x5d9   :  { %15958 = vmatprep.subr.bf16.mxu1 %v16959_v57 }
 0x5da   :  { %15929 = vmatpush3.bf16.msra.mxu0 %v16960_v34  ;;  %v16984_v34 = vld [vmem:[#allocation3 + $0xb90] sm:$0xff]  }
 0x5db   :  { %15911 = vmatmul.mubr.bf16.gmra.mxu1 %v8504_v16  ;;  %15930 = vmatprep.subr.bf16.mxu0 %v16962_v6 }
 0x5dc   :  { %15914 = vmatprep.mubr.bf16.mxu1 %v8505_v49  ;;  %15959 = vmatpush3.bf16.msra.mxu1 %v16959_v57  ;;  %v16983_v49 = vld [vmem:[#allocation3 + $0xb58] sm:$0xff]  }
 0x5dd   :  { %15960 = vmatprep.subr.bf16.mxu1 %v16961_v8  ;;  %15883 = vmatmul.mubr.bf16.gmra.mxu0 %v8304_v58  ;;  %v8874_v58 = vld [vmem:[#allocation2 + $0x61] sm:$0xff] }
 0x5de   :  { %15931 = vmatpush3.bf16.msra.mxu0 %v16962_v6  ;;  %15934 = vmatprep.mubr.bf16.mxu0 %v19718_v9  ;;  %v8873_v9 = vld [vmem:[#allocation2 + $0x51] sm:$0xff]  ;;  %v8905_v60 = vpack.c.bf16 %v8875_v39, %v8874_v58 }
 0x5df   :  { %15932 = vmatprep.subr.bf16.mxu0 %v16964_v48  ;;  %v8904_v1 = vpack.c.bf16 %v8873_v9, %v8872_v11  ;;  %v19979_v39 = vld [vmem:[#allocation3 + $0xbf8] sm:$0xff]  }
 0x5e0   :  { %15961 = vmatpush3.bf16.msra.mxu1 %v16961_v8  ;;  %21716 = vst [vmem:[#allocation63_spill] sm:$0xff] %v19979_v39 }
 0x5e1   :  { %15962 = vmatprep.subr.bf16.mxu1 %v16963_v5 }
 0x5e2   :  { %15933 = vmatpush3.bf16.msra.mxu0 %v16964_v48  ;;  %v16986_v48 = vld [vmem:[#allocation3 + $0xb88] sm:$0xff]  }
 0x5e3   :  { %15915 = vmatmul.mubr.bf16.gmra.mxu1 %v8506_v32  ;;  %15982 = vmatprep.subr.bf16.mxu0 %v16966_v13 }
 0x5e4   :  { %15963 = vmatpush3.bf16.msra.mxu1 %v16963_v5  ;;  %15966 = vmatprep.mubr.bf16.mxu1 %v8903_v56  ;;  %v16988_v56 = vld [vmem:[#allocation3 + $0xb80] sm:$0xff]  }
 0x5e5   :  { %15964 = vmatprep.subr.bf16.mxu1 %v16965_v28  ;;  %15935 = vmatmul.mubr.bf16.vlgmr.msra.gmra.mxu0 %v19745_v29  ;;  %v8876_v29 = vld [vmem:[#allocation2 + $0x81] sm:$0xff] }
 0x5e6   :  { %15938 = vmatprep.mubr.bf16.mxu0 %v19766_v53  ;;  %15983 = vmatpush3.bf16.msra.mxu0 %v16966_v13  ;;  %v8877_v53 = vld [vmem:[#allocation2 + $0x91] sm:$0xff] }
 0x5e7   :  { %15984 = vmatprep.subr.bf16.mxu0 %v16967_v15  ;;  %v8906_v47 = vpack.c.bf16 %v8877_v53, %v8876_v29 }
 0x5e8   :  { %15965 = vmatpush3.bf16.msra.mxu1 %v16965_v28  ;;  %v16985_v28 = vld [vmem:[#allocation3 + $0xb50] sm:$0xff]  }
 0x5ea   :  { %15985 = vmatpush3.bf16.msra.mxu0 %v16967_v15 }
 0x5eb   :  { %15967 = vmatmul.mubr.bf16.vlgmr.msra.gmra.mxu1 %v8904_v1  ;;  %15986 = vmatprep.subr.bf16.mxu0 %v16968_v30  ;;  %v16987_v1 = vld [vmem:[#allocation3 + $0xb48] sm:$0xff]  }
 0x5ec   :  { %15970 = vmatprep.mubr.bf16.mxu1 %v8905_v60 }
 0x5ed   :  { %15939 = vmatmul.mubr.bf16.gmra.mxu0 %v8704_v63 }
 0x5ee   :  { %15942 = vmatprep.mubr.bf16.mxu0 %v19797_v2  ;;  %15987 = vmatpush3.bf16.msra.mxu0 %v16968_v30  ;;  %v16972_v2 = vld [vmem:[#allocation3 + $0xb08] sm:$0xff]  }
 0x5ef   :  { %15988 = vmatprep.subr.bf16.mxu0 %v16969_v59 }
 0x5f2   :  { %15989 = vmatpush3.bf16.msra.mxu0 %v16969_v59 }
 0x5f3   :  { %15971 = vmatmul.mubr.bf16.gmra.mxu1 %v8906_v47  ;;  %15990 = vmatprep.subr.bf16.mxu0 %v16970_v21 }
 0x5f4   :  { %15974 = vmatprep.mubr.bf16.mxu1 %v8907_v62 }
 0x5f5   :  { %15943 = vmatmul.mubr.bf16.gmra.mxu0 %v19814_v55  ;;  %v8910_v55 = vpack.c.bf16 %v8885_v42, %v19778_v10  ;;  %v16974_v10 = vld [vmem:[#allocation3 + $0xbb8] sm:$0xff]  }
 0x5f6   :  { %15946 = vmatprep.mubr.bf16.mxu0 %v19825_v20  ;;  %15991 = vmatpush3.bf16.msra.mxu0 %v16970_v21  ;;  %v16989_v21 = vld [vmem:[#allocation3 + $0xb40] sm:$0xff]  }
 0x5f7   :  { %15992 = vmatprep.subr.bf16.mxu0 %v16971_v50  ;;  %16014 = vmatprep.subr.bf16.mxu1 %v16974_v10 }
 0x5f8   :  { %16015 = vmatpush3.bf16.msra.mxu1 %v16974_v10 }
 0x5fa   :  { %15993 = vmatpush3.bf16.msra.mxu0 %v16971_v50 }
 0x5fb   :  { %15975 = vmatmul.mubr.bf16.gmra.mxu1 %v8908_v38  ;;  %15994 = vmatprep.subr.bf16.mxu0 %v16972_v2  ;;  %v19986_v38 = vld [vmem:[#allocation3 + $0xc38] sm:$0xff]  }
 0x5fc   :  { %15978 = vmatprep.mubr.bf16.mxu1 %v19801_v52  ;;  %v9087_v52 = vld [vmem:[#allocation2 + $0x132] sm:$0xff]  ;;  %21717 = vst [vmem:[#allocation50_spill] sm:$0xff] %v19986_v38 }
 0x5fd   :  { %15947 = vmatmul.mubr.bf16.gmra.mxu0 %v8708_v14  ;;  %v9112_v20 = vpack.c.bf16 %v9087_v52, %v19937_v31 }
 0x5fe   :  { %15995 = vmatpush3.bf16.msra.mxu0 %v16972_v2  ;;  %15998 = vmatprep.mubr.bf16.mxu0 %v19836_v3  ;;  %v16976_v3 = vld [vmem:[#allocation3 + $0xbb0] sm:$0xff]  }
 0x5ff   :  { %15996 = vmatprep.subr.bf16.mxu0 %v16973_v22  ;;  %16016 = vmatprep.subr.bf16.mxu1 %v16976_v3 }
 0x600   :  { %16017 = vmatpush3.bf16.msra.mxu1 %v16976_v3 }
 0x601   :  { %16018 = vmatprep.subr.bf16.mxu1 %v16978_v51 }
 0x602   :  { %15997 = vmatpush3.bf16.msra.mxu0 %v16973_v22 }
 0x603   :  { %15979 = vmatmul.mubr.bf16.gmra.mxu1 %v8910_v55 }
 0x604   :  { %16019 = vmatpush3.bf16.msra.mxu1 %v16978_v51 }
 0x605   :  { %15999 = vmatmul.mubr.bf16.vlgmr.msra.gmra.mxu0 %v19842_v41 }
 0x606   :  { %16002 = vmatprep.mubr.bf16.mxu0 %v19858_v40  ;;  %v16975_v40 = vld [vmem:[#allocation3 + $0xb78] sm:$0xff]  }
 0x607   :  { %16046 = vmatprep.subr.bf16.mxu0 %v16975_v40 }
 0x608   :  { %16047 = vmatpush3.bf16.msra.mxu0 %v16975_v40 }
 0x60d   :  { %16003 = vmatmul.mubr.bf16.gmra.mxu0 %v9108_v54 }
 0x60e   :  { %16006 = vmatprep.mubr.bf16.mxu0 %v19876_v0 }
 0x615   :  { %16007 = vmatmul.mubr.bf16.gmra.mxu0 %v19882_v19  ;;  %v16977_v19 = vld [vmem:[#allocation3 + $0xb70] sm:$0xff]  }
 0x616   :  { %16010 = vmatprep.mubr.bf16.mxu0 %v19896_v44  ;;  %v16980_v44 = vld [vmem:[#allocation3 + $0xba0] sm:$0xff]   ;;  %16048 = vmatprep.subr.bf16.mxu0 %v16977_v19 }
 0x617   :  { %16020 = vmatprep.subr.bf16.mxu1 %v16980_v44  ;;  %16049 = vmatpush3.bf16.msra.mxu0 %v16977_v19 }
 0x618   :  { %16021 = vmatpush3.bf16.msra.mxu1 %v16980_v44  ;;  %16050 = vmatprep.subr.bf16.mxu0 %v16979_v17 }
 0x619   :  { %16022 = vmatprep.subr.bf16.mxu1 %v16982_v35 }
 0x61b   :  { %16051 = vmatpush3.bf16.msra.mxu0 %v16979_v17 }
 0x61c   :  { %16023 = vmatpush3.bf16.msra.mxu1 %v16982_v35  ;;  %16052 = vmatprep.subr.bf16.mxu0 %v16981_v18 }
 0x61d   :  { %16011 = vmatmul.mubr.bf16.gmra.mxu0 %v9112_v20  ;;  %16024 = vmatprep.subr.bf16.mxu1 %v16984_v34 }
 0x61f   :  { %16053 = vmatpush3.bf16.msra.mxu0 %v16981_v18 }
 0x620   :  { %16025 = vmatpush3.bf16.msra.mxu1 %v16984_v34  ;;  %16054 = vmatprep.subr.bf16.mxu0 %v16983_v49 }
 0x621   :  { %16026 = vmatprep.subr.bf16.mxu1 %v16986_v48 }
 0x623   :  { %16055 = vmatpush3.bf16.msra.mxu0 %v16983_v49 }
 0x624   :  { %16027 = vmatpush3.bf16.msra.mxu1 %v16986_v48  ;;  %16056 = vmatprep.subr.bf16.mxu0 %v16985_v28 }
 0x625   :  { %16028 = vmatprep.subr.bf16.mxu1 %v16988_v56 }
 0x627   :  { %16057 = vmatpush3.bf16.msra.mxu0 %v16985_v28 }
 0x628   :  { %16029 = vmatpush3.bf16.msra.mxu1 %v16988_v56  ;;  %16058 = vmatprep.subr.bf16.mxu0 %v16987_v1 }
 0x629   :  { %16078 = vmatprep.subr.bf16.mxu1 %v19979_v39 }
 0x62b   :  { %16059 = vmatpush3.bf16.msra.mxu0 %v16987_v1 }
 0x62c   :  { %16060 = vmatprep.subr.bf16.mxu0 %v16989_v21 }
 0x62f   :  { %16061 = vmatpush3.bf16.msra.mxu0 %v16989_v21 }
 0x630   :  { %16110 = vmatprep.subr.bf16.mxu0 %v19986_v38 }
 0x643   :  { %v15744_v41 = vpop.f32.mrf.mxu0 }
 0x645   :  { %v7652_v43 = vpop.f32.mrf.mxu0 }
 0x647   :  { %v15745_v0 = vpop.f32.mrf.mxu0 }
 0x649   :  { %v19963_v36 = vpop.f32.mrf.mxu0 }
 0x64b   :  { %v15776_v7 = vpop.f32.mrf.mxu1 }
 0x64c   :  { %v19965_v12 = vadd.f32 %v15776_v7, %v15744_v41  ;;  %v15748_v26 = vpop.f32.mrf.mxu0 }
 0x64d   :  { %v7797_v37 = vpop.f32.mrf.mxu1 }
 0x64e   :  { %v19967_v46 = vadd.f32 %v7797_v37, %v7652_v43  ;;  %v7668_v45 = vpop.f32.mrf.mxu0 }
 0x64f   :  { %v15777_v24 = vpop.f32.mrf.mxu1 }
 0x650   :  { %v19969_v25 = vadd.f32 %v15777_v24, %v15745_v0  ;;  %v15749_v57 = vpop.f32.mrf.mxu0 }
 0x651   :  { %v19971_v6 = vpop.f32.mrf.mxu1 }
 0x652   :  { %v19973_v16 = vpop.f32.mrf.mxu0 }
 0x653   :  { %v15780_v8 = vpop.f32.mrf.mxu1 }
 0x654   :  { %v7822_v5 = vadd.f32 %v15780_v8, %v15748_v26  ;;  %v15752_v31 = vpop.f32.mrf.mxu0 }
 0x655   :  { %v7813_v33 = vpop.f32.mrf.mxu1 }
 0x656   :  { %v7814_v13 = vadd.f32 %v7813_v33, %v7668_v45  ;;  %v7684_v32 = vpop.f32.mrf.mxu0 }
 0x657   :  { %v15781_v61 = vpop.f32.mrf.mxu1 }
 0x658   :  { %v7825_v15 = vadd.f32 %v15781_v61, %v15749_v57  ;;  %v15753_v9 = vpop.f32.mrf.mxu0 }
 0x659   :  { %v19975_v58 = vpop.f32.mrf.mxu1 }
 0x65a   :  { %v19977_v30 = vpop.f32.mrf.mxu0 }
 0x65b   :  { %v15784_v11 = vpop.f32.mrf.mxu1 }
 0x65c   :  { %v7838_v60 = vadd.f32 %v15784_v11, %v15752_v31  ;;  %v15756_v63 = vpop.f32.mrf.mxu0 }
 0x65d   :  { %v7829_v59 = vpop.f32.mrf.mxu1 }
 0x65e   :  { %v7830_v29 = vadd.f32 %v7829_v59, %v7684_v32  ;;  %v7700_v53 = vpop.f32.mrf.mxu0 }
 0x65f   :  { %v15785_v4 = vpop.f32.mrf.mxu1 }
 0x660   :  { %v7841_v47 = vadd.f32 %v15785_v4, %v15753_v9  ;;  %v15757_v62 = vpop.f32.mrf.mxu0 }
 0x661   :  { %v19982_v50 = vpop.f32.mrf.mxu1 }
 0x662   :  { %v19984_v27 = vpop.f32.mrf.mxu0 }
 0x663   :  { %v15788_v2 = vpop.f32.mrf.mxu1 }
 0x664   :  { %v7854_v14 = vadd.f32 %v15788_v2, %v15756_v63 }
 0x665   :  { %v7845_v22 = vpop.f32.mrf.mxu1  ;;  %v15808_v42 = vpop.f32.mrf.mxu0 }
 0x666   :  { %v7846_v55 = vadd.f32 %v7845_v22, %v7700_v53  ;;  %v19990_v23 = vadd.f32 %v15808_v42, %v19965_v12 }
 0x667   :  { %v15789_v54 = vpop.f32.mrf.mxu1  ;;  %v7983_v52 = vpop.f32.mrf.mxu0 }
 0x668   :  { %v7857_v20 = vadd.f32 %v15789_v54, %v15757_v62  ;;  %v19993_v10 = vadd.f32 %v7983_v52, %v19967_v46 }
 0x669   :  { %v19995_v3 = vpop.f32.mrf.mxu1  ;;  %v15809_v41 = vpop.f32.mrf.mxu0 }
 0x66a   :  { %v19998_v40 = vadd.f32 %v15809_v41, %v19969_v25 }
 0x66b   :  { %v20000_v51 = vpop.f32.mrf.mxu1  ;;  %v20002_v43 = vpop.f32.mrf.mxu0 }
 0x66d   :  { %v20004_v0 = vpop.f32.mrf.mxu1  ;;  %v15812_v19 = vpop.f32.mrf.mxu0 }
 0x66e   :  { %v20006_v44 = vadd.f32 %v15812_v19, %v7822_v5 }
 0x66f   :  { %v20008_v7 = vpop.f32.mrf.mxu1  ;;  %v7999_v17 = vpop.f32.mrf.mxu0 }
 0x670   :  { %v20010_v35 = vadd.f32 %v7999_v17, %v7814_v13 }
 0x671   :  { %v20012_v12 = vpop.f32.mrf.mxu1  ;;  %v15813_v26 = vpop.f32.mrf.mxu0 }
 0x672   :  { %v20014_v37 = vadd.f32 %v15813_v26, %v7825_v15 }
 0x673   :  { %v20016_v46 = vpop.f32.mrf.mxu1  ;;  %v20018_v45 = vpop.f32.mrf.mxu0 }
 0x675   :  { %v20020_v24 = vpop.f32.mrf.mxu1  ;;  %v15816_v18 = vpop.f32.mrf.mxu0 }
 0x676   :  { %v20022_v34 = vadd.f32 %v15816_v18, %v7838_v60 }
 0x677   :  { %v20024_v25 = vpop.f32.mrf.mxu1  ;;  %v8015_v57 = vpop.f32.mrf.mxu0 }
 0x678   :  { %v20026_v8 = vadd.f32 %v8015_v57, %v7830_v29 }
 0x679   :  { %v20028_v49 = vpop.f32.mrf.mxu1  ;;  %v15817_v48 = vpop.f32.mrf.mxu0 }
 0x67a   :  { %v20030_v5 = vadd.f32 %v15817_v48, %v7841_v47 }
 0x67b   :  { %v20032_v31 = vpop.f32.mrf.mxu1  ;;  %v20034_v33 = vpop.f32.mrf.mxu0 }
 0x67d   :  { %v20036_v13 = vpop.f32.mrf.mxu1  ;;  %v15820_v32 = vpop.f32.mrf.mxu0 }
 0x67e   :  { %v20038_v61 = vadd.f32 %v15820_v32, %v7854_v14 }
 0x67f   :  { %v20040_v28 = vpop.f32.mrf.mxu1  ;;  %v8031_v56 = vpop.f32.mrf.mxu0 }
 0x680   :  { %v20042_v15 = vadd.f32 %v8031_v56, %v7846_v55 }
 0x681   :  { %v20044_v9 = vpop.f32.mrf.mxu1  ;;  %v15821_v11 = vpop.f32.mrf.mxu0 }
 0x682   :  { %v20046_v1 = vadd.f32 %v15821_v11, %v7857_v20 }
 0x683   :  { %v20048_v60 = vpop.f32.mrf.mxu1  ;;  %v20050_v63 = vpop.f32.mrf.mxu0 }
 0x685   :  { %v20052_v59 = vpop.f32.mrf.mxu1  ;;  %v20054_v29 = vpop.f32.mrf.mxu0 }
 0x687   :  { %v20056_v53 = vpop.f32.mrf.mxu1  ;;  %v20058_v4 = vpop.f32.mrf.mxu0 }
 0x689   :  { %v20060_v21 = vpop.f32.mrf.mxu1  ;;  %v20062_v47 = vpop.f32.mrf.mxu0 }
 0x68b   :  { %v20064_v62 = vpop.f32.mrf.mxu1  ;;  %v20066_v2 = vpop.f32.mrf.mxu0 }
 0x68d   :  { %v20068_v14 = vpop.f32.mrf.mxu1  ;;  %v20070_v22 = vpop.f32.mrf.mxu0 }
 0x68f   :  { %v20072_v42 = vpop.f32.mrf.mxu1  ;;  %v20074_v55 = vpop.f32.mrf.mxu0 }
 0x690   :  { %21718 = vst [vmem:[#allocation31_spill] sm:$0xff] %v20074_v55 }
 0x691   :  { %v20076_v54 = vpop.f32.mrf.mxu1  ;;  %v20078_v52 = vpop.f32.mrf.mxu0 }
 0x692   :  { %21719 = vst [vmem:[#allocation17_spill] sm:$0xff] %v20078_v52 }
 0x693   :  { %v20080_v20 = vpop.f32.mrf.mxu1  ;;  %v20082_v41 = vpop.f32.mrf.mxu0 }
 0x694   :  { %21720 = vst [vmem:[#allocation37_spill] sm:$0xff] %v20080_v20  ;;  %21721 = vst [vmem:[#allocation32_spill] sm:$0xff] %v20082_v41 }
 0x695   :  { %v20084_v19 = vpop.f32.mrf.mxu1  ;;  %v20086_v17 = vpop.f32.mrf.mxu0 }
 0x696   :  { %21722 = vst [vmem:[#allocation58_spill] sm:$0xff] %v20084_v19  ;;  %21723 = vst [vmem:[#allocation47_spill] sm:$0xff] %v20086_v17 }
 0x697   :  { %v20088_v26 = vpop.f32.mrf.mxu1  ;;  %v20090_v18 = vpop.f32.mrf.mxu0 }
 0x698   :  { %21724 = vst [vmem:[#allocation54_spill] sm:$0xff] %v20088_v26  ;;  %21725 = vst [vmem:[#allocation13_spill] sm:$0xff] %v20090_v18 }
 0x699   :  { %v20092_v57 = vpop.f32.mrf.mxu1  ;;  %v20094_v48 = vpop.f32.mrf.mxu0 }
 0x69a   :  { %21726 = vst [vmem:[#allocation33_spill] sm:$0xff] %v20092_v57  ;;  %21727 = vst [vmem:[#allocation20_spill] sm:$0xff] %v20094_v48 }
 0x69b   :  { %v20096_v32 = vpop.f32.mrf.mxu1  ;;  %v20098_v56 = vpop.f32.mrf.mxu0 }
 0x69c   :  { %21728 = vst [vmem:[#allocation41_spill] sm:$0xff] %v20096_v32  ;;  %21729 = vst [vmem:[#allocation14_spill] sm:$0xff] %v20098_v56 }
 0x69d   :  { %v20100_v11 = vpop.f32.mrf.mxu1  ;;  %v20102_v38 = vpop.f32.mrf.mxu0 }
 0x69e   :  { %21730 = vst [vmem:[#allocation52_spill] sm:$0xff] %v20100_v11  ;;  %21731 = vst [vmem:[#allocation23_spill] sm:$0xff] %v20102_v38 }
 0x69f   :  { %v20104_v39 = vpop.f32.mrf.mxu1  ;;  %v20106_v41 = vpop.f32.mrf.mxu0 }
 0x6a0   :  { %21732 = vst [vmem:[#allocation64_spill] sm:$0xff] %v20104_v39  ;;  %21733 = vst [vmem:[#allocation60_spill] sm:$0xff] %v20106_v41 }
 0x6a1   :  { %v20108_v17 = vpop.f32.mrf.mxu1  ;;  %v20110_v26 = vpop.f32.mrf.mxu0 }
 0x6a2   :  { %21734 = vst [vmem:[#allocation26_spill] sm:$0xff] %v20108_v17  ;;  %21735 = vst [vmem:[#allocation35_spill] sm:$0xff] %v20110_v26 }
 0x6a3   :  { %v20112_v18 = vpop.f32.mrf.mxu1  ;;  %v20114_v57 = vpop.f32.mrf.mxu0 }
 0x6a4   :  { %21736 = vst [vmem:[#allocation19_spill] sm:$0xff] %v20112_v18  ;;  %21737 = vst [vmem:[#allocation40_spill] sm:$0xff] %v20114_v57 }
 0x6a5   :  { %v20116_v48 = vpop.f32.mrf.mxu1  ;;  %v15936_v32 = vpop.f32.mrf.mxu0 }
 0x6a6   :  { %21738 = vst [vmem:[#allocation53_spill] sm:$0xff] %v20116_v48 }
 0x6a7   :  { %v20118_v56 = vpop.f32.mrf.mxu1  ;;  %v8791_v11 = vpop.f32.mrf.mxu0 }
 0x6a8   :  { %21739 = vst [vmem:[#allocation34_spill] sm:$0xff] %v20118_v56 }
 0x6a9   :  { %v20120_v19 = vpop.f32.mrf.mxu1  ;;  %v20122_v38 = vpop.f32.mrf.mxu0 }
 0x6aa   :  { %21740 = vst [vmem:[#allocation21_spill] sm:$0xff] %v20120_v19  ;;  %21741 = vst [vmem:[#allocation22_spill] sm:$0xff] %v20122_v38 }
 0x6ab   :  { %v15968_v39 = vpop.f32.mrf.mxu1  ;;  %v20124_v41 = vpop.f32.mrf.mxu0 }
 0x6ac   :  { %21742 = vst [vmem:[#allocation61_spill] sm:$0xff] %v20124_v41 }
 0x6ad   :  { %v8993_v17 = vpop.f32.mrf.mxu1  ;;  %v20126_v20 = vpop.f32.mrf.mxu0 }
 0x6ae   :  { %21743 = vst [vmem:[#allocation51_spill] sm:$0xff] %v20126_v20 }
 0x6af   :  { %v20128_v26 = vpop.f32.mrf.mxu1  ;;  %v20130_v18 = vpop.f32.mrf.mxu0 }
 0x6b0   :  { %21744 = vst [vmem:[#allocation25_spill] sm:$0xff] %v20130_v18  ;;  %v7801_v18 = vadd.f32 %v19971_v6, %v19963_v36  ;;  %v8248_v36 = vadd.f32 %v20004_v0, %v19993_v10  ;;  %v8251_v6 = vadd.f32 %v20008_v7, %v19998_v40  ;;  %v8255_v40 = vadd.f32 %v20024_v25, %v20014_v37 }
 0x6b1   :  { %v20132_v57 = vpop.f32.mrf.mxu1  ;;  %v20134_v48 = vpop.f32.mrf.mxu0  ;;  %v8258_v7 = vadd.f32 %v20032_v31, %v20022_v34  ;;  %v8262_v37 = vadd.f32 %v20048_v60, %v20038_v61  ;;  %v8260_v34 = vadd.f32 %v20052_v59, %v20042_v15  ;;  %v21752_v59 = vld [vmem:[#allocation31_spill] sm:$0xff] }
 0x6b2   :  { %21745 = vst [vmem:[#allocation59_spill] sm:$0xff] %v20132_v57  ;;  %21746 = vst [vmem:[#allocation39_spill] sm:$0xff] %v20134_v48  ;;  %v7817_v48 = vadd.f32 %v19975_v58, %v19973_v16  ;;  %v8450_v0 = vadd.f32 %v20058_v4, %v8248_v36  ;;  %v20219_v4 = vld [vmem:[#allocation6 + $0x4] ss:$0 sm:$0xff] }
 0x6b3   :  { %v20136_v56 = vpop.f32.mrf.mxu1  ;;  %v20138_v52 = vpop.f32.mrf.mxu0  ;;  %v21760_v36 = vld [vmem:[#allocation61_spill] sm:$0xff] }
 0x6b4   :  { %21747 = vst [vmem:[#allocation36_spill] sm:$0xff] %v20138_v52  ;;  %v8250_v52 = vadd.f32 %v20000_v51, %v19990_v23  ;;  %v8051_v16 = vadd.f32 %v20018_v45, %v7817_v48  ;;  %v8652_v45 = vadd.f32 %v20068_v14, %v8450_v0  ;;  %v21755_v14 = vld [vmem:[#allocation22_spill] sm:$0xff] }
 0x6b5   :  { %v20140_v19 = vpop.f32.mrf.mxu0  ;;  %v20142_v38 = vpop.f32.mrf.mxu1 }
 0x6b6   :  { %21748 = vst [vmem:[#allocation44_spill] sm:$0xff] %v20140_v19  ;;  %v7833_v19 = vadd.f32 %v19982_v50, %v19977_v30  ;;  %v8452_v58 = vadd.f32 %v20054_v29, %v8250_v52  ;;  %v8254_v50 = vadd.f32 %v20016_v46, %v20006_v44  ;;  %v8253_v51 = vadd.f32 %v20028_v49, %v8051_v16  ;;  %v21753_v29 = vld [vmem:[#allocation17_spill] sm:$0xff]  ;;  %v21757_v52 = vld [vmem:[#allocation54_spill] sm:$0xff] }
 0x6b7   :  { %v20144_v41 = vpop.f32.mrf.mxu0  ;;  %v20148_v20 = vpop.f32.mrf.mxu1  ;;  %v8256_v44 = vadd.f32 %v20036_v13, %v20026_v8  ;;  %v20205_v8 = vadd.f32 %v20056_v53, %v20046_v1  ;;  %v8457_v53 = vadd.f32 %v21753_v29, %v8255_v40  ;;  %v21771_v29 = vld [vmem:[#allocation27_spill] sm:$0xff] }
 0x6b8   :  { %21749 = vst [vmem:[#allocation38_spill] sm:$0xff] %v20144_v41  ;;  %21751 = vst [vmem:[#allocation16_spill] sm:$0xff] %v20148_v20  ;;  %v7849_v41 = vadd.f32 %v19995_v3, %v19984_v27  ;;  %v8252_v27 = vadd.f32 %v20020_v24, %v20010_v35  ;;  %v8055_v3 = vadd.f32 %v20034_v33, %v7833_v19 }
 0x6b9   :  { %v20146_v55 = vpop.f32.mrf.mxu0  ;;  %v20171_v23 = vpop.f32.mrf.mxu1  ;;  %v8259_v35 = vadd.f32 %v20040_v28, %v20030_v5  ;;  %v8453_v24 = vadd.f32 %v20062_v47, %v8251_v6  ;;  %v8456_v61 = vadd.f32 %v20070_v22, %v8254_v50  ;;  %v21754_v47 = vld [vmem:[#allocation37_spill] sm:$0xff] }
 0x6ba   :  { %21750 = vst [vmem:[#allocation46_spill] sm:$0xff] %v20146_v55  ;;  %v8047_v55 = vadd.f32 %v20002_v43, %v7801_v18  ;;  %v8654_v43 = vadd.f32 %v20064_v62, %v8452_v58  ;;  %v8059_v5 = vadd.f32 %v20050_v63, %v7849_v41  ;;  %v8454_v1 = vadd.f32 %v21752_v59, %v8252_v27  ;;  %v21759_v18 = vld [vmem:[#allocation47_spill] sm:$0xff]  ;;  %v21761_v58 = vld [vmem:[#allocation33_spill] sm:$0xff] }
 0x6bb   :  { %v20152_v57 = vpop.f32.mrf.mxu0  ;;  %v20199_v49 = vpop.f32.mrf.mxu1  ;;  %v8655_v13 = vadd.f32 %v20072_v42, %v8453_v24  ;;  %v8658_v62 = vadd.f32 %v21754_v47, %v8456_v61  ;;  %v8659_v41 = vadd.f32 %v21757_v52, %v8457_v53  ;;  %v8460_v48 = vadd.f32 %v21759_v18, %v8258_v7  ;;  %v21762_v50 = vld [vmem:[#allocation13_spill] sm:$0xff] }
 0x6bc   :  { %v8249_v30 = vadd.f32 %v20012_v12, %v8047_v55  ;;  %v8257_v12 = vadd.f32 %v20044_v9, %v8055_v3  ;;  %v8856_v25 = vadd.f32 %v15936_v32, %v8654_v43  ;;  %v8854_v9 = vadd.f32 %v8791_v11, %v8652_v45  ;;  %v21756_v55 = vld [vmem:[#allocation58_spill] sm:$0xff]  ;;  %v21763_v3 = vld [vmem:[#allocation20_spill] sm:$0xff]  ;;  %v21764_v43 = vld [vmem:[#allocation51_spill] sm:$0xff] }
 0x6bd   :  { %v20163_v20 = vpop.f32.mrf.mxu0  ;;  %v20214_v60 = vadd.f32 %v20060_v21, %v8059_v5  ;;  %v8857_v42 = vadd.f32 %v21755_v14, %v8655_v13  ;;  %v20223_v22 = vpop.f32.mrf.mxu1  ;;  %v8656_v21 = vadd.f32 %v21756_v55, %v8454_v1  ;;  %v8458_v27 = vadd.f32 %v21762_v50, %v8256_v44  ;;  %v21767_v13 = vld [vmem:[#allocation41_spill] sm:$0xff]  ;;  %v21773_v14 = vld [vmem:[#allocation23_spill] sm:$0xff] }
 0x6be   :  { %v8451_v31 = vadd.f32 %v20066_v2, %v8249_v30  ;;  %v9058_v28 = vadd.f32 %v15968_v39, %v8856_v25  ;;  %v9056_v2 = vadd.f32 %v8993_v17, %v8854_v9  ;;  %v8461_v40 = vadd.f32 %v21763_v3, %v8259_v35  ;;  %v21766_v25 = vld [vmem:[#allocation15_spill] sm:$0xff] }
 0x6bf   :  { %v20179_v10 = vpop.f32.mrf.mxu0  ;;  %v9059_v11 = vadd.f32 %v20128_v26, %v8857_v42  ;;  %v8860_v0 = vadd.f32 %v21764_v43, %v8658_v62  ;;  %v20237_v7 = vpop.f32.mrf.mxu1  ;;  %v8662_v61 = vadd.f32 %v21767_v13, %v8460_v48  ;;  %v21772_v62 = vld [vmem:[#allocation52_spill] sm:$0xff]  ;;  %v8464_v42 = vadd.f32 %v21773_v14, %v8262_v37  ;;  %v21774_v55 = vld [vmem:[#allocation39_spill] sm:$0xff] }
 0x6c0   :  { %v8653_v15 = vadd.f32 %v20076_v54, %v8451_v31  ;;  %v21758_v54 = vld [vmem:[#allocation32_spill] sm:$0xff] }
 0x6c1   :  { %v20193_v46 = vpop.f32.mrf.mxu0  ;;  %v8455_v19 = vadd.f32 %v21758_v54, %v8253_v51  ;;  %v21765_v51 = vld [vmem:[#allocation59_spill] sm:$0xff]  ;;  %v9062_v44 = vadd.f32 %v20136_v56, %v8860_v0  ;;  %v20253_v56 = vpop.f32.mrf.mxu1  ;;  %v21778_v37 = vld [vmem:[#allocation60_spill] sm:$0xff] }
 0x6c2   :  { %v8855_v6 = vadd.f32 %v21760_v36, %v8653_v15  ;;  %v21769_v15 = vld [vmem:[#allocation25_spill] sm:$0xff]  ;;  %v21776_v54 = vld [vmem:[#allocation55_spill] sm:$0xff] }
 0x6c3   :  { %v20209_v33 = vpop.f32.mrf.mxu0  ;;  %v8657_v30 = vadd.f32 %v21761_v58, %v8455_v19  ;;  %v8858_v35 = vadd.f32 %v21769_v15, %v8656_v21  ;;  %v21787_v15 = vld [vmem:[#allocation19_spill] sm:$0xff] }
 0x6c4   :  { %v9057_v24 = vadd.f32 %v21765_v51, %v8855_v6  ;;  %v8462_v6 = vadd.f32 %v21778_v37, %v8260_v34 }
 0x6c5   :  { %v16000_v63 = vpop.f32.mrf.mxu0 }
 0x6c6   :  { %v9260_v39 = vadd.f32 %v16000_v63, %v9058_v28  ;;  %v21768_v28 = vld [vmem:[#allocation14_spill] sm:$0xff] }
 0x6c7   :  { %v9195_v32 = vpop.f32.mrf.mxu0  ;;  %v8459_v9 = vadd.f32 %v21768_v28, %v8257_v12  ;;  %v8861_v12 = vadd.f32 %v21774_v55, %v8659_v41  ;;  %v21780_v41 = vld [vmem:[#allocation36_spill] sm:$0xff] }
 0x6c8   :  { %v9281_v17 = vadd.f32 %v20219_v4, %v9260_v39  ;;  %v9258_v16 = vadd.f32 %v9195_v32, %v9056_v2  ;;  %v8660_v2 = vadd.f32 %v21772_v62, %v8458_v27  ;;  %v9060_v39 = vadd.f32 %v20142_v38, %v8858_v35  ;;  %v9384_v32 = vld [vmem:[#allocation2 + $0x1] sm:$0xff] }
 0x6c9   :  { %v16001_v45 = vpop.f32.mrf.mxu0  ;;  %v21779_v38 = vld [vmem:[#allocation16_spill] sm:$0xff]  ;;  %v8666_v35 = vadd.f32 %v21787_v15, %v8464_v42 }
 0x6ca   :  { %v9297_v26 = vadd.f32 %v9281_v17, %v21766_v25  ;;  %v9279_v5 = vadd.f32 %v20219_v4, %v9258_v16  ;;  %v9261_v31 = vadd.f32 %v16001_v45, %v9059_v11  ;;  %v21777_v11 = vld [vmem:[#allocation64_spill] sm:$0xff]  ;;  %v9063_v17 = vadd.f32 %v21779_v38, %v8861_v12  ;;  %v21783_v45 = vld [vmem:[#allocation26_spill] sm:$0xff] }
 0x6cb   :  { %v9198_v59 = vpop.f32.mrf.mxu0  ;;  %v8663_v36 = vadd.f32 %v21777_v11, %v8461_v40  ;;  %v8859_v16 = vadd.f32 %v21780_v41, %v8657_v30  ;;  %v21782_v27 = vld [vmem:[#allocation24_spill] sm:$0xff]  ;;  %v8661_v51 = vadd.f32 %v21783_v45, %v8459_v9  ;;  %v15980_v30 = vpop.f32.mrf.mxu1  ;;  %v21788_v9 = vld [vmem:[#allocation35_spill] sm:$0xff]  ;;  %v21793_v12 = vld [vmem:[#allocation46_spill] sm:$0xff] }
 0x6cc   :  { %v20245_v1 = vmax.f32 %v9297_v26, 0.0  ;;  %v9295_v53 = vadd.f32 %v9279_v5, %v21771_v29  ;;  %v9282_v63 = vadd.f32 %v20219_v4, %v9261_v31  ;;  %v9259_v47 = vadd.f32 %v9198_v59, %v9057_v24  ;;  %v21784_v24 = vld [vmem:[#allocation44_spill] sm:$0xff]  ;;  %v21786_v31 = vld [vmem:[#allocation62_spill] sm:$0xff] }
 0x6cd   :  { %v16004_v52 = vpop.f32.mrf.mxu0  ;;  %v9061_v40 = vadd.f32 %v20171_v23, %v8859_v16  ;;  %v8864_v34 = vadd.f32 %v21784_v24, %v8662_v61  ;;  %v8465_v23 = vadd.f32 %v21788_v9, %v20205_v8  ;;  %v21789_v59 = vld [vmem:[#allocation38_spill] sm:$0xff]  ;;  %v21792_v42 = vld [vmem:[#allocation40_spill] sm:$0xff]  ;;  %v8863_v41 = vadd.f32 %v20152_v57, %v8661_v51  ;;  %v20313_v51 = vld [vmem:[#allocation2] sm:$0xff] }
 0x6ce   :  { %21770 = vst [vmem:[#allocation30_spill] sm:$0xff] %v20245_v1  ;;  %9329 = vst [vmem:[#allocation2 + $0x31] sm:$0xff] %v20245_v1  ;;  %v20256_v21 = vmax.f32 %v9295_v53, 0.0  ;;  %v9298_v19 = vadd.f32 %v9282_v63, %v21776_v54  ;;  %v9280_v18 = vadd.f32 %v20219_v4, %v9259_v47  ;;  %v9264_v48 = vadd.f32 %v16004_v52, %v9062_v44  ;;  %v21791_v47 = vld [vmem:[#allocation43_spill] sm:$0xff]  ;;  %v16992_v54 = vld [vmem:[#allocation3 + $0xbf0] sm:$0xff]  }
 0x6cf   :  { %v9211_v58 = vpop.f32.mrf.mxu0  ;;  %v9066_v61 = vadd.f32 %v20199_v49, %v8864_v34  ;;  %v8862_v29 = vadd.f32 %v21789_v59, %v8660_v2  ;;  %v8463_v55 = vadd.f32 %v21792_v42, %v20214_v60  ;;  %v8865_v49 = vadd.f32 %v21793_v12, %v8663_v36  ;;  %v21796_v60 = vld [vmem:[#allocation53_spill] sm:$0xff]  ;;  %v16996_v12 = vld [vmem:[#allocation3 + $0xbe0] sm:$0xff]  }
 0x6d0   :  { %21775 = vst [vmem:[#allocation31_spill] sm:$0xff] %v20256_v21  ;;  %9327 = vst [vmem:[#allocation2 + $0x11] sm:$0xff] %v20256_v21  ;;  %v20265_v50 = vmax.f32 %v9298_v19, 0.0  ;;  %v9296_v3 = vadd.f32 %v9280_v18, %v21782_v27  ;;  %v9285_v43 = vadd.f32 %v20219_v4, %v9264_v48  ;;  %v9262_v0 = vadd.f32 %v9211_v58, %v9060_v39  ;;  %v9041_v19 = vpop.f32.mrf.mxu1  ;;  %v21795_v48 = vld [vmem:[#allocation28_spill] sm:$0xff] }
 0x6d1   :  { %v16005_v25 = vpop.f32.mrf.mxu0  ;;  %v9417_v26 = vpack.c.bf16 %v20256_v21, %v9384_v32  ;;  %v9064_v8 = vadd.f32 %v20223_v22, %v8862_v29  ;;  %v8664_v38 = vadd.f32 %v21796_v60, %v8462_v6  ;;  %v21797_v22 = vld [vmem:[#allocation34_spill] sm:$0xff]  ;;  %v9067_v36 = vadd.f32 %v20237_v7, %v8865_v49  ;;  %v21800_v6 = vld [vmem:[#allocation63_spill] sm:$0xff]  ;;  %v21805_v29 = vld [vmem:[#allocation48_spill] sm:$0xff] }
 0x6d2   :  { %21781 = vst [vmem:[#allocation17_spill] sm:$0xff] %v20265_v50  ;;  %9330 = vst [vmem:[#allocation2 + $0x41] sm:$0xff] %v20265_v50  ;;  %v20274_v5 = vmax.f32 %v9296_v3, 0.0  ;;  %v9301_v13 = vadd.f32 %v9285_v43, %v21786_v31  ;;  %v9283_v28 = vadd.f32 %v20219_v4, %v9262_v0  ;;  %v9265_v44 = vadd.f32 %v16005_v25, %v9063_v17  ;;  %v21799_v3 = vld [vmem:[#allocation45_spill] sm:$0xff]  ;;  %v16994_v25 = vld [vmem:[#allocation3 + $0xbe8] sm:$0xff]  }
 0x6d3   :  { %v9214_v53 = vpop.f32.mrf.mxu0  ;;  %16030 = vmatprep.mubr.bf16.mxu1 %v9417_v26  ;;  %v8667_v17 = vadd.f32 %v21797_v22, %v8465_v23  ;;  %v8868_v7 = vadd.f32 %v20163_v20, %v8666_v35  ;;  %v15981_v26 = vpop.f32.mrf.mxu1  ;;  %v8866_v9 = vadd.f32 %v20179_v10, %v8664_v38  ;;  %v21809_v22 = vld [vmem:[#allocation29_spill] sm:$0xff] }
 0x6d4   :  { %21785 = vst [vmem:[#allocation37_spill] sm:$0xff] %v20274_v5  ;;  %9328 = vst [vmem:[#allocation2 + $0x21] sm:$0xff] %v20274_v5  ;;  %v20284_v63 = vmax.f32 %v9301_v13, 0.0  ;;  %v9299_v62 = vadd.f32 %v9283_v28, %v21791_v47  ;;  %v9286_v14 = vadd.f32 %v20219_v4, %v9265_v44  ;;  %v9263_v39 = vadd.f32 %v9214_v53, %v9061_v40  ;;  %v21802_v13 = vld [vmem:[#allocation56_spill] sm:$0xff]  ;;  %v21803_v44 = vld [vmem:[#allocation21_spill] sm:$0xff] }
 0x6d5   :  { %v16008_v52 = vpop.f32.mrf.mxu0  ;;  %v9418_v2 = vpack.c.bf16 %v20245_v1, %v20274_v5  ;;  %v9065_v40 = vadd.f32 %v20253_v56, %v8863_v41  ;;  %v8665_v15 = vadd.f32 %v21803_v44, %v8463_v55  ;;  %v9070_v35 = vadd.f32 %v15980_v30, %v8868_v7  ;;  %v16993_v55 = vld [vmem:[#allocation3 + $0xc30] sm:$0xff]   ;;  %v9044_v49 = vpop.f32.mrf.mxu1 }
 0x6d6   :  { %21790 = vst [vmem:[#allocation22_spill] sm:$0xff] %v20284_v63  ;;  %9333 = vst [vmem:[#allocation2 + $0x71] sm:$0xff] %v20284_v63  ;;  %v20295_v18 = vmax.f32 %v9299_v62, 0.0  ;;  %v9302_v32 = vadd.f32 %v9286_v14, %v21795_v48  ;;  %v9284_v11 = vadd.f32 %v20219_v4, %v9263_v39  ;;  %v9268_v37 = vadd.f32 %v16008_v52, %v9066_v61  ;;  %v20333_v14 = vld [vmem:[#allocation2 + $0x30] sm:$0xff]  ;;  %v9392_v48 = vld [vmem:[#allocation2 + $0xa1] sm:$0xff] }
 0x6d7   :  { %v9227_v16 = vpop.f32.mrf.mxu0  ;;  %v20303_v58 = vld [vmem:[#allocation2 + $0x10] sm:$0xff]  ;;  %16031 = vmatmul.mubr.bf16.vlgmr.msra.gmra.mxu1 %v9418_v2  ;;  %v9068_v30 = vadd.f32 %v9041_v19, %v8866_v9  ;;  %v8869_v10 = vadd.f32 %v20193_v46, %v8667_v17  ;;  %v21807_v2 = vld [vmem:[#allocation18_spill] sm:$0xff] }
 0x6d8   :  { %21794 = vst [vmem:[#allocation58_spill] sm:$0xff] %v20295_v18  ;;  %9331 = vst [vmem:[#allocation2 + $0x51] sm:$0xff] %v20295_v18  ;;  %v20306_v27 = vmax.f32 %v9302_v32, 0.0  ;;  %v9300_v43 = vadd.f32 %v9284_v11, %v21799_v3  ;;  %v9289_v0 = vadd.f32 %v20219_v4, %v9268_v37  ;;  %v9266_v45 = vadd.f32 %v9227_v16, %v9064_v8  ;;  %v21810_v16 = vld [vmem:[#allocation50_spill] sm:$0xff] }
 0x6d9   :  { %16079 = vmatpush3.bf16.msra.mxu1 %v21800_v6  ;;  %v16009_v57 = vpop.f32.mrf.mxu0  ;;  %v9376_v24 = vpack.c.bf16 %v20303_v58, %v20313_v51  ;;  %v9419_v34 = vpack.c.bf16 %v20295_v18, %v20265_v50  ;;  %v9071_v32 = vadd.f32 %v15981_v26, %v8869_v10  ;;  %v8867_v11 = vadd.f32 %v20209_v33, %v8665_v15  ;;  %v20357_v3 = vld [vmem:[#allocation2 + $0x40] sm:$0xff] }
 0x6da   :  { %21798 = vst [vmem:[#allocation54_spill] sm:$0xff] %v20306_v27  ;;  %16080 = vmatprep.subr.bf16.mxu1 %v16992_v54  ;;  %9334 = vst [vmem:[#allocation2 + $0x81] sm:$0xff] %v20306_v27  ;;  %v20320_v31 = vmax.f32 %v9300_v43, 0.0  ;;  %v9305_v56 = vadd.f32 %v9289_v0, %v21802_v13  ;;  %v9287_v20 = vadd.f32 %v20219_v4, %v9266_v45  ;;  %v16995_v45 = vld [vmem:[#allocation3 + $0xc28] sm:$0xff]  }
 0x6db   :  { %v9269_v28 = vadd.f32 %v16009_v57, %v9067_v36  ;;  %16062 = vmatprep.mubr.bf16.mxu0 %v9376_v24  ;;  %v9230_v23 = vpop.f32.mrf.mxu0  ;;  %v20326_v61 = vld [vmem:[#allocation2 + $0x20] sm:$0xff]  ;;  %16034 = vmatprep.mubr.bf16.mxu1 %v9419_v34  ;;  %v9069_v33 = vadd.f32 %v9044_v49, %v8867_v11  ;;  %v21812_v57 = vld [vmem:[#allocation57_spill] sm:$0xff] }
 0x6dc   :  { %21801 = vst [vmem:[#allocation32_spill] sm:$0xff] %v20320_v31  ;;  %9332 = vst [vmem:[#allocation2 + $0x61] sm:$0xff] %v20320_v31  ;;  %v20329_v59 = vmax.f32 %v9305_v56, 0.0  ;;  %v9303_v53 = vadd.f32 %v9287_v20, %v21805_v29  ;;  %v9267_v62 = vadd.f32 %v9230_v23, %v9065_v40  ;;  %v20338_v42 = vpack.c.bf16 %v20333_v14, %v20326_v61  ;;  %v16998_v40 = vld [vmem:[#allocation3 + $0xbd8] sm:$0xff]   ;;  %v21814_v20 = vld [vmem:[#allocation49_spill] sm:$0xff] }
 0x6dd   :  { %v9290_v47 = vadd.f32 %v20219_v4, %v9269_v28  ;;  %16081 = vmatpush3.bf16.msra.mxu1 %v16992_v54  ;;  %v16012_v39 = vpop.f32.mrf.mxu0  ;;  %v9420_v8 = vpack.c.bf16 %v20284_v63, %v20320_v31  ;;  %v16997_v23 = vld [vmem:[#allocation3 + $0xc20] sm:$0xff]  }
 0x6de   :  { %21804 = vst [vmem:[#allocation47_spill] sm:$0xff] %v20329_v59  ;;  %16082 = vmatprep.subr.bf16.mxu1 %v16994_v25  ;;  %9337 = vst [vmem:[#allocation2 + $0xd1] sm:$0xff] %v20329_v59  ;;  %v20343_v52 = vmax.f32 %v9303_v53, 0.0  ;;  %v9288_v46 = vadd.f32 %v20219_v4, %v9267_v62  ;;  %v9272_v19 = vadd.f32 %v16012_v39, %v9070_v35  ;;  %16063 = vmatmul.mubr.bf16.vlgmr.msra.gmra.mxu0 %v20338_v42  ;;  %v20377_v35 = vld [vmem:[#allocation2 + $0x70] sm:$0xff]  ;;  %v21816_v62 = vld [vmem:[#allocation42_spill] sm:$0xff] }
 0x6df   :  { %v9306_v54 = vadd.f32 %v9290_v47, %v21807_v2  ;;  %v9243_v37 = vpop.f32.mrf.mxu0  ;;  %v20349_v60 = vld [vmem:[#allocation2 + $0x50] sm:$0xff]  ;;  %16035 = vmatmul.mubr.bf16.gmra.mxu1 %v9420_v8  ;;  %16111 = vmatpush3.bf16.msra.mxu0 %v21810_v16  ;;  %v21818_v8 = vld [vmem:[#allocation12_spill] sm:$0xff] }
 0x6e0   :  { %21806 = vst [vmem:[#allocation61_spill] sm:$0xff] %v20343_v52  ;;  %9335 = vst [vmem:[#allocation2 + $0xb1] sm:$0xff] %v20343_v52  ;;  %v9304_v17 = vadd.f32 %v9288_v46, %v21809_v22  ;;  %v9293_v36 = vadd.f32 %v20219_v4, %v9272_v19  ;;  %v9270_v41 = vadd.f32 %v9243_v37, %v9068_v30  ;;  %16112 = vmatprep.subr.bf16.mxu0 %v16993_v55  ;;  %v17000_v53 = vld [vmem:[#allocation3 + $0xbd0] sm:$0xff]   ;;  %v9715_v37 = vld [vmem:[#allocation2 + $0x2] sm:$0xff] }
 0x6e1   :  { %v20352_v38 = vmax.f32 %v9306_v54, 0.0  ;;  %16083 = vmatpush3.bf16.msra.mxu1 %v16994_v25  ;;  %v16013_v43 = vpop.f32.mrf.mxu0  ;;  %v20361_v0 = vpack.c.bf16 %v20349_v60, %v20357_v3  ;;  %v9421_v6 = vpack.c.bf16 %v20343_v52, %v9392_v48  ;;  %v17002_v54 = vld [vmem:[#allocation3 + $0xbc8] sm:$0xff]   ;;  %v20415_v22 = vld [vmem:[#allocation2 + $0x12] sm:$0xff] }
 0x6e2   :  { %16084 = vmatprep.subr.bf16.mxu1 %v16996_v12  ;;  %v20365_v7 = vmax.f32 %v9304_v17, 0.0  ;;  %v9309_v24 = vadd.f32 %v9293_v36, %v21812_v57  ;;  %v9291_v34 = vadd.f32 %v20219_v4, %v9270_v41  ;;  %v9273_v25 = vadd.f32 %v16013_v43, %v9071_v32  ;;  %v17001_v17 = vld [vmem:[#allocation3 + $0xc10] sm:$0xff]   ;;  %v17004_v36 = vld [vmem:[#allocation3 + $0xbc0] sm:$0xff]  }
 0x6e3   :  { %21808 = vst [vmem:[#allocation33_spill] sm:$0xff] %v20352_v38  ;;  %9338 = vst [vmem:[#allocation2 + $0xe1] sm:$0xff] %v20352_v38  ;;  %16066 = vmatprep.mubr.bf16.mxu0 %v20361_v0  ;;  %v9246_v26 = vpop.f32.mrf.mxu0  ;;  %v20370_v13 = vld [vmem:[#allocation2 + $0x60] sm:$0xff]  ;;  %16038 = vmatprep.mubr.bf16.mxu1 %v9421_v6  ;;  %v17006_v6 = vld [vmem:[#allocation3 + $0xc78] sm:$0xff]  }
 0x6e4   :  { %21811 = vst [vmem:[#allocation13_spill] sm:$0xff] %v20365_v7  ;;  %9336 = vst [vmem:[#allocation2 + $0xc1] sm:$0xff] %v20365_v7  ;;  %v20373_v56 = vmax.f32 %v9309_v24, 0.0  ;;  %v9307_v28 = vadd.f32 %v9291_v34, %v21814_v20  ;;  %v9294_v44 = vadd.f32 %v20219_v4, %v9273_v25  ;;  %v9271_v15 = vadd.f32 %v9246_v26, %v9069_v33  ;;  %v20438_v25 = vld [vmem:[#allocation2 + $0x32] sm:$0xff]  ;;  %v17005_v20 = vld [vmem:[#allocation3 + $0xc00] sm:$0xff]  }
 0x6e5   :  { %16113 = vmatpush3.bf16.msra.mxu0 %v16993_v55  ;;  %16085 = vmatpush3.bf16.msra.mxu1 %v16996_v12  ;;  %v20381_v9 = vpack.c.bf16 %v20377_v35, %v20370_v13  ;;  %v9422_v29 = vpack.c.bf16 %v20329_v59, %v20365_v7  ;;  %v20406_v48 = vld [vmem:[#allocation2 + $0xd0] sm:$0xff]  ;;  %v9748_v33 = vpack.c.bf16 %v20415_v22, %v9715_v37  ;;  %v17013_v37 = vld [vmem:[#allocation3 + $0xca0] sm:$0xff]  }
 0x6e6   :  { %21813 = vst [vmem:[#allocation20_spill] sm:$0xff] %v20373_v56  ;;  %16114 = vmatprep.subr.bf16.mxu0 %v16995_v45  ;;  %16086 = vmatprep.subr.bf16.mxu1 %v16998_v40  ;;  %9341 = vst [vmem:[#allocation2 + $0x111] sm:$0xff] %v20373_v56  ;;  %v20386_v47 = vmax.f32 %v9307_v28, 0.0  ;;  %v9310_v30 = vadd.f32 %v9294_v44, %v21816_v62  ;;  %v9292_v10 = vadd.f32 %v20219_v4, %v9271_v15  ;;  %v16999_v4 = vld [vmem:[#allocation3 + $0xc18] sm:$0xff]   ;;  %v20448_v15 = vld [vmem:[#allocation2 + $0x42] sm:$0xff] }
 0x6e7   :  { %16067 = vmatmul.mubr.bf16.gmra.mxu0 %v20381_v9  ;;  %v20391_v39 = vld [vmem:[#allocation2 + $0xb0] sm:$0xff]  ;;  %16039 = vmatmul.mubr.bf16.gmra.mxu1 %v9422_v29  ;;  %v9950_v44 = vpack.c.bf16 %v20326_v61, %v20303_v58  ;;  %v20457_v62 = vld [vmem:[#allocation2 + $0x62] sm:$0xff] }
 0x6e8   :  { %21815 = vst [vmem:[#allocation51_spill] sm:$0xff] %v20386_v47  ;;  %9339 = vst [vmem:[#allocation2 + $0xf1] sm:$0xff] %v20386_v47  ;;  %v20394_v55 = vmax.f32 %v9310_v30, 0.0  ;;  %v9308_v12 = vadd.f32 %v9292_v10, %v21818_v8  ;;  %v9380_v49 = vpack.c.bf16 %v20391_v39, %v20313_v51  ;;  %v9423_v2 = vpack.c.bf16 %v20386_v47, %v20352_v38  ;;  %v20440_v26 = vld [vmem:[#allocation2 + $0x52] sm:$0xff]  ;;  %v9723_v61 = vld [vmem:[#allocation2 + $0xa2] sm:$0xff] }
 0x6e9   :  { %16115 = vmatpush3.bf16.msra.mxu0 %v16995_v45  ;;  %16087 = vmatpush3.bf16.msra.mxu1 %v16998_v40  ;;  %v17003_v45 = vld [vmem:[#allocation3 + $0xc08] sm:$0xff]   ;;  %v17008_v29 = vld [vmem:[#allocation3 + $0xc70] sm:$0xff]   ;;  %v9951_v30 = vpack.c.bf16 %v20357_v3, %v20333_v14 }
 0x6ea   :  { %21817 = vst [vmem:[#allocation59_spill] sm:$0xff] %v20394_v55  ;;  %16116 = vmatprep.subr.bf16.mxu0 %v16997_v23  ;;  %16088 = vmatprep.subr.bf16.mxu1 %v17000_v53  ;;  %9342 = vst [vmem:[#allocation2 + $0x121] sm:$0xff] %v20394_v55  ;;  %v20402_v46 = vmax.f32 %v9308_v12, 0.0  ;;  %v20418_v41 = vld [vmem:[#allocation2 + $0xe0] sm:$0xff]  ;;  %v20459_v58 = vld [vmem:[#allocation2 + $0x72] sm:$0xff] }
 0x6eb   :  { %16070 = vmatprep.mubr.bf16.mxu0 %v9380_v49  ;;  %16042 = vmatprep.mubr.bf16.mxu1 %v9423_v2  ;;  %v20404_v19 = vld [vmem:[#allocation2 + $0xc0] sm:$0xff]  ;;  %v17009_v10 = vld [vmem:[#allocation3 + $0xcb0] sm:$0xff]   ;;  %v20465_v8 = vpack.c.bf16 %v20459_v58, %v20457_v62  ;;  %v17010_v12 = vld [vmem:[#allocation3 + $0xc68] sm:$0xff]   ;;  %v9952_v2 = vpack.c.bf16 %v20370_v13, %v20349_v60 }
 0x6ec   :  { %21819 = vst [vmem:[#allocation15_spill] sm:$0xff] %v20402_v46  ;;  %9340 = vst [vmem:[#allocation2 + $0x101] sm:$0xff] %v20402_v46  ;;  %v20411_v32 = vpack.c.bf16 %v20406_v48, %v20404_v19  ;;  %v9424_v11 = vpack.c.bf16 %v20373_v56, %v20402_v46  ;;  %v20428_v40 = vld [vmem:[#allocation2 + $0x22] sm:$0xff]  ;;  %v20467_v49 = vld [vmem:[#allocation2 + $0xb2] sm:$0xff] }
 0x6ed   :  { %16117 = vmatpush3.bf16.msra.mxu0 %v16997_v23  ;;  %16089 = vmatpush3.bf16.msra.mxu1 %v17000_v53  ;;  %v20432_v24 = vld [vmem:[#allocation2 + $0x110] sm:$0xff]  ;;  %v20444_v28 = vpack.c.bf16 %v20438_v25, %v20428_v40  ;;  %v20454_v23 = vpack.c.bf16 %v20440_v26, %v20448_v15  ;;  %v17007_v53 = vld [vmem:[#allocation3 + $0xcb8] sm:$0xff]   ;;  %v9752_v14 = vpack.c.bf16 %v20467_v49, %v9723_v61  ;;  %v17011_v3 = vld [vmem:[#allocation3 + $0xca8] sm:$0xff]  }
 0x6ee   :  { %16118 = vmatprep.subr.bf16.mxu0 %v16999_v4  ;;  %16090 = vmatprep.subr.bf16.mxu1 %v17002_v54  ;;  %v20477_v60 = vld [vmem:[#allocation2 + $0xd2] sm:$0xff] }
 0x6ef   :  { %16071 = vmatmul.mubr.bf16.gmra.mxu0 %v20411_v32  ;;  %v20420_v16 = vld [vmem:[#allocation2 + $0xf0] sm:$0xff]  ;;  %16043 = vmatmul.mubr.bf16.gmra.mxu1 %v9424_v11  ;;  %v20475_v11 = vld [vmem:[#allocation2 + $0xc2] sm:$0xff] }
 0x6f0   :  { %v20425_v43 = vpack.c.bf16 %v20420_v16, %v20418_v41  ;;  %16094 = vmatprep.mubr.bf16.mxu1 %v9748_v33  ;;  %v20485_v33 = vld [vmem:[#allocation2 + $0xf2] sm:$0xff] }
 0x6f1   :  { %16119 = vmatpush3.bf16.msra.mxu0 %v16999_v4  ;;  %16091 = vmatpush3.bf16.msra.mxu1 %v17002_v54  ;;  %v17012_v4 = vld [vmem:[#allocation3 + $0xc60] sm:$0xff]  }
 0x6f2   :  { %16120 = vmatprep.subr.bf16.mxu0 %v17001_v17  ;;  %16074 = vmatprep.mubr.bf16.mxu0 %v20425_v43  ;;  %v20473_v54 = vld [vmem:[#allocation2 + $0x80] sm:$0xff] }
 0x6f3   :  { %16092 = vmatprep.subr.bf16.mxu1 %v17004_v36  ;;  %v20430_v57 = vld [vmem:[#allocation2 + $0x100] sm:$0xff]  ;;  %v9953_v13 = vpack.c.bf16 %v20473_v54, %v20377_v35 }
 0x6f4   :  { %v20436_v34 = vpack.c.bf16 %v20432_v24, %v20430_v57 }
 0x6f5   :  { %16121 = vmatpush3.bf16.msra.mxu0 %v17001_v17  ;;  %16093 = vmatpush3.bf16.msra.mxu1 %v17004_v36  ;;  %v20483_v17 = vpack.c.bf16 %v20477_v60, %v20475_v11  ;;  %v17014_v36 = vld [vmem:[#allocation3 + $0xc58] sm:$0xff]  }
 0x6f6   :  { %16122 = vmatprep.subr.bf16.mxu0 %v17003_v45  ;;  %16142 = vmatprep.subr.bf16.mxu1 %v17006_v6 }
 0x6f7   :  { %16075 = vmatmul.mubr.bf16.gmra.mxu0 %v20436_v34 }
 0x6f8   :  { %16095 = vmatmul.mubr.bf16.vlgmr.msra.gmra.mxu1 %v20444_v28  ;;  %16126 = vmatprep.mubr.bf16.mxu0 %v9950_v44  ;;  %v17015_v44 = vld [vmem:[#allocation3 + $0xc98] sm:$0xff]  }
 0x6f9   :  { %16123 = vmatpush3.bf16.msra.mxu0 %v17003_v45  ;;  %16098 = vmatprep.mubr.bf16.mxu1 %v20454_v23  ;;  %v9954_v45 = vpack.c.bf16 %v20404_v19, %v20391_v39  ;;  %v20497_v39 = vld [vmem:[#allocation2 + $0x102] sm:$0xff]  ;;  %v20499_v19 = vld [vmem:[#allocation2 + $0x112] sm:$0xff] }
 0x6fa   :  { %16124 = vmatprep.subr.bf16.mxu0 %v17005_v20  ;;  %16143 = vmatpush3.bf16.msra.mxu1 %v17006_v6  ;;  %v20490_v6 = vld [vmem:[#allocation2 + $0xe2] sm:$0xff]  ;;  %v20505_v61 = vpack.c.bf16 %v20499_v19, %v20497_v39 }
 0x6fb   :  { %16144 = vmatprep.subr.bf16.mxu1 %v17008_v29  ;;  %v20494_v35 = vpack.c.bf16 %v20485_v33, %v20490_v6 }
 0x6fd   :  { %16125 = vmatpush3.bf16.msra.mxu0 %v17005_v20  ;;  %v17016_v20 = vld [vmem:[#allocation3 + $0xc50] sm:$0xff]  }
 0x6fe   :  { %16174 = vmatprep.subr.bf16.mxu0 %v17007_v53  ;;  %16145 = vmatpush3.bf16.msra.mxu1 %v17008_v29  ;;  %v9955_v29 = vpack.c.bf16 %v20418_v41, %v20406_v48  ;;  %v10152_v48 = vpack.c.bf16 %v20274_v5, %v20256_v21  ;;  %v17019_v41 = vld [vmem:[#allocation3 + $0xc88] sm:$0xff]  }
 0x6ff   :  { %16146 = vmatprep.subr.bf16.mxu1 %v17010_v12 }
 0x700   :  { %16127 = vmatmul.mubr.bf16.vlgmr.msra.gmra.mxu0 %v9951_v30  ;;  %16099 = vmatmul.mubr.bf16.gmra.mxu1 %v20465_v8  ;;  %v17018_v30 = vld [vmem:[#allocation3 + $0xc48] sm:$0xff]  }
 0x701   :  { %16130 = vmatprep.mubr.bf16.mxu0 %v9952_v2  ;;  %16175 = vmatpush3.bf16.msra.mxu0 %v17007_v53  ;;  %v17017_v53 = vld [vmem:[#allocation3 + $0xc90] sm:$0xff]   ;;  %v20512_v2 = vld [vmem:[#allocation2 + $0x120] sm:$0xff] }
 0x702   :  { %16176 = vmatprep.subr.bf16.mxu0 %v17009_v10  ;;  %16102 = vmatprep.mubr.bf16.mxu1 %v9752_v14  ;;  %v10354_v14 = vpack.c.bf16 %v20428_v40, %v20415_v22  ;;  %v10355_v22 = vpack.c.bf16 %v20448_v15, %v20438_v25  ;;  %v17025_v40 = vld [vmem:[#allocation3 + $0xd30] sm:$0xff]   ;;  %v17027_v25 = vld [vmem:[#allocation3 + $0xd28] sm:$0xff]  }
 0x703   :  { %16147 = vmatpush3.bf16.msra.mxu1 %v17010_v12  ;;  %v17020_v12 = vld [vmem:[#allocation3 + $0xc40] sm:$0xff]  }
 0x704   :  { %16148 = vmatprep.subr.bf16.mxu1 %v17012_v4  ;;  %v20530_v15 = vld [vmem:[#allocation2 + $0x82] sm:$0xff] }
 0x705   :  { %16177 = vmatpush3.bf16.msra.mxu0 %v17009_v10  ;;  %v9956_v10 = vpack.c.bf16 %v20430_v57, %v20420_v16  ;;  %v9957_v16 = vpack.c.bf16 %v20512_v2, %v20432_v24  ;;  %v17021_v57 = vld [vmem:[#allocation3 + $0xc80] sm:$0xff]   ;;  %v17023_v24 = vld [vmem:[#allocation3 + $0xd38] sm:$0xff]  }
 0x706   :  { %16178 = vmatprep.subr.bf16.mxu0 %v17011_v3 }
 0x707   :  { %16149 = vmatpush3.bf16.msra.mxu1 %v17012_v4  ;;  %v17022_v4 = vld [vmem:[#allocation3 + $0xcf8] sm:$0xff]  }
 0x708   :  { %16131 = vmatmul.mubr.bf16.gmra.mxu0 %v9953_v13  ;;  %16103 = vmatmul.mubr.bf16.gmra.mxu1 %v20483_v17  ;;  %v17024_v13 = vld [vmem:[#allocation3 + $0xcf0] sm:$0xff]  }
 0x709   :  { %16134 = vmatprep.mubr.bf16.mxu0 %v9954_v45  ;;  %16179 = vmatpush3.bf16.msra.mxu0 %v17011_v3  ;;  %v10153_v3 = vpack.c.bf16 %v20265_v50, %v20245_v1  ;;  %v10356_v45 = vpack.c.bf16 %v20457_v62, %v20440_v26  ;;  %v17030_v26 = vld [vmem:[#allocation3 + $0xcd8] sm:$0xff]   ;;  %v10357_v62 = vpack.c.bf16 %v20530_v15, %v20459_v58 }
 0x70a   :  { %16180 = vmatprep.subr.bf16.mxu0 %v17013_v37  ;;  %16150 = vmatprep.subr.bf16.mxu1 %v17014_v36  ;;  %v17031_v58 = vld [vmem:[#allocation3 + $0xd18] sm:$0xff]  }
 0x70b   :  { %16106 = vmatprep.mubr.bf16.mxu1 %v20494_v35  ;;  %16151 = vmatpush3.bf16.msra.mxu1 %v17014_v36  ;;  %v17026_v36 = vld [vmem:[#allocation3 + $0xce8] sm:$0xff]  }
 0x70c   :  { %16152 = vmatprep.subr.bf16.mxu1 %v17016_v20 }
 0x70d   :  { %16181 = vmatpush3.bf16.msra.mxu0 %v17013_v37  ;;  %v10154_v37 = vpack.c.bf16 %v20320_v31, %v20295_v18 }
 0x70e   :  { %16182 = vmatprep.subr.bf16.mxu0 %v17015_v44 }
 0x70f   :  { %16153 = vmatpush3.bf16.msra.mxu1 %v17016_v20  ;;  %v10155_v20 = vpack.c.bf16 %v20306_v27, %v20284_v63 }
 0x710   :  { %16135 = vmatmul.mubr.bf16.gmra.mxu0 %v9955_v29  ;;  %16107 = vmatmul.mubr.bf16.gmra.mxu1 %v20505_v61  ;;  %v10156_v29 = vpack.c.bf16 %v20365_v7, %v20343_v52 }
 0x711   :  { %16138 = vmatprep.mubr.bf16.mxu0 %v9956_v10  ;;  %16183 = vmatpush3.bf16.msra.mxu0 %v17015_v44  ;;  %v17028_v44 = vld [vmem:[#allocation3 + $0xce0] sm:$0xff]   ;;  %v10157_v10 = vpack.c.bf16 %v20352_v38, %v20329_v59 }
 0x712   :  { %16184 = vmatprep.subr.bf16.mxu0 %v17017_v53  ;;  %16154 = vmatprep.subr.bf16.mxu1 %v17018_v30 }
 0x713   :  { %16155 = vmatpush3.bf16.msra.mxu1 %v17018_v30  ;;  %16158 = vmatprep.mubr.bf16.mxu1 %v10152_v48  ;;  %v10358_v30 = vpack.c.bf16 %v20475_v11, %v20467_v49  ;;  %v10158_v48 = vpack.c.bf16 %v20402_v46, %v20386_v47  ;;  %v10359_v49 = vpack.c.bf16 %v20490_v6, %v20477_v60  ;;  %v17033_v11 = vld [vmem:[#allocation3 + $0xd10] sm:$0xff]   ;;  %v10725_v60 = vld [vmem:[#allocation2 + $0x21] sm:$0xff] }
 0x714   :  { %16156 = vmatprep.subr.bf16.mxu1 %v17020_v12 }
 0x715   :  { %16185 = vmatpush3.bf16.msra.mxu0 %v17017_v53  ;;  %v17029_v53 = vld [vmem:[#allocation3 + $0xd20] sm:$0xff]  }
 0x716   :  { %16186 = vmatprep.subr.bf16.mxu0 %v17019_v41 }
 0x717   :  { %16157 = vmatpush3.bf16.msra.mxu1 %v17020_v12  ;;  %v17032_v12 = vld [vmem:[#allocation3 + $0xcd0] sm:$0xff]  }
 0x718   :  { %16139 = vmatmul.mubr.bf16.gmra.mxu0 %v9957_v16  ;;  %16206 = vmatprep.subr.bf16.mxu1 %v17022_v4  ;;  %v10159_v16 = vpack.c.bf16 %v20394_v55, %v20373_v56 }
 0x719   :  { %16187 = vmatpush3.bf16.msra.mxu0 %v17019_v41  ;;  %16190 = vmatprep.mubr.bf16.mxu0 %v10354_v14  ;;  %v17034_v41 = vld [vmem:[#allocation3 + $0xcc8] sm:$0xff]  }
 0x71a   :  { %16188 = vmatprep.subr.bf16.mxu0 %v17021_v57  ;;  %16159 = vmatmul.mubr.bf16.vlgmr.msra.gmra.mxu1 %v10153_v3  ;;  %v17035_v14 = vld [vmem:[#allocation3 + $0xd08] sm:$0xff]  }
 0x71b   :  { %16162 = vmatprep.mubr.bf16.mxu1 %v10154_v37  ;;  %16207 = vmatpush3.bf16.msra.mxu1 %v17022_v4  ;;  %v10360_v4 = vpack.c.bf16 %v20497_v39, %v20485_v33  ;;  %v20546_v3 = vld [vmem:[#allocation2 + $0x122] sm:$0xff]  ;;  %v17038_v33 = vld [vmem:[#allocation3 + $0xd78] sm:$0xff]  }
 0x71c   :  { %16208 = vmatprep.subr.bf16.mxu1 %v17024_v13  ;;  %v10361_v6 = vpack.c.bf16 %v20546_v3, %v20499_v19  ;;  %v10726_v39 = vld [vmem:[#allocation2 + $0x31] sm:$0xff]  ;;  %v17040_v19 = vld [vmem:[#allocation3 + $0xd68] sm:$0xff]  }
 0x71d   :  { %16189 = vmatpush3.bf16.msra.mxu0 %v17021_v57  ;;  %v17036_v57 = vld [vmem:[#allocation3 + $0xcc0] sm:$0xff]   ;;  %v10758_v37 = vpack.c.bf16 %v10726_v39, %v10725_v60 }
 0x71e   :  { %16238 = vmatprep.subr.bf16.mxu0 %v17023_v24 }
 0x71f   :  { %16209 = vmatpush3.bf16.msra.mxu1 %v17024_v13  ;;  %v17037_v13 = vld [vmem:[#allocation3 + $0xd00] sm:$0xff]  }
 0x720   :  { %16191 = vmatmul.mubr.bf16.vlgmr.msra.gmra.mxu0 %v10355_v22  ;;  %16210 = vmatprep.subr.bf16.mxu1 %v17026_v36  ;;  %v10727_v22 = vld [vmem:[#allocation2 + $0x41] sm:$0xff] }
 0x721   :  { %16194 = vmatprep.mubr.bf16.mxu0 %v10356_v45  ;;  %16239 = vmatpush3.bf16.msra.mxu0 %v17023_v24  ;;  %v17039_v24 = vld [vmem:[#allocation3 + $0xd70] sm:$0xff]  }
 0x722   :  { %16240 = vmatprep.subr.bf16.mxu0 %v17025_v40  ;;  %16163 = vmatmul.mubr.bf16.gmra.mxu1 %v10155_v20  ;;  %v10730_v45 = vld [vmem:[#allocation2 + $0x71] sm:$0xff] }
 0x723   :  { %16166 = vmatprep.mubr.bf16.mxu1 %v10156_v29  ;;  %16211 = vmatpush3.bf16.msra.mxu1 %v17026_v36  ;;  %v10729_v36 = vld [vmem:[#allocation2 + $0x61] sm:$0xff] }
 0x724   :  { %16212 = vmatprep.subr.bf16.mxu1 %v17028_v44  ;;  %v10760_v20 = vpack.c.bf16 %v10730_v45, %v10729_v36  ;;  %v17041_v29 = vld [vmem:[#allocation3 + $0xd60] sm:$0xff]  }
 0x725   :  { %16241 = vmatpush3.bf16.msra.mxu0 %v17025_v40 }
 0x726   :  { %16242 = vmatprep.subr.bf16.mxu0 %v17027_v25 }
 0x727   :  { %16213 = vmatpush3.bf16.msra.mxu1 %v17028_v44  ;;  %v10559_v44 = vpack.c.bf16 %v20313_v51, %v20473_v54  ;;  %v10735_v54 = vld [vmem:[#allocation2 + $0xe1] sm:$0xff] }
 0x728   :  { %16195 = vmatmul.mubr.bf16.gmra.mxu0 %v10357_v62  ;;  %16214 = vmatprep.subr.bf16.mxu1 %v17030_v26 }
 0x729   :  { %16198 = vmatprep.mubr.bf16.mxu0 %v10358_v30  ;;  %16243 = vmatpush3.bf16.msra.mxu0 %v17027_v25  ;;  %v10734_v25 = vld [vmem:[#allocation2 + $0xd1] sm:$0xff] }
 0x72a   :  { %16244 = vmatprep.subr.bf16.mxu0 %v17029_v53  ;;  %16167 = vmatmul.mubr.bf16.gmra.mxu1 %v10157_v10  ;;  %v17043_v30 = vld [vmem:[#allocation3 + $0xd50] sm:$0xff]  }
 0x72b   :  { %16170 = vmatprep.mubr.bf16.mxu1 %v10158_v48  ;;  %16215 = vmatpush3.bf16.msra.mxu1 %v17030_v26  ;;  %v17042_v26 = vld [vmem:[#allocation3 + $0xd58] sm:$0xff]  }
 0x72c   :  { %16216 = vmatprep.subr.bf16.mxu1 %v17032_v12  ;;  %v10738_v10 = vld [vmem:[#allocation2 + $0x111] sm:$0xff] }
 0x72d   :  { %16245 = vmatpush3.bf16.msra.mxu0 %v17029_v53  ;;  %v10762_v53 = vpack.c.bf16 %v10734_v25, %v20365_v7  ;;  %v10764_v48 = vpack.c.bf16 %v10738_v10, %v20402_v46  ;;  %v17060_v10 = vld [vmem:[#allocation3 + $0xdc0] sm:$0xff]  }
 0x72e   :  { %16246 = vmatprep.subr.bf16.mxu0 %v17031_v58 }
 0x72f   :  { %16217 = vmatpush3.bf16.msra.mxu1 %v17032_v12  ;;  %v10763_v12 = vpack.c.bf16 %v20386_v47, %v10735_v54 }
 0x730   :  { %16199 = vmatmul.mubr.bf16.gmra.mxu0 %v10359_v49  ;;  %16218 = vmatprep.subr.bf16.mxu1 %v17034_v41  ;;  %v10934_v49 = vld [vmem:[#allocation2 + $0x92] sm:$0xff] }
 0x731   :  { %16202 = vmatprep.mubr.bf16.mxu0 %v10360_v4  ;;  %16247 = vmatpush3.bf16.msra.mxu0 %v17031_v58  ;;  %v10563_v58 = vpack.c.bf16 %v20313_v51, %v20512_v2  ;;  %v10963_v51 = vpack.c.bf16 %v10934_v49, %v20530_v15  ;;  %v17050_v15 = vld [vmem:[#allocation3 + $0xde8] sm:$0xff]  }
 0x732   :  { %16248 = vmatprep.subr.bf16.mxu0 %v17033_v11  ;;  %16171 = vmatmul.mubr.bf16.gmra.mxu1 %v10159_v16 }
 0x733   :  { %16219 = vmatpush3.bf16.msra.mxu1 %v17034_v41  ;;  %16222 = vmatprep.mubr.bf16.mxu1 %v20338_v42  ;;  %v10728_v42 = vld [vmem:[#allocation2 + $0x51] sm:$0xff]  ;;  %v17045_v41 = vld [vmem:[#allocation3 + $0xd40] sm:$0xff]  }
 0x734   :  { %16220 = vmatprep.subr.bf16.mxu1 %v17036_v57  ;;  %v10759_v40 = vpack.c.bf16 %v10728_v42, %v10727_v22 }
 0x735   :  { %16249 = vmatpush3.bf16.msra.mxu0 %v17033_v11  ;;  %v17046_v11 = vld [vmem:[#allocation3 + $0xdf8] sm:$0xff]  }
 0x736   :  { %16250 = vmatprep.subr.bf16.mxu0 %v17035_v14 }
 0x737   :  { %16221 = vmatpush3.bf16.msra.mxu1 %v17036_v57 }
 0x738   :  { %16203 = vmatmul.mubr.bf16.gmra.mxu0 %v10361_v6  ;;  %16270 = vmatprep.subr.bf16.mxu1 %v17038_v33 }
 0x739   :  { %16251 = vmatpush3.bf16.msra.mxu0 %v17035_v14  ;;  %16254 = vmatprep.mubr.bf16.mxu0 %v10758_v37  ;;  %v17051_v14 = vld [vmem:[#allocation3 + $0xda8] sm:$0xff]  }
 0x73a   :  { %16252 = vmatprep.subr.bf16.mxu0 %v17037_v13  ;;  %16223 = vmatmul.mubr.bf16.vlgmr.msra.gmra.mxu1 %v20361_v0  ;;  %v10731_v0 = vld [vmem:[#allocation2 + $0x81] sm:$0xff] }
 0x73b   :  { %16226 = vmatprep.mubr.bf16.mxu1 %v20381_v9  ;;  %16271 = vmatpush3.bf16.msra.mxu1 %v17038_v33  ;;  %v10732_v9 = vld [vmem:[#allocation2 + $0x91] sm:$0xff] }
 0x73c   :  { %16272 = vmatprep.subr.bf16.mxu1 %v17039_v24  ;;  %v10761_v62 = vpack.c.bf16 %v10732_v9, %v10731_v0  ;;  %v17054_v33 = vld [vmem:[#allocation3 + $0xdd8] sm:$0xff]   ;;  %v17058_v0 = vld [vmem:[#allocation3 + $0xdc8] sm:$0xff]  }
 0x73d   :  { %16253 = vmatpush3.bf16.msra.mxu0 %v17037_v13 }
 0x73e   :  { %16302 = vmatprep.subr.bf16.mxu0 %v17046_v11 }
 0x73f   :  { %16273 = vmatpush3.bf16.msra.mxu1 %v17039_v24  ;;  %v17053_v24 = vld [vmem:[#allocation3 + $0xda0] sm:$0xff]  }
 0x740   :  { %16255 = vmatmul.mubr.bf16.vlgmr.msra.gmra.mxu0 %v10759_v40  ;;  %16274 = vmatprep.subr.bf16.mxu1 %v17040_v19 }
 0x741   :  { %16258 = vmatprep.mubr.bf16.mxu0 %v10760_v20  ;;  %16303 = vmatpush3.bf16.msra.mxu0 %v17046_v11  ;;  %v17055_v20 = vld [vmem:[#allocation3 + $0xd98] sm:$0xff]   ;;  %v17061_v11 = vld [vmem:[#allocation3 + $0xd80] sm:$0xff]  }
 0x742   :  { %16227 = vmatmul.mubr.bf16.gmra.mxu1 %v10559_v44 }
 0x743   :  { %16230 = vmatprep.mubr.bf16.mxu1 %v20411_v32  ;;  %16275 = vmatpush3.bf16.msra.mxu1 %v17040_v19  ;;  %v17044_v32 = vld [vmem:[#allocation3 + $0xd48] sm:$0xff]   ;;  %v17056_v19 = vld [vmem:[#allocation3 + $0xdd0] sm:$0xff]  }
 0x744   :  { %16276 = vmatprep.subr.bf16.mxu1 %v17041_v29 }
 0x747   :  { %16277 = vmatpush3.bf16.msra.mxu1 %v17041_v29 }
 0x748   :  { %16259 = vmatmul.mubr.bf16.gmra.mxu0 %v10761_v62  ;;  %16278 = vmatprep.subr.bf16.mxu1 %v17042_v26 }
 0x749   :  { %16262 = vmatprep.mubr.bf16.mxu0 %v10762_v53  ;;  %v17057_v53 = vld [vmem:[#allocation3 + $0xd90] sm:$0xff]  }
 0x74a   :  { %16231 = vmatmul.mubr.bf16.gmra.mxu1 %v20425_v43  ;;  %v10740_v43 = vld [vmem:[#allocation2 + $0x131] sm:$0xff] }
 0x74b   :  { %16234 = vmatprep.mubr.bf16.mxu1 %v20436_v34  ;;  %16279 = vmatpush3.bf16.msra.mxu1 %v17042_v26  ;;  %v10765_v34 = vpack.c.bf16 %v10740_v43, %v20394_v55 }
 0x74c   :  { %16280 = vmatprep.subr.bf16.mxu1 %v17043_v30 }
 0x74f   :  { %16281 = vmatpush3.bf16.msra.mxu1 %v17043_v30 }
 0x750   :  { %16263 = vmatmul.mubr.bf16.gmra.mxu0 %v10763_v12  ;;  %16282 = vmatprep.subr.bf16.mxu1 %v17044_v32 }
 0x751   :  { %16266 = vmatprep.mubr.bf16.mxu0 %v10764_v48 }
 0x752   :  { %16235 = vmatmul.mubr.bf16.gmra.mxu1 %v10563_v58  ;;  %v17059_v58 = vld [vmem:[#allocation3 + $0xd88] sm:$0xff]  }
 0x753   :  { %16283 = vmatpush3.bf16.msra.mxu1 %v17044_v32  ;;  %16286 = vmatprep.mubr.bf16.mxu1 %v20444_v28  ;;  %v10942_v28 = vld [vmem:[#allocation2 + $0x132] sm:$0xff] }
 0x754   :  { %16284 = vmatprep.subr.bf16.mxu1 %v17045_v41  ;;  %v10967_v2 = vpack.c.bf16 %v10942_v28, %v20546_v3 }
 0x757   :  { %16285 = vmatpush3.bf16.msra.mxu1 %v17045_v41 }
 0x758   :  { %16267 = vmatmul.mubr.bf16.gmra.mxu0 %v10765_v34  ;;  %v20586_v34 = vld [vmem:[#allocation3 + $0xe38] sm:$0xff]  }
 0x759   :  { %21820 = vst [vmem:[#allocation41_spill] sm:$0xff] %v20586_v34 }
 0x75a   :  { %16287 = vmatmul.mubr.bf16.vlgmr.msra.gmra.mxu1 %v20454_v23  ;;  %v17048_v23 = vld [vmem:[#allocation3 + $0xdf0] sm:$0xff]  }
 0x75b   :  { %16290 = vmatprep.mubr.bf16.mxu1 %v20465_v8  ;;  %16304 = vmatprep.subr.bf16.mxu0 %v17048_v23  ;;  %v17047_v8 = vld [vmem:[#allocation3 + $0xdb8] sm:$0xff]  }
 0x75c   :  { %16305 = vmatpush3.bf16.msra.mxu0 %v17048_v23  ;;  %16334 = vmatprep.subr.bf16.mxu1 %v17047_v8 }
 0x75d   :  { %16335 = vmatpush3.bf16.msra.mxu1 %v17047_v8  ;;  %16306 = vmatprep.subr.bf16.mxu0 %v17050_v15 }
 0x760   :  { %16307 = vmatpush3.bf16.msra.mxu0 %v17050_v15 }
 0x762   :  { %16291 = vmatmul.mubr.bf16.gmra.mxu1 %v10963_v51 }
 0x763   :  { %16294 = vmatprep.mubr.bf16.mxu1 %v20483_v17  ;;  %v17049_v17 = vld [vmem:[#allocation3 + $0xdb0] sm:$0xff]  }
 0x764   :  { %16336 = vmatprep.subr.bf16.mxu1 %v17049_v17 }
 0x765   :  { %16337 = vmatpush3.bf16.msra.mxu1 %v17049_v17  ;;  %v20593_v17 = vld [vmem:[#allocation3 + $0xe78] sm:$0xff]  }
 0x766   :  { %16338 = vmatprep.subr.bf16.mxu1 %v17051_v14  ;;  %21821 = vst [vmem:[#allocation14_spill] sm:$0xff] %v20593_v17 }
 0x769   :  { %16339 = vmatpush3.bf16.msra.mxu1 %v17051_v14 }
 0x76a   :  { %16295 = vmatmul.mubr.bf16.gmra.mxu1 %v20494_v35  ;;  %16340 = vmatprep.subr.bf16.mxu1 %v17053_v24 }
 0x76b   :  { %16298 = vmatprep.mubr.bf16.mxu1 %v20505_v61  ;;  %v17052_v61 = vld [vmem:[#allocation3 + $0xde0] sm:$0xff]  }
 0x76c   :  { %16308 = vmatprep.subr.bf16.mxu0 %v17052_v61 }
 0x76d   :  { %16309 = vmatpush3.bf16.msra.mxu0 %v17052_v61  ;;  %16341 = vmatpush3.bf16.msra.mxu1 %v17053_v24 }
 0x76e   :  { %16310 = vmatprep.subr.bf16.mxu0 %v17054_v33  ;;  %16342 = vmatprep.subr.bf16.mxu1 %v17055_v20 }
 0x771   :  { %16311 = vmatpush3.bf16.msra.mxu0 %v17054_v33  ;;  %16343 = vmatpush3.bf16.msra.mxu1 %v17055_v20 }
 0x772   :  { %16299 = vmatmul.mubr.bf16.gmra.mxu1 %v10967_v2  ;;  %16312 = vmatprep.subr.bf16.mxu0 %v17056_v19 }
 0x773   :  { %16344 = vmatprep.subr.bf16.mxu1 %v17057_v53 }
 0x775   :  { %16313 = vmatpush3.bf16.msra.mxu0 %v17056_v19  ;;  %16345 = vmatpush3.bf16.msra.mxu1 %v17057_v53 }
 0x776   :  { %16314 = vmatprep.subr.bf16.mxu0 %v17058_v0  ;;  %16346 = vmatprep.subr.bf16.mxu1 %v17059_v58 }
 0x779   :  { %16315 = vmatpush3.bf16.msra.mxu0 %v17058_v0  ;;  %16347 = vmatpush3.bf16.msra.mxu1 %v17059_v58 }
 0x77a   :  { %16316 = vmatprep.subr.bf16.mxu0 %v17060_v10  ;;  %16348 = vmatprep.subr.bf16.mxu1 %v17061_v11 }
 0x77d   :  { %16317 = vmatpush3.bf16.msra.mxu0 %v17060_v10  ;;  %16349 = vmatpush3.bf16.msra.mxu1 %v17061_v11 }
 0x77e   :  { %16366 = vmatprep.subr.bf16.mxu0 %v20586_v34  ;;  %16398 = vmatprep.subr.bf16.mxu1 %v20593_v17 }
 0x797   :  { %v16032_v4 = vpop.f32.mrf.mxu1 }
 0x799   :  { %v9507_v16 = vpop.f32.mrf.mxu1 }
 0x79b   :  { %v16033_v35 = vpop.f32.mrf.mxu1 }
 0x79d   :  { %v20572_v57 = vpop.f32.mrf.mxu1 }
 0x79e   :  { %v16064_v3 = vpop.f32.mrf.mxu0 }
 0x79f   :  { %v16036_v60 = vpop.f32.mrf.mxu1  ;;  %v20574_v6 = vadd.f32 %v16064_v3, %v16032_v4 }
 0x7a0   :  { %v9652_v39 = vpop.f32.mrf.mxu0 }
 0x7a1   :  { %v9523_v13 = vpop.f32.mrf.mxu1  ;;  %v20576_v37 = vadd.f32 %v9652_v39, %v9507_v16 }
 0x7a2   :  { %v16065_v42 = vpop.f32.mrf.mxu0 }
 0x7a3   :  { %v16037_v36 = vpop.f32.mrf.mxu1  ;;  %v9664_v22 = vadd.f32 %v16065_v42, %v16033_v35 }
 0x7a4   :  { %v20578_v40 = vpop.f32.mrf.mxu0 }
 0x7a5   :  { %v20580_v45 = vpop.f32.mrf.mxu1 }
 0x7a7   :  { %v16068_v44 = vpop.f32.mrf.mxu0  ;;  %v16040_v29 = vpop.f32.mrf.mxu1 }
 0x7a8   :  { %v9677_v9 = vadd.f32 %v16068_v44, %v16036_v60 }
 0x7a9   :  { %v9668_v25 = vpop.f32.mrf.mxu0  ;;  %v9539_v26 = vpop.f32.mrf.mxu1 }
 0x7aa   :  { %v9669_v62 = vadd.f32 %v9668_v25, %v9523_v13 }
 0x7ab   :  { %v16069_v30 = vpop.f32.mrf.mxu0  ;;  %v16041_v54 = vpop.f32.mrf.mxu1 }
 0x7ac   :  { %v9680_v32 = vadd.f32 %v16069_v30, %v16037_v36 }
 0x7ad   :  { %v20582_v12 = vpop.f32.mrf.mxu0  ;;  %v20584_v48 = vpop.f32.mrf.mxu1 }
 0x7af   :  { %v16072_v41 = vpop.f32.mrf.mxu0  ;;  %v16044_v43 = vpop.f32.mrf.mxu1 }
 0x7b0   :  { %v9693_v49 = vadd.f32 %v16072_v41, %v16040_v29 }
 0x7b1   :  { %v9684_v51 = vpop.f32.mrf.mxu0  ;;  %v9555_v28 = vpop.f32.mrf.mxu1 }
 0x7b2   :  { %v9685_v2 = vadd.f32 %v9684_v51, %v9539_v26 }
 0x7b3   :  { %v16073_v23 = vpop.f32.mrf.mxu0  ;;  %v16045_v8 = vpop.f32.mrf.mxu1 }
 0x7b4   :  { %v9696_v4 = vadd.f32 %v16073_v23, %v16041_v54 }
 0x7b5   :  { %v20589_v15 = vpop.f32.mrf.mxu0  ;;  %v20591_v16 = vpop.f32.mrf.mxu1 }
 0x7b7   :  { %v16076_v35 = vpop.f32.mrf.mxu0 }
 0x7b8   :  { %v16096_v61 = vpop.f32.mrf.mxu1  ;;  %v9709_v14 = vadd.f32 %v16076_v35, %v16044_v43 }
 0x7b9   :  { %v20596_v3 = vadd.f32 %v16096_v61, %v20574_v6  ;;  %v9700_v60 = vpop.f32.mrf.mxu0 }
 0x7ba   :  { %v9838_v33 = vpop.f32.mrf.mxu1  ;;  %v9701_v39 = vadd.f32 %v9700_v60, %v9555_v28 }
 0x7bb   :  { %v20600_v13 = vadd.f32 %v9838_v33, %v20576_v37  ;;  %v16077_v24 = vpop.f32.mrf.mxu0 }
 0x7bc   :  { %v16097_v42 = vpop.f32.mrf.mxu1  ;;  %v9712_v36 = vadd.f32 %v16077_v24, %v16045_v8 }
 0x7bd   :  { %v20602_v19 = vadd.f32 %v16097_v42, %v9664_v22  ;;  %v20604_v20 = vpop.f32.mrf.mxu0 }
 0x7be   :  { %v20606_v44 = vpop.f32.mrf.mxu1 }
 0x7c0   :  { %v20608_v29 = vpop.f32.mrf.mxu0  ;;  %v16100_v6 = vpop.f32.mrf.mxu1 }
 0x7c1   :  { %v20610_v0 = vadd.f32 %v16100_v6, %v9677_v9 }
 0x7c2   :  { %v20612_v25 = vpop.f32.mrf.mxu0  ;;  %v9854_v26 = vpop.f32.mrf.mxu1 }
 0x7c3   :  { %v20614_v53 = vadd.f32 %v9854_v26, %v9669_v62 }
 0x7c4   :  { %v20616_v37 = vpop.f32.mrf.mxu0  ;;  %v16101_v30 = vpop.f32.mrf.mxu1 }
 0x7c5   :  { %v20618_v54 = vadd.f32 %v16101_v30, %v9680_v32 }
 0x7c6   :  { %v20620_v22 = vpop.f32.mrf.mxu0  ;;  %v20622_v10 = vpop.f32.mrf.mxu1 }
 0x7c8   :  { %v20624_v58 = vpop.f32.mrf.mxu0  ;;  %v16104_v41 = vpop.f32.mrf.mxu1 }
 0x7c9   :  { %v20626_v43 = vadd.f32 %v16104_v41, %v9693_v49 }
 0x7ca   :  { %v20628_v9 = vpop.f32.mrf.mxu0  ;;  %v9870_v51 = vpop.f32.mrf.mxu1 }
 0x7cb   :  { %v20630_v28 = vadd.f32 %v9870_v51, %v9685_v2 }
 0x7cc   :  { %v20632_v62 = vpop.f32.mrf.mxu0  ;;  %v16105_v11 = vpop.f32.mrf.mxu1 }
 0x7cd   :  { %v20634_v23 = vadd.f32 %v16105_v11, %v9696_v4 }
 0x7ce   :  { %v20636_v32 = vpop.f32.mrf.mxu0  ;;  %v20638_v8 = vpop.f32.mrf.mxu1 }
 0x7d0   :  { %v20640_v35 = vpop.f32.mrf.mxu0  ;;  %v16108_v61 = vpop.f32.mrf.mxu1 }
 0x7d1   :  { %v20642_v60 = vadd.f32 %v16108_v61, %v9709_v14 }
 0x7d2   :  { %v20644_v49 = vpop.f32.mrf.mxu0  ;;  %v9886_v33 = vpop.f32.mrf.mxu1 }
 0x7d3   :  { %v20646_v24 = vadd.f32 %v9886_v33, %v9701_v39 }
 0x7d4   :  { %v20648_v2 = vpop.f32.mrf.mxu0  ;;  %v16109_v42 = vpop.f32.mrf.mxu1 }
 0x7d5   :  { %v20650_v6 = vadd.f32 %v16109_v42, %v9712_v36 }
 0x7d6   :  { %v20652_v4 = vpop.f32.mrf.mxu0  ;;  %v20654_v26 = vpop.f32.mrf.mxu1 }
 0x7d8   :  { %v20656_v30 = vpop.f32.mrf.mxu0 }
 0x7da   :  { %v20658_v41 = vpop.f32.mrf.mxu0  ;;  %v16160_v14 = vpop.f32.mrf.mxu1 }
 0x7dc   :  { %v20660_v51 = vpop.f32.mrf.mxu0  ;;  %v20662_v11 = vpop.f32.mrf.mxu1 }
 0x7dd   :  { %21822 = vst [vmem:[#allocation25_spill] sm:$0xff] %v20660_v51 }
 0x7de   :  { %v20664_v39 = vpop.f32.mrf.mxu0  ;;  %v20666_v61 = vpop.f32.mrf.mxu1 }
 0x7df   :  { %21823 = vst [vmem:[#allocation27_spill] sm:$0xff] %v20664_v39 }
 0x7e0   :  { %v16192_v33 = vpop.f32.mrf.mxu0  ;;  %v20668_v36 = vpop.f32.mrf.mxu1 }
 0x7e2   :  { %v20670_v42 = vpop.f32.mrf.mxu0  ;;  %v20672_v46 = vpop.f32.mrf.mxu1 }
 0x7e4   :  { %v20674_v55 = vpop.f32.mrf.mxu0  ;;  %v20676_v47 = vpop.f32.mrf.mxu1 }
 0x7e5   :  { %21824 = vst [vmem:[#allocation52_spill] sm:$0xff] %v20676_v47 }
 0x7e6   :  { %v20678_v31 = vpop.f32.mrf.mxu0  ;;  %v20680_v56 = vpop.f32.mrf.mxu1 }
 0x7e7   :  { %21825 = vst [vmem:[#allocation23_spill] sm:$0xff] %v20680_v56 }
 0x7e8   :  { %v20682_v27 = vpop.f32.mrf.mxu0  ;;  %v20684_v7 = vpop.f32.mrf.mxu1 }
 0x7e9   :  { %21826 = vst [vmem:[#allocation39_spill] sm:$0xff] %v20682_v27  ;;  %21827 = vst [vmem:[#allocation55_spill] sm:$0xff] %v20684_v7 }
 0x7ea   :  { %v20686_v18 = vpop.f32.mrf.mxu0  ;;  %v20688_v38 = vpop.f32.mrf.mxu1 }
 0x7eb   :  { %21828 = vst [vmem:[#allocation64_spill] sm:$0xff] %v20686_v18  ;;  %21829 = vst [vmem:[#allocation60_spill] sm:$0xff] %v20688_v38 }
 0x7ec   :  { %v20690_v63 = vpop.f32.mrf.mxu0  ;;  %v20692_v52 = vpop.f32.mrf.mxu1 }
 0x7ed   :  { %21830 = vst [vmem:[#allocation16_spill] sm:$0xff] %v20690_v63  ;;  %21831 = vst [vmem:[#allocation36_spill] sm:$0xff] %v20692_v52 }
 0x7ee   :  { %v20694_v5 = vpop.f32.mrf.mxu0  ;;  %v20696_v59 = vpop.f32.mrf.mxu1 }
 0x7ef   :  { %21832 = vst [vmem:[#allocation24_spill] sm:$0xff] %v20694_v5  ;;  %21833 = vst [vmem:[#allocation26_spill] sm:$0xff] %v20696_v59 }
 0x7f0   :  { %v20698_v50 = vpop.f32.mrf.mxu0  ;;  %v20700_v21 = vpop.f32.mrf.mxu1 }
 0x7f1   :  { %21834 = vst [vmem:[#allocation44_spill] sm:$0xff] %v20698_v50  ;;  %21835 = vst [vmem:[#allocation62_spill] sm:$0xff] %v20700_v21 }
 0x7f2   :  { %v20702_v1 = vpop.f32.mrf.mxu0  ;;  %v20704_v17 = vpop.f32.mrf.mxu1 }
 0x7f3   :  { %21836 = vst [vmem:[#allocation19_spill] sm:$0xff] %v20702_v1  ;;  %21837 = vst [vmem:[#allocation35_spill] sm:$0xff] %v20704_v17 }
 0x7f4   :  { %v20706_v34 = vpop.f32.mrf.mxu0  ;;  %v20708_v7 = vpop.f32.mrf.mxu1 }
 0x7f5   :  { %21838 = vst [vmem:[#allocation38_spill] sm:$0xff] %v20706_v34  ;;  %21839 = vst [vmem:[#allocation43_spill] sm:$0xff] %v20708_v7 }
 0x7f6   :  { %v20710_v38 = vpop.f32.mrf.mxu0  ;;  %v20712_v63 = vpop.f32.mrf.mxu1 }
 0x7f7   :  { %21840 = vst [vmem:[#allocation40_spill] sm:$0xff] %v20710_v38  ;;  %21841 = vst [vmem:[#allocation46_spill] sm:$0xff] %v20712_v63 }
 0x7f8   :  { %v20714_v52 = vpop.f32.mrf.mxu0  ;;  %v20716_v5 = vpop.f32.mrf.mxu1 }
 0x7f9   :  { %21842 = vst [vmem:[#allocation28_spill] sm:$0xff] %v20714_v52  ;;  %21843 = vst [vmem:[#allocation53_spill] sm:$0xff] %v20716_v5 }
 0x7fa   :  { %v20718_v59 = vpop.f32.mrf.mxu0  ;;  %v16224_v50 = vpop.f32.mrf.mxu1 }
 0x7fb   :  { %21844 = vst [vmem:[#allocation34_spill] sm:$0xff] %v20718_v59 }
 0x7fc   :  { %v20720_v21 = vpop.f32.mrf.mxu0  ;;  %v10646_v1 = vpop.f32.mrf.mxu1 }
 0x7fd   :  { %21845 = vst [vmem:[#allocation45_spill] sm:$0xff] %v20720_v21 }
 0x7fe   :  { %v20722_v56 = vpop.f32.mrf.mxu0  ;;  %v16225_v17 = vpop.f32.mrf.mxu1 }
 0x7ff   :  { %21846 = vst [vmem:[#allocation63_spill] sm:$0xff] %v20722_v56 }
 0x800   :  { %v16256_v34 = vpop.f32.mrf.mxu0  ;;  %v20724_v18 = vpop.f32.mrf.mxu1 }
 0x801   :  { %21847 = vst [vmem:[#allocation56_spill] sm:$0xff] %v20724_v18 }
 0x802   :  { %v10848_v7 = vpop.f32.mrf.mxu0  ;;  %v20726_v38 = vpop.f32.mrf.mxu1 }
 0x803   :  { %21848 = vst [vmem:[#allocation21_spill] sm:$0xff] %v20726_v38 }
 0x804   :  { %v16257_v63 = vpop.f32.mrf.mxu0  ;;  %v20728_v39 = vpop.f32.mrf.mxu1 }
 0x805   :  { %21849 = vst [vmem:[#allocation48_spill] sm:$0xff] %v20728_v39  ;;  %v10105_v39 = vadd.f32 %v20608_v29, %v20596_v3  ;;  %v9704_v3 = vadd.f32 %v20604_v20, %v20591_v16 }
 0x806   :  { %v20730_v52 = vpop.f32.mrf.mxu0  ;;  %v20732_v5 = vpop.f32.mrf.mxu1 }
 0x807   :  { %21850 = vst [vmem:[#allocation18_spill] sm:$0xff] %v20732_v5  ;;  %v9656_v5 = vadd.f32 %v20578_v40, %v20572_v57  ;;  %v10106_v40 = vadd.f32 %v20616_v37, %v20602_v19 }
 0x808   :  { %v20734_v59 = vpop.f32.mrf.mxu0  ;;  %v20736_v21 = vpop.f32.mrf.mxu1 }
 0x809   :  { %21851 = vst [vmem:[#allocation29_spill] sm:$0xff] %v20734_v59  ;;  %21852 = vst [vmem:[#allocation50_spill] sm:$0xff] %v20736_v21  ;;  %v10307_v21 = vadd.f32 %v16160_v14, %v10105_v39  ;;  %v9902_v29 = vadd.f32 %v20606_v44, %v9656_v5  ;;  %v10110_v5 = vadd.f32 %v20632_v62, %v20618_v54  ;;  %v21861_v39 = vld [vmem:[#allocation27_spill] sm:$0xff] }
 0x80a   :  { %v20738_v47 = vpop.f32.mrf.mxu1  ;;  %v20740_v56 = vpop.f32.mrf.mxu0  ;;  %v10113_v44 = vadd.f32 %v20640_v35, %v20626_v43  ;;  %v20803_v43 = vadd.f32 %v20656_v30, %v20642_v60  ;;  %v21857_v60 = vld [vmem:[#allocation25_spill] sm:$0xff] }
 0x80b   :  { %21853 = vst [vmem:[#allocation57_spill] sm:$0xff] %v20738_v47  ;;  %v9672_v47 = vadd.f32 %v20582_v12, %v20580_v45  ;;  %v10509_v12 = vadd.f32 %v16192_v33, %v10307_v21  ;;  %v10308_v21 = vadd.f32 %v20666_v61, %v10106_v40  ;;  %v21863_v33 = vld [vmem:[#allocation23_spill] sm:$0xff] }
 0x80c   :  { %v20742_v27 = vpop.f32.mrf.mxu1  ;;  %v20746_v38 = vpop.f32.mrf.mxu0 }
 0x80d   :  { %21854 = vst [vmem:[#allocation49_spill] sm:$0xff] %v20742_v27  ;;  %v10103_v27 = vadd.f32 %v20612_v25, %v20600_v13  ;;  %v9906_v45 = vadd.f32 %v20622_v10, %v9672_v47  ;;  %v10104_v25 = vadd.f32 %v20620_v22, %v9902_v29  ;;  %v10510_v22 = vadd.f32 %v20674_v55, %v10308_v21 }
 0x80e   :  { %v20744_v18 = vpop.f32.mrf.mxu1 }
 0x80f   :  { %21855 = vst [vmem:[#allocation42_spill] sm:$0xff] %v20744_v18  ;;  %v20760_v18 = vpop.f32.mrf.mxu0  ;;  %v10305_v13 = vadd.f32 %v20662_v11, %v10103_v27  ;;  %v10108_v19 = vadd.f32 %v20636_v32, %v9906_v45  ;;  %v10711_v27 = vadd.f32 %v16224_v50, %v10509_v12  ;;  %v10306_v10 = vadd.f32 %v20668_v36, %v10104_v25  ;;  %v20807_v32 = vld [vmem:[#allocation6 + $0x5] ss:$0 sm:$0xff] }
 0x810   :  { %v20748_v51 = vpop.f32.mrf.mxu1  ;;  %v10712_v35 = vadd.f32 %v16225_v17, %v10510_v22  ;;  %v10312_v36 = vadd.f32 %v21863_v33, %v10110_v5  ;;  %v11223_v22 = vld [vmem:[#allocation2 + $0x1] sm:$0xff] }
 0x811   :  { %21856 = vst [vmem:[#allocation12_spill] sm:$0xff] %v20748_v51  ;;  %v9688_v51 = vadd.f32 %v20589_v15, %v20584_v48  ;;  %v10109_v48 = vadd.f32 %v20624_v58, %v20610_v0  ;;  %v10107_v15 = vadd.f32 %v20628_v9, %v20614_v53  ;;  %v10507_v47 = vadd.f32 %v20670_v42, %v10305_v13  ;;  %v20785_v20 = vpop.f32.mrf.mxu0  ;;  %v21865_v13 = vld [vmem:[#allocation16_spill] sm:$0xff] }
 0x812   :  { %v20754_v59 = vpop.f32.mrf.mxu1  ;;  %v10111_v0 = vadd.f32 %v20644_v49, %v20630_v28  ;;  %v10114_v53 = vadd.f32 %v20648_v2, %v20634_v23  ;;  %v10913_v50 = vadd.f32 %v16256_v34, %v10711_v27  ;;  %v9914_v28 = vadd.f32 %v20654_v26, %v9704_v3  ;;  %v21859_v26 = vld [vmem:[#allocation52_spill] sm:$0xff] }
 0x813   :  { %v9910_v37 = vadd.f32 %v20638_v8, %v9688_v51  ;;  %v10709_v58 = vadd.f32 %v10646_v1, %v10507_v47  ;;  %v10311_v62 = vadd.f32 %v20672_v46, %v10109_v48  ;;  %v10508_v55 = vadd.f32 %v20678_v31, %v10306_v10  ;;  %v20810_v34 = vpop.f32.mrf.mxu0  ;;  %v21860_v31 = vld [vmem:[#allocation56_spill] sm:$0xff]  ;;  %v21866_v48 = vld [vmem:[#allocation55_spill] sm:$0xff]  ;;  %v21869_v10 = vld [vmem:[#allocation29_spill] sm:$0xff] }
 0x814   :  { %v20767_v57 = vpop.f32.mrf.mxu1  ;;  %v20814_v49 = vadd.f32 %v20658_v41, %v20646_v24  ;;  %v20818_v2 = vadd.f32 %v21857_v60, %v20650_v6  ;;  %v10309_v30 = vadd.f32 %v21859_v26, %v10107_v15  ;;  %v10914_v51 = vadd.f32 %v16257_v63, %v10712_v35  ;;  %v21862_v24 = vld [vmem:[#allocation64_spill] sm:$0xff]  ;;  %v21864_v6 = vld [vmem:[#allocation21_spill] sm:$0xff] }
 0x815   :  { %v20799_v9 = vadd.f32 %v20652_v4, %v9910_v37  ;;  %v10911_v8 = vadd.f32 %v10848_v7, %v10709_v58  ;;  %v21858_v4 = vld [vmem:[#allocation39_spill] sm:$0xff]  ;;  %v10710_v7 = vadd.f32 %v21860_v31, %v10508_v55  ;;  %v20825_v61 = vadd.f32 %v21861_v39, %v9914_v28  ;;  %v20831_v40 = vpop.f32.mrf.mxu0  ;;  %v21867_v47 = vld [vmem:[#allocation60_spill] sm:$0xff]  ;;  %v21874_v31 = vld [vmem:[#allocation26_spill] sm:$0xff] }
 0x816   :  { %v20780_v16 = vpop.f32.mrf.mxu1  ;;  %v10513_v46 = vadd.f32 %v21858_v4, %v10311_v62  ;;  %v10511_v41 = vadd.f32 %v21862_v24, %v10309_v30  ;;  %v10514_v25 = vadd.f32 %v21865_v13, %v10312_v36  ;;  %v10310_v15 = vadd.f32 %v21866_v48, %v10108_v19  ;;  %v21868_v27 = vld [vmem:[#allocation48_spill] sm:$0xff]  ;;  %v21876_v36 = vld [vmem:[#allocation19_spill] sm:$0xff] }
 0x817   :  { %v10912_v29 = vadd.f32 %v20730_v52, %v10710_v7  ;;  %v10315_v21 = vadd.f32 %v21867_v47, %v10113_v44  ;;  %v21870_v62 = vld [vmem:[#allocation24_spill] sm:$0xff]  ;;  %v21872_v44 = vld [vmem:[#allocation18_spill] sm:$0xff]  ;;  %v20849_v60 = vpop.f32.mrf.mxu0  ;;  %v17064_v47 = vld [vmem:[#allocation3 + $0xe30] sm:$0xff]  }
 0x818   :  { %v20794_v54 = vpop.f32.mrf.mxu1  ;;  %v10715_v42 = vadd.f32 %v21864_v6, %v10513_v46  ;;  %v10713_v5 = vadd.f32 %v21868_v27, %v10511_v41  ;;  %v21871_v55 = vld [vmem:[#allocation36_spill] sm:$0xff]  ;;  %v10716_v35 = vadd.f32 %v21872_v44, %v10514_v25  ;;  %v21875_v7 = vld [vmem:[#allocation50_spill] sm:$0xff] }
 0x819   :  { %v21885_v44 = vld [vmem:[#allocation42_spill] sm:$0xff] }
 0x81a   :  { %v16288_v23 = vpop.f32.mrf.mxu1  ;;  %v10915_v19 = vadd.f32 %v20740_v56, %v10713_v5  ;;  %v10918_v56 = vadd.f32 %v20746_v38, %v10716_v35  ;;  %v21881_v5 = vld [vmem:[#allocation43_spill] sm:$0xff] }
 0x81b   :  { %v11115_v1 = vadd.f32 %v16288_v23, %v10913_v50  ;;  %v10917_v50 = vadd.f32 %v21869_v10, %v10715_v42  ;;  %v10512_v23 = vadd.f32 %v21870_v62, %v10310_v15 }
 0x81c   :  { %v11050_v14 = vpop.f32.mrf.mxu1 }
 0x81d   :  { %v11136_v17 = vadd.f32 %v20807_v32, %v11115_v1  ;;  %v11113_v11 = vadd.f32 %v11050_v14, %v10911_v8  ;;  %v10313_v8 = vadd.f32 %v21871_v55, %v10111_v0  ;;  %v21873_v14 = vld [vmem:[#allocation44_spill] sm:$0xff]  ;;  %v10316_v0 = vadd.f32 %v21874_v31, %v10114_v53  ;;  %v21877_v53 = vld [vmem:[#allocation62_spill] sm:$0xff]  ;;  %v20900_v31 = vld [vmem:[#allocation2] sm:$0xff] }
 0x81e   :  { %v16289_v3 = vpop.f32.mrf.mxu1  ;;  %v10314_v42 = vadd.f32 %v21877_v53, %v20799_v9  ;;  %v21883_v55 = vld [vmem:[#allocation40_spill] sm:$0xff] }
 0x81f   :  { %v20833_v63 = vmax.f32 %v11136_v17, 0.0  ;;  %v11134_v45 = vadd.f32 %v20807_v32, %v11113_v11  ;;  %v11116_v12 = vadd.f32 %v16289_v3, %v10914_v51  ;;  %v10517_v51 = vadd.f32 %v21873_v14, %v10315_v21  ;;  %v21878_v3 = vld [vmem:[#allocation57_spill] sm:$0xff]  ;;  %v21879_v21 = vld [vmem:[#allocation38_spill] sm:$0xff] }
 0x820   :  { %v11053_v37 = vpop.f32.mrf.mxu1  ;;  %v10714_v17 = vadd.f32 %v21875_v7, %v10512_v23  ;;  %v10515_v6 = vadd.f32 %v21876_v36, %v10313_v8  ;;  %v10518_v9 = vadd.f32 %v21879_v21, %v10316_v0  ;;  %v10516_v8 = vadd.f32 %v21883_v55, %v10314_v42  ;;  %v21887_v0 = vld [vmem:[#allocation28_spill] sm:$0xff]  ;;  %v21888_v7 = vld [vmem:[#allocation34_spill] sm:$0xff] }
 0x821   :  { %11168 = vst [vmem:[#allocation2 + $0x31] sm:$0xff] %v20833_v63  ;;  %v20842_v52 = vmax.f32 %v11134_v45, 0.0  ;;  %v11137_v58 = vadd.f32 %v20807_v32, %v11116_v12  ;;  %v11114_v28 = vadd.f32 %v11053_v37, %v10912_v29  ;;  %v10719_v29 = vadd.f32 %v21878_v3, %v10517_v51  ;;  %v20871_v12 = vpop.f32.mrf.mxu0 }
 0x822   :  { %v16292_v1 = vpop.f32.mrf.mxu1  ;;  %v10916_v38 = vadd.f32 %v20760_v18, %v10714_v17  ;;  %v21880_v18 = vld [vmem:[#allocation35_spill] sm:$0xff]  ;;  %v10317_v37 = vadd.f32 %v21881_v5, %v20814_v49  ;;  %v10720_v35 = vadd.f32 %v21885_v44, %v10518_v9 }
 0x823   :  { %11166 = vst [vmem:[#allocation2 + $0x11] sm:$0xff] %v20842_v52  ;;  %v20852_v4 = vmax.f32 %v11137_v58, 0.0  ;;  %v11135_v46 = vadd.f32 %v20807_v32, %v11114_v28  ;;  %v11119_v26 = vadd.f32 %v16292_v1, %v10917_v50  ;;  %v11256_v30 = vpack.c.bf16 %v20842_v52, %v11223_v22  ;;  %v21882_v22 = vld [vmem:[#allocation49_spill] sm:$0xff] }
 0x824   :  { %v11066_v11 = vpop.f32.mrf.mxu1  ;;  %v10319_v27 = vadd.f32 %v21880_v18, %v20803_v43  ;;  %v10717_v10 = vadd.f32 %v21882_v22, %v10515_v6  ;;  %v10921_v58 = vadd.f32 %v20785_v20, %v10719_v29  ;;  %v21884_v43 = vld [vmem:[#allocation46_spill] sm:$0xff]  ;;  %v21886_v20 = vld [vmem:[#allocation41_spill] sm:$0xff]  ;;  %v10519_v17 = vadd.f32 %v21888_v7, %v10317_v37 }
 0x825   :  { %11169 = vst [vmem:[#allocation2 + $0x41] sm:$0xff] %v20852_v4  ;;  %v20861_v39 = vmax.f32 %v11135_v46, 0.0  ;;  %v11140_v24 = vadd.f32 %v20807_v32, %v11119_v26  ;;  %v11117_v41 = vadd.f32 %v11066_v11, %v10915_v19  ;;  %16318 = vmatprep.mubr.bf16.mxu0 %v11256_v30  ;;  %v11992_v33 = vpack.c.bf16 %v20852_v4, %v20833_v63  ;;  %v10896_v26 = vpop.f32.mrf.mxu0  ;;  %v21889_v11 = vld [vmem:[#allocation12_spill] sm:$0xff]  ;;  %v17065_v18 = vld [vmem:[#allocation3 + $0xe70] sm:$0xff]  }
 0x826   :  { %v16293_v45 = vpop.f32.mrf.mxu1  ;;  %v10320_v19 = vadd.f32 %v21884_v43, %v20818_v2  ;;  %v10919_v49 = vadd.f32 %v20810_v34, %v10717_v10  ;;  %v17066_v34 = vld [vmem:[#allocation3 + $0xe28] sm:$0xff]   ;;  %v10922_v6 = vadd.f32 %v20831_v40, %v10720_v35  ;;  %v10721_v22 = vadd.f32 %v20767_v57, %v10519_v17 }
 0x827   :  { %11167 = vst [vmem:[#allocation2 + $0x21] sm:$0xff] %v20861_v39  ;;  %v20874_v13 = vmax.f32 %v11140_v24, 0.0  ;;  %v11138_v25 = vadd.f32 %v20807_v32, %v11117_v41  ;;  %v11120_v48 = vadd.f32 %v16293_v45, %v10918_v56  ;;  %v11257_v15 = vpack.c.bf16 %v20833_v63, %v20861_v39  ;;  %v11231_v43 = vld [vmem:[#allocation2 + $0xa1] sm:$0xff] }
 0x828   :  { %v11069_v50 = vpop.f32.mrf.mxu1  ;;  %v10521_v56 = vadd.f32 %v21887_v0, %v10319_v27  ;;  %v10718_v24 = vadd.f32 %v21889_v11, %v10516_v8  ;;  %v21890_v27 = vld [vmem:[#allocation45_spill] sm:$0xff]  ;;  %v10923_v57 = vadd.f32 %v10896_v26, %v10721_v22 }
 0x829   :  { %11172 = vst [vmem:[#allocation2 + $0x71] sm:$0xff] %v20874_v13  ;;  %v20887_v28 = vmax.f32 %v11138_v25, 0.0  ;;  %v11141_v62 = vadd.f32 %v20807_v32, %v11120_v48  ;;  %v11118_v23 = vadd.f32 %v11069_v50, %v10916_v38  ;;  %16319 = vmatmul.mubr.bf16.vlgmr.msra.gmra.mxu0 %v11257_v15  ;;  %v20917_v48 = vld [vmem:[#allocation2 + $0x30] sm:$0xff]  ;;  %v16269_v15 = vpop.f32.mrf.mxu0  ;;  %v10522_v5 = vadd.f32 %v21890_v27, %v10320_v19 }
 0x82a   :  { %v16296_v1 = vpop.f32.mrf.mxu1  ;;  %v20895_v46 = vld [vmem:[#allocation2 + $0x10] sm:$0xff]  ;;  %16367 = vmatpush3.bf16.msra.mxu0 %v21886_v20  ;;  %v10920_v3 = vadd.f32 %v20849_v60, %v10718_v24  ;;  %v10723_v29 = vadd.f32 %v20754_v59, %v10521_v56  ;;  %v17070_v56 = vld [vmem:[#allocation3 + $0xe18] sm:$0xff]  }
 0x82b   :  { %11170 = vst [vmem:[#allocation2 + $0x51] sm:$0xff] %v20887_v28  ;;  %v11157_v30 = vmax.f32 %v11141_v62, 0.0  ;;  %v11139_v14 = vadd.f32 %v20807_v32, %v11118_v23  ;;  %v11123_v51 = vadd.f32 %v16296_v1, %v10921_v58  ;;  %v11215_v2 = vpack.c.bf16 %v20895_v46, %v20900_v31  ;;  %16368 = vmatprep.subr.bf16.mxu0 %v17064_v47  ;;  %v17068_v58 = vld [vmem:[#allocation3 + $0xe20] sm:$0xff]   ;;  %v10899_v1 = vpop.f32.mrf.mxu0 }
 0x82c   :  { %v11082_v41 = vpop.f32.mrf.mxu1  ;;  %v11258_v36 = vpack.c.bf16 %v20887_v28, %v20852_v4  ;;  %v10925_v62 = vadd.f32 %v20871_v12, %v10723_v29  ;;  %v20945_v35 = vld [vmem:[#allocation2 + $0x40] sm:$0xff]  ;;  %v17099_v4 = vld [vmem:[#allocation3 + $0xf68] sm:$0xff]  }
 0x82d   :  { %11173 = vst [vmem:[#allocation2 + $0x81] sm:$0xff] %v11157_v30  ;;  %v20910_v53 = vmax.f32 %v11139_v14, 0.0  ;;  %v11144_v42 = vadd.f32 %v20807_v32, %v11123_v51  ;;  %v11121_v38 = vadd.f32 %v11082_v41, %v10919_v49  ;;  %16350 = vmatprep.mubr.bf16.mxu1 %v11215_v2  ;;  %v20920_v40 = vpack.c.bf16 %v11157_v30, %v20874_v13 }
 0x82e   :  { %v16297_v45 = vpop.f32.mrf.mxu1  ;;  %v20915_v25 = vld [vmem:[#allocation2 + $0x20] sm:$0xff]  ;;  %16322 = vmatprep.mubr.bf16.mxu0 %v11258_v36  ;;  %16369 = vmatpush3.bf16.msra.mxu0 %v17064_v47  ;;  %v21891_v47 = vld [vmem:[#allocation53_spill] sm:$0xff]  ;;  %v10724_v49 = vadd.f32 %v20780_v16, %v10522_v5  ;;  %v17067_v16 = vld [vmem:[#allocation3 + $0xe68] sm:$0xff]  }
 0x82f   :  { %11171 = vst [vmem:[#allocation2 + $0x61] sm:$0xff] %v20910_v53  ;;  %v20923_v21 = vmax.f32 %v11144_v42, 0.0  ;;  %v11142_v9 = vadd.f32 %v20807_v32, %v11121_v38  ;;  %v11124_v60 = vadd.f32 %v16297_v45, %v10922_v6  ;;  %v20928_v59 = vpack.c.bf16 %v20917_v48, %v20915_v25  ;;  %16370 = vmatprep.subr.bf16.mxu0 %v17066_v34  ;;  %v17069_v45 = vld [vmem:[#allocation3 + $0xe60] sm:$0xff]  }
 0x830   :  { %v10318_v37 = vadd.f32 %v21891_v47, %v20825_v61  ;;  %v11085_v10 = vpop.f32.mrf.mxu1  ;;  %v11259_v50 = vpack.c.bf16 %v20874_v13, %v20910_v53  ;;  %v21892_v61 = vld [vmem:[#allocation63_spill] sm:$0xff]  ;;  %v21893_v13 = vld [vmem:[#allocation14_spill] sm:$0xff]  ;;  %v10926_v7 = vadd.f32 %v16269_v15, %v10724_v49 }
 0x831   :  { %11176 = vst [vmem:[#allocation2 + $0xd1] sm:$0xff] %v20923_v21  ;;  %v20938_v23 = vmax.f32 %v11142_v9, 0.0  ;;  %v11145_v55 = vadd.f32 %v20807_v32, %v11124_v60  ;;  %v11122_v8 = vadd.f32 %v11085_v10, %v10920_v3  ;;  %16351 = vmatmul.mubr.bf16.vlgmr.msra.gmra.mxu1 %v20928_v59  ;;  %v17072_v60 = vld [vmem:[#allocation3 + $0xe10] sm:$0xff]   ;;  %v11554_v49 = vld [vmem:[#allocation2 + $0x2] sm:$0xff] }
 0x832   :  { %v10520_v19 = vadd.f32 %v21892_v61, %v10318_v37  ;;  %v16300_v44 = vpop.f32.mrf.mxu1  ;;  %16399 = vmatpush3.bf16.msra.mxu1 %v21893_v13  ;;  %v20947_v12 = vld [vmem:[#allocation2 + $0x50] sm:$0xff]  ;;  %16323 = vmatmul.mubr.bf16.gmra.mxu0 %v11259_v50  ;;  %v17071_v50 = vld [vmem:[#allocation3 + $0xe58] sm:$0xff]   ;;  %v17076_v13 = vld [vmem:[#allocation3 + $0xe00] sm:$0xff]  }
 0x833   :  { %11174 = vst [vmem:[#allocation2 + $0xb1] sm:$0xff] %v20938_v23  ;;  %v20950_v20 = vmax.f32 %v11145_v55, 0.0  ;;  %v11143_v30 = vadd.f32 %v20807_v32, %v11122_v8  ;;  %v11127_v14 = vadd.f32 %v16300_v44, %v10925_v62  ;;  %v20955_v26 = vpack.c.bf16 %v20947_v12, %v20945_v35  ;;  %16400 = vmatprep.subr.bf16.mxu1 %v17065_v18  ;;  %v17074_v62 = vld [vmem:[#allocation3 + $0xe08] sm:$0xff]   ;;  %v21013_v44 = vld [vmem:[#allocation2 + $0x12] sm:$0xff] }
 0x834   :  { %16371 = vmatpush3.bf16.msra.mxu0 %v17066_v34  ;;  %v10722_v51 = vadd.f32 %v20794_v54, %v10520_v19  ;;  %v11098_v2 = vpop.f32.mrf.mxu1  ;;  %v11260_v0 = vpack.c.bf16 %v20938_v23, %v11231_v43  ;;  %v20966_v54 = vld [vmem:[#allocation2 + $0x70] sm:$0xff] }
 0x835   :  { %16372 = vmatprep.subr.bf16.mxu0 %v17068_v58  ;;  %11177 = vst [vmem:[#allocation2 + $0xe1] sm:$0xff] %v20950_v20  ;;  %v20960_v17 = vmax.f32 %v11143_v30, 0.0  ;;  %v11148_v11 = vadd.f32 %v20807_v32, %v11127_v14  ;;  %v11125_v24 = vadd.f32 %v11098_v2, %v10923_v57  ;;  %16354 = vmatprep.mubr.bf16.mxu1 %v20955_v26  ;;  %v17073_v19 = vld [vmem:[#allocation3 + $0xe50] sm:$0xff]   ;;  %v17078_v2 = vld [vmem:[#allocation3 + $0xeb8] sm:$0xff]  }
 0x836   :  { %v10924_v41 = vadd.f32 %v10899_v1, %v10722_v51  ;;  %v16301_v36 = vpop.f32.mrf.mxu1  ;;  %16401 = vmatpush3.bf16.msra.mxu1 %v17065_v18  ;;  %v20964_v34 = vld [vmem:[#allocation2 + $0x60] sm:$0xff]  ;;  %16326 = vmatprep.mubr.bf16.mxu0 %v11260_v0  ;;  %v11996_v6 = vpack.c.bf16 %v20950_v20, %v20923_v21  ;;  %v11587_v14 = vpack.c.bf16 %v21013_v44, %v11554_v49  ;;  %v17075_v51 = vld [vmem:[#allocation3 + $0xe48] sm:$0xff]  }
 0x837   :  { %11175 = vst [vmem:[#allocation2 + $0xc1] sm:$0xff] %v20960_v17  ;;  %v20971_v42 = vmax.f32 %v11148_v11, 0.0  ;;  %v11146_v38 = vadd.f32 %v20807_v32, %v11125_v24  ;;  %v11128_v3 = vadd.f32 %v16301_v36, %v10926_v7  ;;  %v20976_v29 = vpack.c.bf16 %v20966_v54, %v20964_v34  ;;  %16402 = vmatprep.subr.bf16.mxu1 %v17067_v16  ;;  %v21031_v7 = vld [vmem:[#allocation2 + $0x22] sm:$0xff] }
 0x838   :  { %16373 = vmatpush3.bf16.msra.mxu0 %v17068_v58  ;;  %v11101_v15 = vpop.f32.mrf.mxu1  ;;  %v11261_v9 = vpack.c.bf16 %v20923_v21, %v20960_v17  ;;  %v21002_v43 = vld [vmem:[#allocation2 + $0xd0] sm:$0xff]  ;;  %v17077_v24 = vld [vmem:[#allocation3 + $0xe40] sm:$0xff]   ;;  %v11789_v36 = vpack.c.bf16 %v20915_v25, %v20895_v46  ;;  %v17079_v46 = vld [vmem:[#allocation3 + $0xef8] sm:$0xff]   ;;  %v11995_v63 = vpack.c.bf16 %v20960_v17, %v20938_v23 }
 0x839   :  { %16374 = vmatprep.subr.bf16.mxu0 %v17070_v56  ;;  %11180 = vst [vmem:[#allocation2 + $0x111] sm:$0xff] %v20971_v42  ;;  %v20981_v18 = vmax.f32 %v11146_v38, 0.0  ;;  %v11149_v27 = vadd.f32 %v20807_v32, %v11128_v3  ;;  %v11126_v5 = vadd.f32 %v11101_v15, %v10924_v41  ;;  %16355 = vmatmul.mubr.bf16.gmra.mxu1 %v20976_v29  ;;  %v21037_v41 = vld [vmem:[#allocation2 + $0x52] sm:$0xff]  ;;  %v17082_v25 = vld [vmem:[#allocation3 + $0xea8] sm:$0xff]   ;;  %v21072_v49 = vld [vmem:[#allocation2 + $0x80] sm:$0xff] }
 0x83a   :  { %16403 = vmatpush3.bf16.msra.mxu1 %v17067_v16  ;;  %v20985_v47 = vld [vmem:[#allocation2 + $0xb0] sm:$0xff]  ;;  %16327 = vmatmul.mubr.bf16.gmra.mxu0 %v11261_v9  ;;  %v17107_v21 = vld [vmem:[#allocation3 + $0xf48] sm:$0xff]  }
 0x83b   :  { %11178 = vst [vmem:[#allocation2 + $0xf1] sm:$0xff] %v20981_v18  ;;  %v20988_v37 = vmax.f32 %v11149_v27, 0.0  ;;  %v11147_v22 = vadd.f32 %v20807_v32, %v11126_v5  ;;  %v11219_v10 = vpack.c.bf16 %v20985_v47, %v20900_v31  ;;  %16404 = vmatprep.subr.bf16.mxu1 %v17069_v45  ;;  %v11262_v58 = vpack.c.bf16 %v20981_v18, %v20950_v20  ;;  %v21041_v38 = vld [vmem:[#allocation2 + $0x32] sm:$0xff] }
 0x83c   :  { %16375 = vmatpush3.bf16.msra.mxu0 %v17070_v56  ;;  %v21016_v1 = vld [vmem:[#allocation2 + $0xe0] sm:$0xff]  ;;  %v21046_v3 = vpack.c.bf16 %v21041_v38, %v21031_v7  ;;  %v17080_v15 = vld [vmem:[#allocation3 + $0xeb0] sm:$0xff]   ;;  %v11790_v27 = vpack.c.bf16 %v20945_v35, %v20917_v48  ;;  %v17083_v35 = vld [vmem:[#allocation3 + $0xee8] sm:$0xff]  }
 0x83d   :  { %16376 = vmatprep.subr.bf16.mxu0 %v17072_v60  ;;  %11181 = vst [vmem:[#allocation2 + $0x121] sm:$0xff] %v20988_v37  ;;  %v20996_v55 = vmax.f32 %v11147_v22, 0.0  ;;  %16358 = vmatprep.mubr.bf16.mxu1 %v11219_v10  ;;  %v11998_v32 = vpack.c.bf16 %v20988_v37, %v20971_v42  ;;  %v17081_v5 = vld [vmem:[#allocation3 + $0xef0] sm:$0xff]   ;;  %v11562_v22 = vld [vmem:[#allocation2 + $0xa2] sm:$0xff] }
 0x83e   :  { %16330 = vmatprep.mubr.bf16.mxu0 %v11262_v58  ;;  %16405 = vmatpush3.bf16.msra.mxu1 %v17069_v45  ;;  %v21000_v8 = vld [vmem:[#allocation2 + $0xc0] sm:$0xff]  ;;  %v21060_v10 = vld [vmem:[#allocation2 + $0xb2] sm:$0xff] }
 0x83f   :  { %11179 = vst [vmem:[#allocation2 + $0x101] sm:$0xff] %v20996_v55  ;;  %v21007_v61 = vpack.c.bf16 %v21002_v43, %v21000_v8  ;;  %16406 = vmatprep.subr.bf16.mxu1 %v17071_v50  ;;  %v21011_v57 = vpack.c.bf16 %v20971_v42, %v20996_v55  ;;  %v21048_v45 = vld [vmem:[#allocation2 + $0x42] sm:$0xff]  ;;  %v21064_v58 = vld [vmem:[#allocation2 + $0x72] sm:$0xff]  ;;  %v11591_v48 = vpack.c.bf16 %v21060_v10, %v11562_v22 }
 0x840   :  { %16377 = vmatpush3.bf16.msra.mxu0 %v17072_v60  ;;  %v21029_v56 = vld [vmem:[#allocation2 + $0x110] sm:$0xff]  ;;  %v21052_v9 = vpack.c.bf16 %v21037_v41, %v21048_v45  ;;  %v21056_v60 = vld [vmem:[#allocation2 + $0x62] sm:$0xff]  ;;  %v11997_v23 = vpack.c.bf16 %v20996_v55, %v20981_v18 }
 0x841   :  { %16378 = vmatprep.subr.bf16.mxu0 %v17074_v62  ;;  %16359 = vmatmul.mubr.bf16.gmra.mxu1 %v21007_v61  ;;  %v17108_v55 = vld [vmem:[#allocation3 + $0xf00] sm:$0xff]   ;;  %v17111_v42 = vld [vmem:[#allocation3 + $0xfb0] sm:$0xff]  }
 0x842   :  { %16407 = vmatpush3.bf16.msra.mxu1 %v17071_v50  ;;  %v21018_v30 = vld [vmem:[#allocation2 + $0xf0] sm:$0xff]  ;;  %16331 = vmatmul.mubr.bf16.gmra.mxu0 %v21011_v57  ;;  %v11791_v50 = vpack.c.bf16 %v20964_v34, %v20947_v12  ;;  %v17086_v12 = vld [vmem:[#allocation3 + $0xe98] sm:$0xff]   ;;  %v21074_v34 = vld [vmem:[#allocation2 + $0xc2] sm:$0xff] }
 0x843   :  { %v21024_v16 = vpack.c.bf16 %v21018_v30, %v21016_v1  ;;  %16408 = vmatprep.subr.bf16.mxu1 %v17073_v19  ;;  %16382 = vmatprep.mubr.bf16.mxu0 %v11587_v14  ;;  %v17085_v14 = vld [vmem:[#allocation3 + $0xee0] sm:$0xff]  }
 0x844   :  { %16379 = vmatpush3.bf16.msra.mxu0 %v17074_v62  ;;  %v21068_v62 = vpack.c.bf16 %v21064_v58, %v21056_v60  ;;  %v21147_v20 = vld [vmem:[#allocation2 + $0x122] sm:$0xff] }
 0x845   :  { %16380 = vmatprep.subr.bf16.mxu0 %v17076_v13  ;;  %16362 = vmatprep.mubr.bf16.mxu1 %v21024_v16 }
 0x846   :  { %16409 = vmatpush3.bf16.msra.mxu1 %v17073_v19  ;;  %v21027_v0 = vld [vmem:[#allocation2 + $0x100] sm:$0xff] }
 0x847   :  { %v21035_v11 = vpack.c.bf16 %v21029_v56, %v21027_v0  ;;  %16410 = vmatprep.subr.bf16.mxu1 %v17075_v51  ;;  %v17084_v19 = vld [vmem:[#allocation3 + $0xea0] sm:$0xff]   ;;  %v11795_v22 = vpack.c.bf16 %v21027_v0, %v21018_v30  ;;  %v17094_v0 = vld [vmem:[#allocation3 + $0xf38] sm:$0xff]  }
 0x848   :  { %16381 = vmatpush3.bf16.msra.mxu0 %v17076_v13  ;;  %v11792_v13 = vpack.c.bf16 %v21072_v49, %v20966_v54  ;;  %v21111_v30 = vld [vmem:[#allocation2 + $0x120] sm:$0xff] }
 0x849   :  { %16430 = vmatprep.subr.bf16.mxu0 %v17078_v2  ;;  %16363 = vmatmul.mubr.bf16.gmra.mxu1 %v21035_v11 }
 0x84a   :  { %16411 = vmatpush3.bf16.msra.mxu1 %v17075_v51  ;;  %16414 = vmatprep.mubr.bf16.mxu1 %v11789_v36  ;;  %v21078_v51 = vld [vmem:[#allocation2 + $0xf2] sm:$0xff] }
 0x84b   :  { %16412 = vmatprep.subr.bf16.mxu1 %v17077_v24  ;;  %16383 = vmatmul.mubr.bf16.vlgmr.msra.gmra.mxu0 %v21046_v3 }
 0x84c   :  { %16386 = vmatprep.mubr.bf16.mxu0 %v21052_v9  ;;  %16431 = vmatpush3.bf16.msra.mxu0 %v17078_v2  ;;  %v11793_v2 = vpack.c.bf16 %v21000_v8, %v20985_v47  ;;  %v17087_v47 = vld [vmem:[#allocation3 + $0xed8] sm:$0xff]   ;;  %v17090_v8 = vld [vmem:[#allocation3 + $0xe88] sm:$0xff]  }
 0x84d   :  { %16432 = vmatprep.subr.bf16.mxu0 %v17080_v15 }
 0x84e   :  { %16413 = vmatpush3.bf16.msra.mxu1 %v17077_v24  ;;  %v21082_v24 = vld [vmem:[#allocation2 + $0xd2] sm:$0xff] }
 0x84f   :  { %16462 = vmatprep.subr.bf16.mxu1 %v17079_v46  ;;  %v21086_v36 = vpack.c.bf16 %v21082_v24, %v21074_v34 }
 0x850   :  { %16433 = vmatpush3.bf16.msra.mxu0 %v17080_v15  ;;  %v21088_v15 = vld [vmem:[#allocation2 + $0xe2] sm:$0xff] }
 0x851   :  { %16415 = vmatmul.mubr.bf16.vlgmr.msra.gmra.mxu1 %v11790_v27  ;;  %16434 = vmatprep.subr.bf16.mxu0 %v17082_v25  ;;  %v21092_v54 = vpack.c.bf16 %v21078_v51, %v21088_v15  ;;  %v11794_v27 = vpack.c.bf16 %v21016_v1, %v21002_v43  ;;  %v11991_v43 = vpack.c.bf16 %v20861_v39, %v20842_v52  ;;  %v17091_v1 = vld [vmem:[#allocation3 + $0xec8] sm:$0xff]   ;;  %v17096_v52 = vld [vmem:[#allocation3 + $0xf30] sm:$0xff]  }
 0x852   :  { %16418 = vmatprep.mubr.bf16.mxu1 %v11791_v50  ;;  %16463 = vmatpush3.bf16.msra.mxu1 %v17079_v46  ;;  %v17088_v46 = vld [vmem:[#allocation3 + $0xe90] sm:$0xff]   ;;  %v11993_v39 = vpack.c.bf16 %v20910_v53, %v20887_v28  ;;  %v17100_v28 = vld [vmem:[#allocation3 + $0xf20] sm:$0xff]   ;;  %v17102_v53 = vld [vmem:[#allocation3 + $0xf18] sm:$0xff]  }
 0x853   :  { %16464 = vmatprep.subr.bf16.mxu1 %v17081_v5  ;;  %16387 = vmatmul.mubr.bf16.gmra.mxu0 %v21068_v62  ;;  %v21102_v50 = vld [vmem:[#allocation2 + $0x112] sm:$0xff] }
 0x854   :  { %16390 = vmatprep.mubr.bf16.mxu0 %v11591_v48  ;;  %16435 = vmatpush3.bf16.msra.mxu0 %v17082_v25  ;;  %v21096_v25 = vld [vmem:[#allocation2 + $0x102] sm:$0xff] }
 0x855   :  { %16436 = vmatprep.subr.bf16.mxu0 %v17084_v19  ;;  %v17092_v48 = vld [vmem:[#allocation3 + $0xe80] sm:$0xff]  }
 0x856   :  { %16465 = vmatpush3.bf16.msra.mxu1 %v17081_v5  ;;  %v17089_v5 = vld [vmem:[#allocation3 + $0xed0] sm:$0xff]  }
 0x857   :  { %16466 = vmatprep.subr.bf16.mxu1 %v17083_v35 }
 0x858   :  { %16437 = vmatpush3.bf16.msra.mxu0 %v17084_v19  ;;  %v21106_v19 = vpack.c.bf16 %v21102_v50, %v21096_v25 }
 0x859   :  { %16419 = vmatmul.mubr.bf16.gmra.mxu1 %v11792_v13  ;;  %16438 = vmatprep.subr.bf16.mxu0 %v17086_v12  ;;  %v12193_v13 = vpack.c.bf16 %v21031_v7, %v21013_v44  ;;  %v12194_v44 = vpack.c.bf16 %v21048_v45, %v21041_v38  ;;  %v17097_v7 = vld [vmem:[#allocation3 + $0xf70] sm:$0xff]   ;;  %v17101_v38 = vld [vmem:[#allocation3 + $0xf60] sm:$0xff]   ;;  %v12197_v45 = vpack.c.bf16 %v21074_v34, %v21060_v10 }
 0x85a   :  { %16422 = vmatprep.mubr.bf16.mxu1 %v11793_v2  ;;  %16467 = vmatpush3.bf16.msra.mxu1 %v17083_v35  ;;  %v11796_v35 = vpack.c.bf16 %v21111_v30, %v21029_v56  ;;  %v17095_v56 = vld [vmem:[#allocation3 + $0xf78] sm:$0xff]   ;;  %v12195_v2 = vpack.c.bf16 %v21056_v60, %v21037_v41  ;;  %v12198_v10 = vpack.c.bf16 %v21088_v15, %v21082_v24  ;;  %v17105_v34 = vld [vmem:[#allocation3 + $0xf50] sm:$0xff]  }
 0x85b   :  { %16468 = vmatprep.subr.bf16.mxu1 %v17085_v14  ;;  %16391 = vmatmul.mubr.bf16.gmra.mxu0 %v21086_v36  ;;  %v17103_v60 = vld [vmem:[#allocation3 + $0xf58] sm:$0xff]   ;;  %v12200_v24 = vpack.c.bf16 %v21147_v20, %v21102_v50 }
 0x85c   :  { %16394 = vmatprep.mubr.bf16.mxu0 %v21092_v54  ;;  %16439 = vmatpush3.bf16.msra.mxu0 %v17086_v12  ;;  %v17093_v12 = vld [vmem:[#allocation3 + $0xec0] sm:$0xff]   ;;  %v12565_v15 = vld [vmem:[#allocation2 + $0x31] sm:$0xff] }
 0x85d   :  { %16440 = vmatprep.subr.bf16.mxu0 %v17088_v46 }
 0x85e   :  { %16469 = vmatpush3.bf16.msra.mxu1 %v17085_v14  ;;  %v17098_v14 = vld [vmem:[#allocation3 + $0xf28] sm:$0xff]  }
 0x85f   :  { %16470 = vmatprep.subr.bf16.mxu1 %v17087_v47 }
 0x860   :  { %16441 = vmatpush3.bf16.msra.mxu0 %v17088_v46  ;;  %v12199_v46 = vpack.c.bf16 %v21096_v25, %v21078_v51  ;;  %v17110_v51 = vld [vmem:[#allocation3 + $0xfb8] sm:$0xff]   ;;  %v17112_v25 = vld [vmem:[#allocation3 + $0xfa8] sm:$0xff]  }
 0x861   :  { %16423 = vmatmul.mubr.bf16.gmra.mxu1 %v11794_v27  ;;  %16442 = vmatprep.subr.bf16.mxu0 %v17090_v8  ;;  %v12566_v27 = vld [vmem:[#allocation2 + $0x41] sm:$0xff] }
 0x862   :  { %16426 = vmatprep.mubr.bf16.mxu1 %v11795_v22  ;;  %16471 = vmatpush3.bf16.msra.mxu1 %v17087_v47  ;;  %v17109_v47 = vld [vmem:[#allocation3 + $0xf40] sm:$0xff]   ;;  %v12569_v22 = vld [vmem:[#allocation2 + $0x71] sm:$0xff] }
 0x863   :  { %16472 = vmatprep.subr.bf16.mxu1 %v17089_v5  ;;  %16395 = vmatmul.mubr.bf16.gmra.mxu0 %v21106_v19 }
 0x864   :  { %16443 = vmatpush3.bf16.msra.mxu0 %v17090_v8  ;;  %16446 = vmatprep.mubr.bf16.mxu0 %v11991_v43  ;;  %v12571_v43 = vld [vmem:[#allocation2 + $0x91] sm:$0xff] }
 0x865   :  { %16444 = vmatprep.subr.bf16.mxu0 %v17092_v48 }
 0x866   :  { %16473 = vmatpush3.bf16.msra.mxu1 %v17089_v5 }
 0x867   :  { %16474 = vmatprep.subr.bf16.mxu1 %v17091_v1 }
 0x868   :  { %16445 = vmatpush3.bf16.msra.mxu0 %v17092_v48  ;;  %v12398_v48 = vpack.c.bf16 %v20900_v31, %v21072_v49  ;;  %v17115_v49 = vld [vmem:[#allocation3 + $0xf90] sm:$0xff]  }
 0x869   :  { %16427 = vmatmul.mubr.bf16.gmra.mxu1 %v11796_v35  ;;  %16494 = vmatprep.subr.bf16.mxu0 %v17094_v0 }
 0x86a   :  { %16475 = vmatpush3.bf16.msra.mxu1 %v17091_v1  ;;  %16478 = vmatprep.mubr.bf16.mxu1 %v12193_v13  ;;  %v12573_v1 = vld [vmem:[#allocation2 + $0xd1] sm:$0xff]  ;;  %v12574_v13 = vld [vmem:[#allocation2 + $0xe1] sm:$0xff] }
 0x86b   :  { %16476 = vmatprep.subr.bf16.mxu1 %v17093_v12  ;;  %16447 = vmatmul.mubr.bf16.vlgmr.msra.gmra.mxu0 %v11992_v33  ;;  %v21129_v33 = vld [vmem:[#allocation2 + $0x82] sm:$0xff] }
 0x86c   :  { %16450 = vmatprep.mubr.bf16.mxu0 %v11993_v39  ;;  %16495 = vmatpush3.bf16.msra.mxu0 %v17094_v0  ;;  %v12196_v41 = vpack.c.bf16 %v21129_v33, %v21064_v58  ;;  %v17106_v58 = vld [vmem:[#allocation3 + $0xf08] sm:$0xff]   ;;  %v17114_v0 = vld [vmem:[#allocation3 + $0xf98] sm:$0xff]   ;;  %v17117_v39 = vld [vmem:[#allocation3 + $0xf80] sm:$0xff]  }
 0x86d   :  { %16496 = vmatprep.subr.bf16.mxu0 %v17096_v52 }
 0x86e   :  { %16477 = vmatpush3.bf16.msra.mxu1 %v17093_v12  ;;  %v12601_v12 = vpack.c.bf16 %v12573_v1, %v20960_v17  ;;  %v12402_v17 = vpack.c.bf16 %v20900_v31, %v21111_v30  ;;  %v12773_v31 = vld [vmem:[#allocation2 + $0x92] sm:$0xff] }
 0x86f   :  { %16526 = vmatprep.subr.bf16.mxu1 %v17095_v56 }
 0x870   :  { %16497 = vmatpush3.bf16.msra.mxu0 %v17096_v52  ;;  %v12602_v52 = vpack.c.bf16 %v20981_v18, %v12574_v13 }
 0x871   :  { %16479 = vmatmul.mubr.bf16.vlgmr.msra.gmra.mxu1 %v12194_v44  ;;  %16498 = vmatprep.subr.bf16.mxu0 %v17098_v14 }
 0x872   :  { %16482 = vmatprep.mubr.bf16.mxu1 %v12195_v2  ;;  %16527 = vmatpush3.bf16.msra.mxu1 %v17095_v56 }
 0x873   :  { %16528 = vmatprep.subr.bf16.mxu1 %v17097_v7  ;;  %16451 = vmatmul.mubr.bf16.gmra.mxu0 %v20920_v40  ;;  %v17104_v40 = vld [vmem:[#allocation3 + $0xf10] sm:$0xff]  }
 0x874   :  { %16454 = vmatprep.mubr.bf16.mxu0 %v11995_v63  ;;  %16499 = vmatpush3.bf16.msra.mxu0 %v17098_v14 }
 0x875   :  { %16500 = vmatprep.subr.bf16.mxu0 %v17100_v28 }
 0x876   :  { %16529 = vmatpush3.bf16.msra.mxu1 %v17097_v7 }
 0x877   :  { %16530 = vmatprep.subr.bf16.mxu1 %v17099_v4 }
 0x878   :  { %16501 = vmatpush3.bf16.msra.mxu0 %v17100_v28 }
 0x879   :  { %16483 = vmatmul.mubr.bf16.gmra.mxu1 %v12196_v41  ;;  %16502 = vmatprep.subr.bf16.mxu0 %v17102_v53 }
 0x87a   :  { %16486 = vmatprep.mubr.bf16.mxu1 %v12197_v45  ;;  %16531 = vmatpush3.bf16.msra.mxu1 %v17099_v4 }
 0x87b   :  { %16532 = vmatprep.subr.bf16.mxu1 %v17101_v38  ;;  %16455 = vmatmul.mubr.bf16.gmra.mxu0 %v11996_v6  ;;  %v12564_v6 = vld [vmem:[#allocation2 + $0x21] sm:$0xff] }
 0x87c   :  { %16458 = vmatprep.mubr.bf16.mxu0 %v11997_v23  ;;  %16503 = vmatpush3.bf16.msra.mxu0 %v17102_v53  ;;  %v12597_v8 = vpack.c.bf16 %v12565_v15, %v12564_v6 }
 0x87d   :  { %16504 = vmatprep.subr.bf16.mxu0 %v17104_v40 }
 0x87e   :  { %16533 = vmatpush3.bf16.msra.mxu1 %v17101_v38 }
 0x87f   :  { %16534 = vmatprep.subr.bf16.mxu1 %v17103_v60 }
 0x880   :  { %16505 = vmatpush3.bf16.msra.mxu0 %v17104_v40 }
 0x881   :  { %16487 = vmatmul.mubr.bf16.gmra.mxu1 %v12198_v10  ;;  %16506 = vmatprep.subr.bf16.mxu0 %v17106_v58 }
 0x882   :  { %16490 = vmatprep.mubr.bf16.mxu1 %v12199_v46  ;;  %16535 = vmatpush3.bf16.msra.mxu1 %v17103_v60 }
 0x883   :  { %16536 = vmatprep.subr.bf16.mxu1 %v17105_v34  ;;  %16459 = vmatmul.mubr.bf16.gmra.mxu0 %v11998_v32  ;;  %v12568_v32 = vld [vmem:[#allocation2 + $0x61] sm:$0xff] }
 0x884   :  { %16507 = vmatpush3.bf16.msra.mxu0 %v17106_v58  ;;  %16510 = vmatprep.mubr.bf16.mxu0 %v20928_v59  ;;  %v12567_v59 = vld [vmem:[#allocation2 + $0x51] sm:$0xff]  ;;  %v12599_v50 = vpack.c.bf16 %v12569_v22, %v12568_v32 }
 0x885   :  { %16508 = vmatprep.subr.bf16.mxu0 %v17108_v55  ;;  %v12598_v5 = vpack.c.bf16 %v12567_v59, %v12566_v27 }
 0x886   :  { %16537 = vmatpush3.bf16.msra.mxu1 %v17105_v34 }
 0x887   :  { %16538 = vmatprep.subr.bf16.mxu1 %v17107_v21 }
 0x888   :  { %16509 = vmatpush3.bf16.msra.mxu0 %v17108_v55 }
 0x889   :  { %16491 = vmatmul.mubr.bf16.gmra.mxu1 %v12200_v24  ;;  %16558 = vmatprep.subr.bf16.mxu0 %v17110_v51 }
 0x88a   :  { %16539 = vmatpush3.bf16.msra.mxu1 %v17107_v21  ;;  %16542 = vmatprep.mubr.bf16.mxu1 %v12597_v8 }
 0x88b   :  { %16540 = vmatprep.subr.bf16.mxu1 %v17109_v47  ;;  %16511 = vmatmul.mubr.bf16.vlgmr.msra.gmra.mxu0 %v20955_v26  ;;  %v17113_v26 = vld [vmem:[#allocation3 + $0xfa0] sm:$0xff]  }
 0x88c   :  { %16514 = vmatprep.mubr.bf16.mxu0 %v20976_v29  ;;  %16559 = vmatpush3.bf16.msra.mxu0 %v17110_v51  ;;  %v12570_v29 = vld [vmem:[#allocation2 + $0x81] sm:$0xff] }
 0x88d   :  { %16560 = vmatprep.subr.bf16.mxu0 %v17111_v42  ;;  %v12600_v35 = vpack.c.bf16 %v12571_v43, %v12570_v29 }
 0x88e   :  { %16541 = vmatpush3.bf16.msra.mxu1 %v17109_v47 }
 0x88f   :  { %16590 = vmatprep.subr.bf16.mxu1 %v17110_v51 }
 0x890   :  { %16561 = vmatpush3.bf16.msra.mxu0 %v17111_v42 }
 0x891   :  { %16543 = vmatmul.mubr.bf16.vlgmr.msra.gmra.mxu1 %v12598_v5  ;;  %16562 = vmatprep.subr.bf16.mxu0 %v17112_v25 }
 0x892   :  { %16546 = vmatprep.mubr.bf16.mxu1 %v12599_v50  ;;  %16598 = vmatpush3.bf16.msra.mxu1 %v17110_v51 }
 0x893   :  { %16591 = vmatprep.subr.bf16.mxu1 %v17111_v42  ;;  %16515 = vmatmul.mubr.bf16.gmra.mxu0 %v12398_v48 }
 0x894   :  { %16518 = vmatprep.mubr.bf16.mxu0 %v21007_v61  ;;  %16563 = vmatpush3.bf16.msra.mxu0 %v17112_v25  ;;  %v17116_v61 = vld [vmem:[#allocation3 + $0xf88] sm:$0xff]  }
 0x895   :  { %16564 = vmatprep.subr.bf16.mxu0 %v17113_v26 }
 0x896   :  { %16599 = vmatpush3.bf16.msra.mxu1 %v17111_v42 }
 0x897   :  { %16592 = vmatprep.subr.bf16.mxu1 %v17112_v25 }
 0x898   :  { %16565 = vmatpush3.bf16.msra.mxu0 %v17113_v26 }
 0x899   :  { %16547 = vmatmul.mubr.bf16.gmra.mxu1 %v12600_v35  ;;  %16566 = vmatprep.subr.bf16.mxu0 %v17114_v0 }
 0x89a   :  { %16550 = vmatprep.mubr.bf16.mxu1 %v12601_v12  ;;  %16600 = vmatpush3.bf16.msra.mxu1 %v17112_v25 }
 0x89b   :  { %16593 = vmatprep.subr.bf16.mxu1 %v17113_v26  ;;  %16519 = vmatmul.mubr.bf16.gmra.mxu0 %v21024_v16  ;;  %v12579_v16 = vld [vmem:[#allocation2 + $0x131] sm:$0xff] }
 0x89c   :  { %16522 = vmatprep.mubr.bf16.mxu0 %v21035_v11  ;;  %16567 = vmatpush3.bf16.msra.mxu0 %v17114_v0  ;;  %v12604_v18 = vpack.c.bf16 %v12579_v16, %v20988_v37  ;;  %v12781_v37 = vld [vmem:[#allocation2 + $0x132] sm:$0xff] }
 0x89d   :  { %16568 = vmatprep.subr.bf16.mxu0 %v17115_v49  ;;  %v12806_v11 = vpack.c.bf16 %v12781_v37, %v21147_v20 }
 0x89e   :  { %16601 = vmatpush3.bf16.msra.mxu1 %v17113_v26 }
 0x89f   :  { %16594 = vmatprep.subr.bf16.mxu1 %v17114_v0 }
 0x8a0   :  { %16569 = vmatpush3.bf16.msra.mxu0 %v17115_v49 }
 0x8a1   :  { %16551 = vmatmul.mubr.bf16.gmra.mxu1 %v12602_v52  ;;  %16570 = vmatprep.subr.bf16.mxu0 %v17116_v61 }
 0x8a2   :  { %16554 = vmatprep.mubr.bf16.mxu1 %v21011_v57  ;;  %16602 = vmatpush3.bf16.msra.mxu1 %v17114_v0  ;;  %v12802_v57 = vpack.c.bf16 %v12773_v31, %v21129_v33 }
 0x8a3   :  { %16595 = vmatprep.subr.bf16.mxu1 %v17115_v49  ;;  %16523 = vmatmul.mubr.bf16.gmra.mxu0 %v12402_v17 }
 0x8a4   :  { %16571 = vmatpush3.bf16.msra.mxu0 %v17116_v61  ;;  %16574 = vmatprep.mubr.bf16.mxu0 %v21046_v3 }
 0x8a5   :  { %16572 = vmatprep.subr.bf16.mxu0 %v17117_v39 }
 0x8a6   :  { %16603 = vmatpush3.bf16.msra.mxu1 %v17115_v49 }
 0x8a7   :  { %16596 = vmatprep.subr.bf16.mxu1 %v17116_v61 }
 0x8a8   :  { %16573 = vmatpush3.bf16.msra.mxu0 %v17117_v39 }
 0x8a9   :  { %16555 = vmatmul.mubr.bf16.gmra.mxu1 %v12604_v18 }
 0x8aa   :  { %16604 = vmatpush3.bf16.msra.mxu1 %v17116_v61  ;;  %16582 = vmatprep.mubr.bf16.mxu1 %v21086_v36 }
 0x8ab   :  { %16597 = vmatprep.subr.bf16.mxu1 %v17117_v39  ;;  %16575 = vmatmul.mubr.bf16.vlgmr.msra.gmra.mxu0 %v21052_v9 }
 0x8ac   :  { %16578 = vmatprep.mubr.bf16.mxu0 %v21068_v62 }
 0x8ae   :  { %16605 = vmatpush3.bf16.msra.mxu1 %v17117_v39 }
 0x8b1   :  { %16583 = vmatmul.mubr.bf16.vlgmr.msra.gmra.mxu1 %v21092_v54 }
 0x8b2   :  { %16586 = vmatprep.mubr.bf16.mxu1 %v21106_v19 }
 0x8b3   :  { %16579 = vmatmul.mubr.bf16.gmra.mxu0 %v12802_v57 }
 0x8b9   :  { %16587 = vmatmul.mubr.bf16.gmra.mxu1 %v12806_v11 }
 0x8e9   :  { %v16320_v3 = vpop.f32.mrf.mxu0 }
 0x8eb   :  { %v11346_v36 = vpop.f32.mrf.mxu0 }
 0x8ed   :  { %v16321_v30 = vpop.f32.mrf.mxu0 }
 0x8ef   :  { %v11349_v56 = vpop.f32.mrf.mxu0 }
 0x8f1   :  { %v16352_v9 = vpop.f32.mrf.mxu1 }
 0x8f2   :  { %v11500_v14 = vadd.f32 %v16352_v9, %v16320_v3  ;;  %v16324_v62 = vpop.f32.mrf.mxu0 }
 0x8f3   :  { %v11491_v44 = vpop.f32.mrf.mxu1 }
 0x8f4   :  { %v11492_v7 = vadd.f32 %v11491_v44, %v11346_v36  ;;  %v11362_v2 = vpop.f32.mrf.mxu0 }
 0x8f5   :  { %v16353_v54 = vpop.f32.mrf.mxu1 }
 0x8f6   :  { %v11503_v28 = vadd.f32 %v16353_v54, %v16321_v30  ;;  %v16325_v63 = vpop.f32.mrf.mxu0 }
 0x8f7   :  { %v11494_v4 = vpop.f32.mrf.mxu1 }
 0x8f8   :  { %v11495_v19 = vadd.f32 %v11494_v4, %v11349_v56  ;;  %v11365_v33 = vpop.f32.mrf.mxu0 }
 0x8f9   :  { %v16356_v53 = vpop.f32.mrf.mxu1 }
 0x8fa   :  { %v11516_v41 = vadd.f32 %v16356_v53, %v16324_v62  ;;  %v16328_v38 = vpop.f32.mrf.mxu0 }
 0x8fb   :  { %v11507_v45 = vpop.f32.mrf.mxu1 }
 0x8fc   :  { %v11508_v40 = vadd.f32 %v11507_v45, %v11362_v2  ;;  %v11378_v23 = vpop.f32.mrf.mxu0 }
 0x8fd   :  { %v16357_v60 = vpop.f32.mrf.mxu1 }
 0x8fe   :  { %v11519_v58 = vadd.f32 %v16357_v60, %v16325_v63  ;;  %v16329_v10 = vpop.f32.mrf.mxu0 }
 0x8ff   :  { %v11510_v34 = vpop.f32.mrf.mxu1 }
 0x900   :  { %v11511_v46 = vadd.f32 %v11510_v34, %v11365_v33  ;;  %v11381_v55 = vpop.f32.mrf.mxu0 }
 0x901   :  { %v16360_v21 = vpop.f32.mrf.mxu1 }
 0x902   :  { %v11532_v20 = vadd.f32 %v16360_v21, %v16328_v38  ;;  %v16332_v6 = vpop.f32.mrf.mxu0 }
 0x903   :  { %v11523_v51 = vpop.f32.mrf.mxu1 }
 0x904   :  { %v11524_v24 = vadd.f32 %v11523_v51, %v11378_v23  ;;  %v11394_v15 = vpop.f32.mrf.mxu0 }
 0x905   :  { %v16361_v47 = vpop.f32.mrf.mxu1 }
 0x906   :  { %v11535_v8 = vadd.f32 %v16361_v47, %v16329_v10  ;;  %v16333_v42 = vpop.f32.mrf.mxu0 }
 0x907   :  { %v11526_v59 = vpop.f32.mrf.mxu1 }
 0x908   :  { %v11527_v32 = vadd.f32 %v11526_v59, %v11381_v55  ;;  %v11397_v25 = vpop.f32.mrf.mxu0 }
 0x909   :  { %v16364_v27 = vpop.f32.mrf.mxu1 }
 0x90a   :  { %v11548_v5 = vadd.f32 %v16364_v27, %v16332_v6 }
 0x90b   :  { %v11539_v22 = vpop.f32.mrf.mxu1  ;;  %v16384_v50 = vpop.f32.mrf.mxu0 }
 0x90c   :  { %v11540_v48 = vadd.f32 %v11539_v22, %v11394_v15  ;;  %v11742_v26 = vadd.f32 %v16384_v50, %v11500_v14 }
 0x90d   :  { %v16365_v29 = vpop.f32.mrf.mxu1  ;;  %v11677_v43 = vpop.f32.mrf.mxu0 }
 0x90e   :  { %v11551_v1 = vadd.f32 %v16365_v29, %v16333_v42  ;;  %v11740_v0 = vadd.f32 %v11677_v43, %v11492_v7 }
 0x90f   :  { %v11542_v35 = vpop.f32.mrf.mxu1  ;;  %v16385_v12 = vpop.f32.mrf.mxu0 }
 0x910   :  { %v11543_v49 = vadd.f32 %v11542_v35, %v11397_v25  ;;  %v11743_v13 = vadd.f32 %v16385_v12, %v11503_v28 }
 0x911   :  { %v16416_v61 = vpop.f32.mrf.mxu1  ;;  %v11680_v52 = vpop.f32.mrf.mxu0 }
 0x912   :  { %v21173_v17 = vadd.f32 %v16416_v61, %v11742_v26  ;;  %v11741_v39 = vadd.f32 %v11680_v52, %v11495_v19 }
 0x913   :  { %v11879_v16 = vpop.f32.mrf.mxu1  ;;  %v16388_v18 = vpop.f32.mrf.mxu0 }
 0x914   :  { %v21175_v31 = vadd.f32 %v11879_v16, %v11740_v0  ;;  %v11746_v57 = vadd.f32 %v16388_v18, %v11516_v41 }
 0x915   :  { %v16417_v37 = vpop.f32.mrf.mxu1  ;;  %v11693_v11 = vpop.f32.mrf.mxu0 }
 0x916   :  { %v21177_v3 = vadd.f32 %v16417_v37, %v11743_v13  ;;  %v11744_v36 = vadd.f32 %v11693_v11, %v11508_v40 }
 0x917   :  { %v11882_v30 = vpop.f32.mrf.mxu1  ;;  %v16389_v56 = vpop.f32.mrf.mxu0 }
 0x918   :  { %v21179_v9 = vadd.f32 %v11882_v30, %v11741_v39  ;;  %v11747_v14 = vadd.f32 %v16389_v56, %v11519_v58 }
 0x919   :  { %v16420_v62 = vpop.f32.mrf.mxu1  ;;  %v11696_v44 = vpop.f32.mrf.mxu0 }
 0x91a   :  { %v21181_v7 = vadd.f32 %v16420_v62, %v11746_v57  ;;  %v11745_v2 = vadd.f32 %v11696_v44, %v11511_v46 }
 0x91b   :  { %v11895_v54 = vpop.f32.mrf.mxu1  ;;  %v16392_v28 = vpop.f32.mrf.mxu0 }
 0x91c   :  { %v21183_v63 = vadd.f32 %v11895_v54, %v11744_v36  ;;  %v11750_v4 = vadd.f32 %v16392_v28, %v11532_v20 }
 0x91d   :  { %v16421_v19 = vpop.f32.mrf.mxu1  ;;  %v11709_v33 = vpop.f32.mrf.mxu0 }
 0x91e   :  { %v21185_v53 = vadd.f32 %v16421_v19, %v11747_v14  ;;  %v11748_v41 = vadd.f32 %v11709_v33, %v11524_v24 }
 0x91f   :  { %v11898_v38 = vpop.f32.mrf.mxu1  ;;  %v16393_v45 = vpop.f32.mrf.mxu0 }
 0x920   :  { %v21187_v40 = vadd.f32 %v11898_v38, %v11745_v2  ;;  %v11751_v23 = vadd.f32 %v16393_v45, %v11535_v8 }
 0x921   :  { %v16424_v60 = vpop.f32.mrf.mxu1  ;;  %v11712_v58 = vpop.f32.mrf.mxu0 }
 0x922   :  { %v21189_v10 = vadd.f32 %v16424_v60, %v11750_v4  ;;  %v11749_v34 = vadd.f32 %v11712_v58, %v11527_v32 }
 0x923   :  { %v11911_v46 = vpop.f32.mrf.mxu1  ;;  %v16396_v55 = vpop.f32.mrf.mxu0 }
 0x924   :  { %v21191_v21 = vadd.f32 %v11911_v46, %v11748_v41  ;;  %v11754_v20 = vadd.f32 %v16396_v55, %v11548_v5 }
 0x925   :  { %v16425_v6 = vpop.f32.mrf.mxu1  ;;  %v11725_v51 = vpop.f32.mrf.mxu0 }
 0x926   :  { %v21193_v15 = vadd.f32 %v16425_v6, %v11751_v23  ;;  %v11752_v24 = vadd.f32 %v11725_v51, %v11540_v48 }
 0x927   :  { %v11914_v47 = vpop.f32.mrf.mxu1  ;;  %v16397_v42 = vpop.f32.mrf.mxu0 }
 0x928   :  { %v21195_v59 = vadd.f32 %v11914_v47, %v11749_v34  ;;  %v11755_v8 = vadd.f32 %v16397_v42, %v11551_v1 }
 0x929   :  { %v16428_v25 = vpop.f32.mrf.mxu1  ;;  %v11728_v27 = vpop.f32.mrf.mxu0 }
 0x92a   :  { %v21197_v22 = vadd.f32 %v16428_v25, %v11754_v20  ;;  %v11753_v32 = vadd.f32 %v11728_v27, %v11543_v49 }
 0x92b   :  { %v11927_v50 = vpop.f32.mrf.mxu1  ;;  %v16448_v26 = vpop.f32.mrf.mxu0 }
 0x92c   :  { %v21199_v29 = vadd.f32 %v11927_v50, %v11752_v24 }
 0x92d   :  { %v16429_v5 = vpop.f32.mrf.mxu1  ;;  %v12081_v43 = vpop.f32.mrf.mxu0 }
 0x92e   :  { %v21201_v0 = vadd.f32 %v16429_v5, %v11755_v8 }
 0x92f   :  { %v11930_v35 = vpop.f32.mrf.mxu1  ;;  %v16449_v48 = vpop.f32.mrf.mxu0 }
 0x930   :  { %v21203_v12 = vadd.f32 %v11930_v35, %v11753_v32 }
 0x931   :  { %v16480_v13 = vpop.f32.mrf.mxu1  ;;  %v12084_v61 = vpop.f32.mrf.mxu0 }
 0x932   :  { %21894 = vst [vmem:[#allocation25_spill] sm:$0xff] %v21203_v12 }
 0x933   :  { %v12283_v1 = vpop.f32.mrf.mxu1  ;;  %v16452_v52 = vpop.f32.mrf.mxu0 }
 0x935   :  { %v16481_v39 = vpop.f32.mrf.mxu1  ;;  %v12097_v16 = vpop.f32.mrf.mxu0 }
 0x937   :  { %v12286_v18 = vpop.f32.mrf.mxu1  ;;  %v16453_v49 = vpop.f32.mrf.mxu0 }
 0x939   :  { %v16484_v57 = vpop.f32.mrf.mxu1  ;;  %v12100_v37 = vpop.f32.mrf.mxu0 }
 0x93b   :  { %v12299_v11 = vpop.f32.mrf.mxu1  ;;  %v16456_v36 = vpop.f32.mrf.mxu0 }
 0x93d   :  { %v16485_v30 = vpop.f32.mrf.mxu1  ;;  %v12113_v56 = vpop.f32.mrf.mxu0 }
 0x93f   :  { %v12302_v14 = vpop.f32.mrf.mxu1  ;;  %v16457_v62 = vpop.f32.mrf.mxu0 }
 0x941   :  { %v16488_v44 = vpop.f32.mrf.mxu1  ;;  %v12116_v2 = vpop.f32.mrf.mxu0 }
 0x943   :  { %v12315_v54 = vpop.f32.mrf.mxu1  ;;  %v16460_v28 = vpop.f32.mrf.mxu0 }
 0x945   :  { %v16489_v4 = vpop.f32.mrf.mxu1  ;;  %v12129_v19 = vpop.f32.mrf.mxu0 }
 0x947   :  { %v12318_v33 = vpop.f32.mrf.mxu1  ;;  %v16461_v41 = vpop.f32.mrf.mxu0 }
 0x949   :  { %v16492_v38 = vpop.f32.mrf.mxu1  ;;  %v12132_v45 = vpop.f32.mrf.mxu0 }
 0x94b   :  { %v21205_v23 = vpop.f32.mrf.mxu1  ;;  %v16512_v60 = vpop.f32.mrf.mxu0 }
 0x94c   :  { %21895 = vst [vmem:[#allocation39_spill] sm:$0xff] %v21205_v23 }
 0x94d   :  { %v16493_v58 = vpop.f32.mrf.mxu1  ;;  %v12485_v34 = vpop.f32.mrf.mxu0 }
 0x94f   :  { %v21207_v46 = vpop.f32.mrf.mxu1  ;;  %v16513_v55 = vpop.f32.mrf.mxu0 }
 0x950   :  { %21896 = vst [vmem:[#allocation52_spill] sm:$0xff] %v21207_v46 }
 0x951   :  { %v16544_v20 = vpop.f32.mrf.mxu1  ;;  %v12488_v6 = vpop.f32.mrf.mxu0 }
 0x953   :  { %v12687_v51 = vpop.f32.mrf.mxu1  ;;  %v16516_v24 = vpop.f32.mrf.mxu0 }
 0x955   :  { %v21209_v47 = vpop.f32.mrf.mxu1  ;;  %v21211_v42 = vpop.f32.mrf.mxu0 }
 0x956   :  { %21897 = vst [vmem:[#allocation56_spill] sm:$0xff] %v21209_v47  ;;  %21898 = vst [vmem:[#allocation27_spill] sm:$0xff] %v21211_v42 }
 0x957   :  { %v21213_v8 = vpop.f32.mrf.mxu1  ;;  %v21215_v25 = vpop.f32.mrf.mxu0 }
 0x958   :  { %21899 = vst [vmem:[#allocation64_spill] sm:$0xff] %v21213_v8  ;;  %21900 = vst [vmem:[#allocation23_spill] sm:$0xff] %v21215_v25  ;;  %v12146_v8 = vadd.f32 %v16448_v26, %v21173_v17  ;;  %v12144_v25 = vadd.f32 %v12081_v43, %v21175_v31  ;;  %v12148_v17 = vadd.f32 %v12097_v16, %v21183_v63 }
 0x959   :  { %v21217_v27 = vpop.f32.mrf.mxu1  ;;  %v21219_v32 = vpop.f32.mrf.mxu0  ;;  %v12151_v31 = vadd.f32 %v16453_v49, %v21185_v53  ;;  %v12149_v26 = vadd.f32 %v12100_v37, %v21187_v40  ;;  %v12153_v63 = vadd.f32 %v12116_v2, %v21195_v59  ;;  %v12158_v53 = vadd.f32 %v16460_v28, %v21197_v22  ;;  %v21912_v2 = vld [vmem:[#allocation52_spill] sm:$0xff] }
 0x95a   :  { %21901 = vst [vmem:[#allocation21_spill] sm:$0xff] %v21217_v27  ;;  %21902 = vst [vmem:[#allocation16_spill] sm:$0xff] %v21219_v32  ;;  %v12348_v32 = vadd.f32 %v16480_v13, %v12146_v8 }
 0x95b   :  { %v21221_v50 = vpop.f32.mrf.mxu1  ;;  %v21223_v5 = vpop.f32.mrf.mxu0  ;;  %v12360_v37 = vadd.f32 %v16492_v38, %v12158_v53 }
 0x95c   :  { %21903 = vst [vmem:[#allocation55_spill] sm:$0xff] %v21221_v50  ;;  %21904 = vst [vmem:[#allocation60_spill] sm:$0xff] %v21223_v5  ;;  %v12147_v50 = vadd.f32 %v16449_v48, %v21177_v3  ;;  %v12346_v5 = vadd.f32 %v12283_v1, %v12144_v25  ;;  %v12154_v3 = vadd.f32 %v16456_v36, %v21189_v10 }
 0x95d   :  { %v21225_v35 = vpop.f32.mrf.mxu1  ;;  %v21227_v46 = vpop.f32.mrf.mxu0  ;;  %v12152_v48 = vadd.f32 %v12113_v56, %v21191_v21  ;;  %v12351_v1 = vadd.f32 %v12302_v14, %v12149_v26  ;;  %v12156_v10 = vadd.f32 %v12129_v19, %v21199_v29  ;;  %v12159_v21 = vadd.f32 %v16461_v41, %v21201_v0  ;;  %v21911_v14 = vld [vmem:[#allocation39_spill] sm:$0xff] }
 0x95e   :  { %21905 = vst [vmem:[#allocation48_spill] sm:$0xff] %v21225_v35  ;;  %21906 = vst [vmem:[#allocation29_spill] sm:$0xff] %v21227_v46  ;;  %v12145_v35 = vadd.f32 %v12084_v61, %v21179_v9  ;;  %v12150_v46 = vadd.f32 %v16452_v52, %v21181_v7  ;;  %v12350_v7 = vadd.f32 %v12299_v11, %v12148_v17  ;;  %v21910_v11 = vld [vmem:[#allocation25_spill] sm:$0xff]  ;;  %v21259_v41 = vld [vmem:[#allocation6 + $0x6] ss:$0 sm:$0xff] }
 0x95f   :  { %v21229_v23 = vpop.f32.mrf.mxu1  ;;  %v21231_v47 = vpop.f32.mrf.mxu0  ;;  %v12353_v61 = vadd.f32 %v16485_v30, %v12151_v31  ;;  %v12155_v52 = vadd.f32 %v16457_v62, %v21193_v15  ;;  %v12354_v8 = vadd.f32 %v12315_v54, %v12152_v48  ;;  %v12550_v49 = vadd.f32 %v16512_v60, %v12348_v32  ;;  %v21916_v32 = vld [vmem:[#allocation64_spill] sm:$0xff] }
 0x960   :  { %21907 = vst [vmem:[#allocation24_spill] sm:$0xff] %v21229_v23  ;;  %21908 = vst [vmem:[#allocation36_spill] sm:$0xff] %v21231_v47  ;;  %v12349_v47 = vadd.f32 %v16481_v39, %v12147_v50  ;;  %v12347_v43 = vadd.f32 %v12286_v18, %v12145_v35  ;;  %v12356_v39 = vadd.f32 %v16488_v44, %v12154_v3 }
 0x961   :  { %v21235_v42 = vpop.f32.mrf.mxu1  ;;  %v21237_v27 = vpop.f32.mrf.mxu0  ;;  %v12357_v18 = vadd.f32 %v16489_v4, %v12155_v52  ;;  %v12157_v36 = vadd.f32 %v12132_v45, %v21910_v11  ;;  %v12548_v30 = vadd.f32 %v12485_v34, %v12346_v5  ;;  %v12358_v62 = vadd.f32 %v21911_v14, %v12156_v10  ;;  %v21914_v45 = vld [vmem:[#allocation27_spill] sm:$0xff] }
 0x962   :  { %21909 = vst [vmem:[#allocation18_spill] sm:$0xff] %v21237_v27  ;;  %v12352_v27 = vadd.f32 %v16484_v57, %v12150_v46  ;;  %v12355_v57 = vadd.f32 %v12318_v33, %v12153_v63  ;;  %v12361_v59 = vadd.f32 %v16493_v58, %v12159_v21  ;;  %v12752_v44 = vadd.f32 %v16544_v20, %v12550_v49  ;;  %v21913_v33 = vld [vmem:[#allocation56_spill] sm:$0xff]  ;;  %v21915_v34 = vld [vmem:[#allocation23_spill] sm:$0xff]  ;;  %v21917_v20 = vld [vmem:[#allocation21_spill] sm:$0xff] }
 0x963   :  { %v21242_v12 = vpop.f32.mrf.mxu1  ;;  %v21244_v23 = vpop.f32.mrf.mxu0  ;;  %v12551_v22 = vadd.f32 %v16513_v55, %v12349_v47  ;;  %v12359_v54 = vadd.f32 %v21912_v2, %v12157_v36  ;;  %v12750_v28 = vadd.f32 %v12687_v51, %v12548_v30  ;;  %v12549_v4 = vadd.f32 %v12488_v6, %v12347_v43  ;;  %v21918_v47 = vld [vmem:[#allocation16_spill] sm:$0xff]  ;;  %v21920_v5 = vld [vmem:[#allocation55_spill] sm:$0xff]  ;;  %v21926_v49 = vld [vmem:[#allocation30_spill] sm:$0xff] }
 0x964   :  { %v12554_v29 = vadd.f32 %v16516_v24, %v12352_v27  ;;  %v12552_v60 = vadd.f32 %v21914_v45, %v12350_v7  ;;  %v12555_v46 = vadd.f32 %v21915_v34, %v12353_v61  ;;  %v12553_v50 = vadd.f32 %v21918_v47, %v12351_v1  ;;  %v21919_v51 = vld [vmem:[#allocation60_spill] sm:$0xff] }
 0x965   :  { %v16553_v9 = vpop.f32.mrf.mxu1  ;;  %v12533_v13 = vpop.f32.mrf.mxu0  ;;  %v12753_v38 = vadd.f32 %v21913_v33, %v12551_v22  ;;  %v12751_v58 = vadd.f32 %v21916_v32, %v12549_v4  ;;  %v12558_v6 = vadd.f32 %v21919_v51, %v12356_v39  ;;  %v21921_v17 = vld [vmem:[#allocation48_spill] sm:$0xff]  ;;  %v21923_v61 = vld [vmem:[#allocation29_spill] sm:$0xff]  ;;  %v12562_v22 = vadd.f32 %v21244_v23, %v12360_v37  ;;  %v21927_v4 = vld [vmem:[#allocation31_spill] sm:$0xff] }
 0x966   :  { %v12756_v55 = vadd.f32 %v21917_v20, %v12554_v29  ;;  %v12754_v35 = vadd.f32 %v21920_v5, %v12552_v60  ;;  %v12757_v31 = vadd.f32 %v21921_v17, %v12555_v46  ;;  %v12556_v52 = vadd.f32 %v21923_v61, %v12354_v8  ;;  %v21930_v51 = vld [vmem:[#allocation37_spill] sm:$0xff] }
 0x967   :  { %v12722_v40 = vpop.f32.mrf.mxu1  ;;  %v16525_v16 = vpop.f32.mrf.mxu0  ;;  %v21922_v3 = vld [vmem:[#allocation24_spill] sm:$0xff]  ;;  %v12760_v7 = vadd.f32 %v21235_v42, %v12558_v6  ;;  %v12560_v42 = vadd.f32 %v12533_v13, %v12358_v62  ;;  %v21928_v13 = vld [vmem:[#allocation17_spill] sm:$0xff] }
 0x968   :  { %v21272_v48 = vadd.f32 %v21922_v3, %v12553_v50  ;;  %v21924_v63 = vld [vmem:[#allocation36_spill] sm:$0xff]  ;;  %v12758_v14 = vadd.f32 %v21242_v12, %v12556_v52  ;;  %v12563_v45 = vadd.f32 %v16525_v16, %v12361_v59  ;;  %v21931_v17 = vld [vmem:[#allocation61_spill] sm:$0xff] }
 0x969   :  { %v16556_v15 = vpop.f32.mrf.mxu1  ;;  %v12536_v56 = vpop.f32.mrf.mxu0  ;;  %v12559_v1 = vadd.f32 %v21924_v63, %v12357_v18  ;;  %v21925_v10 = vld [vmem:[#allocation18_spill] sm:$0xff] }
 0x96a   :  { %v12557_v21 = vadd.f32 %v21925_v10, %v12355_v57  ;;  %v12764_v33 = vadd.f32 %v16556_v15, %v12562_v22  ;;  %v12561_v46 = vadd.f32 %v12536_v56, %v12359_v54  ;;  %v21933_v10 = vld [vmem:[#allocation33_spill] sm:$0xff] }
 0x96b   :  { %v12735_v19 = vpop.f32.mrf.mxu1  ;;  %v16576_v0 = vpop.f32.mrf.mxu0 }
 0x96c   :  { %v12954_v25 = vadd.f32 %v16576_v0, %v12752_v44  ;;  %v12761_v44 = vadd.f32 %v16553_v9, %v12559_v1  ;;  %v12759_v57 = vadd.f32 %v12722_v40, %v12557_v21  ;;  %v12762_v62 = vadd.f32 %v12735_v19, %v12560_v42  ;;  %v21929_v40 = vld [vmem:[#allocation47_spill] sm:$0xff] }
 0x96d   :  { %v16557_v24 = vpop.f32.mrf.mxu1  ;;  %v12889_v27 = vpop.f32.mrf.mxu0 }
 0x96e   :  { %v12975_v26 = vadd.f32 %v21259_v41, %v12954_v25  ;;  %v12952_v43 = vadd.f32 %v12889_v27, %v12750_v28  ;;  %v12765_v50 = vadd.f32 %v16557_v24, %v12563_v45 }
 0x96f   :  { %v21277_v53 = vpop.f32.mrf.mxu1  ;;  %v16577_v39 = vpop.f32.mrf.mxu0 }
 0x970   :  { %v12991_v11 = vadd.f32 %v12975_v26, %v21926_v49  ;;  %v12973_v36 = vadd.f32 %v21259_v41, %v12952_v43  ;;  %v12955_v30 = vadd.f32 %v16577_v39, %v12753_v38 }
 0x971   :  { %v16584_v2 = vpop.f32.mrf.mxu1  ;;  %v12892_v8 = vpop.f32.mrf.mxu0 }
 0x972   :  { %v13007_v28 = vmax.f32 %v12991_v11, 0.0  ;;  %v12962_v18 = vadd.f32 %v16584_v2, %v12760_v7  ;;  %v12989_v29 = vadd.f32 %v12973_v36, %v21927_v4  ;;  %v12976_v0 = vadd.f32 %v21259_v41, %v12955_v30  ;;  %v21932_v7 = vld [vmem:[#allocation22_spill] sm:$0xff] }
 0x973   :  { %v12921_v60 = vpop.f32.mrf.mxu1  ;;  %v12953_v34 = vadd.f32 %v12892_v8, %v12751_v58  ;;  %v16580_v38 = vpop.f32.mrf.mxu0  ;;  %v21934_v36 = vld [vmem:[#allocation58_spill] sm:$0xff] }
 0x974   :  { %13023 = vst [vmem:[#allocation8 + $0x10] sm:$0xff] %v13007_v28  ;;  %v12983_v12 = vadd.f32 %v21259_v41, %v12962_v18  ;;  %v13005_v9 = vmax.f32 %v12989_v29, 0.0  ;;  %v12960_v23 = vadd.f32 %v12921_v60, %v12758_v14  ;;  %v12992_v37 = vadd.f32 %v12976_v0, %v21928_v13  ;;  %v21936_v29 = vld [vmem:[#allocation54_spill] sm:$0xff]  ;;  %v21937_v60 = vld [vmem:[#allocation20_spill] sm:$0xff] }
 0x975   :  { %v16585_v25 = vpop.f32.mrf.mxu1  ;;  %v12974_v32 = vadd.f32 %v21259_v41, %v12953_v34  ;;  %v12958_v20 = vadd.f32 %v16580_v38, %v12756_v55  ;;  %v12905_v47 = vpop.f32.mrf.mxu0  ;;  %v12763_v18 = vadd.f32 %v21277_v53, %v12561_v46 }
 0x976   :  { %v12999_v15 = vadd.f32 %v12983_v12, %v21929_v40  ;;  %13021 = vst [vmem:[#allocation8] sm:$0xff] %v13005_v9  ;;  %v12981_v16 = vadd.f32 %v21259_v41, %v12960_v23  ;;  %v13008_v59 = vmax.f32 %v12992_v37, 0.0  ;;  %v12963_v58 = vadd.f32 %v16585_v25, %v12761_v44  ;;  %v21938_v9 = vld [vmem:[#allocation32_spill] sm:$0xff]  ;;  %v21939_v37 = vld [vmem:[#allocation51_spill] sm:$0xff] }
 0x977   :  { %v12990_v6 = vadd.f32 %v12974_v32, %v21930_v51  ;;  %v12924_v27 = vpop.f32.mrf.mxu1  ;;  %v12979_v5 = vadd.f32 %v21259_v41, %v12958_v20  ;;  %v12956_v19 = vadd.f32 %v12905_v47, %v12754_v35  ;;  %v16581_v56 = vpop.f32.mrf.mxu0  ;;  %v21940_v47 = vld [vmem:[#allocation59_spill] sm:$0xff] }
 0x978   :  { %v13015_v54 = vmax.f32 %v12999_v15, 0.0  ;;  %v12997_v26 = vadd.f32 %v12981_v16, %v21931_v17  ;;  %13024 = vst [vmem:[#allocation8 + $0x18] sm:$0xff] %v13008_v59  ;;  %v12984_v55 = vadd.f32 %v21259_v41, %v12963_v58  ;;  %v12961_v43 = vadd.f32 %v12924_v27, %v12759_v57  ;;  %v21941_v59 = vld [vmem:[#allocation15_spill] sm:$0xff] }
 0x979   :  { %v13006_v3 = vmax.f32 %v12990_v6, 0.0  ;;  %v12995_v61 = vadd.f32 %v12979_v5, %v21932_v7  ;;  %v16588_v52 = vpop.f32.mrf.mxu1  ;;  %v12977_v24 = vadd.f32 %v21259_v41, %v12956_v19  ;;  %v12959_v63 = vadd.f32 %v16581_v56, %v12757_v31  ;;  %v12908_v1 = vpop.f32.mrf.mxu0  ;;  %v21935_v31 = vld [vmem:[#allocation13_spill] sm:$0xff] }
 0x97a   :  { %13031 = vst [vmem:[#allocation8 + $0x50] sm:$0xff] %v13015_v54  ;;  %v13013_v39 = vmax.f32 %v12997_v26, 0.0  ;;  %v13000_v35 = vadd.f32 %v12984_v55, %v21933_v10  ;;  %v12982_v21 = vadd.f32 %v21259_v41, %v12961_v43  ;;  %v12966_v49 = vadd.f32 %v16588_v52, %v12764_v33 }
 0x97b   :  { %13022 = vst [vmem:[#allocation8 + $0x8] sm:$0xff] %v13006_v3  ;;  %v13011_v11 = vmax.f32 %v12995_v61, 0.0  ;;  %v12993_v30 = vadd.f32 %v12977_v24, %v21934_v36  ;;  %v12937_v14 = vpop.f32.mrf.mxu1  ;;  %v12980_v44 = vadd.f32 %v21259_v41, %v12959_v63  ;;  %v12957_v22 = vadd.f32 %v12908_v1, %v21272_v48 }
 0x97c   :  { %13029 = vst [vmem:[#allocation8 + $0x40] sm:$0xff] %v13013_v39  ;;  %v13016_v42 = vmax.f32 %v13000_v35, 0.0  ;;  %v12998_v2 = vadd.f32 %v12982_v21, %v21935_v31  ;;  %v12987_v8 = vadd.f32 %v21259_v41, %v12966_v49  ;;  %v12964_v28 = vadd.f32 %v12937_v14, %v12762_v62 }
 0x97d   :  { %13027 = vst [vmem:[#allocation8 + $0x30] sm:$0xff] %v13011_v11  ;;  %v13009_v4 = vmax.f32 %v12993_v30, 0.0  ;;  %v12996_v0 = vadd.f32 %v12980_v44, %v21936_v29  ;;  %v16589_v57 = vpop.f32.mrf.mxu1  ;;  %v12978_v33 = vadd.f32 %v21259_v41, %v12957_v22 }
 0x97e   :  { %13032 = vst [vmem:[#allocation8 + $0x58] sm:$0xff] %v13016_v42  ;;  %v13014_v45 = vmax.f32 %v12998_v2, 0.0  ;;  %v13003_v48 = vadd.f32 %v12987_v8, %v21937_v60  ;;  %v12985_v34 = vadd.f32 %v21259_v41, %v12964_v28  ;;  %v12967_v38 = vadd.f32 %v16589_v57, %v12765_v50 }
 0x97f   :  { %13025 = vst [vmem:[#allocation8 + $0x20] sm:$0xff] %v13009_v4  ;;  %v13012_v12 = vmax.f32 %v12996_v0, 0.0  ;;  %v12994_v23 = vadd.f32 %v12978_v33, %v21938_v9  ;;  %v12940_v13 = vpop.f32.mrf.mxu1 }
 0x980   :  { %13030 = vst [vmem:[#allocation8 + $0x48] sm:$0xff] %v13014_v45  ;;  %v13019_v53 = vmax.f32 %v13003_v48, 0.0  ;;  %v13001_v62 = vadd.f32 %v12985_v34, %v21939_v37  ;;  %v12988_v46 = vadd.f32 %v21259_v41, %v12967_v38  ;;  %v12965_v25 = vadd.f32 %v12940_v13, %v12763_v18 }
 0x981   :  { %13028 = vst [vmem:[#allocation8 + $0x38] sm:$0xff] %v13012_v12  ;;  %v13010_v32 = vmax.f32 %v12994_v23, 0.0 }
 0x982   :  { %13035 = vst [vmem:[#allocation8 + $0x70] sm:$0xff] %v13019_v53  ;;  %v13017_v20 = vmax.f32 %v13001_v62, 0.0  ;;  %v13004_v40 = vadd.f32 %v12988_v46, %v21940_v47  ;;  %v12986_v15 = vadd.f32 %v21259_v41, %v12965_v25 }
 0x983   :  { %13026 = vst [vmem:[#allocation8 + $0x28] sm:$0xff] %v13010_v32 }
 0x984   :  { %13033 = vst [vmem:[#allocation8 + $0x60] sm:$0xff] %v13017_v20  ;;  %v13020_v16 = vmax.f32 %v13004_v40, 0.0  ;;  %v13002_v58 = vadd.f32 %v12986_v15, %v21941_v59 }
 0x986   :  { %13036 = vst [vmem:[#allocation8 + $0x78] sm:$0xff] %v13020_v16  ;;  %v13018_v50 = vmax.f32 %v13002_v58, 0.0 }
 0x988   :  { %13034 = vst [vmem:[#allocation8 + $0x68] sm:$0xff] %v13018_v50 }
 0x989   :  { %17178 = shalt.err (!%p17175_p0)
}
 0x98a   :  { %s17199_s27 = smov 128   ;;  %s17200_s28 = smov 8  }
 0x98b   :  { %13048 = dma.vmem_to_hbm [thread:$0]  %s13043_s25, 2048, %s21321_s3, [#allocation5], %s17199_s27, %s17199_s27, %s17200_s28  }
 0x98c   :  { %17191 = dma.done.wait [#allocation5], 2048  }
 0x98d   :  { %17192 = vsyncadd [#allocation5], 4294965248 }
 0x98e   :  { %13052 = vsyncpa [#allocation4], 1 }
 0x98f   :  { %13053 = vsyncpa [#allocation7], 1 }
 0x990   :  { %13054 = vsyncpa [#allocation5], 1 }

</bundles_post_ra>
